<compile_context>
chip_gen: v7x
topology: tpu7x:2x2x1
jax: 0.10.0
libtpu: 0.0.40
codegen_flags: <defaults>
</compile_context>

<pallas_src>
import functools
import math

import jax
import jax.numpy as jnp
import numpy as np
from jax.experimental import pallas as pl
from jax.experimental.pallas import tpu as pltpu

TM = 256     # row tile for large-M GEMMs
LANE = 128   # decoder channel padding target (lane-dense stores)


# ----------------------------------------------------------------------------
# Fused linear kernel:  y = act(x @ W + b);  optionally y = LN(y + residual)
# ----------------------------------------------------------------------------
def _make_linear_kernel(act, with_res, with_ln, eps):
    def kernel(*refs):
        it = iter(refs)
        x_ref, w_ref, b_ref = next(it), next(it), next(it)
        res_ref = next(it) if with_res else None
        g_ref = bt_ref = None
        if with_ln:
            g_ref, bt_ref = next(it), next(it)
        o_ref = next(it)

        # bf16 operands, f32 accumulation on the MXU.
        y = jnp.dot(x_ref[...].astype(jnp.bfloat16), w_ref[...],
                    preferred_element_type=jnp.float32) + b_ref[...]
        if act == "relu":
            y = jnp.maximum(y, 0.0)
        if with_res:
            y = y + res_ref[...]
        if with_ln:
            mu = jnp.mean(y, axis=-1, keepdims=True)
            var = jnp.mean(jnp.square(y - mu), axis=-1, keepdims=True)
            y = (y - mu) * jax.lax.rsqrt(var + eps) * g_ref[...] + bt_ref[...]
        o_ref[...] = y.astype(o_ref.dtype)

    return kernel


def pallas_linear(x, w, b, *, act="none", residual=None, ln=None):
    """act(x @ w + b), optionally followed by LayerNorm(. + residual)."""
    x = x.astype(jnp.float32)
    M, K = x.shape
    N = w.shape[1]
    wb = w.astype(jnp.bfloat16)
    b2 = b.reshape(1, N).astype(jnp.float32)
    with_res = residual is not None
    with_ln = ln is not None
    eps = float(ln[2]) if with_ln else 0.0
    kern = _make_linear_kernel(act, with_res, with_ln, eps)

    inputs = [x, wb, b2]
    if with_res:
        inputs.append(residual.astype(jnp.float32))
    if with_ln:
        inputs.append(ln[0].reshape(1, N).astype(jnp.float32))
        inputs.append(ln[1].reshape(1, N).astype(jnp.float32))

    if M <= TM:
        # whole problem resident in VMEM, single step.
        # TODO(synk): for production-size hidden/intermediate dims add K/N
        # tiling (reduction axis last + VMEM f32 accumulator) so the weight
        # block never has to be fully VMEM resident on v7x (64 MiB VMEM).
        return pl.pallas_call(
            kern, out_shape=jax.ShapeDtypeStruct((M, N), jnp.float32)
        )(*inputs)

    in_specs = [
        pl.BlockSpec((TM, K), lambda i: (i, 0)),
        pl.BlockSpec((K, N), lambda i: (0, 0)),
        pl.BlockSpec((1, N), lambda i: (0, 0)),
    ]
    if with_res:
        in_specs.append(pl.BlockSpec((TM, N), lambda i: (i, 0)))
    if with_ln:
        in_specs.append(pl.BlockSpec((1, N), lambda i: (0, 0)))
        in_specs.append(pl.BlockSpec((1, N), lambda i: (0, 0)))
    # No pad/slice round trip: Pallas masks the ragged trailing row block.
    return pl.pallas_call(
        kern,
        out_shape=jax.ShapeDtypeStruct((M, N), jnp.float32),
        grid=(pl.cdiv(M, TM),),
        in_specs=in_specs,
        out_specs=pl.BlockSpec((TM, N), lambda i: (i, 0)),
        compiler_params=pltpu.CompilerParams(dimension_semantics=("parallel",)),
    )(*inputs)


# ----------------------------------------------------------------------------
# Residual-add + LayerNorm (used once, for the positional embedding)
# ----------------------------------------------------------------------------
def _add_ln_kernel(x_ref, r_ref, g_ref, b_ref, o_ref, *, eps):
    x = x_ref[...] + r_ref[...]
    mu = jnp.mean(x, axis=-1, keepdims=True)
    var = jnp.mean(jnp.square(x - mu), axis=-1, keepdims=True)
    o_ref[...] = ((x - mu) * jax.lax.rsqrt(var + eps) * g_ref[...]
                  + b_ref[...]).astype(o_ref.dtype)


def pallas_add_layernorm(x, residual, gamma, beta, eps):
    M, N = x.shape
    kern = functools.partial(_add_ln_kernel, eps=eps)
    return pl.pallas_call(kern, out_shape=jax.ShapeDtypeStruct((M, N), jnp.float32))(
        x.astype(jnp.float32), residual.astype(jnp.float32),
        gamma.reshape(1, N).astype(jnp.float32),
        beta.reshape(1, N).astype(jnp.float32))


# ----------------------------------------------------------------------------
# Attention: all (batch*head) slices in a single kernel call
# ----------------------------------------------------------------------------
def _attn_kernel(q_ref, k_ref, v_ref, o_ref, *, scale):
    q = q_ref[...].astype(jnp.bfloat16)
    k = k_ref[...].astype(jnp.bfloat16)
    v = v_ref[...].astype(jnp.bfloat16)
    s = jnp.einsum("bqd,bkd->bqk", q, k, preferred_element_type=jnp.float32) * scale
    s = s - jnp.max(s, axis=-1, keepdims=True)
    e = jnp.exp(s)
    p = e * pl.reciprocal(jnp.sum(e, axis=-1, keepdims=True), approx=True)
    o = jnp.einsum("bqk,bkd->bqd", p.astype(jnp.bfloat16), v,
                   preferred_element_type=jnp.float32)
    o_ref[...] = o.astype(o_ref.dtype)


def pallas_attention(q, k, v, scale):
    BH, S, D = q.shape
    kern = functools.partial(_attn_kernel, scale=scale)
    # TODO(synk): for long sequences switch to a flash-style tiled kernel; at
    # SETR patch counts the whole problem is a few KB so one block is optimal.
    return pl.pallas_call(kern, out_shape=jax.ShapeDtypeStruct((BH, S, D), jnp.float32))(
        q.astype(jnp.float32), k.astype(jnp.float32), v.astype(jnp.float32))


# ----------------------------------------------------------------------------
# Decoder kernels: Conv3x3(pad=1) + folded BN + ReLU (+ bilinear x2 upsample)
# ----------------------------------------------------------------------------
def _upsample_taps(n_in):
    """Per-output-row (i0, i1, w0, w1) for x2 bilinear, align_corners=False."""
    taps = []
    for o in range(2 * n_in):
        c = max((o + 0.5) * 0.5 - 0.5, 0.0)
        i0 = min(int(math.floor(c)), n_in - 1)
        i1 = min(i0 + 1, n_in - 1)
        lam = c - i0
        taps.append((i0, i1, 1.0 - lam, lam))
    return tuple(taps)


def _bilinear_matrix_x2(n_in):
    m = np.zeros((2 * n_in, n_in), np.float32)
    for o, (i0, i1, w0, w1) in enumerate(_upsample_taps(n_in)):
        m[o, i0] += w0
        m[o, i1] += w1
    return jnp.asarray(m)


def _make_conv_bn_relu_up_kernel(H, W, taps):
    """One image: conv3x3 (implicit im2col) + scale/shift + ReLU + x2 upsample."""
    def kernel(x_ref, w_ref, s_ref, b_ref, lw_ref, o_ref, t_ref):
        Cp = w_ref.shape[-1]

        @pl.loop(0, H)
        def _(y):
            acc = jnp.zeros((W, Cp), jnp.float32)
            for ky in range(3):
                for kx in range(3):
                    lhs = x_ref[0, y + ky, kx:kx + W, :].astype(jnp.bfloat16)
                    acc += jnp.dot(lhs, w_ref[ky * 3 + kx],
                                   preferred_element_type=jnp.float32)
            r = jnp.maximum(acc * s_ref[...] + b_ref[...], 0.0)
            # width interpolation on the MXU; interpolated row -> VMEM scratch
            t_ref[y] = jnp.dot(lw_ref[...], r, preferred_element_type=jnp.float32)

        # height interpolation: static two-tap blend per output row
        for yo, (i0, i1, w0, w1) in enumerate(taps):
            o_ref[0, yo] = (w0 * t_ref[i0] + w1 * t_ref[i1]).astype(o_ref.dtype)

    return kernel


def _make_conv_kernel(H, W, relu):
    """One image: conv3x3 (implicit im2col) + per-channel scale/shift (+ReLU)."""
    def kernel(x_ref, w_ref, s_ref, b_ref, o_ref):
        Cp = w_ref.shape[-1]

        @pl.loop(0, H)
        def _(y):
            acc = jnp.zeros((W, Cp), jnp.float32)
            for ky in range(3):
                for kx in range(3):
                    lhs = x_ref[0, y + ky, kx:kx + W, :].astype(jnp.bfloat16)
                    acc += jnp.dot(lhs, w_ref[ky * 3 + kx],
                                   preferred_element_type=jnp.float32)
            r = acc * s_ref[...] + b_ref[...]
            if relu:
                r = jnp.maximum(r, 0.0)
            o_ref[0, y] = r.astype(o_ref.dtype)

    return kernel


def _conv_weight_taps(w, cp):
    """(Cout, Cin, 3, 3) torch layout -> (9, cp, cp) bf16, tap index ky*3+kx."""
    cout, cin = w.shape[0], w.shape[1]
    wt = jnp.transpose(w, (2, 3, 1, 0)).reshape(9, cin, cout)
    wt = jnp.pad(wt, ((0, 0), (0, cp - cin), (0, cp - cout)))
    return wt.astype(jnp.bfloat16)


def pallas_conv3x3(x_p, w_taps, scale, shift, *, relu, upsample):
    """x_p: (B, H, W, Cp) channel-padded NHWC.  Returns (B, H', W', Cp)."""
    B, H, W, Cp = x_p.shape
    xpad = jnp.pad(x_p, ((0, 0), (1, 1), (1, 1), (0, 0)))
    s2 = scale.reshape(1, Cp).astype(jnp.float32)
    b2 = shift.reshape(1, Cp).astype(jnp.float32)
    cparams = pltpu.CompilerParams(dimension_semantics=("parallel",))
    if upsample:
        kern = _make_conv_bn_relu_up_kernel(H, W, _upsample_taps(H))
        lw = _bilinear_matrix_x2(W)  # (2W, W)
        return pl.pallas_call(
            kern,
            out_shape=jax.ShapeDtypeStruct((B, 2 * H, 2 * W, Cp), jnp.float32),
            grid=(B,),
            in_specs=[
                pl.BlockSpec((1, H + 2, W + 2, Cp), lambda b: (b, 0, 0, 0)),
                pl.BlockSpec((9, Cp, Cp), lambda b: (0, 0, 0)),
                pl.BlockSpec((1, Cp), lambda b: (0, 0)),
                pl.BlockSpec((1, Cp), lambda b: (0, 0)),
                pl.BlockSpec((2 * W, W), lambda b: (0, 0)),
            ],
            out_specs=pl.BlockSpec((1, 2 * H, 2 * W, Cp), lambda b: (b, 0, 0, 0)),
            scratch_shapes=[pltpu.VMEM((H, 2 * W, Cp), jnp.float32)],
            compiler_params=cparams,
        )(xpad, w_taps, s2, b2, lw)
    kern = _make_conv_kernel(H, W, relu)
    return pl.pallas_call(
        kern,
        out_shape=jax.ShapeDtypeStruct((B, H, W, Cp), jnp.float32),
        grid=(B,),
        in_specs=[
            pl.BlockSpec((1, H + 2, W + 2, Cp), lambda b: (b, 0, 0, 0)),
            pl.BlockSpec((9, Cp, Cp), lambda b: (0, 0, 0)),
            pl.BlockSpec((1, Cp), lambda b: (0, 0)),
            pl.BlockSpec((1, Cp), lambda b: (0, 0)),
        ],
        out_specs=pl.BlockSpec((1, H, W, Cp), lambda b: (b, 0, 0, 0)),
        compiler_params=cparams,
    )(xpad, w_taps, s2, b2)


# ----------------------------------------------------------------------------
# Model forward (Encoder2D + Decoder2D, eval mode)
# ----------------------------------------------------------------------------
def encoder2d_forward(x, params, cfg):
    B, C, H, W = x.shape
    p1, p2 = cfg["patch"]
    hh, ww = H // p1, W // p2
    S = hh * ww
    hid = cfg["hidden"]
    eps = cfg["eps"]
    act = cfg["act"]

    # rearrange 'b c (h p1) (w p2) -> b (h w) (p1 p2 c)'
    xt = (x.reshape(B, C, hh, p1, ww, p2)
            .transpose(0, 2, 4, 3, 5, 1)
            .reshape(B * S, p1 * p2 * C))

    # InputDense2d: LN(act(dense(x)))  -- fused into one kernel
    h = pallas_linear(xt, params["patch_w"], params["patch_b"], act=act,
                      ln=(params["patch_ln_g"], params["patch_ln_b"], eps))

    # TransEmbeddings: dropout(LN(h + pos))   (dropout = identity in eval)
    pos = jnp.tile(params["pos_emb"][:S], (B, 1))
    h = pallas_add_layernorm(h, pos, params["emb_ln_g"], params["emb_ln_b"], eps)

    nh = cfg["heads"]
    dh = hid // nh
    scale = 1.0 / math.sqrt(dh)

    def split_heads(t):
        return t.reshape(B, S, nh, dh).transpose(0, 2, 1, 3).reshape(B * nh, S, dh)

    for lp in params["layers"]:
        qkv = pallas_linear(h, lp["wqkv"], lp["bqkv"])          # fused Q/K/V GEMM
        q, k, v = qkv[:, :hid], qkv[:, hid:2 * hid], qkv[:, 2 * hid:]
        ctx = pallas_attention(split_heads(q), split_heads(k), split_heads(v), scale)
        ctx = ctx.reshape(B, nh, S, dh).transpose(0, 2, 1, 3).reshape(B * S, hid)
        # attention output projection + residual + LN fused
        h = pallas_linear(ctx, lp["wo"], lp["bo"], residual=h,
                          ln=(lp["ln1_g"], lp["ln1_b"], eps))
        inter = pallas_linear(h, lp["wi"], lp["bi"], act=act)   # FFN up + ReLU
        # FFN down + residual + LN fused
        h = pallas_linear(inter, lp["wo2"], lp["bo2"], residual=h,
                          ln=(lp["ln2_g"], lp["ln2_b"], eps))

    fd = pallas_linear(h, params["final_w"], params["final_b"])
    fp1, fp2 = p1 // 16, p2 // 16
    # rearrange 'b (h w) (p1 p2 c) -> b (h p1) (w p2) c'  (NHWC for the decoder)
    return (fd.reshape(B, hh, ww, fp1, fp2, hid)
              .transpose(0, 1, 3, 2, 4, 5)
              .reshape(B, hh * fp1, ww * fp2, hid))


def decoder2d_forward(x_nhwc, params, cfg):
    bn_eps = 1e-5
    hid = cfg["hidden"]
    out_ch = cfg["out_channels"]
    cmax = max([hid, out_ch] + list(cfg["decoder_features"]))
    cp = ((cmax + LANE - 1) // LANE) * LANE

    h = jnp.pad(x_nhwc.astype(jnp.float32),
                ((0, 0), (0, 0), (0, 0), (0, cp - x_nhwc.shape[-1])))
    for lp in params["dec"]:
        cout = lp["w"].shape[0]
        # fold eval-mode BatchNorm (and conv bias) into per-channel scale/shift
        scale = lp["gamma"] * jax.lax.rsqrt(lp["var"] + bn_eps)
        shift = (lp["b"] - lp["mean"]) * scale + lp["beta"]
        h = pallas_conv3x3(
            h, _conv_weight_taps(lp["w"], cp),
            jnp.pad(scale, (0, cp - cout)), jnp.pad(shift, (0, cp - cout)),
            relu=True, upsample=True)
    # final_out conv: bias only, no BN/ReLU/upsample
    w_taps = _conv_weight_taps(params["final_conv_w"], cp)
    scale = jnp.pad(jnp.ones((out_ch,), jnp.float32), (0, cp - out_ch))
    shift = jnp.pad(params["final_conv_b"], (0, cp - out_ch))
    h = pallas_conv3x3(h, w_taps, scale, shift, relu=False, upsample=False)
    return jnp.transpose(h[..., :out_ch], (0, 3, 1, 2))   # NCHW, true channels


def setr_forward(x, params, cfg):
    return decoder2d_forward(encoder2d_forward(x, params, cfg), params, cfg)


# ----------------------------------------------------------------------------
# Deterministic parameter init
# ----------------------------------------------------------------------------
def init_params(key, cfg):
    p1, p2 = cfg["patch"]
    hid = cfg["hidden"]
    inter = cfg["intermediate"]
    cin = cfg["in_channels"]
    feats = cfg["decoder_features"]
    out_ch = cfg["out_channels"]
    patch_dim = p1 * p2 * cin
    final_dim = p1 * p2 * hid // 256

    keys = iter(jax.random.split(key, 256))

    def nrm(shape, s=0.02):
        return s * jax.random.normal(next(keys), shape, jnp.float32)

    def uni(shape, lo=0.5, hi=1.5):
        return jax.random.uniform(next(keys), shape, jnp.float32, lo, hi)

    params = {
        "patch_w": nrm((patch_dim, hid)),
        "patch_b": nrm((hid,)),
        "patch_ln_g": jnp.ones((hid,), jnp.float32),
        "patch_ln_b": jnp.zeros((hid,), jnp.float32),
        "pos_emb": nrm((cfg["max_pos"], hid)),
        "emb_ln_g": jnp.ones((hid,), jnp.float32),
        "emb_ln_b": jnp.zeros((hid,), jnp.float32),
        "final_w": nrm((hid, final_dim)),
        "final_b": nrm((final_dim,)),
        "layers": [],
        "dec": [],
    }
    for _ in range(cfg["layers"]):
        params["layers"].append({
            "wqkv": nrm((hid, 3 * hid)), "bqkv": nrm((3 * hid,)),
            "wo": nrm((hid, hid)), "bo": nrm((hid,)),
            "ln1_g": jnp.ones((hid,), jnp.float32),
            "ln1_b": jnp.zeros((hid,), jnp.float32),
            "wi": nrm((hid, inter)), "bi": nrm((inter,)),
            "wo2": nrm((inter, hid)), "bo2": nrm((hid,)),
            "ln2_g": jnp.ones((hid,), jnp.float32),
            "ln2_b": jnp.zeros((hid,), jnp.float32),
        })
    chans = [hid] + list(feats)
    for i in range(4):
        c_in, c_out = chans[i], chans[i + 1]
        params["dec"].append({
            "w": nrm((c_out, c_in, 3, 3)),
            "b": nrm((c_out,)),
            "gamma": uni((c_out,)),
            "beta": nrm((c_out,), 0.1),
            "mean": nrm((c_out,), 0.1),
            "var": uni((c_out,)),
        })
    params["final_conv_w"] = nrm((out_ch, feats[-1], 3, 3))
    params["final_conv_b"] = nrm((out_ch,))
    return params


# ----------------------------------------------------------------------------
if __name__ == "__main__":
    # TransConfig equivalent (small shapes)
    cfg = {
        "patch": (16, 16),                   # cfg.MODEL.PATCH_SIZE (img_size)
        "in_channels": 3,                    # cfg.MODEL.IN_CHANNELS
        "out_channels": 2,                   # cfg.MODEL.NUM_SEGMENTS
        "hidden": 32,                        # cfg.MODEL.DIM_MODEL (16*16*32 % 256 == 0)
        "layers": 2,                         # cfg.MODEL.ENCODER_LAYERS
        "heads": 4,                          # cfg.MODEL.N_HEAD
        "intermediate": 64,                  # cfg.MODEL.DIM_FEEDFORWARD
        "decoder_features": (16, 16, 8, 8),  # cfg.MODEL.NUM_DECONV_FILTERS
        "act": "relu",                       # ACT2FN['relu']
        "eps": 1e-12,
        "max_pos": 64,
    }

    key = jax.random.PRNGKey(0)
    pkey, xkey = jax.random.split(key)
    params = init_params(pkey, cfg)

    # input image: (B, C, H, W) with H, W multiples of the patch size
    x = jax.random.normal(xkey, (2, 3, 32, 32), jnp.float32)

    fwd = jax.jit(lambda xx, pp: setr_forward(xx, pp, cfg))
    out = jax.block_until_ready(fwd(x, params))
    assert out.shape == (2, cfg["out_channels"], 32, 32), out.shape
    assert bool(jnp.all(jnp.isfinite(out)))
    print("KERNEL_OK")
</pallas_src>

<mosaic_0001>
module attributes {stable_mosaic.version = 11 : i64} {
  func.func @kernel(%arg0: memref<8x768xf32, #tpu.memory_space<vmem>>, %arg1: memref<768x32xbf16, #tpu.memory_space<vmem>>, %arg2: memref<1x32xf32, #tpu.memory_space<vmem>>, %arg3: memref<1x32xf32, #tpu.memory_space<vmem>>, %arg4: memref<1x32xf32, #tpu.memory_space<vmem>>, %arg5: memref<8x32xf32, #tpu.memory_space<vmem>>) attributes {dimension_semantics = [], scalar_prefetch = 0 : i64, scratch_operands = 0 : i64, tpu.core_type = #tpu.core_type<tc>} {
    %c0 = arith.constant 0 : index
    %c0_0 = arith.constant 0 : index
    %0 = vector.load %arg0[%c0, %c0_0] : memref<8x768xf32, #tpu.memory_space<vmem>>, vector<8x768xf32>
    %1 = arith.truncf %0 : vector<8x768xf32> to vector<8x768xbf16>
    %c0_1 = arith.constant 0 : index
    %c0_2 = arith.constant 0 : index
    %2 = vector.load %arg1[%c0_1, %c0_2] : memref<768x32xbf16, #tpu.memory_space<vmem>>, vector<768x32xbf16>
    %cst = arith.constant dense<0.000000e+00> : vector<8x32xf32>
    %3 = tpu.matmul %1, %2, %cst {dimension_numbers = #tpu.dot_dimension_numbers<[1], [0], [0], [1], [0, 0, 1, 1], [], []>} : vector<8x768xbf16>, vector<768x32xbf16>, vector<8x32xf32> -> vector<8x32xf32>
    %c0_3 = arith.constant 0 : index
    %c0_4 = arith.constant 0 : index
    %4 = vector.load %arg2[%c0_3, %c0_4] : memref<1x32xf32, #tpu.memory_space<vmem>>, vector<1x32xf32>
    %5 = vector.broadcast %4 : vector<1x32xf32> to vector<8x32xf32>
    %6 = arith.addf %3, %5 : vector<8x32xf32>
    %cst_5 = arith.constant 0.000000e+00 : f32
    %7 = vector.broadcast %cst_5 : f32 to vector<8x32xf32>
    %8 = arith.maximumf %6, %7 : vector<8x32xf32>
    %cst_6 = arith.constant dense<0.000000e+00> : vector<8xf32>
    %9 = vector.multi_reduction <add>, %8, %cst_6 [1] : vector<8x32xf32> to vector<8xf32>
    %10 = vector.shape_cast %9 : vector<8xf32> to vector<8x1xf32>
    %cst_7 = arith.constant 3.200000e+01 : f32
    %11 = vector.broadcast %cst_7 : f32 to vector<8x1xf32>
    %12 = arith.divf %10, %11 : vector<8x1xf32>
    %13 = vector.broadcast %12 : vector<8x1xf32> to vector<8x32xf32>
    %14 = arith.subf %8, %13 : vector<8x32xf32>
    %15 = arith.mulf %14, %14 : vector<8x32xf32>
    %cst_8 = arith.constant dense<0.000000e+00> : vector<8xf32>
    %16 = vector.multi_reduction <add>, %15, %cst_8 [1] : vector<8x32xf32> to vector<8xf32>
    %17 = vector.shape_cast %16 : vector<8xf32> to vector<8x1xf32>
    %cst_9 = arith.constant 3.200000e+01 : f32
    %18 = vector.broadcast %cst_9 : f32 to vector<8x1xf32>
    %19 = arith.divf %17, %18 : vector<8x1xf32>
    %20 = vector.broadcast %12 : vector<8x1xf32> to vector<8x32xf32>
    %21 = arith.subf %8, %20 : vector<8x32xf32>
    %cst_10 = arith.constant 9.99999996E-13 : f32
    %22 = vector.broadcast %cst_10 : f32 to vector<8x1xf32>
    %23 = arith.addf %19, %22 : vector<8x1xf32>
    %24 = math.rsqrt %23 : vector<8x1xf32>
    %25 = vector.broadcast %24 : vector<8x1xf32> to vector<8x32xf32>
    %26 = arith.mulf %21, %25 : vector<8x32xf32>
    %c0_11 = arith.constant 0 : index
    %c0_12 = arith.constant 0 : index
    %27 = vector.load %arg3[%c0_11, %c0_12] : memref<1x32xf32, #tpu.memory_space<vmem>>, vector<1x32xf32>
    %28 = vector.broadcast %27 : vector<1x32xf32> to vector<8x32xf32>
    %29 = arith.mulf %26, %28 : vector<8x32xf32>
    %c0_13 = arith.constant 0 : index
    %c0_14 = arith.constant 0 : index
    %30 = vector.load %arg4[%c0_13, %c0_14] : memref<1x32xf32, #tpu.memory_space<vmem>>, vector<1x32xf32>
    %31 = vector.broadcast %30 : vector<1x32xf32> to vector<8x32xf32>
    %32 = arith.addf %29, %31 : vector<8x32xf32>
    %c0_15 = arith.constant 0 : index
    %c0_16 = arith.constant 0 : index
    %33 = vector.load %arg5[%c0_15, %c0_16] : memref<8x32xf32, #tpu.memory_space<vmem>>, vector<8x32xf32>
    tpu.vector_store %arg5[%c0_15, %c0_16], %32 {strides = array<i32>} : memref<8x32xf32, #tpu.memory_space<vmem>>, vector<8x32xf32>,
    return
  }
}

module attributes {stable_mosaic.version = 11 : i64} {
  func.func @_add_ln_kernel(%arg0: memref<8x32xf32, #tpu.memory_space<vmem>>, %arg1: memref<8x32xf32, #tpu.memory_space<vmem>>, %arg2: memref<1x32xf32, #tpu.memory_space<vmem>>, %arg3: memref<1x32xf32, #tpu.memory_space<vmem>>, %arg4: memref<8x32xf32, #tpu.memory_space<vmem>>) attributes {dimension_semantics = [], scalar_prefetch = 0 : i64, scratch_operands = 0 : i64, tpu.core_type = #tpu.core_type<tc>} {
    %c0 = arith.constant 0 : index
    %c0_0 = arith.constant 0 : index
    %0 = vector.load %arg0[%c0, %c0_0] : memref<8x32xf32, #tpu.memory_space<vmem>>, vector<8x32xf32>
    %c0_1 = arith.constant 0 : index
    %c0_2 = arith.constant 0 : index
    %1 = vector.load %arg1[%c0_1, %c0_2] : memref<8x32xf32, #tpu.memory_space<vmem>>, vector<8x32xf32>
    %2 = arith.addf %0, %1 : vector<8x32xf32>
    %cst = arith.constant dense<0.000000e+00> : vector<8xf32>
    %3 = vector.multi_reduction <add>, %2, %cst [1] : vector<8x32xf32> to vector<8xf32>
    %4 = vector.shape_cast %3 : vector<8xf32> to vector<8x1xf32>
    %cst_3 = arith.constant 3.200000e+01 : f32
    %5 = vector.broadcast %cst_3 : f32 to vector<8x1xf32>
    %6 = arith.divf %4, %5 : vector<8x1xf32>
    %7 = vector.broadcast %6 : vector<8x1xf32> to vector<8x32xf32>
    %8 = arith.subf %2, %7 : vector<8x32xf32>
    %9 = arith.mulf %8, %8 : vector<8x32xf32>
    %cst_4 = arith.constant dense<0.000000e+00> : vector<8xf32>
    %10 = vector.multi_reduction <add>, %9, %cst_4 [1] : vector<8x32xf32> to vector<8xf32>
    %11 = vector.shape_cast %10 : vector<8xf32> to vector<8x1xf32>
    %cst_5 = arith.constant 3.200000e+01 : f32
    %12 = vector.broadcast %cst_5 : f32 to vector<8x1xf32>
    %13 = arith.divf %11, %12 : vector<8x1xf32>
    %14 = vector.broadcast %6 : vector<8x1xf32> to vector<8x32xf32>
    %15 = arith.subf %2, %14 : vector<8x32xf32>
    %cst_6 = arith.constant 9.99999996E-13 : f32
    %16 = vector.broadcast %cst_6 : f32 to vector<8x1xf32>
    %17 = arith.addf %13, %16 : vector<8x1xf32>
    %18 = math.rsqrt %17 : vector<8x1xf32>
    %19 = vector.broadcast %18 : vector<8x1xf32> to vector<8x32xf32>
    %20 = arith.mulf %15, %19 : vector<8x32xf32>
    %c0_7 = arith.constant 0 : index
    %c0_8 = arith.constant 0 : index
    %21 = vector.load %arg2[%c0_7, %c0_8] : memref<1x32xf32, #tpu.memory_space<vmem>>, vector<1x32xf32>
    %22 = vector.broadcast %21 : vector<1x32xf32> to vector<8x32xf32>
    %23 = arith.mulf %20, %22 : vector<8x32xf32>
    %c0_9 = arith.constant 0 : index
    %c0_10 = arith.constant 0 : index
    %24 = vector.load %arg3[%c0_9, %c0_10] : memref<1x32xf32, #tpu.memory_space<vmem>>, vector<1x32xf32>
    %25 = vector.broadcast %24 : vector<1x32xf32> to vector<8x32xf32>
    %26 = arith.addf %23, %25 : vector<8x32xf32>
    %c0_11 = arith.constant 0 : index
    %c0_12 = arith.constant 0 : index
    %27 = vector.load %arg4[%c0_11, %c0_12] : memref<8x32xf32, #tpu.memory_space<vmem>>, vector<8x32xf32>
    tpu.vector_store %arg4[%c0_11, %c0_12], %26 {strides = array<i32>} : memref<8x32xf32, #tpu.memory_space<vmem>>, vector<8x32xf32>,
    return
  }
}

module attributes {stable_mosaic.version = 11 : i64} {
  func.func @kernel(%arg0: memref<8x32xf32, #tpu.memory_space<vmem>>, %arg1: memref<32x96xbf16, #tpu.memory_space<vmem>>, %arg2: memref<1x96xf32, #tpu.memory_space<vmem>>, %arg3: memref<8x96xf32, #tpu.memory_space<vmem>>) attributes {dimension_semantics = [], scalar_prefetch = 0 : i64, scratch_operands = 0 : i64, tpu.core_type = #tpu.core_type<tc>} {
    %c0 = arith.constant 0 : index
    %c0_0 = arith.constant 0 : index
    %0 = vector.load %arg0[%c0, %c0_0] : memref<8x32xf32, #tpu.memory_space<vmem>>, vector<8x32xf32>
    %1 = arith.truncf %0 : vector<8x32xf32> to vector<8x32xbf16>
    %c0_1 = arith.constant 0 : index
    %c0_2 = arith.constant 0 : index
    %2 = vector.load %arg1[%c0_1, %c0_2] : memref<32x96xbf16, #tpu.memory_space<vmem>>, vector<32x96xbf16>
    %cst = arith.constant dense<0.000000e+00> : vector<8x96xf32>
    %3 = tpu.matmul %1, %2, %cst {dimension_numbers = #tpu.dot_dimension_numbers<[1], [0], [0], [1], [0, 0, 1, 1], [], []>} : vector<8x32xbf16>, vector<32x96xbf16>, vector<8x96xf32> -> vector<8x96xf32>
    %c0_3 = arith.constant 0 : index
    %c0_4 = arith.constant 0 : index
    %4 = vector.load %arg2[%c0_3, %c0_4] : memref<1x96xf32, #tpu.memory_space<vmem>>, vector<1x96xf32>
    %5 = vector.broadcast %4 : vector<1x96xf32> to vector<8x96xf32>
    %6 = arith.addf %3, %5 : vector<8x96xf32>
    %c0_5 = arith.constant 0 : index
    %c0_6 = arith.constant 0 : index
    %7 = vector.load %arg3[%c0_5, %c0_6] : memref<8x96xf32, #tpu.memory_space<vmem>>, vector<8x96xf32>
    tpu.vector_store %arg3[%c0_5, %c0_6], %6 {strides = array<i32>} : memref<8x96xf32, #tpu.memory_space<vmem>>, vector<8x96xf32>,
    return
  }
}

module attributes {stable_mosaic.version = 11 : i64} {
  func.func @_attn_kernel(%arg0: memref<8x4x8xf32, #tpu.memory_space<vmem>>, %arg1: memref<8x4x8xf32, #tpu.memory_space<vmem>>, %arg2: memref<8x4x8xf32, #tpu.memory_space<vmem>>, %arg3: memref<8x4x8xf32, #tpu.memory_space<vmem>>) attributes {dimension_semantics = [], scalar_prefetch = 0 : i64, scratch_operands = 0 : i64, tpu.core_type = #tpu.core_type<tc>} {
    %c0 = arith.constant 0 : index
    %c0_0 = arith.constant 0 : index
    %c0_1 = arith.constant 0 : index
    %0 = vector.load %arg0[%c0, %c0_0, %c0_1] : memref<8x4x8xf32, #tpu.memory_space<vmem>>, vector<8x4x8xf32>
    %1 = arith.truncf %0 : vector<8x4x8xf32> to vector<8x4x8xbf16>
    %c0_2 = arith.constant 0 : index
    %c0_3 = arith.constant 0 : index
    %c0_4 = arith.constant 0 : index
    %2 = vector.load %arg1[%c0_2, %c0_3, %c0_4] : memref<8x4x8xf32, #tpu.memory_space<vmem>>, vector<8x4x8xf32>
    %3 = arith.truncf %2 : vector<8x4x8xf32> to vector<8x4x8xbf16>
    %c0_5 = arith.constant 0 : index
    %c0_6 = arith.constant 0 : index
    %c0_7 = arith.constant 0 : index
    %4 = vector.load %arg2[%c0_5, %c0_6, %c0_7] : memref<8x4x8xf32, #tpu.memory_space<vmem>>, vector<8x4x8xf32>
    %5 = arith.truncf %4 : vector<8x4x8xf32> to vector<8x4x8xbf16>
    "tpu.trace_start"() <{level = 10 : i32, message = "bqd,bkd->bqk"}> : () -> ()
    %cst = arith.constant dense<0.000000e+00> : vector<8x4x4xf32>
    %6 = tpu.matmul %1, %3, %cst {dimension_numbers = #tpu.dot_dimension_numbers<[2], [2], [1], [1], [0, 0, 0, 1, 1, 1], [0], [0]>} : vector<8x4x8xbf16>, vector<8x4x8xbf16>, vector<8x4x4xf32> -> vector<8x4x4xf32>
    "tpu.trace_stop"() : () -> ()
    %cst_8 = arith.constant 0.353553385 : f32
    %7 = vector.broadcast %cst_8 : f32 to vector<8x4x4xf32>
    %8 = arith.mulf %6, %7 : vector<8x4x4xf32>
    %cst_9 = arith.constant dense<0xFF800000> : vector<8x4xf32>
    %9 = vector.multi_reduction <maximumf>, %8, %cst_9 [2] : vector<8x4x4xf32> to vector<8x4xf32>
    %10 = vector.shape_cast %9 : vector<8x4xf32> to vector<8x4x1xf32>
    %11 = vector.broadcast %10 : vector<8x4x1xf32> to vector<8x4x4xf32>
    %12 = arith.subf %8, %11 : vector<8x4x4xf32>
    %13 = math.exp %12 : vector<8x4x4xf32>
    %cst_10 = arith.constant dense<0.000000e+00> : vector<8x4xf32>
    %14 = vector.multi_reduction <add>, %13, %cst_10 [2] : vector<8x4x4xf32> to vector<8x4xf32>
    %15 = vector.shape_cast %14 : vector<8x4xf32> to vector<8x4x1xf32>
    %16 = tpu.reciprocal %15 {approx = true} : vector<8x4x1xf32> -> vector<8x4x1xf32>
    %17 = vector.broadcast %16 : vector<8x4x1xf32> to vector<8x4x4xf32>
    %18 = arith.mulf %13, %17 : vector<8x4x4xf32>
    %19 = arith.truncf %18 : vector<8x4x4xf32> to vector<8x4x4xbf16>
    "tpu.trace_start"() <{level = 10 : i32, message = "bqk,bkd->bqd"}> : () -> ()
    %cst_11 = arith.constant dense<0.000000e+00> : vector<8x4x8xf32>
    %20 = tpu.matmul %19, %5, %cst_11 {dimension_numbers = #tpu.dot_dimension_numbers<[2], [1], [1], [2], [0, 0, 0, 1, 1, 2], [0], [0]>} : vector<8x4x4xbf16>, vector<8x4x8xbf16>, vector<8x4x8xf32> -> vector<8x4x8xf32>
    "tpu.trace_stop"() : () -> ()
    %c0_12 = arith.constant 0 : index
    %c0_13 = arith.constant 0 : index
    %c0_14 = arith.constant 0 : index
    %21 = vector.load %arg3[%c0_12, %c0_13, %c0_14] : memref<8x4x8xf32, #tpu.memory_space<vmem>>, vector<8x4x8xf32>
    tpu.vector_store %arg3[%c0_12, %c0_13, %c0_14], %20 {strides = array<i32>} : memref<8x4x8xf32, #tpu.memory_space<vmem>>, vector<8x4x8xf32>,
    return
  }
}

module attributes {stable_mosaic.version = 11 : i64} {
  func.func @kernel(%arg0: memref<8x32xf32, #tpu.memory_space<vmem>>, %arg1: memref<32x32xbf16, #tpu.memory_space<vmem>>, %arg2: memref<1x32xf32, #tpu.memory_space<vmem>>, %arg3: memref<8x32xf32, #tpu.memory_space<vmem>>, %arg4: memref<1x32xf32, #tpu.memory_space<vmem>>, %arg5: memref<1x32xf32, #tpu.memory_space<vmem>>, %arg6: memref<8x32xf32, #tpu.memory_space<vmem>>) attributes {dimension_semantics = [], scalar_prefetch = 0 : i64, scratch_operands = 0 : i64, tpu.core_type = #tpu.core_type<tc>} {
    %c0 = arith.constant 0 : index
    %c0_0 = arith.constant 0 : index
    %0 = vector.load %arg0[%c0, %c0_0] : memref<8x32xf32, #tpu.memory_space<vmem>>, vector<8x32xf32>
    %1 = arith.truncf %0 : vector<8x32xf32> to vector<8x32xbf16>
    %c0_1 = arith.constant 0 : index
    %c0_2 = arith.constant 0 : index
    %2 = vector.load %arg1[%c0_1, %c0_2] : memref<32x32xbf16, #tpu.memory_space<vmem>>, vector<32x32xbf16>
    %cst = arith.constant dense<0.000000e+00> : vector<8x32xf32>
    %3 = tpu.matmul %1, %2, %cst {dimension_numbers = #tpu.dot_dimension_numbers<[1], [0], [0], [1], [0, 0, 1, 1], [], []>} : vector<8x32xbf16>, vector<32x32xbf16>, vector<8x32xf32> -> vector<8x32xf32>
    %c0_3 = arith.constant 0 : index
    %c0_4 = arith.constant 0 : index
    %4 = vector.load %arg2[%c0_3, %c0_4] : memref<1x32xf32, #tpu.memory_space<vmem>>, vector<1x32xf32>
    %5 = vector.broadcast %4 : vector<1x32xf32> to vector<8x32xf32>
    %6 = arith.addf %3, %5 : vector<8x32xf32>
    %c0_5 = arith.constant 0 : index
    %c0_6 = arith.constant 0 : index
    %7 = vector.load %arg3[%c0_5, %c0_6] : memref<8x32xf32, #tpu.memory_space<vmem>>, vector<8x32xf32>
    %8 = arith.addf %6, %7 : vector<8x32xf32>
    %cst_7 = arith.constant dense<0.000000e+00> : vector<8xf32>
    %9 = vector.multi_reduction <add>, %8, %cst_7 [1] : vector<8x32xf32> to vector<8xf32>
    %10 = vector.shape_cast %9 : vector<8xf32> to vector<8x1xf32>
    %cst_8 = arith.constant 3.200000e+01 : f32
    %11 = vector.broadcast %cst_8 : f32 to vector<8x1xf32>
    %12 = arith.divf %10, %11 : vector<8x1xf32>
    %13 = vector.broadcast %12 : vector<8x1xf32> to vector<8x32xf32>
    %14 = arith.subf %8, %13 : vector<8x32xf32>
    %15 = arith.mulf %14, %14 : vector<8x32xf32>
    %cst_9 = arith.constant dense<0.000000e+00> : vector<8xf32>
    %16 = vector.multi_reduction <add>, %15, %cst_9 [1] : vector<8x32xf32> to vector<8xf32>
    %17 = vector.shape_cast %16 : vector<8xf32> to vector<8x1xf32>
    %cst_10 = arith.constant 3.200000e+01 : f32
    %18 = vector.broadcast %cst_10 : f32 to vector<8x1xf32>
    %19 = arith.divf %17, %18 : vector<8x1xf32>
    %20 = vector.broadcast %12 : vector<8x1xf32> to vector<8x32xf32>
    %21 = arith.subf %8, %20 : vector<8x32xf32>
    %cst_11 = arith.constant 9.99999996E-13 : f32
    %22 = vector.broadcast %cst_11 : f32 to vector<8x1xf32>
    %23 = arith.addf %19, %22 : vector<8x1xf32>
    %24 = math.rsqrt %23 : vector<8x1xf32>
    %25 = vector.broadcast %24 : vector<8x1xf32> to vector<8x32xf32>
    %26 = arith.mulf %21, %25 : vector<8x32xf32>
    %c0_12 = arith.constant 0 : index
    %c0_13 = arith.constant 0 : index
    %27 = vector.load %arg4[%c0_12, %c0_13] : memref<1x32xf32, #tpu.memory_space<vmem>>, vector<1x32xf32>
    %28 = vector.broadcast %27 : vector<1x32xf32> to vector<8x32xf32>
    %29 = arith.mulf %26, %28 : vector<8x32xf32>
    %c0_14 = arith.constant 0 : index
    %c0_15 = arith.constant 0 : index
    %30 = vector.load %arg5[%c0_14, %c0_15] : memref<1x32xf32, #tpu.memory_space<vmem>>, vector<1x32xf32>
    %31 = vector.broadcast %30 : vector<1x32xf32> to vector<8x32xf32>
    %32 = arith.addf %29, %31 : vector<8x32xf32>
    %c0_16 = arith.constant 0 : index
    %c0_17 = arith.constant 0 : index
    %33 = vector.load %arg6[%c0_16, %c0_17] : memref<8x32xf32, #tpu.memory_space<vmem>>, vector<8x32xf32>
    tpu.vector_store %arg6[%c0_16, %c0_17], %32 {strides = array<i32>} : memref<8x32xf32, #tpu.memory_space<vmem>>, vector<8x32xf32>,
    return
  }
}

module attributes {stable_mosaic.version = 11 : i64} {
  func.func @kernel(%arg0: memref<8x32xf32, #tpu.memory_space<vmem>>, %arg1: memref<32x64xbf16, #tpu.memory_space<vmem>>, %arg2: memref<1x64xf32, #tpu.memory_space<vmem>>, %arg3: memref<8x64xf32, #tpu.memory_space<vmem>>) attributes {dimension_semantics = [], scalar_prefetch = 0 : i64, scratch_operands = 0 : i64, tpu.core_type = #tpu.core_type<tc>} {
    %c0 = arith.constant 0 : index
    %c0_0 = arith.constant 0 : index
    %0 = vector.load %arg0[%c0, %c0_0] : memref<8x32xf32, #tpu.memory_space<vmem>>, vector<8x32xf32>
    %1 = arith.truncf %0 : vector<8x32xf32> to vector<8x32xbf16>
    %c0_1 = arith.constant 0 : index
    %c0_2 = arith.constant 0 : index
    %2 = vector.load %arg1[%c0_1, %c0_2] : memref<32x64xbf16, #tpu.memory_space<vmem>>, vector<32x64xbf16>
    %cst = arith.constant dense<0.000000e+00> : vector<8x64xf32>
    %3 = tpu.matmul %1, %2, %cst {dimension_numbers = #tpu.dot_dimension_numbers<[1], [0], [0], [1], [0, 0, 1, 1], [], []>} : vector<8x32xbf16>, vector<32x64xbf16>, vector<8x64xf32> -> vector<8x64xf32>
    %c0_3 = arith.constant 0 : index
    %c0_4 = arith.constant 0 : index
    %4 = vector.load %arg2[%c0_3, %c0_4] : memref<1x64xf32, #tpu.memory_space<vmem>>, vector<1x64xf32>
    %5 = vector.broadcast %4 : vector<1x64xf32> to vector<8x64xf32>
    %6 = arith.addf %3, %5 : vector<8x64xf32>
    %cst_5 = arith.constant 0.000000e+00 : f32
    %7 = vector.broadcast %cst_5 : f32 to vector<8x64xf32>
    %8 = arith.maximumf %6, %7 : vector<8x64xf32>
    %c0_6 = arith.constant 0 : index
    %c0_7 = arith.constant 0 : index
    %9 = vector.load %arg3[%c0_6, %c0_7] : memref<8x64xf32, #tpu.memory_space<vmem>>, vector<8x64xf32>
    tpu.vector_store %arg3[%c0_6, %c0_7], %8 {strides = array<i32>} : memref<8x64xf32, #tpu.memory_space<vmem>>, vector<8x64xf32>,
    return
  }
}

module attributes {stable_mosaic.version = 11 : i64} {
  func.func @kernel(%arg0: memref<8x64xf32, #tpu.memory_space<vmem>>, %arg1: memref<64x32xbf16, #tpu.memory_space<vmem>>, %arg2: memref<1x32xf32, #tpu.memory_space<vmem>>, %arg3: memref<8x32xf32, #tpu.memory_space<vmem>>, %arg4: memref<1x32xf32, #tpu.memory_space<vmem>>, %arg5: memref<1x32xf32, #tpu.memory_space<vmem>>, %arg6: memref<8x32xf32, #tpu.memory_space<vmem>>) attributes {dimension_semantics = [], scalar_prefetch = 0 : i64, scratch_operands = 0 : i64, tpu.core_type = #tpu.core_type<tc>} {
    %c0 = arith.constant 0 : index
    %c0_0 = arith.constant 0 : index
    %0 = vector.load %arg0[%c0, %c0_0] : memref<8x64xf32, #tpu.memory_space<vmem>>, vector<8x64xf32>
    %1 = arith.truncf %0 : vector<8x64xf32> to vector<8x64xbf16>
    %c0_1 = arith.constant 0 : index
    %c0_2 = arith.constant 0 : index
    %2 = vector.load %arg1[%c0_1, %c0_2] : memref<64x32xbf16, #tpu.memory_space<vmem>>, vector<64x32xbf16>
    %cst = arith.constant dense<0.000000e+00> : vector<8x32xf32>
    %3 = tpu.matmul %1, %2, %cst {dimension_numbers = #tpu.dot_dimension_numbers<[1], [0], [0], [1], [0, 0, 1, 1], [], []>} : vector<8x64xbf16>, vector<64x32xbf16>, vector<8x32xf32> -> vector<8x32xf32>
    %c0_3 = arith.constant 0 : index
    %c0_4 = arith.constant 0 : index
    %4 = vector.load %arg2[%c0_3, %c0_4] : memref<1x32xf32, #tpu.memory_space<vmem>>, vector<1x32xf32>
    %5 = vector.broadcast %4 : vector<1x32xf32> to vector<8x32xf32>
    %6 = arith.addf %3, %5 : vector<8x32xf32>
    %c0_5 = arith.constant 0 : index
    %c0_6 = arith.constant 0 : index
    %7 = vector.load %arg3[%c0_5, %c0_6] : memref<8x32xf32, #tpu.memory_space<vmem>>, vector<8x32xf32>
    %8 = arith.addf %6, %7 : vector<8x32xf32>
    %cst_7 = arith.constant dense<0.000000e+00> : vector<8xf32>
    %9 = vector.multi_reduction <add>, %8, %cst_7 [1] : vector<8x32xf32> to vector<8xf32>
    %10 = vector.shape_cast %9 : vector<8xf32> to vector<8x1xf32>
    %cst_8 = arith.constant 3.200000e+01 : f32
    %11 = vector.broadcast %cst_8 : f32 to vector<8x1xf32>
    %12 = arith.divf %10, %11 : vector<8x1xf32>
    %13 = vector.broadcast %12 : vector<8x1xf32> to vector<8x32xf32>
    %14 = arith.subf %8, %13 : vector<8x32xf32>
    %15 = arith.mulf %14, %14 : vector<8x32xf32>
    %cst_9 = arith.constant dense<0.000000e+00> : vector<8xf32>
    %16 = vector.multi_reduction <add>, %15, %cst_9 [1] : vector<8x32xf32> to vector<8xf32>
    %17 = vector.shape_cast %16 : vector<8xf32> to vector<8x1xf32>
    %cst_10 = arith.constant 3.200000e+01 : f32
    %18 = vector.broadcast %cst_10 : f32 to vector<8x1xf32>
    %19 = arith.divf %17, %18 : vector<8x1xf32>
    %20 = vector.broadcast %12 : vector<8x1xf32> to vector<8x32xf32>
    %21 = arith.subf %8, %20 : vector<8x32xf32>
    %cst_11 = arith.constant 9.99999996E-13 : f32
    %22 = vector.broadcast %cst_11 : f32 to vector<8x1xf32>
    %23 = arith.addf %19, %22 : vector<8x1xf32>
    %24 = math.rsqrt %23 : vector<8x1xf32>
    %25 = vector.broadcast %24 : vector<8x1xf32> to vector<8x32xf32>
    %26 = arith.mulf %21, %25 : vector<8x32xf32>
    %c0_12 = arith.constant 0 : index
    %c0_13 = arith.constant 0 : index
    %27 = vector.load %arg4[%c0_12, %c0_13] : memref<1x32xf32, #tpu.memory_space<vmem>>, vector<1x32xf32>
    %28 = vector.broadcast %27 : vector<1x32xf32> to vector<8x32xf32>
    %29 = arith.mulf %26, %28 : vector<8x32xf32>
    %c0_14 = arith.constant 0 : index
    %c0_15 = arith.constant 0 : index
    %30 = vector.load %arg5[%c0_14, %c0_15] : memref<1x32xf32, #tpu.memory_space<vmem>>, vector<1x32xf32>
    %31 = vector.broadcast %30 : vector<1x32xf32> to vector<8x32xf32>
    %32 = arith.addf %29, %31 : vector<8x32xf32>
    %c0_16 = arith.constant 0 : index
    %c0_17 = arith.constant 0 : index
    %33 = vector.load %arg6[%c0_16, %c0_17] : memref<8x32xf32, #tpu.memory_space<vmem>>, vector<8x32xf32>
    tpu.vector_store %arg6[%c0_16, %c0_17], %32 {strides = array<i32>} : memref<8x32xf32, #tpu.memory_space<vmem>>, vector<8x32xf32>,
    return
  }
}

module attributes {stable_mosaic.version = 11 : i64} {
  func.func @kernel(%arg0: memref<8x32xf32, #tpu.memory_space<vmem>>, %arg1: memref<32x32xbf16, #tpu.memory_space<vmem>>, %arg2: memref<1x32xf32, #tpu.memory_space<vmem>>, %arg3: memref<8x32xf32, #tpu.memory_space<vmem>>) attributes {dimension_semantics = [], scalar_prefetch = 0 : i64, scratch_operands = 0 : i64, tpu.core_type = #tpu.core_type<tc>} {
    %c0 = arith.constant 0 : index
    %c0_0 = arith.constant 0 : index
    %0 = vector.load %arg0[%c0, %c0_0] : memref<8x32xf32, #tpu.memory_space<vmem>>, vector<8x32xf32>
    %1 = arith.truncf %0 : vector<8x32xf32> to vector<8x32xbf16>
    %c0_1 = arith.constant 0 : index
    %c0_2 = arith.constant 0 : index
    %2 = vector.load %arg1[%c0_1, %c0_2] : memref<32x32xbf16, #tpu.memory_space<vmem>>, vector<32x32xbf16>
    %cst = arith.constant dense<0.000000e+00> : vector<8x32xf32>
    %3 = tpu.matmul %1, %2, %cst {dimension_numbers = #tpu.dot_dimension_numbers<[1], [0], [0], [1], [0, 0, 1, 1], [], []>} : vector<8x32xbf16>, vector<32x32xbf16>, vector<8x32xf32> -> vector<8x32xf32>
    %c0_3 = arith.constant 0 : index
    %c0_4 = arith.constant 0 : index
    %4 = vector.load %arg2[%c0_3, %c0_4] : memref<1x32xf32, #tpu.memory_space<vmem>>, vector<1x32xf32>
    %5 = vector.broadcast %4 : vector<1x32xf32> to vector<8x32xf32>
    %6 = arith.addf %3, %5 : vector<8x32xf32>
    %c0_5 = arith.constant 0 : index
    %c0_6 = arith.constant 0 : index
    %7 = vector.load %arg3[%c0_5, %c0_6] : memref<8x32xf32, #tpu.memory_space<vmem>>, vector<8x32xf32>
    tpu.vector_store %arg3[%c0_5, %c0_6], %6 {strides = array<i32>} : memref<8x32xf32, #tpu.memory_space<vmem>>, vector<8x32xf32>,
    return
  }
}

module attributes {stable_mosaic.version = 11 : i64} {
  func.func @kernel(%arg0: i32, %arg1: memref<1x4x4x128xf32, #tpu.memory_space<vmem>>, %arg2: memref<9x128x128xbf16, #tpu.memory_space<vmem>>, %arg3: memref<1x128xf32, #tpu.memory_space<vmem>>, %arg4: memref<1x128xf32, #tpu.memory_space<vmem>>, %arg5: memref<4x2xf32, #tpu.memory_space<vmem>>, %arg6: memref<1x4x4x128xf32, #tpu.memory_space<vmem>>, %arg7: memref<2x4x128xf32, #tpu.memory_space<vmem>>) attributes {dimension_semantics = [#tpu.dimension_semantics<parallel>], iteration_bounds = array<i64: 2>, scalar_prefetch = 0 : i64, scratch_operands = 1 : i64, tpu.core_type = #tpu.core_type<tc>, window_params = [{transform_indices = @transform_0, window_bounds = array<i64: 1, 4, 4, 128>}, {pipeline_mode = #tpu.pipeline_mode<synchronous>, transform_indices = @transform_1, window_bounds = array<i64: 9, 128, 128>}, {pipeline_mode = #tpu.pipeline_mode<synchronous>, transform_indices = @transform_2, window_bounds = array<i64: 1, 128>}, {pipeline_mode = #tpu.pipeline_mode<synchronous>, transform_indices = @transform_3, window_bounds = array<i64: 1, 128>}, {pipeline_mode = #tpu.pipeline_mode<synchronous>, transform_indices = @transform_4, window_bounds = array<i64: 4, 2>}, {transform_indices = @transform_5, window_bounds = array<i64: 1, 4, 4, 128>}]} {
    %c0_i32 = arith.constant 0 : i32
    %c2_i32 = arith.constant 2 : i32
    %0 = arith.addi %c0_i32, %c2_i32 : i32
    %c1_i32 = arith.constant 1 : i32
    scf.for %arg8 = %c0_i32 to %0 step %c1_i32  : i32 {
      %c1_i32_44 = arith.constant 1 : i32
      %49 = arith.muli %arg8, %c1_i32_44 : i32
      %c0_i32_45 = arith.constant 0 : i32
      %50 = arith.addi %c0_i32_45, %49 : i32
      %cst_46 = arith.constant 0.000000e+00 : f32
      %51 = vector.broadcast %cst_46 : f32 to vector<2x128xf32>
      %c0_i32_47 = arith.constant 0 : i32
      %52 = arith.addi %50, %c0_i32_47 : i32
      %c0_48 = arith.constant 0 : index
      %53 = arith.index_cast %52 : i32 to index
      %c0_49 = arith.constant 0 : index
      %c0_50 = arith.constant 0 : index
      %54 = vector.load %arg1[%c0_48, %53, %c0_49, %c0_50] : memref<1x4x4x128xf32, #tpu.memory_space<vmem>>, vector<1x1x2x128xf32>
      %55 = vector.shape_cast %54 : vector<1x1x2x128xf32> to vector<2x128xf32>
      %56 = arith.truncf %55 : vector<2x128xf32> to vector<2x128xbf16>
      %c0_51 = arith.constant 0 : index
      %c0_52 = arith.constant 0 : index
      %c0_53 = arith.constant 0 : index
      %57 = vector.load %arg2[%c0_51, %c0_52, %c0_53] : memref<9x128x128xbf16, #tpu.memory_space<vmem>>, vector<1x128x128xbf16>
      %58 = vector.shape_cast %57 : vector<1x128x128xbf16> to vector<128x128xbf16>
      %cst_54 = arith.constant dense<0.000000e+00> : vector<2x128xf32>
      %59 = tpu.matmul %56, %58, %cst_54 {dimension_numbers = #tpu.dot_dimension_numbers<[1], [0], [0], [1], [0, 0, 1, 1], [], []>} : vector<2x128xbf16>, vector<128x128xbf16>, vector<2x128xf32> -> vector<2x128xf32>
      %60 = arith.addf %51, %59 : vector<2x128xf32>
      %c0_i32_55 = arith.constant 0 : i32
      %61 = arith.addi %50, %c0_i32_55 : i32
      %c0_56 = arith.constant 0 : index
      %62 = arith.index_cast %61 : i32 to index
      %c1_57 = arith.constant 1 : index
      %c0_58 = arith.constant 0 : index
      %63 = vector.load %arg1[%c0_56, %62, %c1_57, %c0_58] : memref<1x4x4x128xf32, #tpu.memory_space<vmem>>, vector<1x1x2x128xf32>
      %64 = vector.shape_cast %63 : vector<1x1x2x128xf32> to vector<2x128xf32>
      %65 = arith.truncf %64 : vector<2x128xf32> to vector<2x128xbf16>
      %c1_59 = arith.constant 1 : index
      %c0_60 = arith.constant 0 : index
      %c0_61 = arith.constant 0 : index
      %66 = vector.load %arg2[%c1_59, %c0_60, %c0_61] : memref<9x128x128xbf16, #tpu.memory_space<vmem>>, vector<1x128x128xbf16>
      %67 = vector.shape_cast %66 : vector<1x128x128xbf16> to vector<128x128xbf16>
      %cst_62 = arith.constant dense<0.000000e+00> : vector<2x128xf32>
      %68 = tpu.matmul %65, %67, %cst_62 {dimension_numbers = #tpu.dot_dimension_numbers<[1], [0], [0], [1], [0, 0, 1, 1], [], []>} : vector<2x128xbf16>, vector<128x128xbf16>, vector<2x128xf32> -> vector<2x128xf32>
      %69 = arith.addf %60, %68 : vector<2x128xf32>
      %c0_i32_63 = arith.constant 0 : i32
      %70 = arith.addi %50, %c0_i32_63 : i32
      %c0_64 = arith.constant 0 : index
      %71 = arith.index_cast %70 : i32 to index
      %c2_65 = arith.constant 2 : index
      %c0_66 = arith.constant 0 : index
      %72 = vector.load %arg1[%c0_64, %71, %c2_65, %c0_66] : memref<1x4x4x128xf32, #tpu.memory_space<vmem>>, vector<1x1x2x128xf32>
      %73 = vector.shape_cast %72 : vector<1x1x2x128xf32> to vector<2x128xf32>
      %74 = arith.truncf %73 : vector<2x128xf32> to vector<2x128xbf16>
      %c2_67 = arith.constant 2 : index
      %c0_68 = arith.constant 0 : index
      %c0_69 = arith.constant 0 : index
      %75 = vector.load %arg2[%c2_67, %c0_68, %c0_69] : memref<9x128x128xbf16, #tpu.memory_space<vmem>>, vector<1x128x128xbf16>
      %76 = vector.shape_cast %75 : vector<1x128x128xbf16> to vector<128x128xbf16>
      %cst_70 = arith.constant dense<0.000000e+00> : vector<2x128xf32>
      %77 = tpu.matmul %74, %76, %cst_70 {dimension_numbers = #tpu.dot_dimension_numbers<[1], [0], [0], [1], [0, 0, 1, 1], [], []>} : vector<2x128xbf16>, vector<128x128xbf16>, vector<2x128xf32> -> vector<2x128xf32>
      %78 = arith.addf %69, %77 : vector<2x128xf32>
      %c1_i32_71 = arith.constant 1 : i32
      %79 = arith.addi %50, %c1_i32_71 : i32
      %c0_72 = arith.constant 0 : index
      %80 = arith.index_cast %79 : i32 to index
      %c0_73 = arith.constant 0 : index
      %c0_74 = arith.constant 0 : index
      %81 = vector.load %arg1[%c0_72, %80, %c0_73, %c0_74] : memref<1x4x4x128xf32, #tpu.memory_space<vmem>>, vector<1x1x2x128xf32>
      %82 = vector.shape_cast %81 : vector<1x1x2x128xf32> to vector<2x128xf32>
      %83 = arith.truncf %82 : vector<2x128xf32> to vector<2x128xbf16>
      %c3_75 = arith.constant 3 : index
      %c0_76 = arith.constant 0 : index
      %c0_77 = arith.constant 0 : index
      %84 = vector.load %arg2[%c3_75, %c0_76, %c0_77] : memref<9x128x128xbf16, #tpu.memory_space<vmem>>, vector<1x128x128xbf16>
      %85 = vector.shape_cast %84 : vector<1x128x128xbf16> to vector<128x128xbf16>
      %cst_78 = arith.constant dense<0.000000e+00> : vector<2x128xf32>
      %86 = tpu.matmul %83, %85, %cst_78 {dimension_numbers = #tpu.dot_dimension_numbers<[1], [0], [0], [1], [0, 0, 1, 1], [], []>} : vector<2x128xbf16>, vector<128x128xbf16>, vector<2x128xf32> -> vector<2x128xf32>
      %87 = arith.addf %78, %86 : vector<2x128xf32>
      %c1_i32_79 = arith.constant 1 : i32
      %88 = arith.addi %50, %c1_i32_79 : i32
      %c0_80 = arith.constant 0 : index
      %89 = arith.index_cast %88 : i32 to index
      %c1_81 = arith.constant 1 : index
      %c0_82 = arith.constant 0 : index
      %90 = vector.load %arg1[%c0_80, %89, %c1_81, %c0_82] : memref<1x4x4x128xf32, #tpu.memory_space<vmem>>, vector<1x1x2x128xf32>
      %91 = vector.shape_cast %90 : vector<1x1x2x128xf32> to vector<2x128xf32>
      %92 = arith.truncf %91 : vector<2x128xf32> to vector<2x128xbf16>
      %c4 = arith.constant 4 : index
      %c0_83 = arith.constant 0 : index
      %c0_84 = arith.constant 0 : index
      %93 = vector.load %arg2[%c4, %c0_83, %c0_84] : memref<9x128x128xbf16, #tpu.memory_space<vmem>>, vector<1x128x128xbf16>
      %94 = vector.shape_cast %93 : vector<1x128x128xbf16> to vector<128x128xbf16>
      %cst_85 = arith.constant dense<0.000000e+00> : vector<2x128xf32>
      %95 = tpu.matmul %92, %94, %cst_85 {dimension_numbers = #tpu.dot_dimension_numbers<[1], [0], [0], [1], [0, 0, 1, 1], [], []>} : vector<2x128xbf16>, vector<128x128xbf16>, vector<2x128xf32> -> vector<2x128xf32>
      %96 = arith.addf %87, %95 : vector<2x128xf32>
      %c1_i32_86 = arith.constant 1 : i32
      %97 = arith.addi %50, %c1_i32_86 : i32
      %c0_87 = arith.constant 0 : index
      %98 = arith.index_cast %97 : i32 to index
      %c2_88 = arith.constant 2 : index
      %c0_89 = arith.constant 0 : index
      %99 = vector.load %arg1[%c0_87, %98, %c2_88, %c0_89] : memref<1x4x4x128xf32, #tpu.memory_space<vmem>>, vector<1x1x2x128xf32>
      %100 = vector.shape_cast %99 : vector<1x1x2x128xf32> to vector<2x128xf32>
      %101 = arith.truncf %100 : vector<2x128xf32> to vector<2x128xbf16>
      %c5 = arith.constant 5 : index
      %c0_90 = arith.constant 0 : index
      %c0_91 = arith.constant 0 : index
      %102 = vector.load %arg2[%c5, %c0_90, %c0_91] : memref<9x128x128xbf16, #tpu.memory_space<vmem>>, vector<1x128x128xbf16>
      %103 = vector.shape_cast %102 : vector<1x128x128xbf16> to vector<128x128xbf16>
      %cst_92 = arith.constant dense<0.000000e+00> : vector<2x128xf32>
      %104 = tpu.matmul %101, %103, %cst_92 {dimension_numbers = #tpu.dot_dimension_numbers<[1], [0], [0], [1], [0, 0, 1, 1], [], []>} : vector<2x128xbf16>, vector<128x128xbf16>, vector<2x128xf32> -> vector<2x128xf32>
      %105 = arith.addf %96, %104 : vector<2x128xf32>
      %c2_i32_93 = arith.constant 2 : i32
      %106 = arith.addi %50, %c2_i32_93 : i32
      %c0_94 = arith.constant 0 : index
      %107 = arith.index_cast %106 : i32 to index
      %c0_95 = arith.constant 0 : index
      %c0_96 = arith.constant 0 : index
      %108 = vector.load %arg1[%c0_94, %107, %c0_95, %c0_96] : memref<1x4x4x128xf32, #tpu.memory_space<vmem>>, vector<1x1x2x128xf32>
      %109 = vector.shape_cast %108 : vector<1x1x2x128xf32> to vector<2x128xf32>
      %110 = arith.truncf %109 : vector<2x128xf32> to vector<2x128xbf16>
      %c6 = arith.constant 6 : index
      %c0_97 = arith.constant 0 : index
      %c0_98 = arith.constant 0 : index
      %111 = vector.load %arg2[%c6, %c0_97, %c0_98] : memref<9x128x128xbf16, #tpu.memory_space<vmem>>, vector<1x128x128xbf16>
      %112 = vector.shape_cast %111 : vector<1x128x128xbf16> to vector<128x128xbf16>
      %cst_99 = arith.constant dense<0.000000e+00> : vector<2x128xf32>
      %113 = tpu.matmul %110, %112, %cst_99 {dimension_numbers = #tpu.dot_dimension_numbers<[1], [0], [0], [1], [0, 0, 1, 1], [], []>} : vector<2x128xbf16>, vector<128x128xbf16>, vector<2x128xf32> -> vector<2x128xf32>
      %114 = arith.addf %105, %113 : vector<2x128xf32>
      %c2_i32_100 = arith.constant 2 : i32
      %115 = arith.addi %50, %c2_i32_100 : i32
      %c0_101 = arith.constant 0 : index
      %116 = arith.index_cast %115 : i32 to index
      %c1_102 = arith.constant 1 : index
      %c0_103 = arith.constant 0 : index
      %117 = vector.load %arg1[%c0_101, %116, %c1_102, %c0_103] : memref<1x4x4x128xf32, #tpu.memory_space<vmem>>, vector<1x1x2x128xf32>
      %118 = vector.shape_cast %117 : vector<1x1x2x128xf32> to vector<2x128xf32>
      %119 = arith.truncf %118 : vector<2x128xf32> to vector<2x128xbf16>
      %c7 = arith.constant 7 : index
      %c0_104 = arith.constant 0 : index
      %c0_105 = arith.constant 0 : index
      %120 = vector.load %arg2[%c7, %c0_104, %c0_105] : memref<9x128x128xbf16, #tpu.memory_space<vmem>>, vector<1x128x128xbf16>
      %121 = vector.shape_cast %120 : vector<1x128x128xbf16> to vector<128x128xbf16>
      %cst_106 = arith.constant dense<0.000000e+00> : vector<2x128xf32>
      %122 = tpu.matmul %119, %121, %cst_106 {dimension_numbers = #tpu.dot_dimension_numbers<[1], [0], [0], [1], [0, 0, 1, 1], [], []>} : vector<2x128xbf16>, vector<128x128xbf16>, vector<2x128xf32> -> vector<2x128xf32>
      %123 = arith.addf %114, %122 : vector<2x128xf32>
      %c2_i32_107 = arith.constant 2 : i32
      %124 = arith.addi %50, %c2_i32_107 : i32
      %c0_108 = arith.constant 0 : index
      %125 = arith.index_cast %124 : i32 to index
      %c2_109 = arith.constant 2 : index
      %c0_110 = arith.constant 0 : index
      %126 = vector.load %arg1[%c0_108, %125, %c2_109, %c0_110] : memref<1x4x4x128xf32, #tpu.memory_space<vmem>>, vector<1x1x2x128xf32>
      %127 = vector.shape_cast %126 : vector<1x1x2x128xf32> to vector<2x128xf32>
      %128 = arith.truncf %127 : vector<2x128xf32> to vector<2x128xbf16>
      %c8 = arith.constant 8 : index
      %c0_111 = arith.constant 0 : index
      %c0_112 = arith.constant 0 : index
      %129 = vector.load %arg2[%c8, %c0_111, %c0_112] : memref<9x128x128xbf16, #tpu.memory_space<vmem>>, vector<1x128x128xbf16>
      %130 = vector.shape_cast %129 : vector<1x128x128xbf16> to vector<128x128xbf16>
      %cst_113 = arith.constant dense<0.000000e+00> : vector<2x128xf32>
      %131 = tpu.matmul %128, %130, %cst_113 {dimension_numbers = #tpu.dot_dimension_numbers<[1], [0], [0], [1], [0, 0, 1, 1], [], []>} : vector<2x128xbf16>, vector<128x128xbf16>, vector<2x128xf32> -> vector<2x128xf32>
      %132 = arith.addf %123, %131 : vector<2x128xf32>
      %c0_114 = arith.constant 0 : index
      %c0_115 = arith.constant 0 : index
      %133 = vector.load %arg3[%c0_114, %c0_115] : memref<1x128xf32, #tpu.memory_space<vmem>>, vector<1x128xf32>
      %134 = vector.broadcast %133 : vector<1x128xf32> to vector<2x128xf32>
      %135 = arith.mulf %132, %134 : vector<2x128xf32>
      %c0_116 = arith.constant 0 : index
      %c0_117 = arith.constant 0 : index
      %136 = vector.load %arg4[%c0_116, %c0_117] : memref<1x128xf32, #tpu.memory_space<vmem>>, vector<1x128xf32>
      %137 = vector.broadcast %136 : vector<1x128xf32> to vector<2x128xf32>
      %138 = arith.addf %135, %137 : vector<2x128xf32>
      %cst_118 = arith.constant 0.000000e+00 : f32
      %139 = vector.broadcast %cst_118 : f32 to vector<2x128xf32>
      %140 = arith.maximumf %138, %139 : vector<2x128xf32>
      %c0_119 = arith.constant 0 : index
      %c0_120 = arith.constant 0 : index
      %141 = vector.load %arg5[%c0_119, %c0_120] : memref<4x2xf32, #tpu.memory_space<vmem>>, vector<4x2xf32>
      %cst_121 = arith.constant dense<0.000000e+00> : vector<4x128xf32>
      %142 = tpu.matmul %141, %140, %cst_121 {dimension_numbers = #tpu.dot_dimension_numbers<[1], [0], [0], [1], [0, 0, 1, 1], [], []>} : vector<4x2xf32>, vector<2x128xf32>, vector<4x128xf32> -> vector<4x128xf32>
      %143 = arith.index_cast %50 : i32 to index
      %c0_122 = arith.constant 0 : index
      %c0_123 = arith.constant 0 : index
      %144 = vector.load %arg7[%143, %c0_122, %c0_123] : memref<2x4x128xf32, #tpu.memory_space<vmem>>, vector<1x4x128xf32>
      %145 = vector.shape_cast %144 : vector<1x4x128xf32> to vector<4x128xf32>
      %146 = vector.shape_cast %142 : vector<4x128xf32> to vector<1x4x128xf32>
      tpu.vector_store %arg7[%143, %c0_122, %c0_123], %146 {strides = array<i32>} : memref<2x4x128xf32, #tpu.memory_space<vmem>>, vector<1x4x128xf32>,
    }
    %c2_i32_0 = arith.constant 2 : i32
    %c0 = arith.constant 0 : index
    %c0_1 = arith.constant 0 : index
    %c0_2 = arith.constant 0 : index
    %1 = vector.load %arg7[%c0, %c0_1, %c0_2] : memref<2x4x128xf32, #tpu.memory_space<vmem>>, vector<1x4x128xf32>
    %2 = vector.shape_cast %1 : vector<1x4x128xf32> to vector<4x128xf32>
    %cst = arith.constant 1.000000e+00 : f32
    %3 = vector.broadcast %cst : f32 to vector<4x128xf32>
    %4 = arith.mulf %3, %2 : vector<4x128xf32>
    %c1 = arith.constant 1 : index
    %c0_3 = arith.constant 0 : index
    %c0_4 = arith.constant 0 : index
    %5 = vector.load %arg7[%c1, %c0_3, %c0_4] : memref<2x4x128xf32, #tpu.memory_space<vmem>>, vector<1x4x128xf32>
    %6 = vector.shape_cast %5 : vector<1x4x128xf32> to vector<4x128xf32>
    %cst_5 = arith.constant 0.000000e+00 : f32
    %7 = vector.broadcast %cst_5 : f32 to vector<4x128xf32>
    %8 = arith.mulf %7, %6 : vector<4x128xf32>
    %9 = arith.addf %4, %8 : vector<4x128xf32>
    %c0_6 = arith.constant 0 : index
    %c0_7 = arith.constant 0 : index
    %c0_8 = arith.constant 0 : index
    %c0_9 = arith.constant 0 : index
    %10 = vector.load %arg6[%c0_6, %c0_7, %c0_8, %c0_9] : memref<1x4x4x128xf32, #tpu.memory_space<vmem>>, vector<1x1x4x128xf32>
    %11 = vector.shape_cast %10 : vector<1x1x4x128xf32> to vector<4x128xf32>
    %12 = vector.shape_cast %9 : vector<4x128xf32> to vector<1x1x4x128xf32>
    tpu.vector_store %arg6[%c0_6, %c0_7, %c0_8, %c0_9], %12 {strides = array<i32>} : memref<1x4x4x128xf32, #tpu.memory_space<vmem>>, vector<1x1x4x128xf32>,
    %c0_10 = arith.constant 0 : index
    %c0_11 = arith.constant 0 : index
    %c0_12 = arith.constant 0 : index
    %13 = vector.load %arg7[%c0_10, %c0_11, %c0_12] : memref<2x4x128xf32, #tpu.memory_space<vmem>>, vector<1x4x128xf32>
    %14 = vector.shape_cast %13 : vector<1x4x128xf32> to vector<4x128xf32>
    %cst_13 = arith.constant 7.500000e-01 : f32
    %15 = vector.broadcast %cst_13 : f32 to vector<4x128xf32>
    %16 = arith.mulf %15, %14 : vector<4x128xf32>
    %c1_14 = arith.constant 1 : index
    %c0_15 = arith.constant 0 : index
    %c0_16 = arith.constant 0 : index
    %17 = vector.load %arg7[%c1_14, %c0_15, %c0_16] : memref<2x4x128xf32, #tpu.memory_space<vmem>>, vector<1x4x128xf32>
    %18 = vector.shape_cast %17 : vector<1x4x128xf32> to vector<4x128xf32>
    %cst_17 = arith.constant 2.500000e-01 : f32
    %19 = vector.broadcast %cst_17 : f32 to vector<4x128xf32>
    %20 = arith.mulf %19, %18 : vector<4x128xf32>
    %21 = arith.addf %16, %20 : vector<4x128xf32>
    %c0_18 = arith.constant 0 : index
    %c1_19 = arith.constant 1 : index
    %c0_20 = arith.constant 0 : index
    %c0_21 = arith.constant 0 : index
    %22 = vector.load %arg6[%c0_18, %c1_19, %c0_20, %c0_21] : memref<1x4x4x128xf32, #tpu.memory_space<vmem>>, vector<1x1x4x128xf32>
    %23 = vector.shape_cast %22 : vector<1x1x4x128xf32> to vector<4x128xf32>
    %24 = vector.shape_cast %21 : vector<4x128xf32> to vector<1x1x4x128xf32>
    tpu.vector_store %arg6[%c0_18, %c1_19, %c0_20, %c0_21], %24 {strides = array<i32>} : memref<1x4x4x128xf32, #tpu.memory_space<vmem>>, vector<1x1x4x128xf32>,
    %c0_22 = arith.constant 0 : index
    %c0_23 = arith.constant 0 : index
    %c0_24 = arith.constant 0 : index
    %25 = vector.load %arg7[%c0_22, %c0_23, %c0_24] : memref<2x4x128xf32, #tpu.memory_space<vmem>>, vector<1x4x128xf32>
    %26 = vector.shape_cast %25 : vector<1x4x128xf32> to vector<4x128xf32>
    %cst_25 = arith.constant 2.500000e-01 : f32
    %27 = vector.broadcast %cst_25 : f32 to vector<4x128xf32>
    %28 = arith.mulf %27, %26 : vector<4x128xf32>
    %c1_26 = arith.constant 1 : index
    %c0_27 = arith.constant 0 : index
    %c0_28 = arith.constant 0 : index
    %29 = vector.load %arg7[%c1_26, %c0_27, %c0_28] : memref<2x4x128xf32, #tpu.memory_space<vmem>>, vector<1x4x128xf32>
    %30 = vector.shape_cast %29 : vector<1x4x128xf32> to vector<4x128xf32>
    %cst_29 = arith.constant 7.500000e-01 : f32
    %31 = vector.broadcast %cst_29 : f32 to vector<4x128xf32>
    %32 = arith.mulf %31, %30 : vector<4x128xf32>
    %33 = arith.addf %28, %32 : vector<4x128xf32>
    %c0_30 = arith.constant 0 : index
    %c2 = arith.constant 2 : index
    %c0_31 = arith.constant 0 : index
    %c0_32 = arith.constant 0 : index
    %34 = vector.load %arg6[%c0_30, %c2, %c0_31, %c0_32] : memref<1x4x4x128xf32, #tpu.memory_space<vmem>>, vector<1x1x4x128xf32>
    %35 = vector.shape_cast %34 : vector<1x1x4x128xf32> to vector<4x128xf32>
    %36 = vector.shape_cast %33 : vector<4x128xf32> to vector<1x1x4x128xf32>
    tpu.vector_store %arg6[%c0_30, %c2, %c0_31, %c0_32], %36 {strides = array<i32>} : memref<1x4x4x128xf32, #tpu.memory_space<vmem>>, vector<1x1x4x128xf32>,
    %c1_33 = arith.constant 1 : index
    %c0_34 = arith.constant 0 : index
    %c0_35 = arith.constant 0 : index
    %37 = vector.load %arg7[%c1_33, %c0_34, %c0_35] : memref<2x4x128xf32, #tpu.memory_space<vmem>>, vector<1x4x128xf32>
    %38 = vector.shape_cast %37 : vector<1x4x128xf32> to vector<4x128xf32>
    %cst_36 = arith.constant 7.500000e-01 : f32
    %39 = vector.broadcast %cst_36 : f32 to vector<4x128xf32>
    %40 = arith.mulf %39, %38 : vector<4x128xf32>
    %c1_37 = arith.constant 1 : index
    %c0_38 = arith.constant 0 : index
    %c0_39 = arith.constant 0 : index
    %41 = vector.load %arg7[%c1_37, %c0_38, %c0_39] : memref<2x4x128xf32, #tpu.memory_space<vmem>>, vector<1x4x128xf32>
    %42 = vector.shape_cast %41 : vector<1x4x128xf32> to vector<4x128xf32>
    %cst_40 = arith.constant 2.500000e-01 : f32
    %43 = vector.broadcast %cst_40 : f32 to vector<4x128xf32>
    %44 = arith.mulf %43, %42 : vector<4x128xf32>
    %45 = arith.addf %40, %44 : vector<4x128xf32>
    %c0_41 = arith.constant 0 : index
    %c3 = arith.constant 3 : index
    %c0_42 = arith.constant 0 : index
    %c0_43 = arith.constant 0 : index
    %46 = vector.load %arg6[%c0_41, %c3, %c0_42, %c0_43] : memref<1x4x4x128xf32, #tpu.memory_space<vmem>>, vector<1x1x4x128xf32>
    %47 = vector.shape_cast %46 : vector<1x1x4x128xf32> to vector<4x128xf32>
    %48 = vector.shape_cast %45 : vector<4x128xf32> to vector<1x1x4x128xf32>
    tpu.vector_store %arg6[%c0_41, %c3, %c0_42, %c0_43], %48 {strides = array<i32>} : memref<1x4x4x128xf32, #tpu.memory_space<vmem>>, vector<1x1x4x128xf32>,
    return
  }
  func.func @transform_0(%arg0: i32) -> (i32, i32, i32, i32) {
    %c0_i32 = arith.constant 0 : i32
    %c0_i32_0 = arith.constant 0 : i32
    %c0_i32_1 = arith.constant 0 : i32
    %c0_i32_2 = arith.constant 0 : i32
    return %arg0, %c0_i32, %c0_i32_0, %c0_i32_1 : i32, i32, i32, i32
  }
  func.func @transform_1(%arg0: i32) -> (i32, i32, i32) {
    %c0_i32 = arith.constant 0 : i32
    %c0_i32_0 = arith.constant 0 : i32
    %c0_i32_1 = arith.constant 0 : i32
    %c0_i32_2 = arith.constant 0 : i32
    return %c0_i32, %c0_i32_0, %c0_i32_1 : i32, i32, i32
  }
  func.func @transform_2(%arg0: i32) -> (i32, i32) {
    %c0_i32 = arith.constant 0 : i32
    %c0_i32_0 = arith.constant 0 : i32
    %c0_i32_1 = arith.constant 0 : i32
    return %c0_i32, %c0_i32_0 : i32, i32
  }
  func.func @transform_3(%arg0: i32) -> (i32, i32) {
    %c0_i32 = arith.constant 0 : i32
    %c0_i32_0 = arith.constant 0 : i32
    %c0_i32_1 = arith.constant 0 : i32
    return %c0_i32, %c0_i32_0 : i32, i32
  }
  func.func @transform_4(%arg0: i32) -> (i32, i32) {
    %c0_i32 = arith.constant 0 : i32
    %c0_i32_0 = arith.constant 0 : i32
    %c0_i32_1 = arith.constant 0 : i32
    return %c0_i32, %c0_i32_0 : i32, i32
  }
  func.func @transform_5(%arg0: i32) -> (i32, i32, i32, i32) {
    %c0_i32 = arith.constant 0 : i32
    %c0_i32_0 = arith.constant 0 : i32
    %c0_i32_1 = arith.constant 0 : i32
    %c0_i32_2 = arith.constant 0 : i32
    return %arg0, %c0_i32, %c0_i32_0, %c0_i32_1 : i32, i32, i32, i32
  }
}

module attributes {stable_mosaic.version = 11 : i64} {
  func.func @kernel(%arg0: i32, %arg1: memref<1x10x10x128xf32, #tpu.memory_space<vmem>>, %arg2: memref<9x128x128xbf16, #tpu.memory_space<vmem>>, %arg3: memref<1x128xf32, #tpu.memory_space<vmem>>, %arg4: memref<1x128xf32, #tpu.memory_space<vmem>>, %arg5: memref<16x8xf32, #tpu.memory_space<vmem>>, %arg6: memref<1x16x16x128xf32, #tpu.memory_space<vmem>>, %arg7: memref<8x16x128xf32, #tpu.memory_space<vmem>>) attributes {dimension_semantics = [#tpu.dimension_semantics<parallel>], iteration_bounds = array<i64: 2>, scalar_prefetch = 0 : i64, scratch_operands = 1 : i64, tpu.core_type = #tpu.core_type<tc>, window_params = [{transform_indices = @transform_0, window_bounds = array<i64: 1, 10, 10, 128>}, {pipeline_mode = #tpu.pipeline_mode<synchronous>, transform_indices = @transform_1, window_bounds = array<i64: 9, 128, 128>}, {pipeline_mode = #tpu.pipeline_mode<synchronous>, transform_indices = @transform_2, window_bounds = array<i64: 1, 128>}, {pipeline_mode = #tpu.pipeline_mode<synchronous>, transform_indices = @transform_3, window_bounds = array<i64: 1, 128>}, {pipeline_mode = #tpu.pipeline_mode<synchronous>, transform_indices = @transform_4, window_bounds = array<i64: 16, 8>}, {transform_indices = @transform_5, window_bounds = array<i64: 1, 16, 16, 128>}]} {
    %c0_i32 = arith.constant 0 : i32
    %c8_i32 = arith.constant 8 : i32
    %0 = arith.addi %c0_i32, %c8_i32 : i32
    %c1_i32 = arith.constant 1 : i32
    scf.for %arg8 = %c0_i32 to %0 step %c1_i32  : i32 {
      %c1_i32_176 = arith.constant 1 : i32
      %193 = arith.muli %arg8, %c1_i32_176 : i32
      %c0_i32_177 = arith.constant 0 : i32
      %194 = arith.addi %c0_i32_177, %193 : i32
      %cst_178 = arith.constant 0.000000e+00 : f32
      %195 = vector.broadcast %cst_178 : f32 to vector<8x128xf32>
      %c0_i32_179 = arith.constant 0 : i32
      %196 = arith.addi %194, %c0_i32_179 : i32
      %c0_180 = arith.constant 0 : index
      %197 = arith.index_cast %196 : i32 to index
      %c0_181 = arith.constant 0 : index
      %c0_182 = arith.constant 0 : index
      %198 = vector.load %arg1[%c0_180, %197, %c0_181, %c0_182] : memref<1x10x10x128xf32, #tpu.memory_space<vmem>>, vector<1x1x8x128xf32>
      %199 = vector.shape_cast %198 : vector<1x1x8x128xf32> to vector<8x128xf32>
      %200 = arith.truncf %199 : vector<8x128xf32> to vector<8x128xbf16>
      %c0_183 = arith.constant 0 : index
      %c0_184 = arith.constant 0 : index
      %c0_185 = arith.constant 0 : index
      %201 = vector.load %arg2[%c0_183, %c0_184, %c0_185] : memref<9x128x128xbf16, #tpu.memory_space<vmem>>, vector<1x128x128xbf16>
      %202 = vector.shape_cast %201 : vector<1x128x128xbf16> to vector<128x128xbf16>
      %cst_186 = arith.constant dense<0.000000e+00> : vector<8x128xf32>
      %203 = tpu.matmul %200, %202, %cst_186 {dimension_numbers = #tpu.dot_dimension_numbers<[1], [0], [0], [1], [0, 0, 1, 1], [], []>} : vector<8x128xbf16>, vector<128x128xbf16>, vector<8x128xf32> -> vector<8x128xf32>
      %204 = arith.addf %195, %203 : vector<8x128xf32>
      %c0_i32_187 = arith.constant 0 : i32
      %205 = arith.addi %194, %c0_i32_187 : i32
      %c0_188 = arith.constant 0 : index
      %206 = arith.index_cast %205 : i32 to index
      %c1_189 = arith.constant 1 : index
      %c0_190 = arith.constant 0 : index
      %207 = vector.load %arg1[%c0_188, %206, %c1_189, %c0_190] : memref<1x10x10x128xf32, #tpu.memory_space<vmem>>, vector<1x1x8x128xf32>
      %208 = vector.shape_cast %207 : vector<1x1x8x128xf32> to vector<8x128xf32>
      %209 = arith.truncf %208 : vector<8x128xf32> to vector<8x128xbf16>
      %c1_191 = arith.constant 1 : index
      %c0_192 = arith.constant 0 : index
      %c0_193 = arith.constant 0 : index
      %210 = vector.load %arg2[%c1_191, %c0_192, %c0_193] : memref<9x128x128xbf16, #tpu.memory_space<vmem>>, vector<1x128x128xbf16>
      %211 = vector.shape_cast %210 : vector<1x128x128xbf16> to vector<128x128xbf16>
      %cst_194 = arith.constant dense<0.000000e+00> : vector<8x128xf32>
      %212 = tpu.matmul %209, %211, %cst_194 {dimension_numbers = #tpu.dot_dimension_numbers<[1], [0], [0], [1], [0, 0, 1, 1], [], []>} : vector<8x128xbf16>, vector<128x128xbf16>, vector<8x128xf32> -> vector<8x128xf32>
      %213 = arith.addf %204, %212 : vector<8x128xf32>
      %c0_i32_195 = arith.constant 0 : i32
      %214 = arith.addi %194, %c0_i32_195 : i32
      %c0_196 = arith.constant 0 : index
      %215 = arith.index_cast %214 : i32 to index
      %c2_197 = arith.constant 2 : index
      %c0_198 = arith.constant 0 : index
      %216 = vector.load %arg1[%c0_196, %215, %c2_197, %c0_198] : memref<1x10x10x128xf32, #tpu.memory_space<vmem>>, vector<1x1x8x128xf32>
      %217 = vector.shape_cast %216 : vector<1x1x8x128xf32> to vector<8x128xf32>
      %218 = arith.truncf %217 : vector<8x128xf32> to vector<8x128xbf16>
      %c2_199 = arith.constant 2 : index
      %c0_200 = arith.constant 0 : index
      %c0_201 = arith.constant 0 : index
      %219 = vector.load %arg2[%c2_199, %c0_200, %c0_201] : memref<9x128x128xbf16, #tpu.memory_space<vmem>>, vector<1x128x128xbf16>
      %220 = vector.shape_cast %219 : vector<1x128x128xbf16> to vector<128x128xbf16>
      %cst_202 = arith.constant dense<0.000000e+00> : vector<8x128xf32>
      %221 = tpu.matmul %218, %220, %cst_202 {dimension_numbers = #tpu.dot_dimension_numbers<[1], [0], [0], [1], [0, 0, 1, 1], [], []>} : vector<8x128xbf16>, vector<128x128xbf16>, vector<8x128xf32> -> vector<8x128xf32>
      %222 = arith.addf %213, %221 : vector<8x128xf32>
      %c1_i32_203 = arith.constant 1 : i32
      %223 = arith.addi %194, %c1_i32_203 : i32
      %c0_204 = arith.constant 0 : index
      %224 = arith.index_cast %223 : i32 to index
      %c0_205 = arith.constant 0 : index
      %c0_206 = arith.constant 0 : index
      %225 = vector.load %arg1[%c0_204, %224, %c0_205, %c0_206] : memref<1x10x10x128xf32, #tpu.memory_space<vmem>>, vector<1x1x8x128xf32>
      %226 = vector.shape_cast %225 : vector<1x1x8x128xf32> to vector<8x128xf32>
      %227 = arith.truncf %226 : vector<8x128xf32> to vector<8x128xbf16>
      %c3_207 = arith.constant 3 : index
      %c0_208 = arith.constant 0 : index
      %c0_209 = arith.constant 0 : index
      %228 = vector.load %arg2[%c3_207, %c0_208, %c0_209] : memref<9x128x128xbf16, #tpu.memory_space<vmem>>, vector<1x128x128xbf16>
      %229 = vector.shape_cast %228 : vector<1x128x128xbf16> to vector<128x128xbf16>
      %cst_210 = arith.constant dense<0.000000e+00> : vector<8x128xf32>
      %230 = tpu.matmul %227, %229, %cst_210 {dimension_numbers = #tpu.dot_dimension_numbers<[1], [0], [0], [1], [0, 0, 1, 1], [], []>} : vector<8x128xbf16>, vector<128x128xbf16>, vector<8x128xf32> -> vector<8x128xf32>
      %231 = arith.addf %222, %230 : vector<8x128xf32>
      %c1_i32_211 = arith.constant 1 : i32
      %232 = arith.addi %194, %c1_i32_211 : i32
      %c0_212 = arith.constant 0 : index
      %233 = arith.index_cast %232 : i32 to index
      %c1_213 = arith.constant 1 : index
      %c0_214 = arith.constant 0 : index
      %234 = vector.load %arg1[%c0_212, %233, %c1_213, %c0_214] : memref<1x10x10x128xf32, #tpu.memory_space<vmem>>, vector<1x1x8x128xf32>
      %235 = vector.shape_cast %234 : vector<1x1x8x128xf32> to vector<8x128xf32>
      %236 = arith.truncf %235 : vector<8x128xf32> to vector<8x128xbf16>
      %c4_215 = arith.constant 4 : index
      %c0_216 = arith.constant 0 : index
      %c0_217 = arith.constant 0 : index
      %237 = vector.load %arg2[%c4_215, %c0_216, %c0_217] : memref<9x128x128xbf16, #tpu.memory_space<vmem>>, vector<1x128x128xbf16>
      %238 = vector.shape_cast %237 : vector<1x128x128xbf16> to vector<128x128xbf16>
      %cst_218 = arith.constant dense<0.000000e+00> : vector<8x128xf32>
      %239 = tpu.matmul %236, %238, %cst_218 {dimension_numbers = #tpu.dot_dimension_numbers<[1], [0], [0], [1], [0, 0, 1, 1], [], []>} : vector<8x128xbf16>, vector<128x128xbf16>, vector<8x128xf32> -> vector<8x128xf32>
      %240 = arith.addf %231, %239 : vector<8x128xf32>
      %c1_i32_219 = arith.constant 1 : i32
      %241 = arith.addi %194, %c1_i32_219 : i32
      %c0_220 = arith.constant 0 : index
      %242 = arith.index_cast %241 : i32 to index
      %c2_221 = arith.constant 2 : index
      %c0_222 = arith.constant 0 : index
      %243 = vector.load %arg1[%c0_220, %242, %c2_221, %c0_222] : memref<1x10x10x128xf32, #tpu.memory_space<vmem>>, vector<1x1x8x128xf32>
      %244 = vector.shape_cast %243 : vector<1x1x8x128xf32> to vector<8x128xf32>
      %245 = arith.truncf %244 : vector<8x128xf32> to vector<8x128xbf16>
      %c5_223 = arith.constant 5 : index
      %c0_224 = arith.constant 0 : index
      %c0_225 = arith.constant 0 : index
      %246 = vector.load %arg2[%c5_223, %c0_224, %c0_225] : memref<9x128x128xbf16, #tpu.memory_space<vmem>>, vector<1x128x128xbf16>
      %247 = vector.shape_cast %246 : vector<1x128x128xbf16> to vector<128x128xbf16>
      %cst_226 = arith.constant dense<0.000000e+00> : vector<8x128xf32>
      %248 = tpu.matmul %245, %247, %cst_226 {dimension_numbers = #tpu.dot_dimension_numbers<[1], [0], [0], [1], [0, 0, 1, 1], [], []>} : vector<8x128xbf16>, vector<128x128xbf16>, vector<8x128xf32> -> vector<8x128xf32>
      %249 = arith.addf %240, %248 : vector<8x128xf32>
      %c2_i32 = arith.constant 2 : i32
      %250 = arith.addi %194, %c2_i32 : i32
      %c0_227 = arith.constant 0 : index
      %251 = arith.index_cast %250 : i32 to index
      %c0_228 = arith.constant 0 : index
      %c0_229 = arith.constant 0 : index
      %252 = vector.load %arg1[%c0_227, %251, %c0_228, %c0_229] : memref<1x10x10x128xf32, #tpu.memory_space<vmem>>, vector<1x1x8x128xf32>
      %253 = vector.shape_cast %252 : vector<1x1x8x128xf32> to vector<8x128xf32>
      %254 = arith.truncf %253 : vector<8x128xf32> to vector<8x128xbf16>
      %c6_230 = arith.constant 6 : index
      %c0_231 = arith.constant 0 : index
      %c0_232 = arith.constant 0 : index
      %255 = vector.load %arg2[%c6_230, %c0_231, %c0_232] : memref<9x128x128xbf16, #tpu.memory_space<vmem>>, vector<1x128x128xbf16>
      %256 = vector.shape_cast %255 : vector<1x128x128xbf16> to vector<128x128xbf16>
      %cst_233 = arith.constant dense<0.000000e+00> : vector<8x128xf32>
      %257 = tpu.matmul %254, %256, %cst_233 {dimension_numbers = #tpu.dot_dimension_numbers<[1], [0], [0], [1], [0, 0, 1, 1], [], []>} : vector<8x128xbf16>, vector<128x128xbf16>, vector<8x128xf32> -> vector<8x128xf32>
      %258 = arith.addf %249, %257 : vector<8x128xf32>
      %c2_i32_234 = arith.constant 2 : i32
      %259 = arith.addi %194, %c2_i32_234 : i32
      %c0_235 = arith.constant 0 : index
      %260 = arith.index_cast %259 : i32 to index
      %c1_236 = arith.constant 1 : index
      %c0_237 = arith.constant 0 : index
      %261 = vector.load %arg1[%c0_235, %260, %c1_236, %c0_237] : memref<1x10x10x128xf32, #tpu.memory_space<vmem>>, vector<1x1x8x128xf32>
      %262 = vector.shape_cast %261 : vector<1x1x8x128xf32> to vector<8x128xf32>
      %263 = arith.truncf %262 : vector<8x128xf32> to vector<8x128xbf16>
      %c7_238 = arith.constant 7 : index
      %c0_239 = arith.constant 0 : index
      %c0_240 = arith.constant 0 : index
      %264 = vector.load %arg2[%c7_238, %c0_239, %c0_240] : memref<9x128x128xbf16, #tpu.memory_space<vmem>>, vector<1x128x128xbf16>
      %265 = vector.shape_cast %264 : vector<1x128x128xbf16> to vector<128x128xbf16>
      %cst_241 = arith.constant dense<0.000000e+00> : vector<8x128xf32>
      %266 = tpu.matmul %263, %265, %cst_241 {dimension_numbers = #tpu.dot_dimension_numbers<[1], [0], [0], [1], [0, 0, 1, 1], [], []>} : vector<8x128xbf16>, vector<128x128xbf16>, vector<8x128xf32> -> vector<8x128xf32>
      %267 = arith.addf %258, %266 : vector<8x128xf32>
      %c2_i32_242 = arith.constant 2 : i32
      %268 = arith.addi %194, %c2_i32_242 : i32
      %c0_243 = arith.constant 0 : index
      %269 = arith.index_cast %268 : i32 to index
      %c2_244 = arith.constant 2 : index
      %c0_245 = arith.constant 0 : index
      %270 = vector.load %arg1[%c0_243, %269, %c2_244, %c0_245] : memref<1x10x10x128xf32, #tpu.memory_space<vmem>>, vector<1x1x8x128xf32>
      %271 = vector.shape_cast %270 : vector<1x1x8x128xf32> to vector<8x128xf32>
      %272 = arith.truncf %271 : vector<8x128xf32> to vector<8x128xbf16>
      %c8_246 = arith.constant 8 : index
      %c0_247 = arith.constant 0 : index
      %c0_248 = arith.constant 0 : index
      %273 = vector.load %arg2[%c8_246, %c0_247, %c0_248] : memref<9x128x128xbf16, #tpu.memory_space<vmem>>, vector<1x128x128xbf16>
      %274 = vector.shape_cast %273 : vector<1x128x128xbf16> to vector<128x128xbf16>
      %cst_249 = arith.constant dense<0.000000e+00> : vector<8x128xf32>
      %275 = tpu.matmul %272, %274, %cst_249 {dimension_numbers = #tpu.dot_dimension_numbers<[1], [0], [0], [1], [0, 0, 1, 1], [], []>} : vector<8x128xbf16>, vector<128x128xbf16>, vector<8x128xf32> -> vector<8x128xf32>
      %276 = arith.addf %267, %275 : vector<8x128xf32>
      %c0_250 = arith.constant 0 : index
      %c0_251 = arith.constant 0 : index
      %277 = vector.load %arg3[%c0_250, %c0_251] : memref<1x128xf32, #tpu.memory_space<vmem>>, vector<1x128xf32>
      %278 = vector.broadcast %277 : vector<1x128xf32> to vector<8x128xf32>
      %279 = arith.mulf %276, %278 : vector<8x128xf32>
      %c0_252 = arith.constant 0 : index
      %c0_253 = arith.constant 0 : index
      %280 = vector.load %arg4[%c0_252, %c0_253] : memref<1x128xf32, #tpu.memory_space<vmem>>, vector<1x128xf32>
      %281 = vector.broadcast %280 : vector<1x128xf32> to vector<8x128xf32>
      %282 = arith.addf %279, %281 : vector<8x128xf32>
      %cst_254 = arith.constant 0.000000e+00 : f32
      %283 = vector.broadcast %cst_254 : f32 to vector<8x128xf32>
      %284 = arith.maximumf %282, %283 : vector<8x128xf32>
      %c0_255 = arith.constant 0 : index
      %c0_256 = arith.constant 0 : index
      %285 = vector.load %arg5[%c0_255, %c0_256] : memref<16x8xf32, #tpu.memory_space<vmem>>, vector<16x8xf32>
      %cst_257 = arith.constant dense<0.000000e+00> : vector<16x128xf32>
      %286 = tpu.matmul %285, %284, %cst_257 {dimension_numbers = #tpu.dot_dimension_numbers<[1], [0], [0], [1], [0, 0, 1, 1], [], []>} : vector<16x8xf32>, vector<8x128xf32>, vector<16x128xf32> -> vector<16x128xf32>
      %287 = arith.index_cast %194 : i32 to index
      %c0_258 = arith.constant 0 : index
      %c0_259 = arith.constant 0 : index
      %288 = vector.load %arg7[%287, %c0_258, %c0_259] : memref<8x16x128xf32, #tpu.memory_space<vmem>>, vector<1x16x128xf32>
      %289 = vector.shape_cast %288 : vector<1x16x128xf32> to vector<16x128xf32>
      %290 = vector.shape_cast %286 : vector<16x128xf32> to vector<1x16x128xf32>
      tpu.vector_store %arg7[%287, %c0_258, %c0_259], %290 {strides = array<i32>} : memref<8x16x128xf32, #tpu.memory_space<vmem>>, vector<1x16x128xf32>,
    }
    %c8_i32_0 = arith.constant 8 : i32
    %c0 = arith.constant 0 : index
    %c0_1 = arith.constant 0 : index
    %c0_2 = arith.constant 0 : index
    %1 = vector.load %arg7[%c0, %c0_1, %c0_2] : memref<8x16x128xf32, #tpu.memory_space<vmem>>, vector<1x16x128xf32>
    %2 = vector.shape_cast %1 : vector<1x16x128xf32> to vector<16x128xf32>
    %cst = arith.constant 1.000000e+00 : f32
    %3 = vector.broadcast %cst : f32 to vector<16x128xf32>
    %4 = arith.mulf %3, %2 : vector<16x128xf32>
    %c1 = arith.constant 1 : index
    %c0_3 = arith.constant 0 : index
    %c0_4 = arith.constant 0 : index
    %5 = vector.load %arg7[%c1, %c0_3, %c0_4] : memref<8x16x128xf32, #tpu.memory_space<vmem>>, vector<1x16x128xf32>
    %6 = vector.shape_cast %5 : vector<1x16x128xf32> to vector<16x128xf32>
    %cst_5 = arith.constant 0.000000e+00 : f32
    %7 = vector.broadcast %cst_5 : f32 to vector<16x128xf32>
    %8 = arith.mulf %7, %6 : vector<16x128xf32>
    %9 = arith.addf %4, %8 : vector<16x128xf32>
    %c0_6 = arith.constant 0 : index
    %c0_7 = arith.constant 0 : index
    %c0_8 = arith.constant 0 : index
    %c0_9 = arith.constant 0 : index
    %10 = vector.load %arg6[%c0_6, %c0_7, %c0_8, %c0_9] : memref<1x16x16x128xf32, #tpu.memory_space<vmem>>, vector<1x1x16x128xf32>
    %11 = vector.shape_cast %10 : vector<1x1x16x128xf32> to vector<16x128xf32>
    %12 = vector.shape_cast %9 : vector<16x128xf32> to vector<1x1x16x128xf32>
    tpu.vector_store %arg6[%c0_6, %c0_7, %c0_8, %c0_9], %12 {strides = array<i32>} : memref<1x16x16x128xf32, #tpu.memory_space<vmem>>, vector<1x1x16x128xf32>,
    %c0_10 = arith.constant 0 : index
    %c0_11 = arith.constant 0 : index
    %c0_12 = arith.constant 0 : index
    %13 = vector.load %arg7[%c0_10, %c0_11, %c0_12] : memref<8x16x128xf32, #tpu.memory_space<vmem>>, vector<1x16x128xf32>
    %14 = vector.shape_cast %13 : vector<1x16x128xf32> to vector<16x128xf32>
    %cst_13 = arith.constant 7.500000e-01 : f32
    %15 = vector.broadcast %cst_13 : f32 to vector<16x128xf32>
    %16 = arith.mulf %15, %14 : vector<16x128xf32>
    %c1_14 = arith.constant 1 : index
    %c0_15 = arith.constant 0 : index
    %c0_16 = arith.constant 0 : index
    %17 = vector.load %arg7[%c1_14, %c0_15, %c0_16] : memref<8x16x128xf32, #tpu.memory_space<vmem>>, vector<1x16x128xf32>
    %18 = vector.shape_cast %17 : vector<1x16x128xf32> to vector<16x128xf32>
    %cst_17 = arith.constant 2.500000e-01 : f32
    %19 = vector.broadcast %cst_17 : f32 to vector<16x128xf32>
    %20 = arith.mulf %19, %18 : vector<16x128xf32>
    %21 = arith.addf %16, %20 : vector<16x128xf32>
    %c0_18 = arith.constant 0 : index
    %c1_19 = arith.constant 1 : index
    %c0_20 = arith.constant 0 : index
    %c0_21 = arith.constant 0 : index
    %22 = vector.load %arg6[%c0_18, %c1_19, %c0_20, %c0_21] : memref<1x16x16x128xf32, #tpu.memory_space<vmem>>, vector<1x1x16x128xf32>
    %23 = vector.shape_cast %22 : vector<1x1x16x128xf32> to vector<16x128xf32>
    %24 = vector.shape_cast %21 : vector<16x128xf32> to vector<1x1x16x128xf32>
    tpu.vector_store %arg6[%c0_18, %c1_19, %c0_20, %c0_21], %24 {strides = array<i32>} : memref<1x16x16x128xf32, #tpu.memory_space<vmem>>, vector<1x1x16x128xf32>,
    %c0_22 = arith.constant 0 : index
    %c0_23 = arith.constant 0 : index
    %c0_24 = arith.constant 0 : index
    %25 = vector.load %arg7[%c0_22, %c0_23, %c0_24] : memref<8x16x128xf32, #tpu.memory_space<vmem>>, vector<1x16x128xf32>
    %26 = vector.shape_cast %25 : vector<1x16x128xf32> to vector<16x128xf32>
    %cst_25 = arith.constant 2.500000e-01 : f32
    %27 = vector.broadcast %cst_25 : f32 to vector<16x128xf32>
    %28 = arith.mulf %27, %26 : vector<16x128xf32>
    %c1_26 = arith.constant 1 : index
    %c0_27 = arith.constant 0 : index
    %c0_28 = arith.constant 0 : index
    %29 = vector.load %arg7[%c1_26, %c0_27, %c0_28] : memref<8x16x128xf32, #tpu.memory_space<vmem>>, vector<1x16x128xf32>
    %30 = vector.shape_cast %29 : vector<1x16x128xf32> to vector<16x128xf32>
    %cst_29 = arith.constant 7.500000e-01 : f32
    %31 = vector.broadcast %cst_29 : f32 to vector<16x128xf32>
    %32 = arith.mulf %31, %30 : vector<16x128xf32>
    %33 = arith.addf %28, %32 : vector<16x128xf32>
    %c0_30 = arith.constant 0 : index
    %c2 = arith.constant 2 : index
    %c0_31 = arith.constant 0 : index
    %c0_32 = arith.constant 0 : index
    %34 = vector.load %arg6[%c0_30, %c2, %c0_31, %c0_32] : memref<1x16x16x128xf32, #tpu.memory_space<vmem>>, vector<1x1x16x128xf32>
    %35 = vector.shape_cast %34 : vector<1x1x16x128xf32> to vector<16x128xf32>
    %36 = vector.shape_cast %33 : vector<16x128xf32> to vector<1x1x16x128xf32>
    tpu.vector_store %arg6[%c0_30, %c2, %c0_31, %c0_32], %36 {strides = array<i32>} : memref<1x16x16x128xf32, #tpu.memory_space<vmem>>, vector<1x1x16x128xf32>,
    %c1_33 = arith.constant 1 : index
    %c0_34 = arith.constant 0 : index
    %c0_35 = arith.constant 0 : index
    %37 = vector.load %arg7[%c1_33, %c0_34, %c0_35] : memref<8x16x128xf32, #tpu.memory_space<vmem>>, vector<1x16x128xf32>
    %38 = vector.shape_cast %37 : vector<1x16x128xf32> to vector<16x128xf32>
    %cst_36 = arith.constant 7.500000e-01 : f32
    %39 = vector.broadcast %cst_36 : f32 to vector<16x128xf32>
    %40 = arith.mulf %39, %38 : vector<16x128xf32>
    %c2_37 = arith.constant 2 : index
    %c0_38 = arith.constant 0 : index
    %c0_39 = arith.constant 0 : index
    %41 = vector.load %arg7[%c2_37, %c0_38, %c0_39] : memref<8x16x128xf32, #tpu.memory_space<vmem>>, vector<1x16x128xf32>
    %42 = vector.shape_cast %41 : vector<1x16x128xf32> to vector<16x128xf32>
    %cst_40 = arith.constant 2.500000e-01 : f32
    %43 = vector.broadcast %cst_40 : f32 to vector<16x128xf32>
    %44 = arith.mulf %43, %42 : vector<16x128xf32>
    %45 = arith.addf %40, %44 : vector<16x128xf32>
    %c0_41 = arith.constant 0 : index
    %c3 = arith.constant 3 : index
    %c0_42 = arith.constant 0 : index
    %c0_43 = arith.constant 0 : index
    %46 = vector.load %arg6[%c0_41, %c3, %c0_42, %c0_43] : memref<1x16x16x128xf32, #tpu.memory_space<vmem>>, vector<1x1x16x128xf32>
    %47 = vector.shape_cast %46 : vector<1x1x16x128xf32> to vector<16x128xf32>
    %48 = vector.shape_cast %45 : vector<16x128xf32> to vector<1x1x16x128xf32>
    tpu.vector_store %arg6[%c0_41, %c3, %c0_42, %c0_43], %48 {strides = array<i32>} : memref<1x16x16x128xf32, #tpu.memory_space<vmem>>, vector<1x1x16x128xf32>,
    %c1_44 = arith.constant 1 : index
    %c0_45 = arith.constant 0 : index
    %c0_46 = arith.constant 0 : index
    %49 = vector.load %arg7[%c1_44, %c0_45, %c0_46] : memref<8x16x128xf32, #tpu.memory_space<vmem>>, vector<1x16x128xf32>
    %50 = vector.shape_cast %49 : vector<1x16x128xf32> to vector<16x128xf32>
    %cst_47 = arith.constant 2.500000e-01 : f32
    %51 = vector.broadcast %cst_47 : f32 to vector<16x128xf32>
    %52 = arith.mulf %51, %50 : vector<16x128xf32>
    %c2_48 = arith.constant 2 : index
    %c0_49 = arith.constant 0 : index
    %c0_50 = arith.constant 0 : index
    %53 = vector.load %arg7[%c2_48, %c0_49, %c0_50] : memref<8x16x128xf32, #tpu.memory_space<vmem>>, vector<1x16x128xf32>
    %54 = vector.shape_cast %53 : vector<1x16x128xf32> to vector<16x128xf32>
    %cst_51 = arith.constant 7.500000e-01 : f32
    %55 = vector.broadcast %cst_51 : f32 to vector<16x128xf32>
    %56 = arith.mulf %55, %54 : vector<16x128xf32>
    %57 = arith.addf %52, %56 : vector<16x128xf32>
    %c0_52 = arith.constant 0 : index
    %c4 = arith.constant 4 : index
    %c0_53 = arith.constant 0 : index
    %c0_54 = arith.constant 0 : index
    %58 = vector.load %arg6[%c0_52, %c4, %c0_53, %c0_54] : memref<1x16x16x128xf32, #tpu.memory_space<vmem>>, vector<1x1x16x128xf32>
    %59 = vector.shape_cast %58 : vector<1x1x16x128xf32> to vector<16x128xf32>
    %60 = vector.shape_cast %57 : vector<16x128xf32> to vector<1x1x16x128xf32>
    tpu.vector_store %arg6[%c0_52, %c4, %c0_53, %c0_54], %60 {strides = array<i32>} : memref<1x16x16x128xf32, #tpu.memory_space<vmem>>, vector<1x1x16x128xf32>,
    %c2_55 = arith.constant 2 : index
    %c0_56 = arith.constant 0 : index
    %c0_57 = arith.constant 0 : index
    %61 = vector.load %arg7[%c2_55, %c0_56, %c0_57] : memref<8x16x128xf32, #tpu.memory_space<vmem>>, vector<1x16x128xf32>
    %62 = vector.shape_cast %61 : vector<1x16x128xf32> to vector<16x128xf32>
    %cst_58 = arith.constant 7.500000e-01 : f32
    %63 = vector.broadcast %cst_58 : f32 to vector<16x128xf32>
    %64 = arith.mulf %63, %62 : vector<16x128xf32>
    %c3_59 = arith.constant 3 : index
    %c0_60 = arith.constant 0 : index
    %c0_61 = arith.constant 0 : index
    %65 = vector.load %arg7[%c3_59, %c0_60, %c0_61] : memref<8x16x128xf32, #tpu.memory_space<vmem>>, vector<1x16x128xf32>
    %66 = vector.shape_cast %65 : vector<1x16x128xf32> to vector<16x128xf32>
    %cst_62 = arith.constant 2.500000e-01 : f32
    %67 = vector.broadcast %cst_62 : f32 to vector<16x128xf32>
    %68 = arith.mulf %67, %66 : vector<16x128xf32>
    %69 = arith.addf %64, %68 : vector<16x128xf32>
    %c0_63 = arith.constant 0 : index
    %c5 = arith.constant 5 : index
    %c0_64 = arith.constant 0 : index
    %c0_65 = arith.constant 0 : index
    %70 = vector.load %arg6[%c0_63, %c5, %c0_64, %c0_65] : memref<1x16x16x128xf32, #tpu.memory_space<vmem>>, vector<1x1x16x128xf32>
    %71 = vector.shape_cast %70 : vector<1x1x16x128xf32> to vector<16x128xf32>
    %72 = vector.shape_cast %69 : vector<16x128xf32> to vector<1x1x16x128xf32>
    tpu.vector_store %arg6[%c0_63, %c5, %c0_64, %c0_65], %72 {strides = array<i32>} : memref<1x16x16x128xf32, #tpu.memory_space<vmem>>, vector<1x1x16x128xf32>,
    %c2_66 = arith.constant 2 : index
    %c0_67 = arith.constant 0 : index
    %c0_68 = arith.constant 0 : index
    %73 = vector.load %arg7[%c2_66, %c0_67, %c0_68] : memref<8x16x128xf32, #tpu.memory_space<vmem>>, vector<1x16x128xf32>
    %74 = vector.shape_cast %73 : vector<1x16x128xf32> to vector<16x128xf32>
    %cst_69 = arith.constant 2.500000e-01 : f32
    %75 = vector.broadcast %cst_69 : f32 to vector<16x128xf32>
    %76 = arith.mulf %75, %74 : vector<16x128xf32>
    %c3_70 = arith.constant 3 : index
    %c0_71 = arith.constant 0 : index
    %c0_72 = arith.constant 0 : index
    %77 = vector.load %arg7[%c3_70, %c0_71, %c0_72] : memref<8x16x128xf32, #tpu.memory_space<vmem>>, vector<1x16x128xf32>
    %78 = vector.shape_cast %77 : vector<1x16x128xf32> to vector<16x128xf32>
    %cst_73 = arith.constant 7.500000e-01 : f32
    %79 = vector.broadcast %cst_73 : f32 to vector<16x128xf32>
    %80 = arith.mulf %79, %78 : vector<16x128xf32>
    %81 = arith.addf %76, %80 : vector<16x128xf32>
    %c0_74 = arith.constant 0 : index
    %c6 = arith.constant 6 : index
    %c0_75 = arith.constant 0 : index
    %c0_76 = arith.constant 0 : index
    %82 = vector.load %arg6[%c0_74, %c6, %c0_75, %c0_76] : memref<1x16x16x128xf32, #tpu.memory_space<vmem>>, vector<1x1x16x128xf32>
    %83 = vector.shape_cast %82 : vector<1x1x16x128xf32> to vector<16x128xf32>
    %84 = vector.shape_cast %81 : vector<16x128xf32> to vector<1x1x16x128xf32>
    tpu.vector_store %arg6[%c0_74, %c6, %c0_75, %c0_76], %84 {strides = array<i32>} : memref<1x16x16x128xf32, #tpu.memory_space<vmem>>, vector<1x1x16x128xf32>,
    %c3_77 = arith.constant 3 : index
    %c0_78 = arith.constant 0 : index
    %c0_79 = arith.constant 0 : index
    %85 = vector.load %arg7[%c3_77, %c0_78, %c0_79] : memref<8x16x128xf32, #tpu.memory_space<vmem>>, vector<1x16x128xf32>
    %86 = vector.shape_cast %85 : vector<1x16x128xf32> to vector<16x128xf32>
    %cst_80 = arith.constant 7.500000e-01 : f32
    %87 = vector.broadcast %cst_80 : f32 to vector<16x128xf32>
    %88 = arith.mulf %87, %86 : vector<16x128xf32>
    %c4_81 = arith.constant 4 : index
    %c0_82 = arith.constant 0 : index
    %c0_83 = arith.constant 0 : index
    %89 = vector.load %arg7[%c4_81, %c0_82, %c0_83] : memref<8x16x128xf32, #tpu.memory_space<vmem>>, vector<1x16x128xf32>
    %90 = vector.shape_cast %89 : vector<1x16x128xf32> to vector<16x128xf32>
    %cst_84 = arith.constant 2.500000e-01 : f32
    %91 = vector.broadcast %cst_84 : f32 to vector<16x128xf32>
    %92 = arith.mulf %91, %90 : vector<16x128xf32>
    %93 = arith.addf %88, %92 : vector<16x128xf32>
    %c0_85 = arith.constant 0 : index
    %c7 = arith.constant 7 : index
    %c0_86 = arith.constant 0 : index
    %c0_87 = arith.constant 0 : index
    %94 = vector.load %arg6[%c0_85, %c7, %c0_86, %c0_87] : memref<1x16x16x128xf32, #tpu.memory_space<vmem>>, vector<1x1x16x128xf32>
    %95 = vector.shape_cast %94 : vector<1x1x16x128xf32> to vector<16x128xf32>
    %96 = vector.shape_cast %93 : vector<16x128xf32> to vector<1x1x16x128xf32>
    tpu.vector_store %arg6[%c0_85, %c7, %c0_86, %c0_87], %96 {strides = array<i32>} : memref<1x16x16x128xf32, #tpu.memory_space<vmem>>, vector<1x1x16x128xf32>,
    %c3_88 = arith.constant 3 : index
    %c0_89 = arith.constant 0 : index
    %c0_90 = arith.constant 0 : index
    %97 = vector.load %arg7[%c3_88, %c0_89, %c0_90] : memref<8x16x128xf32, #tpu.memory_space<vmem>>, vector<1x16x128xf32>
    %98 = vector.shape_cast %97 : vector<1x16x128xf32> to vector<16x128xf32>
    %cst_91 = arith.constant 2.500000e-01 : f32
    %99 = vector.broadcast %cst_91 : f32 to vector<16x128xf32>
    %100 = arith.mulf %99, %98 : vector<16x128xf32>
    %c4_92 = arith.constant 4 : index
    %c0_93 = arith.constant 0 : index
    %c0_94 = arith.constant 0 : index
    %101 = vector.load %arg7[%c4_92, %c0_93, %c0_94] : memref<8x16x128xf32, #tpu.memory_space<vmem>>, vector<1x16x128xf32>
    %102 = vector.shape_cast %101 : vector<1x16x128xf32> to vector<16x128xf32>
    %cst_95 = arith.constant 7.500000e-01 : f32
    %103 = vector.broadcast %cst_95 : f32 to vector<16x128xf32>
    %104 = arith.mulf %103, %102 : vector<16x128xf32>
    %105 = arith.addf %100, %104 : vector<16x128xf32>
    %c0_96 = arith.constant 0 : index
    %c8 = arith.constant 8 : index
    %c0_97 = arith.constant 0 : index
    %c0_98 = arith.constant 0 : index
    %106 = vector.load %arg6[%c0_96, %c8, %c0_97, %c0_98] : memref<1x16x16x128xf32, #tpu.memory_space<vmem>>, vector<1x1x16x128xf32>
    %107 = vector.shape_cast %106 : vector<1x1x16x128xf32> to vector<16x128xf32>
    %108 = vector.shape_cast %105 : vector<16x128xf32> to vector<1x1x16x128xf32>
    tpu.vector_store %arg6[%c0_96, %c8, %c0_97, %c0_98], %108 {strides = array<i32>} : memref<1x16x16x128xf32, #tpu.memory_space<vmem>>, vector<1x1x16x128xf32>,
    %c4_99 = arith.constant 4 : index
    %c0_100 = arith.constant 0 : index
    %c0_101 = arith.constant 0 : index
    %109 = vector.load %arg7[%c4_99, %c0_100, %c0_101] : memref<8x16x128xf32, #tpu.memory_space<vmem>>, vector<1x16x128xf32>
    %110 = vector.shape_cast %109 : vector<1x16x128xf32> to vector<16x128xf32>
    %cst_102 = arith.constant 7.500000e-01 : f32
    %111 = vector.broadcast %cst_102 : f32 to vector<16x128xf32>
    %112 = arith.mulf %111, %110 : vector<16x128xf32>
    %c5_103 = arith.constant 5 : index
    %c0_104 = arith.constant 0 : index
    %c0_105 = arith.constant 0 : index
    %113 = vector.load %arg7[%c5_103, %c0_104, %c0_105] : memref<8x16x128xf32, #tpu.memory_space<vmem>>, vector<1x16x128xf32>
    %114 = vector.shape_cast %113 : vector<1x16x128xf32> to vector<16x128xf32>
    %cst_106 = arith.constant 2.500000e-01 : f32
    %115 = vector.broadcast %cst_106 : f32 to vector<16x128xf32>
    %116 = arith.mulf %115, %114 : vector<16x128xf32>
    %117 = arith.addf %112, %116 : vector<16x128xf32>
    %c0_107 = arith.constant 0 : index
    %c9 = arith.constant 9 : index
    %c0_108 = arith.constant 0 : index
    %c0_109 = arith.constant 0 : index
    %118 = vector.load %arg6[%c0_107, %c9, %c0_108, %c0_109] : memref<1x16x16x128xf32, #tpu.memory_space<vmem>>, vector<1x1x16x128xf32>
    %119 = vector.shape_cast %118 : vector<1x1x16x128xf32> to vector<16x128xf32>
    %120 = vector.shape_cast %117 : vector<16x128xf32> to vector<1x1x16x128xf32>
    tpu.vector_store %arg6[%c0_107, %c9, %c0_108, %c0_109], %120 {strides = array<i32>} : memref<1x16x16x128xf32, #tpu.memory_space<vmem>>, vector<1x1x16x128xf32>,
    %c4_110 = arith.constant 4 : index
    %c0_111 = arith.constant 0 : index
    %c0_112 = arith.constant 0 : index
    %121 = vector.load %arg7[%c4_110, %c0_111, %c0_112] : memref<8x16x128xf32, #tpu.memory_space<vmem>>, vector<1x16x128xf32>
    %122 = vector.shape_cast %121 : vector<1x16x128xf32> to vector<16x128xf32>
    %cst_113 = arith.constant 2.500000e-01 : f32
    %123 = vector.broadcast %cst_113 : f32 to vector<16x128xf32>
    %124 = arith.mulf %123, %122 : vector<16x128xf32>
    %c5_114 = arith.constant 5 : index
    %c0_115 = arith.constant 0 : index
    %c0_116 = arith.constant 0 : index
    %125 = vector.load %arg7[%c5_114, %c0_115, %c0_116] : memref<8x16x128xf32, #tpu.memory_space<vmem>>, vector<1x16x128xf32>
    %126 = vector.shape_cast %125 : vector<1x16x128xf32> to vector<16x128xf32>
    %cst_117 = arith.constant 7.500000e-01 : f32
    %127 = vector.broadcast %cst_117 : f32 to vector<16x128xf32>
    %128 = arith.mulf %127, %126 : vector<16x128xf32>
    %129 = arith.addf %124, %128 : vector<16x128xf32>
    %c0_118 = arith.constant 0 : index
    %c10 = arith.constant 10 : index
    %c0_119 = arith.constant 0 : index
    %c0_120 = arith.constant 0 : index
    %130 = vector.load %arg6[%c0_118, %c10, %c0_119, %c0_120] : memref<1x16x16x128xf32, #tpu.memory_space<vmem>>, vector<1x1x16x128xf32>
    %131 = vector.shape_cast %130 : vector<1x1x16x128xf32> to vector<16x128xf32>
    %132 = vector.shape_cast %129 : vector<16x128xf32> to vector<1x1x16x128xf32>
    tpu.vector_store %arg6[%c0_118, %c10, %c0_119, %c0_120], %132 {strides = array<i32>} : memref<1x16x16x128xf32, #tpu.memory_space<vmem>>, vector<1x1x16x128xf32>,
    %c5_121 = arith.constant 5 : index
    %c0_122 = arith.constant 0 : index
    %c0_123 = arith.constant 0 : index
    %133 = vector.load %arg7[%c5_121, %c0_122, %c0_123] : memref<8x16x128xf32, #tpu.memory_space<vmem>>, vector<1x16x128xf32>
    %134 = vector.shape_cast %133 : vector<1x16x128xf32> to vector<16x128xf32>
    %cst_124 = arith.constant 7.500000e-01 : f32
    %135 = vector.broadcast %cst_124 : f32 to vector<16x128xf32>
    %136 = arith.mulf %135, %134 : vector<16x128xf32>
    %c6_125 = arith.constant 6 : index
    %c0_126 = arith.constant 0 : index
    %c0_127 = arith.constant 0 : index
    %137 = vector.load %arg7[%c6_125, %c0_126, %c0_127] : memref<8x16x128xf32, #tpu.memory_space<vmem>>, vector<1x16x128xf32>
    %138 = vector.shape_cast %137 : vector<1x16x128xf32> to vector<16x128xf32>
    %cst_128 = arith.constant 2.500000e-01 : f32
    %139 = vector.broadcast %cst_128 : f32 to vector<16x128xf32>
    %140 = arith.mulf %139, %138 : vector<16x128xf32>
    %141 = arith.addf %136, %140 : vector<16x128xf32>
    %c0_129 = arith.constant 0 : index
    %c11 = arith.constant 11 : index
    %c0_130 = arith.constant 0 : index
    %c0_131 = arith.constant 0 : index
    %142 = vector.load %arg6[%c0_129, %c11, %c0_130, %c0_131] : memref<1x16x16x128xf32, #tpu.memory_space<vmem>>, vector<1x1x16x128xf32>
    %143 = vector.shape_cast %142 : vector<1x1x16x128xf32> to vector<16x128xf32>
    %144 = vector.shape_cast %141 : vector<16x128xf32> to vector<1x1x16x128xf32>
    tpu.vector_store %arg6[%c0_129, %c11, %c0_130, %c0_131], %144 {strides = array<i32>} : memref<1x16x16x128xf32, #tpu.memory_space<vmem>>, vector<1x1x16x128xf32>,
    %c5_132 = arith.constant 5 : index
    %c0_133 = arith.constant 0 : index
    %c0_134 = arith.constant 0 : index
    %145 = vector.load %arg7[%c5_132, %c0_133, %c0_134] : memref<8x16x128xf32, #tpu.memory_space<vmem>>, vector<1x16x128xf32>
    %146 = vector.shape_cast %145 : vector<1x16x128xf32> to vector<16x128xf32>
    %cst_135 = arith.constant 2.500000e-01 : f32
    %147 = vector.broadcast %cst_135 : f32 to vector<16x128xf32>
    %148 = arith.mulf %147, %146 : vector<16x128xf32>
    %c6_136 = arith.constant 6 : index
    %c0_137 = arith.constant 0 : index
    %c0_138 = arith.constant 0 : index
    %149 = vector.load %arg7[%c6_136, %c0_137, %c0_138] : memref<8x16x128xf32, #tpu.memory_space<vmem>>, vector<1x16x128xf32>
    %150 = vector.shape_cast %149 : vector<1x16x128xf32> to vector<16x128xf32>
    %cst_139 = arith.constant 7.500000e-01 : f32
    %151 = vector.broadcast %cst_139 : f32 to vector<16x128xf32>
    %152 = arith.mulf %151, %150 : vector<16x128xf32>
    %153 = arith.addf %148, %152 : vector<16x128xf32>
    %c0_140 = arith.constant 0 : index
    %c12 = arith.constant 12 : index
    %c0_141 = arith.constant 0 : index
    %c0_142 = arith.constant 0 : index
    %154 = vector.load %arg6[%c0_140, %c12, %c0_141, %c0_142] : memref<1x16x16x128xf32, #tpu.memory_space<vmem>>, vector<1x1x16x128xf32>
    %155 = vector.shape_cast %154 : vector<1x1x16x128xf32> to vector<16x128xf32>
    %156 = vector.shape_cast %153 : vector<16x128xf32> to vector<1x1x16x128xf32>
    tpu.vector_store %arg6[%c0_140, %c12, %c0_141, %c0_142], %156 {strides = array<i32>} : memref<1x16x16x128xf32, #tpu.memory_space<vmem>>, vector<1x1x16x128xf32>,
    %c6_143 = arith.constant 6 : index
    %c0_144 = arith.constant 0 : index
    %c0_145 = arith.constant 0 : index
    %157 = vector.load %arg7[%c6_143, %c0_144, %c0_145] : memref<8x16x128xf32, #tpu.memory_space<vmem>>, vector<1x16x128xf32>
    %158 = vector.shape_cast %157 : vector<1x16x128xf32> to vector<16x128xf32>
    %cst_146 = arith.constant 7.500000e-01 : f32
    %159 = vector.broadcast %cst_146 : f32 to vector<16x128xf32>
    %160 = arith.mulf %159, %158 : vector<16x128xf32>
    %c7_147 = arith.constant 7 : index
    %c0_148 = arith.constant 0 : index
    %c0_149 = arith.constant 0 : index
    %161 = vector.load %arg7[%c7_147, %c0_148, %c0_149] : memref<8x16x128xf32, #tpu.memory_space<vmem>>, vector<1x16x128xf32>
    %162 = vector.shape_cast %161 : vector<1x16x128xf32> to vector<16x128xf32>
    %cst_150 = arith.constant 2.500000e-01 : f32
    %163 = vector.broadcast %cst_150 : f32 to vector<16x128xf32>
    %164 = arith.mulf %163, %162 : vector<16x128xf32>
    %165 = arith.addf %160, %164 : vector<16x128xf32>
    %c0_151 = arith.constant 0 : index
    %c13 = arith.constant 13 : index
    %c0_152 = arith.constant 0 : index
    %c0_153 = arith.constant 0 : index
    %166 = vector.load %arg6[%c0_151, %c13, %c0_152, %c0_153] : memref<1x16x16x128xf32, #tpu.memory_space<vmem>>, vector<1x1x16x128xf32>
    %167 = vector.shape_cast %166 : vector<1x1x16x128xf32> to vector<16x128xf32>
    %168 = vector.shape_cast %165 : vector<16x128xf32> to vector<1x1x16x128xf32>
    tpu.vector_store %arg6[%c0_151, %c13, %c0_152, %c0_153], %168 {strides = array<i32>} : memref<1x16x16x128xf32, #tpu.memory_space<vmem>>, vector<1x1x16x128xf32>,
    %c6_154 = arith.constant 6 : index
    %c0_155 = arith.constant 0 : index
    %c0_156 = arith.constant 0 : index
    %169 = vector.load %arg7[%c6_154, %c0_155, %c0_156] : memref<8x16x128xf32, #tpu.memory_space<vmem>>, vector<1x16x128xf32>
    %170 = vector.shape_cast %169 : vector<1x16x128xf32> to vector<16x128xf32>
    %cst_157 = arith.constant 2.500000e-01 : f32
    %171 = vector.broadcast %cst_157 : f32 to vector<16x128xf32>
    %172 = arith.mulf %171, %170 : vector<16x128xf32>
    %c7_158 = arith.constant 7 : index
    %c0_159 = arith.constant 0 : index
    %c0_160 = arith.constant 0 : index
    %173 = vector.load %arg7[%c7_158, %c0_159, %c0_160] : memref<8x16x128xf32, #tpu.memory_space<vmem>>, vector<1x16x128xf32>
    %174 = vector.shape_cast %173 : vector<1x16x128xf32> to vector<16x128xf32>
    %cst_161 = arith.constant 7.500000e-01 : f32
    %175 = vector.broadcast %cst_161 : f32 to vector<16x128xf32>
    %176 = arith.mulf %175, %174 : vector<16x128xf32>
    %177 = arith.addf %172, %176 : vector<16x128xf32>
    %c0_162 = arith.constant 0 : index
    %c14 = arith.constant 14 : index
    %c0_163 = arith.constant 0 : index
    %c0_164 = arith.constant 0 : index
    %178 = vector.load %arg6[%c0_162, %c14, %c0_163, %c0_164] : memref<1x16x16x128xf32, #tpu.memory_space<vmem>>, vector<1x1x16x128xf32>
    %179 = vector.shape_cast %178 : vector<1x1x16x128xf32> to vector<16x128xf32>
    %180 = vector.shape_cast %177 : vector<16x128xf32> to vector<1x1x16x128xf32>
    tpu.vector_store %arg6[%c0_162, %c14, %c0_163, %c0_164], %180 {strides = array<i32>} : memref<1x16x16x128xf32, #tpu.memory_space<vmem>>, vector<1x1x16x128xf32>,
    %c7_165 = arith.constant 7 : index
    %c0_166 = arith.constant 0 : index
    %c0_167 = arith.constant 0 : index
    %181 = vector.load %arg7[%c7_165, %c0_166, %c0_167] : memref<8x16x128xf32, #tpu.memory_space<vmem>>, vector<1x16x128xf32>
    %182 = vector.shape_cast %181 : vector<1x16x128xf32> to vector<16x128xf32>
    %cst_168 = arith.constant 7.500000e-01 : f32
    %183 = vector.broadcast %cst_168 : f32 to vector<16x128xf32>
    %184 = arith.mulf %183, %182 : vector<16x128xf32>
    %c7_169 = arith.constant 7 : index
    %c0_170 = arith.constant 0 : index
    %c0_171 = arith.constant 0 : index
    %185 = vector.load %arg7[%c7_169, %c0_170, %c0_171] : memref<8x16x128xf32, #tpu.memory_space<vmem>>, vector<1x16x128xf32>
    %186 = vector.shape_cast %185 : vector<1x16x128xf32> to vector<16x128xf32>
    %cst_172 = arith.constant 2.500000e-01 : f32
    %187 = vector.broadcast %cst_172 : f32 to vector<16x128xf32>
    %188 = arith.mulf %187, %186 : vector<16x128xf32>
    %189 = arith.addf %184, %188 : vector<16x128xf32>
    %c0_173 = arith.constant 0 : index
    %c15 = arith.constant 15 : index
    %c0_174 = arith.constant 0 : index
    %c0_175 = arith.constant 0 : index
    %190 = vector.load %arg6[%c0_173, %c15, %c0_174, %c0_175] : memref<1x16x16x128xf32, #tpu.memory_space<vmem>>, vector<1x1x16x128xf32>
    %191 = vector.shape_cast %190 : vector<1x1x16x128xf32> to vector<16x128xf32>
    %192 = vector.shape_cast %189 : vector<16x128xf32> to vector<1x1x16x128xf32>
    tpu.vector_store %arg6[%c0_173, %c15, %c0_174, %c0_175], %192 {strides = array<i32>} : memref<1x16x16x128xf32, #tpu.memory_space<vmem>>, vector<1x1x16x128xf32>,
    return
  }
  func.func @transform_0(%arg0: i32) -> (i32, i32, i32, i32) {
    %c0_i32 = arith.constant 0 : i32
    %c0_i32_0 = arith.constant 0 : i32
    %c0_i32_1 = arith.constant 0 : i32
    %c0_i32_2 = arith.constant 0 : i32
    return %arg0, %c0_i32, %c0_i32_0, %c0_i32_1 : i32, i32, i32, i32
  }
  func.func @transform_1(%arg0: i32) -> (i32, i32, i32) {
    %c0_i32 = arith.constant 0 : i32
    %c0_i32_0 = arith.constant 0 : i32
    %c0_i32_1 = arith.constant 0 : i32
    %c0_i32_2 = arith.constant 0 : i32
    return %c0_i32, %c0_i32_0, %c0_i32_1 : i32, i32, i32
  }
  func.func @transform_2(%arg0: i32) -> (i32, i32) {
    %c0_i32 = arith.constant 0 : i32
    %c0_i32_0 = arith.constant 0 : i32
    %c0_i32_1 = arith.constant 0 : i32
    return %c0_i32, %c0_i32_0 : i32, i32
  }
  func.func @transform_3(%arg0: i32) -> (i32, i32) {
    %c0_i32 = arith.constant 0 : i32
    %c0_i32_0 = arith.constant 0 : i32
    %c0_i32_1 = arith.constant 0 : i32
    return %c0_i32, %c0_i32_0 : i32, i32
  }
  func.func @transform_4(%arg0: i32) -> (i32, i32) {
    %c0_i32 = arith.constant 0 : i32
    %c0_i32_0 = arith.constant 0 : i32
    %c0_i32_1 = arith.constant 0 : i32
    return %c0_i32, %c0_i32_0 : i32, i32
  }
  func.func @transform_5(%arg0: i32) -> (i32, i32, i32, i32) {
    %c0_i32 = arith.constant 0 : i32
    %c0_i32_0 = arith.constant 0 : i32
    %c0_i32_1 = arith.constant 0 : i32
    %c0_i32_2 = arith.constant 0 : i32
    return %arg0, %c0_i32, %c0_i32_0, %c0_i32_1 : i32, i32, i32, i32
  }
}

module attributes {stable_mosaic.version = 11 : i64} {
  func.func @kernel(%arg0: i32, %arg1: memref<1x6x6x128xf32, #tpu.memory_space<vmem>>, %arg2: memref<9x128x128xbf16, #tpu.memory_space<vmem>>, %arg3: memref<1x128xf32, #tpu.memory_space<vmem>>, %arg4: memref<1x128xf32, #tpu.memory_space<vmem>>, %arg5: memref<8x4xf32, #tpu.memory_space<vmem>>, %arg6: memref<1x8x8x128xf32, #tpu.memory_space<vmem>>, %arg7: memref<4x8x128xf32, #tpu.memory_space<vmem>>) attributes {dimension_semantics = [#tpu.dimension_semantics<parallel>], iteration_bounds = array<i64: 2>, scalar_prefetch = 0 : i64, scratch_operands = 1 : i64, tpu.core_type = #tpu.core_type<tc>, window_params = [{transform_indices = @transform_0, window_bounds = array<i64: 1, 6, 6, 128>}, {pipeline_mode = #tpu.pipeline_mode<synchronous>, transform_indices = @transform_1, window_bounds = array<i64: 9, 128, 128>}, {pipeline_mode = #tpu.pipeline_mode<synchronous>, transform_indices = @transform_2, window_bounds = array<i64: 1, 128>}, {pipeline_mode = #tpu.pipeline_mode<synchronous>, transform_indices = @transform_3, window_bounds = array<i64: 1, 128>}, {pipeline_mode = #tpu.pipeline_mode<synchronous>, transform_indices = @transform_4, window_bounds = array<i64: 8, 4>}, {transform_indices = @transform_5, window_bounds = array<i64: 1, 8, 8, 128>}]} {
    %c0_i32 = arith.constant 0 : i32
    %c4_i32 = arith.constant 4 : i32
    %0 = arith.addi %c0_i32, %c4_i32 : i32
    %c1_i32 = arith.constant 1 : i32
    scf.for %arg8 = %c0_i32 to %0 step %c1_i32  : i32 {
      %c1_i32_88 = arith.constant 1 : i32
      %97 = arith.muli %arg8, %c1_i32_88 : i32
      %c0_i32_89 = arith.constant 0 : i32
      %98 = arith.addi %c0_i32_89, %97 : i32
      %cst_90 = arith.constant 0.000000e+00 : f32
      %99 = vector.broadcast %cst_90 : f32 to vector<4x128xf32>
      %c0_i32_91 = arith.constant 0 : i32
      %100 = arith.addi %98, %c0_i32_91 : i32
      %c0_92 = arith.constant 0 : index
      %101 = arith.index_cast %100 : i32 to index
      %c0_93 = arith.constant 0 : index
      %c0_94 = arith.constant 0 : index
      %102 = vector.load %arg1[%c0_92, %101, %c0_93, %c0_94] : memref<1x6x6x128xf32, #tpu.memory_space<vmem>>, vector<1x1x4x128xf32>
      %103 = vector.shape_cast %102 : vector<1x1x4x128xf32> to vector<4x128xf32>
      %104 = arith.truncf %103 : vector<4x128xf32> to vector<4x128xbf16>
      %c0_95 = arith.constant 0 : index
      %c0_96 = arith.constant 0 : index
      %c0_97 = arith.constant 0 : index
      %105 = vector.load %arg2[%c0_95, %c0_96, %c0_97] : memref<9x128x128xbf16, #tpu.memory_space<vmem>>, vector<1x128x128xbf16>
      %106 = vector.shape_cast %105 : vector<1x128x128xbf16> to vector<128x128xbf16>
      %cst_98 = arith.constant dense<0.000000e+00> : vector<4x128xf32>
      %107 = tpu.matmul %104, %106, %cst_98 {dimension_numbers = #tpu.dot_dimension_numbers<[1], [0], [0], [1], [0, 0, 1, 1], [], []>} : vector<4x128xbf16>, vector<128x128xbf16>, vector<4x128xf32> -> vector<4x128xf32>
      %108 = arith.addf %99, %107 : vector<4x128xf32>
      %c0_i32_99 = arith.constant 0 : i32
      %109 = arith.addi %98, %c0_i32_99 : i32
      %c0_100 = arith.constant 0 : index
      %110 = arith.index_cast %109 : i32 to index
      %c1_101 = arith.constant 1 : index
      %c0_102 = arith.constant 0 : index
      %111 = vector.load %arg1[%c0_100, %110, %c1_101, %c0_102] : memref<1x6x6x128xf32, #tpu.memory_space<vmem>>, vector<1x1x4x128xf32>
      %112 = vector.shape_cast %111 : vector<1x1x4x128xf32> to vector<4x128xf32>
      %113 = arith.truncf %112 : vector<4x128xf32> to vector<4x128xbf16>
      %c1_103 = arith.constant 1 : index
      %c0_104 = arith.constant 0 : index
      %c0_105 = arith.constant 0 : index
      %114 = vector.load %arg2[%c1_103, %c0_104, %c0_105] : memref<9x128x128xbf16, #tpu.memory_space<vmem>>, vector<1x128x128xbf16>
      %115 = vector.shape_cast %114 : vector<1x128x128xbf16> to vector<128x128xbf16>
      %cst_106 = arith.constant dense<0.000000e+00> : vector<4x128xf32>
      %116 = tpu.matmul %113, %115, %cst_106 {dimension_numbers = #tpu.dot_dimension_numbers<[1], [0], [0], [1], [0, 0, 1, 1], [], []>} : vector<4x128xbf16>, vector<128x128xbf16>, vector<4x128xf32> -> vector<4x128xf32>
      %117 = arith.addf %108, %116 : vector<4x128xf32>
      %c0_i32_107 = arith.constant 0 : i32
      %118 = arith.addi %98, %c0_i32_107 : i32
      %c0_108 = arith.constant 0 : index
      %119 = arith.index_cast %118 : i32 to index
      %c2_109 = arith.constant 2 : index
      %c0_110 = arith.constant 0 : index
      %120 = vector.load %arg1[%c0_108, %119, %c2_109, %c0_110] : memref<1x6x6x128xf32, #tpu.memory_space<vmem>>, vector<1x1x4x128xf32>
      %121 = vector.shape_cast %120 : vector<1x1x4x128xf32> to vector<4x128xf32>
      %122 = arith.truncf %121 : vector<4x128xf32> to vector<4x128xbf16>
      %c2_111 = arith.constant 2 : index
      %c0_112 = arith.constant 0 : index
      %c0_113 = arith.constant 0 : index
      %123 = vector.load %arg2[%c2_111, %c0_112, %c0_113] : memref<9x128x128xbf16, #tpu.memory_space<vmem>>, vector<1x128x128xbf16>
      %124 = vector.shape_cast %123 : vector<1x128x128xbf16> to vector<128x128xbf16>
      %cst_114 = arith.constant dense<0.000000e+00> : vector<4x128xf32>
      %125 = tpu.matmul %122, %124, %cst_114 {dimension_numbers = #tpu.dot_dimension_numbers<[1], [0], [0], [1], [0, 0, 1, 1], [], []>} : vector<4x128xbf16>, vector<128x128xbf16>, vector<4x128xf32> -> vector<4x128xf32>
      %126 = arith.addf %117, %125 : vector<4x128xf32>
      %c1_i32_115 = arith.constant 1 : i32
      %127 = arith.addi %98, %c1_i32_115 : i32
      %c0_116 = arith.constant 0 : index
      %128 = arith.index_cast %127 : i32 to index
      %c0_117 = arith.constant 0 : index
      %c0_118 = arith.constant 0 : index
      %129 = vector.load %arg1[%c0_116, %128, %c0_117, %c0_118] : memref<1x6x6x128xf32, #tpu.memory_space<vmem>>, vector<1x1x4x128xf32>
      %130 = vector.shape_cast %129 : vector<1x1x4x128xf32> to vector<4x128xf32>
      %131 = arith.truncf %130 : vector<4x128xf32> to vector<4x128xbf16>
      %c3_119 = arith.constant 3 : index
      %c0_120 = arith.constant 0 : index
      %c0_121 = arith.constant 0 : index
      %132 = vector.load %arg2[%c3_119, %c0_120, %c0_121] : memref<9x128x128xbf16, #tpu.memory_space<vmem>>, vector<1x128x128xbf16>
      %133 = vector.shape_cast %132 : vector<1x128x128xbf16> to vector<128x128xbf16>
      %cst_122 = arith.constant dense<0.000000e+00> : vector<4x128xf32>
      %134 = tpu.matmul %131, %133, %cst_122 {dimension_numbers = #tpu.dot_dimension_numbers<[1], [0], [0], [1], [0, 0, 1, 1], [], []>} : vector<4x128xbf16>, vector<128x128xbf16>, vector<4x128xf32> -> vector<4x128xf32>
      %135 = arith.addf %126, %134 : vector<4x128xf32>
      %c1_i32_123 = arith.constant 1 : i32
      %136 = arith.addi %98, %c1_i32_123 : i32
      %c0_124 = arith.constant 0 : index
      %137 = arith.index_cast %136 : i32 to index
      %c1_125 = arith.constant 1 : index
      %c0_126 = arith.constant 0 : index
      %138 = vector.load %arg1[%c0_124, %137, %c1_125, %c0_126] : memref<1x6x6x128xf32, #tpu.memory_space<vmem>>, vector<1x1x4x128xf32>
      %139 = vector.shape_cast %138 : vector<1x1x4x128xf32> to vector<4x128xf32>
      %140 = arith.truncf %139 : vector<4x128xf32> to vector<4x128xbf16>
      %c4_127 = arith.constant 4 : index
      %c0_128 = arith.constant 0 : index
      %c0_129 = arith.constant 0 : index
      %141 = vector.load %arg2[%c4_127, %c0_128, %c0_129] : memref<9x128x128xbf16, #tpu.memory_space<vmem>>, vector<1x128x128xbf16>
      %142 = vector.shape_cast %141 : vector<1x128x128xbf16> to vector<128x128xbf16>
      %cst_130 = arith.constant dense<0.000000e+00> : vector<4x128xf32>
      %143 = tpu.matmul %140, %142, %cst_130 {dimension_numbers = #tpu.dot_dimension_numbers<[1], [0], [0], [1], [0, 0, 1, 1], [], []>} : vector<4x128xbf16>, vector<128x128xbf16>, vector<4x128xf32> -> vector<4x128xf32>
      %144 = arith.addf %135, %143 : vector<4x128xf32>
      %c1_i32_131 = arith.constant 1 : i32
      %145 = arith.addi %98, %c1_i32_131 : i32
      %c0_132 = arith.constant 0 : index
      %146 = arith.index_cast %145 : i32 to index
      %c2_133 = arith.constant 2 : index
      %c0_134 = arith.constant 0 : index
      %147 = vector.load %arg1[%c0_132, %146, %c2_133, %c0_134] : memref<1x6x6x128xf32, #tpu.memory_space<vmem>>, vector<1x1x4x128xf32>
      %148 = vector.shape_cast %147 : vector<1x1x4x128xf32> to vector<4x128xf32>
      %149 = arith.truncf %148 : vector<4x128xf32> to vector<4x128xbf16>
      %c5_135 = arith.constant 5 : index
      %c0_136 = arith.constant 0 : index
      %c0_137 = arith.constant 0 : index
      %150 = vector.load %arg2[%c5_135, %c0_136, %c0_137] : memref<9x128x128xbf16, #tpu.memory_space<vmem>>, vector<1x128x128xbf16>
      %151 = vector.shape_cast %150 : vector<1x128x128xbf16> to vector<128x128xbf16>
      %cst_138 = arith.constant dense<0.000000e+00> : vector<4x128xf32>
      %152 = tpu.matmul %149, %151, %cst_138 {dimension_numbers = #tpu.dot_dimension_numbers<[1], [0], [0], [1], [0, 0, 1, 1], [], []>} : vector<4x128xbf16>, vector<128x128xbf16>, vector<4x128xf32> -> vector<4x128xf32>
      %153 = arith.addf %144, %152 : vector<4x128xf32>
      %c2_i32 = arith.constant 2 : i32
      %154 = arith.addi %98, %c2_i32 : i32
      %c0_139 = arith.constant 0 : index
      %155 = arith.index_cast %154 : i32 to index
      %c0_140 = arith.constant 0 : index
      %c0_141 = arith.constant 0 : index
      %156 = vector.load %arg1[%c0_139, %155, %c0_140, %c0_141] : memref<1x6x6x128xf32, #tpu.memory_space<vmem>>, vector<1x1x4x128xf32>
      %157 = vector.shape_cast %156 : vector<1x1x4x128xf32> to vector<4x128xf32>
      %158 = arith.truncf %157 : vector<4x128xf32> to vector<4x128xbf16>
      %c6_142 = arith.constant 6 : index
      %c0_143 = arith.constant 0 : index
      %c0_144 = arith.constant 0 : index
      %159 = vector.load %arg2[%c6_142, %c0_143, %c0_144] : memref<9x128x128xbf16, #tpu.memory_space<vmem>>, vector<1x128x128xbf16>
      %160 = vector.shape_cast %159 : vector<1x128x128xbf16> to vector<128x128xbf16>
      %cst_145 = arith.constant dense<0.000000e+00> : vector<4x128xf32>
      %161 = tpu.matmul %158, %160, %cst_145 {dimension_numbers = #tpu.dot_dimension_numbers<[1], [0], [0], [1], [0, 0, 1, 1], [], []>} : vector<4x128xbf16>, vector<128x128xbf16>, vector<4x128xf32> -> vector<4x128xf32>
      %162 = arith.addf %153, %161 : vector<4x128xf32>
      %c2_i32_146 = arith.constant 2 : i32
      %163 = arith.addi %98, %c2_i32_146 : i32
      %c0_147 = arith.constant 0 : index
      %164 = arith.index_cast %163 : i32 to index
      %c1_148 = arith.constant 1 : index
      %c0_149 = arith.constant 0 : index
      %165 = vector.load %arg1[%c0_147, %164, %c1_148, %c0_149] : memref<1x6x6x128xf32, #tpu.memory_space<vmem>>, vector<1x1x4x128xf32>
      %166 = vector.shape_cast %165 : vector<1x1x4x128xf32> to vector<4x128xf32>
      %167 = arith.truncf %166 : vector<4x128xf32> to vector<4x128xbf16>
      %c7_150 = arith.constant 7 : index
      %c0_151 = arith.constant 0 : index
      %c0_152 = arith.constant 0 : index
      %168 = vector.load %arg2[%c7_150, %c0_151, %c0_152] : memref<9x128x128xbf16, #tpu.memory_space<vmem>>, vector<1x128x128xbf16>
      %169 = vector.shape_cast %168 : vector<1x128x128xbf16> to vector<128x128xbf16>
      %cst_153 = arith.constant dense<0.000000e+00> : vector<4x128xf32>
      %170 = tpu.matmul %167, %169, %cst_153 {dimension_numbers = #tpu.dot_dimension_numbers<[1], [0], [0], [1], [0, 0, 1, 1], [], []>} : vector<4x128xbf16>, vector<128x128xbf16>, vector<4x128xf32> -> vector<4x128xf32>
      %171 = arith.addf %162, %170 : vector<4x128xf32>
      %c2_i32_154 = arith.constant 2 : i32
      %172 = arith.addi %98, %c2_i32_154 : i32
      %c0_155 = arith.constant 0 : index
      %173 = arith.index_cast %172 : i32 to index
      %c2_156 = arith.constant 2 : index
      %c0_157 = arith.constant 0 : index
      %174 = vector.load %arg1[%c0_155, %173, %c2_156, %c0_157] : memref<1x6x6x128xf32, #tpu.memory_space<vmem>>, vector<1x1x4x128xf32>
      %175 = vector.shape_cast %174 : vector<1x1x4x128xf32> to vector<4x128xf32>
      %176 = arith.truncf %175 : vector<4x128xf32> to vector<4x128xbf16>
      %c8 = arith.constant 8 : index
      %c0_158 = arith.constant 0 : index
      %c0_159 = arith.constant 0 : index
      %177 = vector.load %arg2[%c8, %c0_158, %c0_159] : memref<9x128x128xbf16, #tpu.memory_space<vmem>>, vector<1x128x128xbf16>
      %178 = vector.shape_cast %177 : vector<1x128x128xbf16> to vector<128x128xbf16>
      %cst_160 = arith.constant dense<0.000000e+00> : vector<4x128xf32>
      %179 = tpu.matmul %176, %178, %cst_160 {dimension_numbers = #tpu.dot_dimension_numbers<[1], [0], [0], [1], [0, 0, 1, 1], [], []>} : vector<4x128xbf16>, vector<128x128xbf16>, vector<4x128xf32> -> vector<4x128xf32>
      %180 = arith.addf %171, %179 : vector<4x128xf32>
      %c0_161 = arith.constant 0 : index
      %c0_162 = arith.constant 0 : index
      %181 = vector.load %arg3[%c0_161, %c0_162] : memref<1x128xf32, #tpu.memory_space<vmem>>, vector<1x128xf32>
      %182 = vector.broadcast %181 : vector<1x128xf32> to vector<4x128xf32>
      %183 = arith.mulf %180, %182 : vector<4x128xf32>
      %c0_163 = arith.constant 0 : index
      %c0_164 = arith.constant 0 : index
      %184 = vector.load %arg4[%c0_163, %c0_164] : memref<1x128xf32, #tpu.memory_space<vmem>>, vector<1x128xf32>
      %185 = vector.broadcast %184 : vector<1x128xf32> to vector<4x128xf32>
      %186 = arith.addf %183, %185 : vector<4x128xf32>
      %cst_165 = arith.constant 0.000000e+00 : f32
      %187 = vector.broadcast %cst_165 : f32 to vector<4x128xf32>
      %188 = arith.maximumf %186, %187 : vector<4x128xf32>
      %c0_166 = arith.constant 0 : index
      %c0_167 = arith.constant 0 : index
      %189 = vector.load %arg5[%c0_166, %c0_167] : memref<8x4xf32, #tpu.memory_space<vmem>>, vector<8x4xf32>
      %cst_168 = arith.constant dense<0.000000e+00> : vector<8x128xf32>
      %190 = tpu.matmul %189, %188, %cst_168 {dimension_numbers = #tpu.dot_dimension_numbers<[1], [0], [0], [1], [0, 0, 1, 1], [], []>} : vector<8x4xf32>, vector<4x128xf32>, vector<8x128xf32> -> vector<8x128xf32>
      %191 = arith.index_cast %98 : i32 to index
      %c0_169 = arith.constant 0 : index
      %c0_170 = arith.constant 0 : index
      %192 = vector.load %arg7[%191, %c0_169, %c0_170] : memref<4x8x128xf32, #tpu.memory_space<vmem>>, vector<1x8x128xf32>
      %193 = vector.shape_cast %192 : vector<1x8x128xf32> to vector<8x128xf32>
      %194 = vector.shape_cast %190 : vector<8x128xf32> to vector<1x8x128xf32>
      tpu.vector_store %arg7[%191, %c0_169, %c0_170], %194 {strides = array<i32>} : memref<4x8x128xf32, #tpu.memory_space<vmem>>, vector<1x8x128xf32>,
    }
    %c4_i32_0 = arith.constant 4 : i32
    %c0 = arith.constant 0 : index
    %c0_1 = arith.constant 0 : index
    %c0_2 = arith.constant 0 : index
    %1 = vector.load %arg7[%c0, %c0_1, %c0_2] : memref<4x8x128xf32, #tpu.memory_space<vmem>>, vector<1x8x128xf32>
    %2 = vector.shape_cast %1 : vector<1x8x128xf32> to vector<8x128xf32>
    %cst = arith.constant 1.000000e+00 : f32
    %3 = vector.broadcast %cst : f32 to vector<8x128xf32>
    %4 = arith.mulf %3, %2 : vector<8x128xf32>
    %c1 = arith.constant 1 : index
    %c0_3 = arith.constant 0 : index
    %c0_4 = arith.constant 0 : index
    %5 = vector.load %arg7[%c1, %c0_3, %c0_4] : memref<4x8x128xf32, #tpu.memory_space<vmem>>, vector<1x8x128xf32>
    %6 = vector.shape_cast %5 : vector<1x8x128xf32> to vector<8x128xf32>
    %cst_5 = arith.constant 0.000000e+00 : f32
    %7 = vector.broadcast %cst_5 : f32 to vector<8x128xf32>
    %8 = arith.mulf %7, %6 : vector<8x128xf32>
    %9 = arith.addf %4, %8 : vector<8x128xf32>
    %c0_6 = arith.constant 0 : index
    %c0_7 = arith.constant 0 : index
    %c0_8 = arith.constant 0 : index
    %c0_9 = arith.constant 0 : index
    %10 = vector.load %arg6[%c0_6, %c0_7, %c0_8, %c0_9] : memref<1x8x8x128xf32, #tpu.memory_space<vmem>>, vector<1x1x8x128xf32>
    %11 = vector.shape_cast %10 : vector<1x1x8x128xf32> to vector<8x128xf32>
    %12 = vector.shape_cast %9 : vector<8x128xf32> to vector<1x1x8x128xf32>
    tpu.vector_store %arg6[%c0_6, %c0_7, %c0_8, %c0_9], %12 {strides = array<i32>} : memref<1x8x8x128xf32, #tpu.memory_space<vmem>>, vector<1x1x8x128xf32>,
    %c0_10 = arith.constant 0 : index
    %c0_11 = arith.constant 0 : index
    %c0_12 = arith.constant 0 : index
    %13 = vector.load %arg7[%c0_10, %c0_11, %c0_12] : memref<4x8x128xf32, #tpu.memory_space<vmem>>, vector<1x8x128xf32>
    %14 = vector.shape_cast %13 : vector<1x8x128xf32> to vector<8x128xf32>
    %cst_13 = arith.constant 7.500000e-01 : f32
    %15 = vector.broadcast %cst_13 : f32 to vector<8x128xf32>
    %16 = arith.mulf %15, %14 : vector<8x128xf32>
    %c1_14 = arith.constant 1 : index
    %c0_15 = arith.constant 0 : index
    %c0_16 = arith.constant 0 : index
    %17 = vector.load %arg7[%c1_14, %c0_15, %c0_16] : memref<4x8x128xf32, #tpu.memory_space<vmem>>, vector<1x8x128xf32>
    %18 = vector.shape_cast %17 : vector<1x8x128xf32> to vector<8x128xf32>
    %cst_17 = arith.constant 2.500000e-01 : f32
    %19 = vector.broadcast %cst_17 : f32 to vector<8x128xf32>
    %20 = arith.mulf %19, %18 : vector<8x128xf32>
    %21 = arith.addf %16, %20 : vector<8x128xf32>
    %c0_18 = arith.constant 0 : index
    %c1_19 = arith.constant 1 : index
    %c0_20 = arith.constant 0 : index
    %c0_21 = arith.constant 0 : index
    %22 = vector.load %arg6[%c0_18, %c1_19, %c0_20, %c0_21] : memref<1x8x8x128xf32, #tpu.memory_space<vmem>>, vector<1x1x8x128xf32>
    %23 = vector.shape_cast %22 : vector<1x1x8x128xf32> to vector<8x128xf32>
    %24 = vector.shape_cast %21 : vector<8x128xf32> to vector<1x1x8x128xf32>
    tpu.vector_store %arg6[%c0_18, %c1_19, %c0_20, %c0_21], %24 {strides = array<i32>} : memref<1x8x8x128xf32, #tpu.memory_space<vmem>>, vector<1x1x8x128xf32>,
    %c0_22 = arith.constant 0 : index
    %c0_23 = arith.constant 0 : index
    %c0_24 = arith.constant 0 : index
    %25 = vector.load %arg7[%c0_22, %c0_23, %c0_24] : memref<4x8x128xf32, #tpu.memory_space<vmem>>, vector<1x8x128xf32>
    %26 = vector.shape_cast %25 : vector<1x8x128xf32> to vector<8x128xf32>
    %cst_25 = arith.constant 2.500000e-01 : f32
    %27 = vector.broadcast %cst_25 : f32 to vector<8x128xf32>
    %28 = arith.mulf %27, %26 : vector<8x128xf32>
    %c1_26 = arith.constant 1 : index
    %c0_27 = arith.constant 0 : index
    %c0_28 = arith.constant 0 : index
    %29 = vector.load %arg7[%c1_26, %c0_27, %c0_28] : memref<4x8x128xf32, #tpu.memory_space<vmem>>, vector<1x8x128xf32>
    %30 = vector.shape_cast %29 : vector<1x8x128xf32> to vector<8x128xf32>
    %cst_29 = arith.constant 7.500000e-01 : f32
    %31 = vector.broadcast %cst_29 : f32 to vector<8x128xf32>
    %32 = arith.mulf %31, %30 : vector<8x128xf32>
    %33 = arith.addf %28, %32 : vector<8x128xf32>
    %c0_30 = arith.constant 0 : index
    %c2 = arith.constant 2 : index
    %c0_31 = arith.constant 0 : index
    %c0_32 = arith.constant 0 : index
    %34 = vector.load %arg6[%c0_30, %c2, %c0_31, %c0_32] : memref<1x8x8x128xf32, #tpu.memory_space<vmem>>, vector<1x1x8x128xf32>
    %35 = vector.shape_cast %34 : vector<1x1x8x128xf32> to vector<8x128xf32>
    %36 = vector.shape_cast %33 : vector<8x128xf32> to vector<1x1x8x128xf32>
    tpu.vector_store %arg6[%c0_30, %c2, %c0_31, %c0_32], %36 {strides = array<i32>} : memref<1x8x8x128xf32, #tpu.memory_space<vmem>>, vector<1x1x8x128xf32>,
    %c1_33 = arith.constant 1 : index
    %c0_34 = arith.constant 0 : index
    %c0_35 = arith.constant 0 : index
    %37 = vector.load %arg7[%c1_33, %c0_34, %c0_35] : memref<4x8x128xf32, #tpu.memory_space<vmem>>, vector<1x8x128xf32>
    %38 = vector.shape_cast %37 : vector<1x8x128xf32> to vector<8x128xf32>
    %cst_36 = arith.constant 7.500000e-01 : f32
    %39 = vector.broadcast %cst_36 : f32 to vector<8x128xf32>
    %40 = arith.mulf %39, %38 : vector<8x128xf32>
    %c2_37 = arith.constant 2 : index
    %c0_38 = arith.constant 0 : index
    %c0_39 = arith.constant 0 : index
    %41 = vector.load %arg7[%c2_37, %c0_38, %c0_39] : memref<4x8x128xf32, #tpu.memory_space<vmem>>, vector<1x8x128xf32>
    %42 = vector.shape_cast %41 : vector<1x8x128xf32> to vector<8x128xf32>
    %cst_40 = arith.constant 2.500000e-01 : f32
    %43 = vector.broadcast %cst_40 : f32 to vector<8x128xf32>
    %44 = arith.mulf %43, %42 : vector<8x128xf32>
    %45 = arith.addf %40, %44 : vector<8x128xf32>
    %c0_41 = arith.constant 0 : index
    %c3 = arith.constant 3 : index
    %c0_42 = arith.constant 0 : index
    %c0_43 = arith.constant 0 : index
    %46 = vector.load %arg6[%c0_41, %c3, %c0_42, %c0_43] : memref<1x8x8x128xf32, #tpu.memory_space<vmem>>, vector<1x1x8x128xf32>
    %47 = vector.shape_cast %46 : vector<1x1x8x128xf32> to vector<8x128xf32>
    %48 = vector.shape_cast %45 : vector<8x128xf32> to vector<1x1x8x128xf32>
    tpu.vector_store %arg6[%c0_41, %c3, %c0_42, %c0_43], %48 {strides = array<i32>} : memref<1x8x8x128xf32, #tpu.memory_space<vmem>>, vector<1x1x8x128xf32>,
    %c1_44 = arith.constant 1 : index
    %c0_45 = arith.constant 0 : index
    %c0_46 = arith.constant 0 : index
    %49 = vector.load %arg7[%c1_44, %c0_45, %c0_46] : memref<4x8x128xf32, #tpu.memory_space<vmem>>, vector<1x8x128xf32>
    %50 = vector.shape_cast %49 : vector<1x8x128xf32> to vector<8x128xf32>
    %cst_47 = arith.constant 2.500000e-01 : f32
    %51 = vector.broadcast %cst_47 : f32 to vector<8x128xf32>
    %52 = arith.mulf %51, %50 : vector<8x128xf32>
    %c2_48 = arith.constant 2 : index
    %c0_49 = arith.constant 0 : index
    %c0_50 = arith.constant 0 : index
    %53 = vector.load %arg7[%c2_48, %c0_49, %c0_50] : memref<4x8x128xf32, #tpu.memory_space<vmem>>, vector<1x8x128xf32>
    %54 = vector.shape_cast %53 : vector<1x8x128xf32> to vector<8x128xf32>
    %cst_51 = arith.constant 7.500000e-01 : f32
    %55 = vector.broadcast %cst_51 : f32 to vector<8x128xf32>
    %56 = arith.mulf %55, %54 : vector<8x128xf32>
    %57 = arith.addf %52, %56 : vector<8x128xf32>
    %c0_52 = arith.constant 0 : index
    %c4 = arith.constant 4 : index
    %c0_53 = arith.constant 0 : index
    %c0_54 = arith.constant 0 : index
    %58 = vector.load %arg6[%c0_52, %c4, %c0_53, %c0_54] : memref<1x8x8x128xf32, #tpu.memory_space<vmem>>, vector<1x1x8x128xf32>
    %59 = vector.shape_cast %58 : vector<1x1x8x128xf32> to vector<8x128xf32>
    %60 = vector.shape_cast %57 : vector<8x128xf32> to vector<1x1x8x128xf32>
    tpu.vector_store %arg6[%c0_52, %c4, %c0_53, %c0_54], %60 {strides = array<i32>} : memref<1x8x8x128xf32, #tpu.memory_space<vmem>>, vector<1x1x8x128xf32>,
    %c2_55 = arith.constant 2 : index
    %c0_56 = arith.constant 0 : index
    %c0_57 = arith.constant 0 : index
    %61 = vector.load %arg7[%c2_55, %c0_56, %c0_57] : memref<4x8x128xf32, #tpu.memory_space<vmem>>, vector<1x8x128xf32>
    %62 = vector.shape_cast %61 : vector<1x8x128xf32> to vector<8x128xf32>
    %cst_58 = arith.constant 7.500000e-01 : f32
    %63 = vector.broadcast %cst_58 : f32 to vector<8x128xf32>
    %64 = arith.mulf %63, %62 : vector<8x128xf32>
    %c3_59 = arith.constant 3 : index
    %c0_60 = arith.constant 0 : index
    %c0_61 = arith.constant 0 : index
    %65 = vector.load %arg7[%c3_59, %c0_60, %c0_61] : memref<4x8x128xf32, #tpu.memory_space<vmem>>, vector<1x8x128xf32>
    %66 = vector.shape_cast %65 : vector<1x8x128xf32> to vector<8x128xf32>
    %cst_62 = arith.constant 2.500000e-01 : f32
    %67 = vector.broadcast %cst_62 : f32 to vector<8x128xf32>
    %68 = arith.mulf %67, %66 : vector<8x128xf32>
    %69 = arith.addf %64, %68 : vector<8x128xf32>
    %c0_63 = arith.constant 0 : index
    %c5 = arith.constant 5 : index
    %c0_64 = arith.constant 0 : index
    %c0_65 = arith.constant 0 : index
    %70 = vector.load %arg6[%c0_63, %c5, %c0_64, %c0_65] : memref<1x8x8x128xf32, #tpu.memory_space<vmem>>, vector<1x1x8x128xf32>
    %71 = vector.shape_cast %70 : vector<1x1x8x128xf32> to vector<8x128xf32>
    %72 = vector.shape_cast %69 : vector<8x128xf32> to vector<1x1x8x128xf32>
    tpu.vector_store %arg6[%c0_63, %c5, %c0_64, %c0_65], %72 {strides = array<i32>} : memref<1x8x8x128xf32, #tpu.memory_space<vmem>>, vector<1x1x8x128xf32>,
    %c2_66 = arith.constant 2 : index
    %c0_67 = arith.constant 0 : index
    %c0_68 = arith.constant 0 : index
    %73 = vector.load %arg7[%c2_66, %c0_67, %c0_68] : memref<4x8x128xf32, #tpu.memory_space<vmem>>, vector<1x8x128xf32>
    %74 = vector.shape_cast %73 : vector<1x8x128xf32> to vector<8x128xf32>
    %cst_69 = arith.constant 2.500000e-01 : f32
    %75 = vector.broadcast %cst_69 : f32 to vector<8x128xf32>
    %76 = arith.mulf %75, %74 : vector<8x128xf32>
    %c3_70 = arith.constant 3 : index
    %c0_71 = arith.constant 0 : index
    %c0_72 = arith.constant 0 : index
    %77 = vector.load %arg7[%c3_70, %c0_71, %c0_72] : memref<4x8x128xf32, #tpu.memory_space<vmem>>, vector<1x8x128xf32>
    %78 = vector.shape_cast %77 : vector<1x8x128xf32> to vector<8x128xf32>
    %cst_73 = arith.constant 7.500000e-01 : f32
    %79 = vector.broadcast %cst_73 : f32 to vector<8x128xf32>
    %80 = arith.mulf %79, %78 : vector<8x128xf32>
    %81 = arith.addf %76, %80 : vector<8x128xf32>
    %c0_74 = arith.constant 0 : index
    %c6 = arith.constant 6 : index
    %c0_75 = arith.constant 0 : index
    %c0_76 = arith.constant 0 : index
    %82 = vector.load %arg6[%c0_74, %c6, %c0_75, %c0_76] : memref<1x8x8x128xf32, #tpu.memory_space<vmem>>, vector<1x1x8x128xf32>
    %83 = vector.shape_cast %82 : vector<1x1x8x128xf32> to vector<8x128xf32>
    %84 = vector.shape_cast %81 : vector<8x128xf32> to vector<1x1x8x128xf32>
    tpu.vector_store %arg6[%c0_74, %c6, %c0_75, %c0_76], %84 {strides = array<i32>} : memref<1x8x8x128xf32, #tpu.memory_space<vmem>>, vector<1x1x8x128xf32>,
    %c3_77 = arith.constant 3 : index
    %c0_78 = arith.constant 0 : index
    %c0_79 = arith.constant 0 : index
    %85 = vector.load %arg7[%c3_77, %c0_78, %c0_79] : memref<4x8x128xf32, #tpu.memory_space<vmem>>, vector<1x8x128xf32>
    %86 = vector.shape_cast %85 : vector<1x8x128xf32> to vector<8x128xf32>
    %cst_80 = arith.constant 7.500000e-01 : f32
    %87 = vector.broadcast %cst_80 : f32 to vector<8x128xf32>
    %88 = arith.mulf %87, %86 : vector<8x128xf32>
    %c3_81 = arith.constant 3 : index
    %c0_82 = arith.constant 0 : index
    %c0_83 = arith.constant 0 : index
    %89 = vector.load %arg7[%c3_81, %c0_82, %c0_83] : memref<4x8x128xf32, #tpu.memory_space<vmem>>, vector<1x8x128xf32>
    %90 = vector.shape_cast %89 : vector<1x8x128xf32> to vector<8x128xf32>
    %cst_84 = arith.constant 2.500000e-01 : f32
    %91 = vector.broadcast %cst_84 : f32 to vector<8x128xf32>
    %92 = arith.mulf %91, %90 : vector<8x128xf32>
    %93 = arith.addf %88, %92 : vector<8x128xf32>
    %c0_85 = arith.constant 0 : index
    %c7 = arith.constant 7 : index
    %c0_86 = arith.constant 0 : index
    %c0_87 = arith.constant 0 : index
    %94 = vector.load %arg6[%c0_85, %c7, %c0_86, %c0_87] : memref<1x8x8x128xf32, #tpu.memory_space<vmem>>, vector<1x1x8x128xf32>
    %95 = vector.shape_cast %94 : vector<1x1x8x128xf32> to vector<8x128xf32>
    %96 = vector.shape_cast %93 : vector<8x128xf32> to vector<1x1x8x128xf32>
    tpu.vector_store %arg6[%c0_85, %c7, %c0_86, %c0_87], %96 {strides = array<i32>} : memref<1x8x8x128xf32, #tpu.memory_space<vmem>>, vector<1x1x8x128xf32>,
    return
  }
  func.func @transform_0(%arg0: i32) -> (i32, i32, i32, i32) {
    %c0_i32 = arith.constant 0 : i32
    %c0_i32_0 = arith.constant 0 : i32
    %c0_i32_1 = arith.constant 0 : i32
    %c0_i32_2 = arith.constant 0 : i32
    return %arg0, %c0_i32, %c0_i32_0, %c0_i32_1 : i32, i32, i32, i32
  }
  func.func @transform_1(%arg0: i32) -> (i32, i32, i32) {
    %c0_i32 = arith.constant 0 : i32
    %c0_i32_0 = arith.constant 0 : i32
    %c0_i32_1 = arith.constant 0 : i32
    %c0_i32_2 = arith.constant 0 : i32
    return %c0_i32, %c0_i32_0, %c0_i32_1 : i32, i32, i32
  }
  func.func @transform_2(%arg0: i32) -> (i32, i32) {
    %c0_i32 = arith.constant 0 : i32
    %c0_i32_0 = arith.constant 0 : i32
    %c0_i32_1 = arith.constant 0 : i32
    return %c0_i32, %c0_i32_0 : i32, i32
  }
  func.func @transform_3(%arg0: i32) -> (i32, i32) {
    %c0_i32 = arith.constant 0 : i32
    %c0_i32_0 = arith.constant 0 : i32
    %c0_i32_1 = arith.constant 0 : i32
    return %c0_i32, %c0_i32_0 : i32, i32
  }
  func.func @transform_4(%arg0: i32) -> (i32, i32) {
    %c0_i32 = arith.constant 0 : i32
    %c0_i32_0 = arith.constant 0 : i32
    %c0_i32_1 = arith.constant 0 : i32
    return %c0_i32, %c0_i32_0 : i32, i32
  }
  func.func @transform_5(%arg0: i32) -> (i32, i32, i32, i32) {
    %c0_i32 = arith.constant 0 : i32
    %c0_i32_0 = arith.constant 0 : i32
    %c0_i32_1 = arith.constant 0 : i32
    %c0_i32_2 = arith.constant 0 : i32
    return %arg0, %c0_i32, %c0_i32_0, %c0_i32_1 : i32, i32, i32, i32
  }
}

module attributes {stable_mosaic.version = 11 : i64} {
  func.func @kernel(%arg0: i32, %arg1: memref<1x18x18x128xf32, #tpu.memory_space<vmem>>, %arg2: memref<9x128x128xbf16, #tpu.memory_space<vmem>>, %arg3: memref<1x128xf32, #tpu.memory_space<vmem>>, %arg4: memref<1x128xf32, #tpu.memory_space<vmem>>, %arg5: memref<32x16xf32, #tpu.memory_space<vmem>>, %arg6: memref<1x32x32x128xf32, #tpu.memory_space<vmem>>, %arg7: memref<16x32x128xf32, #tpu.memory_space<vmem>>) attributes {dimension_semantics = [#tpu.dimension_semantics<parallel>], iteration_bounds = array<i64: 2>, scalar_prefetch = 0 : i64, scratch_operands = 1 : i64, tpu.core_type = #tpu.core_type<tc>, window_params = [{transform_indices = @transform_0, window_bounds = array<i64: 1, 18, 18, 128>}, {pipeline_mode = #tpu.pipeline_mode<synchronous>, transform_indices = @transform_1, window_bounds = array<i64: 9, 128, 128>}, {pipeline_mode = #tpu.pipeline_mode<synchronous>, transform_indices = @transform_2, window_bounds = array<i64: 1, 128>}, {pipeline_mode = #tpu.pipeline_mode<synchronous>, transform_indices = @transform_3, window_bounds = array<i64: 1, 128>}, {pipeline_mode = #tpu.pipeline_mode<synchronous>, transform_indices = @transform_4, window_bounds = array<i64: 32, 16>}, {transform_indices = @transform_5, window_bounds = array<i64: 1, 32, 32, 128>}]} {
    %c0_i32 = arith.constant 0 : i32
    %c16_i32 = arith.constant 16 : i32
    %0 = arith.addi %c0_i32, %c16_i32 : i32
    %c1_i32 = arith.constant 1 : i32
    scf.for %arg8 = %c0_i32 to %0 step %c1_i32  : i32 {
      %c1_i32_352 = arith.constant 1 : i32
      %385 = arith.muli %arg8, %c1_i32_352 : i32
      %c0_i32_353 = arith.constant 0 : i32
      %386 = arith.addi %c0_i32_353, %385 : i32
      %cst_354 = arith.constant 0.000000e+00 : f32
      %387 = vector.broadcast %cst_354 : f32 to vector<16x128xf32>
      %c0_i32_355 = arith.constant 0 : i32
      %388 = arith.addi %386, %c0_i32_355 : i32
      %c0_356 = arith.constant 0 : index
      %389 = arith.index_cast %388 : i32 to index
      %c0_357 = arith.constant 0 : index
      %c0_358 = arith.constant 0 : index
      %390 = vector.load %arg1[%c0_356, %389, %c0_357, %c0_358] : memref<1x18x18x128xf32, #tpu.memory_space<vmem>>, vector<1x1x16x128xf32>
      %391 = vector.shape_cast %390 : vector<1x1x16x128xf32> to vector<16x128xf32>
      %392 = arith.truncf %391 : vector<16x128xf32> to vector<16x128xbf16>
      %c0_359 = arith.constant 0 : index
      %c0_360 = arith.constant 0 : index
      %c0_361 = arith.constant 0 : index
      %393 = vector.load %arg2[%c0_359, %c0_360, %c0_361] : memref<9x128x128xbf16, #tpu.memory_space<vmem>>, vector<1x128x128xbf16>
      %394 = vector.shape_cast %393 : vector<1x128x128xbf16> to vector<128x128xbf16>
      %cst_362 = arith.constant dense<0.000000e+00> : vector<16x128xf32>
      %395 = tpu.matmul %392, %394, %cst_362 {dimension_numbers = #tpu.dot_dimension_numbers<[1], [0], [0], [1], [0, 0, 1, 1], [], []>} : vector<16x128xbf16>, vector<128x128xbf16>, vector<16x128xf32> -> vector<16x128xf32>
      %396 = arith.addf %387, %395 : vector<16x128xf32>
      %c0_i32_363 = arith.constant 0 : i32
      %397 = arith.addi %386, %c0_i32_363 : i32
      %c0_364 = arith.constant 0 : index
      %398 = arith.index_cast %397 : i32 to index
      %c1_365 = arith.constant 1 : index
      %c0_366 = arith.constant 0 : index
      %399 = vector.load %arg1[%c0_364, %398, %c1_365, %c0_366] : memref<1x18x18x128xf32, #tpu.memory_space<vmem>>, vector<1x1x16x128xf32>
      %400 = vector.shape_cast %399 : vector<1x1x16x128xf32> to vector<16x128xf32>
      %401 = arith.truncf %400 : vector<16x128xf32> to vector<16x128xbf16>
      %c1_367 = arith.constant 1 : index
      %c0_368 = arith.constant 0 : index
      %c0_369 = arith.constant 0 : index
      %402 = vector.load %arg2[%c1_367, %c0_368, %c0_369] : memref<9x128x128xbf16, #tpu.memory_space<vmem>>, vector<1x128x128xbf16>
      %403 = vector.shape_cast %402 : vector<1x128x128xbf16> to vector<128x128xbf16>
      %cst_370 = arith.constant dense<0.000000e+00> : vector<16x128xf32>
      %404 = tpu.matmul %401, %403, %cst_370 {dimension_numbers = #tpu.dot_dimension_numbers<[1], [0], [0], [1], [0, 0, 1, 1], [], []>} : vector<16x128xbf16>, vector<128x128xbf16>, vector<16x128xf32> -> vector<16x128xf32>
      %405 = arith.addf %396, %404 : vector<16x128xf32>
      %c0_i32_371 = arith.constant 0 : i32
      %406 = arith.addi %386, %c0_i32_371 : i32
      %c0_372 = arith.constant 0 : index
      %407 = arith.index_cast %406 : i32 to index
      %c2_373 = arith.constant 2 : index
      %c0_374 = arith.constant 0 : index
      %408 = vector.load %arg1[%c0_372, %407, %c2_373, %c0_374] : memref<1x18x18x128xf32, #tpu.memory_space<vmem>>, vector<1x1x16x128xf32>
      %409 = vector.shape_cast %408 : vector<1x1x16x128xf32> to vector<16x128xf32>
      %410 = arith.truncf %409 : vector<16x128xf32> to vector<16x128xbf16>
      %c2_375 = arith.constant 2 : index
      %c0_376 = arith.constant 0 : index
      %c0_377 = arith.constant 0 : index
      %411 = vector.load %arg2[%c2_375, %c0_376, %c0_377] : memref<9x128x128xbf16, #tpu.memory_space<vmem>>, vector<1x128x128xbf16>
      %412 = vector.shape_cast %411 : vector<1x128x128xbf16> to vector<128x128xbf16>
      %cst_378 = arith.constant dense<0.000000e+00> : vector<16x128xf32>
      %413 = tpu.matmul %410, %412, %cst_378 {dimension_numbers = #tpu.dot_dimension_numbers<[1], [0], [0], [1], [0, 0, 1, 1], [], []>} : vector<16x128xbf16>, vector<128x128xbf16>, vector<16x128xf32> -> vector<16x128xf32>
      %414 = arith.addf %405, %413 : vector<16x128xf32>
      %c1_i32_379 = arith.constant 1 : i32
      %415 = arith.addi %386, %c1_i32_379 : i32
      %c0_380 = arith.constant 0 : index
      %416 = arith.index_cast %415 : i32 to index
      %c0_381 = arith.constant 0 : index
      %c0_382 = arith.constant 0 : index
      %417 = vector.load %arg1[%c0_380, %416, %c0_381, %c0_382] : memref<1x18x18x128xf32, #tpu.memory_space<vmem>>, vector<1x1x16x128xf32>
      %418 = vector.shape_cast %417 : vector<1x1x16x128xf32> to vector<16x128xf32>
      %419 = arith.truncf %418 : vector<16x128xf32> to vector<16x128xbf16>
      %c3_383 = arith.constant 3 : index
      %c0_384 = arith.constant 0 : index
      %c0_385 = arith.constant 0 : index
      %420 = vector.load %arg2[%c3_383, %c0_384, %c0_385] : memref<9x128x128xbf16, #tpu.memory_space<vmem>>, vector<1x128x128xbf16>
      %421 = vector.shape_cast %420 : vector<1x128x128xbf16> to vector<128x128xbf16>
      %cst_386 = arith.constant dense<0.000000e+00> : vector<16x128xf32>
      %422 = tpu.matmul %419, %421, %cst_386 {dimension_numbers = #tpu.dot_dimension_numbers<[1], [0], [0], [1], [0, 0, 1, 1], [], []>} : vector<16x128xbf16>, vector<128x128xbf16>, vector<16x128xf32> -> vector<16x128xf32>
      %423 = arith.addf %414, %422 : vector<16x128xf32>
      %c1_i32_387 = arith.constant 1 : i32
      %424 = arith.addi %386, %c1_i32_387 : i32
      %c0_388 = arith.constant 0 : index
      %425 = arith.index_cast %424 : i32 to index
      %c1_389 = arith.constant 1 : index
      %c0_390 = arith.constant 0 : index
      %426 = vector.load %arg1[%c0_388, %425, %c1_389, %c0_390] : memref<1x18x18x128xf32, #tpu.memory_space<vmem>>, vector<1x1x16x128xf32>
      %427 = vector.shape_cast %426 : vector<1x1x16x128xf32> to vector<16x128xf32>
      %428 = arith.truncf %427 : vector<16x128xf32> to vector<16x128xbf16>
      %c4_391 = arith.constant 4 : index
      %c0_392 = arith.constant 0 : index
      %c0_393 = arith.constant 0 : index
      %429 = vector.load %arg2[%c4_391, %c0_392, %c0_393] : memref<9x128x128xbf16, #tpu.memory_space<vmem>>, vector<1x128x128xbf16>
      %430 = vector.shape_cast %429 : vector<1x128x128xbf16> to vector<128x128xbf16>
      %cst_394 = arith.constant dense<0.000000e+00> : vector<16x128xf32>
      %431 = tpu.matmul %428, %430, %cst_394 {dimension_numbers = #tpu.dot_dimension_numbers<[1], [0], [0], [1], [0, 0, 1, 1], [], []>} : vector<16x128xbf16>, vector<128x128xbf16>, vector<16x128xf32> -> vector<16x128xf32>
      %432 = arith.addf %423, %431 : vector<16x128xf32>
      %c1_i32_395 = arith.constant 1 : i32
      %433 = arith.addi %386, %c1_i32_395 : i32
      %c0_396 = arith.constant 0 : index
      %434 = arith.index_cast %433 : i32 to index
      %c2_397 = arith.constant 2 : index
      %c0_398 = arith.constant 0 : index
      %435 = vector.load %arg1[%c0_396, %434, %c2_397, %c0_398] : memref<1x18x18x128xf32, #tpu.memory_space<vmem>>, vector<1x1x16x128xf32>
      %436 = vector.shape_cast %435 : vector<1x1x16x128xf32> to vector<16x128xf32>
      %437 = arith.truncf %436 : vector<16x128xf32> to vector<16x128xbf16>
      %c5_399 = arith.constant 5 : index
      %c0_400 = arith.constant 0 : index
      %c0_401 = arith.constant 0 : index
      %438 = vector.load %arg2[%c5_399, %c0_400, %c0_401] : memref<9x128x128xbf16, #tpu.memory_space<vmem>>, vector<1x128x128xbf16>
      %439 = vector.shape_cast %438 : vector<1x128x128xbf16> to vector<128x128xbf16>
      %cst_402 = arith.constant dense<0.000000e+00> : vector<16x128xf32>
      %440 = tpu.matmul %437, %439, %cst_402 {dimension_numbers = #tpu.dot_dimension_numbers<[1], [0], [0], [1], [0, 0, 1, 1], [], []>} : vector<16x128xbf16>, vector<128x128xbf16>, vector<16x128xf32> -> vector<16x128xf32>
      %441 = arith.addf %432, %440 : vector<16x128xf32>
      %c2_i32 = arith.constant 2 : i32
      %442 = arith.addi %386, %c2_i32 : i32
      %c0_403 = arith.constant 0 : index
      %443 = arith.index_cast %442 : i32 to index
      %c0_404 = arith.constant 0 : index
      %c0_405 = arith.constant 0 : index
      %444 = vector.load %arg1[%c0_403, %443, %c0_404, %c0_405] : memref<1x18x18x128xf32, #tpu.memory_space<vmem>>, vector<1x1x16x128xf32>
      %445 = vector.shape_cast %444 : vector<1x1x16x128xf32> to vector<16x128xf32>
      %446 = arith.truncf %445 : vector<16x128xf32> to vector<16x128xbf16>
      %c6_406 = arith.constant 6 : index
      %c0_407 = arith.constant 0 : index
      %c0_408 = arith.constant 0 : index
      %447 = vector.load %arg2[%c6_406, %c0_407, %c0_408] : memref<9x128x128xbf16, #tpu.memory_space<vmem>>, vector<1x128x128xbf16>
      %448 = vector.shape_cast %447 : vector<1x128x128xbf16> to vector<128x128xbf16>
      %cst_409 = arith.constant dense<0.000000e+00> : vector<16x128xf32>
      %449 = tpu.matmul %446, %448, %cst_409 {dimension_numbers = #tpu.dot_dimension_numbers<[1], [0], [0], [1], [0, 0, 1, 1], [], []>} : vector<16x128xbf16>, vector<128x128xbf16>, vector<16x128xf32> -> vector<16x128xf32>
      %450 = arith.addf %441, %449 : vector<16x128xf32>
      %c2_i32_410 = arith.constant 2 : i32
      %451 = arith.addi %386, %c2_i32_410 : i32
      %c0_411 = arith.constant 0 : index
      %452 = arith.index_cast %451 : i32 to index
      %c1_412 = arith.constant 1 : index
      %c0_413 = arith.constant 0 : index
      %453 = vector.load %arg1[%c0_411, %452, %c1_412, %c0_413] : memref<1x18x18x128xf32, #tpu.memory_space<vmem>>, vector<1x1x16x128xf32>
      %454 = vector.shape_cast %453 : vector<1x1x16x128xf32> to vector<16x128xf32>
      %455 = arith.truncf %454 : vector<16x128xf32> to vector<16x128xbf16>
      %c7_414 = arith.constant 7 : index
      %c0_415 = arith.constant 0 : index
      %c0_416 = arith.constant 0 : index
      %456 = vector.load %arg2[%c7_414, %c0_415, %c0_416] : memref<9x128x128xbf16, #tpu.memory_space<vmem>>, vector<1x128x128xbf16>
      %457 = vector.shape_cast %456 : vector<1x128x128xbf16> to vector<128x128xbf16>
      %cst_417 = arith.constant dense<0.000000e+00> : vector<16x128xf32>
      %458 = tpu.matmul %455, %457, %cst_417 {dimension_numbers = #tpu.dot_dimension_numbers<[1], [0], [0], [1], [0, 0, 1, 1], [], []>} : vector<16x128xbf16>, vector<128x128xbf16>, vector<16x128xf32> -> vector<16x128xf32>
      %459 = arith.addf %450, %458 : vector<16x128xf32>
      %c2_i32_418 = arith.constant 2 : i32
      %460 = arith.addi %386, %c2_i32_418 : i32
      %c0_419 = arith.constant 0 : index
      %461 = arith.index_cast %460 : i32 to index
      %c2_420 = arith.constant 2 : index
      %c0_421 = arith.constant 0 : index
      %462 = vector.load %arg1[%c0_419, %461, %c2_420, %c0_421] : memref<1x18x18x128xf32, #tpu.memory_space<vmem>>, vector<1x1x16x128xf32>
      %463 = vector.shape_cast %462 : vector<1x1x16x128xf32> to vector<16x128xf32>
      %464 = arith.truncf %463 : vector<16x128xf32> to vector<16x128xbf16>
      %c8_422 = arith.constant 8 : index
      %c0_423 = arith.constant 0 : index
      %c0_424 = arith.constant 0 : index
      %465 = vector.load %arg2[%c8_422, %c0_423, %c0_424] : memref<9x128x128xbf16, #tpu.memory_space<vmem>>, vector<1x128x128xbf16>
      %466 = vector.shape_cast %465 : vector<1x128x128xbf16> to vector<128x128xbf16>
      %cst_425 = arith.constant dense<0.000000e+00> : vector<16x128xf32>
      %467 = tpu.matmul %464, %466, %cst_425 {dimension_numbers = #tpu.dot_dimension_numbers<[1], [0], [0], [1], [0, 0, 1, 1], [], []>} : vector<16x128xbf16>, vector<128x128xbf16>, vector<16x128xf32> -> vector<16x128xf32>
      %468 = arith.addf %459, %467 : vector<16x128xf32>
      %c0_426 = arith.constant 0 : index
      %c0_427 = arith.constant 0 : index
      %469 = vector.load %arg3[%c0_426, %c0_427] : memref<1x128xf32, #tpu.memory_space<vmem>>, vector<1x128xf32>
      %470 = vector.broadcast %469 : vector<1x128xf32> to vector<16x128xf32>
      %471 = arith.mulf %468, %470 : vector<16x128xf32>
      %c0_428 = arith.constant 0 : index
      %c0_429 = arith.constant 0 : index
      %472 = vector.load %arg4[%c0_428, %c0_429] : memref<1x128xf32, #tpu.memory_space<vmem>>, vector<1x128xf32>
      %473 = vector.broadcast %472 : vector<1x128xf32> to vector<16x128xf32>
      %474 = arith.addf %471, %473 : vector<16x128xf32>
      %cst_430 = arith.constant 0.000000e+00 : f32
      %475 = vector.broadcast %cst_430 : f32 to vector<16x128xf32>
      %476 = arith.maximumf %474, %475 : vector<16x128xf32>
      %c0_431 = arith.constant 0 : index
      %c0_432 = arith.constant 0 : index
      %477 = vector.load %arg5[%c0_431, %c0_432] : memref<32x16xf32, #tpu.memory_space<vmem>>, vector<32x16xf32>
      %cst_433 = arith.constant dense<0.000000e+00> : vector<32x128xf32>
      %478 = tpu.matmul %477, %476, %cst_433 {dimension_numbers = #tpu.dot_dimension_numbers<[1], [0], [0], [1], [0, 0, 1, 1], [], []>} : vector<32x16xf32>, vector<16x128xf32>, vector<32x128xf32> -> vector<32x128xf32>
      %479 = arith.index_cast %386 : i32 to index
      %c0_434 = arith.constant 0 : index
      %c0_435 = arith.constant 0 : index
      %480 = vector.load %arg7[%479, %c0_434, %c0_435] : memref<16x32x128xf32, #tpu.memory_space<vmem>>, vector<1x32x128xf32>
      %481 = vector.shape_cast %480 : vector<1x32x128xf32> to vector<32x128xf32>
      %482 = vector.shape_cast %478 : vector<32x128xf32> to vector<1x32x128xf32>
      tpu.vector_store %arg7[%479, %c0_434, %c0_435], %482 {strides = array<i32>} : memref<16x32x128xf32, #tpu.memory_space<vmem>>, vector<1x32x128xf32>,
    }
    %c16_i32_0 = arith.constant 16 : i32
    %c0 = arith.constant 0 : index
    %c0_1 = arith.constant 0 : index
    %c0_2 = arith.constant 0 : index
    %1 = vector.load %arg7[%c0, %c0_1, %c0_2] : memref<16x32x128xf32, #tpu.memory_space<vmem>>, vector<1x32x128xf32>
    %2 = vector.shape_cast %1 : vector<1x32x128xf32> to vector<32x128xf32>
    %cst = arith.constant 1.000000e+00 : f32
    %3 = vector.broadcast %cst : f32 to vector<32x128xf32>
    %4 = arith.mulf %3, %2 : vector<32x128xf32>
    %c1 = arith.constant 1 : index
    %c0_3 = arith.constant 0 : index
    %c0_4 = arith.constant 0 : index
    %5 = vector.load %arg7[%c1, %c0_3, %c0_4] : memref<16x32x128xf32, #tpu.memory_space<vmem>>, vector<1x32x128xf32>
    %6 = vector.shape_cast %5 : vector<1x32x128xf32> to vector<32x128xf32>
    %cst_5 = arith.constant 0.000000e+00 : f32
    %7 = vector.broadcast %cst_5 : f32 to vector<32x128xf32>
    %8 = arith.mulf %7, %6 : vector<32x128xf32>
    %9 = arith.addf %4, %8 : vector<32x128xf32>
    %c0_6 = arith.constant 0 : index
    %c0_7 = arith.constant 0 : index
    %c0_8 = arith.constant 0 : index
    %c0_9 = arith.constant 0 : index
    %10 = vector.load %arg6[%c0_6, %c0_7, %c0_8, %c0_9] : memref<1x32x32x128xf32, #tpu.memory_space<vmem>>, vector<1x1x32x128xf32>
    %11 = vector.shape_cast %10 : vector<1x1x32x128xf32> to vector<32x128xf32>
    %12 = vector.shape_cast %9 : vector<32x128xf32> to vector<1x1x32x128xf32>
    tpu.vector_store %arg6[%c0_6, %c0_7, %c0_8, %c0_9], %12 {strides = array<i32>} : memref<1x32x32x128xf32, #tpu.memory_space<vmem>>, vector<1x1x32x128xf32>,
    %c0_10 = arith.constant 0 : index
    %c0_11 = arith.constant 0 : index
    %c0_12 = arith.constant 0 : index
    %13 = vector.load %arg7[%c0_10, %c0_11, %c0_12] : memref<16x32x128xf32, #tpu.memory_space<vmem>>, vector<1x32x128xf32>
    %14 = vector.shape_cast %13 : vector<1x32x128xf32> to vector<32x128xf32>
    %cst_13 = arith.constant 7.500000e-01 : f32
    %15 = vector.broadcast %cst_13 : f32 to vector<32x128xf32>
    %16 = arith.mulf %15, %14 : vector<32x128xf32>
    %c1_14 = arith.constant 1 : index
    %c0_15 = arith.constant 0 : index
    %c0_16 = arith.constant 0 : index
    %17 = vector.load %arg7[%c1_14, %c0_15, %c0_16] : memref<16x32x128xf32, #tpu.memory_space<vmem>>, vector<1x32x128xf32>
    %18 = vector.shape_cast %17 : vector<1x32x128xf32> to vector<32x128xf32>
    %cst_17 = arith.constant 2.500000e-01 : f32
    %19 = vector.broadcast %cst_17 : f32 to vector<32x128xf32>
    %20 = arith.mulf %19, %18 : vector<32x128xf32>
    %21 = arith.addf %16, %20 : vector<32x128xf32>
    %c0_18 = arith.constant 0 : index
    %c1_19 = arith.constant 1 : index
    %c0_20 = arith.constant 0 : index
    %c0_21 = arith.constant 0 : index
    %22 = vector.load %arg6[%c0_18, %c1_19, %c0_20, %c0_21] : memref<1x32x32x128xf32, #tpu.memory_space<vmem>>, vector<1x1x32x128xf32>
    %23 = vector.shape_cast %22 : vector<1x1x32x128xf32> to vector<32x128xf32>
    %24 = vector.shape_cast %21 : vector<32x128xf32> to vector<1x1x32x128xf32>
    tpu.vector_store %arg6[%c0_18, %c1_19, %c0_20, %c0_21], %24 {strides = array<i32>} : memref<1x32x32x128xf32, #tpu.memory_space<vmem>>, vector<1x1x32x128xf32>,
    %c0_22 = arith.constant 0 : index
    %c0_23 = arith.constant 0 : index
    %c0_24 = arith.constant 0 : index
    %25 = vector.load %arg7[%c0_22, %c0_23, %c0_24] : memref<16x32x128xf32, #tpu.memory_space<vmem>>, vector<1x32x128xf32>
    %26 = vector.shape_cast %25 : vector<1x32x128xf32> to vector<32x128xf32>
    %cst_25 = arith.constant 2.500000e-01 : f32
    %27 = vector.broadcast %cst_25 : f32 to vector<32x128xf32>
    %28 = arith.mulf %27, %26 : vector<32x128xf32>
    %c1_26 = arith.constant 1 : index
    %c0_27 = arith.constant 0 : index
    %c0_28 = arith.constant 0 : index
    %29 = vector.load %arg7[%c1_26, %c0_27, %c0_28] : memref<16x32x128xf32, #tpu.memory_space<vmem>>, vector<1x32x128xf32>
    %30 = vector.shape_cast %29 : vector<1x32x128xf32> to vector<32x128xf32>
    %cst_29 = arith.constant 7.500000e-01 : f32
    %31 = vector.broadcast %cst_29 : f32 to vector<32x128xf32>
    %32 = arith.mulf %31, %30 : vector<32x128xf32>
    %33 = arith.addf %28, %32 : vector<32x128xf32>
    %c0_30 = arith.constant 0 : index
    %c2 = arith.constant 2 : index
    %c0_31 = arith.constant 0 : index
    %c0_32 = arith.constant 0 : index
    %34 = vector.load %arg6[%c0_30, %c2, %c0_31, %c0_32] : memref<1x32x32x128xf32, #tpu.memory_space<vmem>>, vector<1x1x32x128xf32>
    %35 = vector.shape_cast %34 : vector<1x1x32x128xf32> to vector<32x128xf32>
    %36 = vector.shape_cast %33 : vector<32x128xf32> to vector<1x1x32x128xf32>
    tpu.vector_store %arg6[%c0_30, %c2, %c0_31, %c0_32], %36 {strides = array<i32>} : memref<1x32x32x128xf32, #tpu.memory_space<vmem>>, vector<1x1x32x128xf32>,
    %c1_33 = arith.constant 1 : index
    %c0_34 = arith.constant 0 : index
    %c0_35 = arith.constant 0 : index
    %37 = vector.load %arg7[%c1_33, %c0_34, %c0_35] : memref<16x32x128xf32, #tpu.memory_space<vmem>>, vector<1x32x128xf32>
    %38 = vector.shape_cast %37 : vector<1x32x128xf32> to vector<32x128xf32>
    %cst_36 = arith.constant 7.500000e-01 : f32
    %39 = vector.broadcast %cst_36 : f32 to vector<32x128xf32>
    %40 = arith.mulf %39, %38 : vector<32x128xf32>
    %c2_37 = arith.constant 2 : index
    %c0_38 = arith.constant 0 : index
    %c0_39 = arith.constant 0 : index
    %41 = vector.load %arg7[%c2_37, %c0_38, %c0_39] : memref<16x32x128xf32, #tpu.memory_space<vmem>>, vector<1x32x128xf32>
    %42 = vector.shape_cast %41 : vector<1x32x128xf32> to vector<32x128xf32>
    %cst_40 = arith.constant 2.500000e-01 : f32
    %43 = vector.broadcast %cst_40 : f32 to vector<32x128xf32>
    %44 = arith.mulf %43, %42 : vector<32x128xf32>
    %45 = arith.addf %40, %44 : vector<32x128xf32>
    %c0_41 = arith.constant 0 : index
    %c3 = arith.constant 3 : index
    %c0_42 = arith.constant 0 : index
    %c0_43 = arith.constant 0 : index
    %46 = vector.load %arg6[%c0_41, %c3, %c0_42, %c0_43] : memref<1x32x32x128xf32, #tpu.memory_space<vmem>>, vector<1x1x32x128xf32>
    %47 = vector.shape_cast %46 : vector<1x1x32x128xf32> to vector<32x128xf32>
    %48 = vector.shape_cast %45 : vector<32x128xf32> to vector<1x1x32x128xf32>
    tpu.vector_store %arg6[%c0_41, %c3, %c0_42, %c0_43], %48 {strides = array<i32>} : memref<1x32x32x128xf32, #tpu.memory_space<vmem>>, vector<1x1x32x128xf32>,
    %c1_44 = arith.constant 1 : index
    %c0_45 = arith.constant 0 : index
    %c0_46 = arith.constant 0 : index
    %49 = vector.load %arg7[%c1_44, %c0_45, %c0_46] : memref<16x32x128xf32, #tpu.memory_space<vmem>>, vector<1x32x128xf32>
    %50 = vector.shape_cast %49 : vector<1x32x128xf32> to vector<32x128xf32>
    %cst_47 = arith.constant 2.500000e-01 : f32
    %51 = vector.broadcast %cst_47 : f32 to vector<32x128xf32>
    %52 = arith.mulf %51, %50 : vector<32x128xf32>
    %c2_48 = arith.constant 2 : index
    %c0_49 = arith.constant 0 : index
    %c0_50 = arith.constant 0 : index
    %53 = vector.load %arg7[%c2_48, %c0_49, %c0_50] : memref<16x32x128xf32, #tpu.memory_space<vmem>>, vector<1x32x128xf32>
    %54 = vector.shape_cast %53 : vector<1x32x128xf32> to vector<32x128xf32>
    %cst_51 = arith.constant 7.500000e-01 : f32
    %55 = vector.broadcast %cst_51 : f32 to vector<32x128xf32>
    %56 = arith.mulf %55, %54 : vector<32x128xf32>
    %57 = arith.addf %52, %56 : vector<32x128xf32>
    %c0_52 = arith.constant 0 : index
    %c4 = arith.constant 4 : index
    %c0_53 = arith.constant 0 : index
    %c0_54 = arith.constant 0 : index
    %58 = vector.load %arg6[%c0_52, %c4, %c0_53, %c0_54] : memref<1x32x32x128xf32, #tpu.memory_space<vmem>>, vector<1x1x32x128xf32>
    %59 = vector.shape_cast %58 : vector<1x1x32x128xf32> to vector<32x128xf32>
    %60 = vector.shape_cast %57 : vector<32x128xf32> to vector<1x1x32x128xf32>
    tpu.vector_store %arg6[%c0_52, %c4, %c0_53, %c0_54], %60 {strides = array<i32>} : memref<1x32x32x128xf32, #tpu.memory_space<vmem>>, vector<1x1x32x128xf32>,
    %c2_55 = arith.constant 2 : index
    %c0_56 = arith.constant 0 : index
    %c0_57 = arith.constant 0 : index
    %61 = vector.load %arg7[%c2_55, %c0_56, %c0_57] : memref<16x32x128xf32, #tpu.memory_space<vmem>>, vector<1x32x128xf32>
    %62 = vector.shape_cast %61 : vector<1x32x128xf32> to vector<32x128xf32>
    %cst_58 = arith.constant 7.500000e-01 : f32
    %63 = vector.broadcast %cst_58 : f32 to vector<32x128xf32>
    %64 = arith.mulf %63, %62 : vector<32x128xf32>
    %c3_59 = arith.constant 3 : index
    %c0_60 = arith.constant 0 : index
    %c0_61 = arith.constant 0 : index
    %65 = vector.load %arg7[%c3_59, %c0_60, %c0_61] : memref<16x32x128xf32, #tpu.memory_space<vmem>>, vector<1x32x128xf32>
    %66 = vector.shape_cast %65 : vector<1x32x128xf32> to vector<32x128xf32>
    %cst_62 = arith.constant 2.500000e-01 : f32
    %67 = vector.broadcast %cst_62 : f32 to vector<32x128xf32>
    %68 = arith.mulf %67, %66 : vector<32x128xf32>
    %69 = arith.addf %64, %68 : vector<32x128xf32>
    %c0_63 = arith.constant 0 : index
    %c5 = arith.constant 5 : index
    %c0_64 = arith.constant 0 : index
    %c0_65 = arith.constant 0 : index
    %70 = vector.load %arg6[%c0_63, %c5, %c0_64, %c0_65] : memref<1x32x32x128xf32, #tpu.memory_space<vmem>>, vector<1x1x32x128xf32>
    %71 = vector.shape_cast %70 : vector<1x1x32x128xf32> to vector<32x128xf32>
    %72 = vector.shape_cast %69 : vector<32x128xf32> to vector<1x1x32x128xf32>
    tpu.vector_store %arg6[%c0_63, %c5, %c0_64, %c0_65], %72 {strides = array<i32>} : memref<1x32x32x128xf32, #tpu.memory_space<vmem>>, vector<1x1x32x128xf32>,
    %c2_66 = arith.constant 2 : index
    %c0_67 = arith.constant 0 : index
    %c0_68 = arith.constant 0 : index
    %73 = vector.load %arg7[%c2_66, %c0_67, %c0_68] : memref<16x32x128xf32, #tpu.memory_space<vmem>>, vector<1x32x128xf32>
    %74 = vector.shape_cast %73 : vector<1x32x128xf32> to vector<32x128xf32>
    %cst_69 = arith.constant 2.500000e-01 : f32
    %75 = vector.broadcast %cst_69 : f32 to vector<32x128xf32>
    %76 = arith.mulf %75, %74 : vector<32x128xf32>
    %c3_70 = arith.constant 3 : index
    %c0_71 = arith.constant 0 : index
    %c0_72 = arith.constant 0 : index
    %77 = vector.load %arg7[%c3_70, %c0_71, %c0_72] : memref<16x32x128xf32, #tpu.memory_space<vmem>>, vector<1x32x128xf32>
    %78 = vector.shape_cast %77 : vector<1x32x128xf32> to vector<32x128xf32>
    %cst_73 = arith.constant 7.500000e-01 : f32
    %79 = vector.broadcast %cst_73 : f32 to vector<32x128xf32>
    %80 = arith.mulf %79, %78 : vector<32x128xf32>
    %81 = arith.addf %76, %80 : vector<32x128xf32>
    %c0_74 = arith.constant 0 : index
    %c6 = arith.constant 6 : index
    %c0_75 = arith.constant 0 : index
    %c0_76 = arith.constant 0 : index
    %82 = vector.load %arg6[%c0_74, %c6, %c0_75, %c0_76] : memref<1x32x32x128xf32, #tpu.memory_space<vmem>>, vector<1x1x32x128xf32>
    %83 = vector.shape_cast %82 : vector<1x1x32x128xf32> to vector<32x128xf32>
    %84 = vector.shape_cast %81 : vector<32x128xf32> to vector<1x1x32x128xf32>
    tpu.vector_store %arg6[%c0_74, %c6, %c0_75, %c0_76], %84 {strides = array<i32>} : memref<1x32x32x128xf32, #tpu.memory_space<vmem>>, vector<1x1x32x128xf32>,
    %c3_77 = arith.constant 3 : index
    %c0_78 = arith.constant 0 : index
    %c0_79 = arith.constant 0 : index
    %85 = vector.load %arg7[%c3_77, %c0_78, %c0_79] : memref<16x32x128xf32, #tpu.memory_space<vmem>>, vector<1x32x128xf32>
    %86 = vector.shape_cast %85 : vector<1x32x128xf32> to vector<32x128xf32>
    %cst_80 = arith.constant 7.500000e-01 : f32
    %87 = vector.broadcast %cst_80 : f32 to vector<32x128xf32>
    %88 = arith.mulf %87, %86 : vector<32x128xf32>
    %c4_81 = arith.constant 4 : index
    %c0_82 = arith.constant 0 : index
    %c0_83 = arith.constant 0 : index
    %89 = vector.load %arg7[%c4_81, %c0_82, %c0_83] : memref<16x32x128xf32, #tpu.memory_space<vmem>>, vector<1x32x128xf32>
    %90 = vector.shape_cast %89 : vector<1x32x128xf32> to vector<32x128xf32>
    %cst_84 = arith.constant 2.500000e-01 : f32
    %91 = vector.broadcast %cst_84 : f32 to vector<32x128xf32>
    %92 = arith.mulf %91, %90 : vector<32x128xf32>
    %93 = arith.addf %88, %92 : vector<32x128xf32>
    %c0_85 = arith.constant 0 : index
    %c7 = arith.constant 7 : index
    %c0_86 = arith.constant 0 : index
    %c0_87 = arith.constant 0 : index
    %94 = vector.load %arg6[%c0_85, %c7, %c0_86, %c0_87] : memref<1x32x32x128xf32, #tpu.memory_space<vmem>>, vector<1x1x32x128xf32>
    %95 = vector.shape_cast %94 : vector<1x1x32x128xf32> to vector<32x128xf32>
    %96 = vector.shape_cast %93 : vector<32x128xf32> to vector<1x1x32x128xf32>
    tpu.vector_store %arg6[%c0_85, %c7, %c0_86, %c0_87], %96 {strides = array<i32>} : memref<1x32x32x128xf32, #tpu.memory_space<vmem>>, vector<1x1x32x128xf32>,
    %c3_88 = arith.constant 3 : index
    %c0_89 = arith.constant 0 : index
    %c0_90 = arith.constant 0 : index
    %97 = vector.load %arg7[%c3_88, %c0_89, %c0_90] : memref<16x32x128xf32, #tpu.memory_space<vmem>>, vector<1x32x128xf32>
    %98 = vector.shape_cast %97 : vector<1x32x128xf32> to vector<32x128xf32>
    %cst_91 = arith.constant 2.500000e-01 : f32
    %99 = vector.broadcast %cst_91 : f32 to vector<32x128xf32>
    %100 = arith.mulf %99, %98 : vector<32x128xf32>
    %c4_92 = arith.constant 4 : index
    %c0_93 = arith.constant 0 : index
    %c0_94 = arith.constant 0 : index
    %101 = vector.load %arg7[%c4_92, %c0_93, %c0_94] : memref<16x32x128xf32, #tpu.memory_space<vmem>>, vector<1x32x128xf32>
    %102 = vector.shape_cast %101 : vector<1x32x128xf32> to vector<32x128xf32>
    %cst_95 = arith.constant 7.500000e-01 : f32
    %103 = vector.broadcast %cst_95 : f32 to vector<32x128xf32>
    %104 = arith.mulf %103, %102 : vector<32x128xf32>
    %105 = arith.addf %100, %104 : vector<32x128xf32>
    %c0_96 = arith.constant 0 : index
    %c8 = arith.constant 8 : index
    %c0_97 = arith.constant 0 : index
    %c0_98 = arith.constant 0 : index
    %106 = vector.load %arg6[%c0_96, %c8, %c0_97, %c0_98] : memref<1x32x32x128xf32, #tpu.memory_space<vmem>>, vector<1x1x32x128xf32>
    %107 = vector.shape_cast %106 : vector<1x1x32x128xf32> to vector<32x128xf32>
    %108 = vector.shape_cast %105 : vector<32x128xf32> to vector<1x1x32x128xf32>
    tpu.vector_store %arg6[%c0_96, %c8, %c0_97, %c0_98], %108 {strides = array<i32>} : memref<1x32x32x128xf32, #tpu.memory_space<vmem>>, vector<1x1x32x128xf32>,
    %c4_99 = arith.constant 4 : index
    %c0_100 = arith.constant 0 : index
    %c0_101 = arith.constant 0 : index
    %109 = vector.load %arg7[%c4_99, %c0_100, %c0_101] : memref<16x32x128xf32, #tpu.memory_space<vmem>>, vector<1x32x128xf32>
    %110 = vector.shape_cast %109 : vector<1x32x128xf32> to vector<32x128xf32>
    %cst_102 = arith.constant 7.500000e-01 : f32
    %111 = vector.broadcast %cst_102 : f32 to vector<32x128xf32>
    %112 = arith.mulf %111, %110 : vector<32x128xf32>
    %c5_103 = arith.constant 5 : index
    %c0_104 = arith.constant 0 : index
    %c0_105 = arith.constant 0 : index
    %113 = vector.load %arg7[%c5_103, %c0_104, %c0_105] : memref<16x32x128xf32, #tpu.memory_space<vmem>>, vector<1x32x128xf32>
    %114 = vector.shape_cast %113 : vector<1x32x128xf32> to vector<32x128xf32>
    %cst_106 = arith.constant 2.500000e-01 : f32
    %115 = vector.broadcast %cst_106 : f32 to vector<32x128xf32>
    %116 = arith.mulf %115, %114 : vector<32x128xf32>
    %117 = arith.addf %112, %116 : vector<32x128xf32>
    %c0_107 = arith.constant 0 : index
    %c9 = arith.constant 9 : index
    %c0_108 = arith.constant 0 : index
    %c0_109 = arith.constant 0 : index
    %118 = vector.load %arg6[%c0_107, %c9, %c0_108, %c0_109] : memref<1x32x32x128xf32, #tpu.memory_space<vmem>>, vector<1x1x32x128xf32>
    %119 = vector.shape_cast %118 : vector<1x1x32x128xf32> to vector<32x128xf32>
    %120 = vector.shape_cast %117 : vector<32x128xf32> to vector<1x1x32x128xf32>
    tpu.vector_store %arg6[%c0_107, %c9, %c0_108, %c0_109], %120 {strides = array<i32>} : memref<1x32x32x128xf32, #tpu.memory_space<vmem>>, vector<1x1x32x128xf32>,
    %c4_110 = arith.constant 4 : index
    %c0_111 = arith.constant 0 : index
    %c0_112 = arith.constant 0 : index
    %121 = vector.load %arg7[%c4_110, %c0_111, %c0_112] : memref<16x32x128xf32, #tpu.memory_space<vmem>>, vector<1x32x128xf32>
    %122 = vector.shape_cast %121 : vector<1x32x128xf32> to vector<32x128xf32>
    %cst_113 = arith.constant 2.500000e-01 : f32
    %123 = vector.broadcast %cst_113 : f32 to vector<32x128xf32>
    %124 = arith.mulf %123, %122 : vector<32x128xf32>
    %c5_114 = arith.constant 5 : index
    %c0_115 = arith.constant 0 : index
    %c0_116 = arith.constant 0 : index
    %125 = vector.load %arg7[%c5_114, %c0_115, %c0_116] : memref<16x32x128xf32, #tpu.memory_space<vmem>>, vector<1x32x128xf32>
    %126 = vector.shape_cast %125 : vector<1x32x128xf32> to vector<32x128xf32>
    %cst_117 = arith.constant 7.500000e-01 : f32
    %127 = vector.broadcast %cst_117 : f32 to vector<32x128xf32>
    %128 = arith.mulf %127, %126 : vector<32x128xf32>
    %129 = arith.addf %124, %128 : vector<32x128xf32>
    %c0_118 = arith.constant 0 : index
    %c10 = arith.constant 10 : index
    %c0_119 = arith.constant 0 : index
    %c0_120 = arith.constant 0 : index
    %130 = vector.load %arg6[%c0_118, %c10, %c0_119, %c0_120] : memref<1x32x32x128xf32, #tpu.memory_space<vmem>>, vector<1x1x32x128xf32>
    %131 = vector.shape_cast %130 : vector<1x1x32x128xf32> to vector<32x128xf32>
    %132 = vector.shape_cast %129 : vector<32x128xf32> to vector<1x1x32x128xf32>
    tpu.vector_store %arg6[%c0_118, %c10, %c0_119, %c0_120], %132 {strides = array<i32>} : memref<1x32x32x128xf32, #tpu.memory_space<vmem>>, vector<1x1x32x128xf32>,
    %c5_121 = arith.constant 5 : index
    %c0_122 = arith.constant 0 : index
    %c0_123 = arith.constant 0 : index
    %133 = vector.load %arg7[%c5_121, %c0_122, %c0_123] : memref<16x32x128xf32, #tpu.memory_space<vmem>>, vector<1x32x128xf32>
    %134 = vector.shape_cast %133 : vector<1x32x128xf32> to vector<32x128xf32>
    %cst_124 = arith.constant 7.500000e-01 : f32
    %135 = vector.broadcast %cst_124 : f32 to vector<32x128xf32>
    %136 = arith.mulf %135, %134 : vector<32x128xf32>
    %c6_125 = arith.constant 6 : index
    %c0_126 = arith.constant 0 : index
    %c0_127 = arith.constant 0 : index
    %137 = vector.load %arg7[%c6_125, %c0_126, %c0_127] : memref<16x32x128xf32, #tpu.memory_space<vmem>>, vector<1x32x128xf32>
    %138 = vector.shape_cast %137 : vector<1x32x128xf32> to vector<32x128xf32>
    %cst_128 = arith.constant 2.500000e-01 : f32
    %139 = vector.broadcast %cst_128 : f32 to vector<32x128xf32>
    %140 = arith.mulf %139, %138 : vector<32x128xf32>
    %141 = arith.addf %136, %140 : vector<32x128xf32>
    %c0_129 = arith.constant 0 : index
    %c11 = arith.constant 11 : index
    %c0_130 = arith.constant 0 : index
    %c0_131 = arith.constant 0 : index
    %142 = vector.load %arg6[%c0_129, %c11, %c0_130, %c0_131] : memref<1x32x32x128xf32, #tpu.memory_space<vmem>>, vector<1x1x32x128xf32>
    %143 = vector.shape_cast %142 : vector<1x1x32x128xf32> to vector<32x128xf32>
    %144 = vector.shape_cast %141 : vector<32x128xf32> to vector<1x1x32x128xf32>
    tpu.vector_store %arg6[%c0_129, %c11, %c0_130, %c0_131], %144 {strides = array<i32>} : memref<1x32x32x128xf32, #tpu.memory_space<vmem>>, vector<1x1x32x128xf32>,
    %c5_132 = arith.constant 5 : index
    %c0_133 = arith.constant 0 : index
    %c0_134 = arith.constant 0 : index
    %145 = vector.load %arg7[%c5_132, %c0_133, %c0_134] : memref<16x32x128xf32, #tpu.memory_space<vmem>>, vector<1x32x128xf32>
    %146 = vector.shape_cast %145 : vector<1x32x128xf32> to vector<32x128xf32>
    %cst_135 = arith.constant 2.500000e-01 : f32
    %147 = vector.broadcast %cst_135 : f32 to vector<32x128xf32>
    %148 = arith.mulf %147, %146 : vector<32x128xf32>
    %c6_136 = arith.constant 6 : index
    %c0_137 = arith.constant 0 : index
    %c0_138 = arith.constant 0 : index
    %149 = vector.load %arg7[%c6_136, %c0_137, %c0_138] : memref<16x32x128xf32, #tpu.memory_space<vmem>>, vector<1x32x128xf32>
    %150 = vector.shape_cast %149 : vector<1x32x128xf32> to vector<32x128xf32>
    %cst_139 = arith.constant 7.500000e-01 : f32
    %151 = vector.broadcast %cst_139 : f32 to vector<32x128xf32>
    %152 = arith.mulf %151, %150 : vector<32x128xf32>
    %153 = arith.addf %148, %152 : vector<32x128xf32>
    %c0_140 = arith.constant 0 : index
    %c12 = arith.constant 12 : index
    %c0_141 = arith.constant 0 : index
    %c0_142 = arith.constant 0 : index
    %154 = vector.load %arg6[%c0_140, %c12, %c0_141, %c0_142] : memref<1x32x32x128xf32, #tpu.memory_space<vmem>>, vector<1x1x32x128xf32>
    %155 = vector.shape_cast %154 : vector<1x1x32x128xf32> to vector<32x128xf32>
    %156 = vector.shape_cast %153 : vector<32x128xf32> to vector<1x1x32x128xf32>
    tpu.vector_store %arg6[%c0_140, %c12, %c0_141, %c0_142], %156 {strides = array<i32>} : memref<1x32x32x128xf32, #tpu.memory_space<vmem>>, vector<1x1x32x128xf32>,
    %c6_143 = arith.constant 6 : index
    %c0_144 = arith.constant 0 : index
    %c0_145 = arith.constant 0 : index
    %157 = vector.load %arg7[%c6_143, %c0_144, %c0_145] : memref<16x32x128xf32, #tpu.memory_space<vmem>>, vector<1x32x128xf32>
    %158 = vector.shape_cast %157 : vector<1x32x128xf32> to vector<32x128xf32>
    %cst_146 = arith.constant 7.500000e-01 : f32
    %159 = vector.broadcast %cst_146 : f32 to vector<32x128xf32>
    %160 = arith.mulf %159, %158 : vector<32x128xf32>
    %c7_147 = arith.constant 7 : index
    %c0_148 = arith.constant 0 : index
    %c0_149 = arith.constant 0 : index
    %161 = vector.load %arg7[%c7_147, %c0_148, %c0_149] : memref<16x32x128xf32, #tpu.memory_space<vmem>>, vector<1x32x128xf32>
    %162 = vector.shape_cast %161 : vector<1x32x128xf32> to vector<32x128xf32>
    %cst_150 = arith.constant 2.500000e-01 : f32
    %163 = vector.broadcast %cst_150 : f32 to vector<32x128xf32>
    %164 = arith.mulf %163, %162 : vector<32x128xf32>
    %165 = arith.addf %160, %164 : vector<32x128xf32>
    %c0_151 = arith.constant 0 : index
    %c13 = arith.constant 13 : index
    %c0_152 = arith.constant 0 : index
    %c0_153 = arith.constant 0 : index
    %166 = vector.load %arg6[%c0_151, %c13, %c0_152, %c0_153] : memref<1x32x32x128xf32, #tpu.memory_space<vmem>>, vector<1x1x32x128xf32>
    %167 = vector.shape_cast %166 : vector<1x1x32x128xf32> to vector<32x128xf32>
    %168 = vector.shape_cast %165 : vector<32x128xf32> to vector<1x1x32x128xf32>
    tpu.vector_store %arg6[%c0_151, %c13, %c0_152, %c0_153], %168 {strides = array<i32>} : memref<1x32x32x128xf32, #tpu.memory_space<vmem>>, vector<1x1x32x128xf32>,
    %c6_154 = arith.constant 6 : index
    %c0_155 = arith.constant 0 : index
    %c0_156 = arith.constant 0 : index
    %169 = vector.load %arg7[%c6_154, %c0_155, %c0_156] : memref<16x32x128xf32, #tpu.memory_space<vmem>>, vector<1x32x128xf32>
    %170 = vector.shape_cast %169 : vector<1x32x128xf32> to vector<32x128xf32>
    %cst_157 = arith.constant 2.500000e-01 : f32
    %171 = vector.broadcast %cst_157 : f32 to vector<32x128xf32>
    %172 = arith.mulf %171, %170 : vector<32x128xf32>
    %c7_158 = arith.constant 7 : index
    %c0_159 = arith.constant 0 : index
    %c0_160 = arith.constant 0 : index
    %173 = vector.load %arg7[%c7_158, %c0_159, %c0_160] : memref<16x32x128xf32, #tpu.memory_space<vmem>>, vector<1x32x128xf32>
    %174 = vector.shape_cast %173 : vector<1x32x128xf32> to vector<32x128xf32>
    %cst_161 = arith.constant 7.500000e-01 : f32
    %175 = vector.broadcast %cst_161 : f32 to vector<32x128xf32>
    %176 = arith.mulf %175, %174 : vector<32x128xf32>
    %177 = arith.addf %172, %176 : vector<32x128xf32>
    %c0_162 = arith.constant 0 : index
    %c14 = arith.constant 14 : index
    %c0_163 = arith.constant 0 : index
    %c0_164 = arith.constant 0 : index
    %178 = vector.load %arg6[%c0_162, %c14, %c0_163, %c0_164] : memref<1x32x32x128xf32, #tpu.memory_space<vmem>>, vector<1x1x32x128xf32>
    %179 = vector.shape_cast %178 : vector<1x1x32x128xf32> to vector<32x128xf32>
    %180 = vector.shape_cast %177 : vector<32x128xf32> to vector<1x1x32x128xf32>
    tpu.vector_store %arg6[%c0_162, %c14, %c0_163, %c0_164], %180 {strides = array<i32>} : memref<1x32x32x128xf32, #tpu.memory_space<vmem>>, vector<1x1x32x128xf32>,
    %c7_165 = arith.constant 7 : index
    %c0_166 = arith.constant 0 : index
    %c0_167 = arith.constant 0 : index
    %181 = vector.load %arg7[%c7_165, %c0_166, %c0_167] : memref<16x32x128xf32, #tpu.memory_space<vmem>>, vector<1x32x128xf32>
    %182 = vector.shape_cast %181 : vector<1x32x128xf32> to vector<32x128xf32>
    %cst_168 = arith.constant 7.500000e-01 : f32
    %183 = vector.broadcast %cst_168 : f32 to vector<32x128xf32>
    %184 = arith.mulf %183, %182 : vector<32x128xf32>
    %c8_169 = arith.constant 8 : index
    %c0_170 = arith.constant 0 : index
    %c0_171 = arith.constant 0 : index
    %185 = vector.load %arg7[%c8_169, %c0_170, %c0_171] : memref<16x32x128xf32, #tpu.memory_space<vmem>>, vector<1x32x128xf32>
    %186 = vector.shape_cast %185 : vector<1x32x128xf32> to vector<32x128xf32>
    %cst_172 = arith.constant 2.500000e-01 : f32
    %187 = vector.broadcast %cst_172 : f32 to vector<32x128xf32>
    %188 = arith.mulf %187, %186 : vector<32x128xf32>
    %189 = arith.addf %184, %188 : vector<32x128xf32>
    %c0_173 = arith.constant 0 : index
    %c15 = arith.constant 15 : index
    %c0_174 = arith.constant 0 : index
    %c0_175 = arith.constant 0 : index
    %190 = vector.load %arg6[%c0_173, %c15, %c0_174, %c0_175] : memref<1x32x32x128xf32, #tpu.memory_space<vmem>>, vector<1x1x32x128xf32>
    %191 = vector.shape_cast %190 : vector<1x1x32x128xf32> to vector<32x128xf32>
    %192 = vector.shape_cast %189 : vector<32x128xf32> to vector<1x1x32x128xf32>
    tpu.vector_store %arg6[%c0_173, %c15, %c0_174, %c0_175], %192 {strides = array<i32>} : memref<1x32x32x128xf32, #tpu.memory_space<vmem>>, vector<1x1x32x128xf32>,
    %c7_176 = arith.constant 7 : index
    %c0_177 = arith.constant 0 : index
    %c0_178 = arith.constant 0 : index
    %193 = vector.load %arg7[%c7_176, %c0_177, %c0_178] : memref<16x32x128xf32, #tpu.memory_space<vmem>>, vector<1x32x128xf32>
    %194 = vector.shape_cast %193 : vector<1x32x128xf32> to vector<32x128xf32>
    %cst_179 = arith.constant 2.500000e-01 : f32
    %195 = vector.broadcast %cst_179 : f32 to vector<32x128xf32>
    %196 = arith.mulf %195, %194 : vector<32x128xf32>
    %c8_180 = arith.constant 8 : index
    %c0_181 = arith.constant 0 : index
    %c0_182 = arith.constant 0 : index
    %197 = vector.load %arg7[%c8_180, %c0_181, %c0_182] : memref<16x32x128xf32, #tpu.memory_space<vmem>>, vector<1x32x128xf32>
    %198 = vector.shape_cast %197 : vector<1x32x128xf32> to vector<32x128xf32>
    %cst_183 = arith.constant 7.500000e-01 : f32
    %199 = vector.broadcast %cst_183 : f32 to vector<32x128xf32>
    %200 = arith.mulf %199, %198 : vector<32x128xf32>
    %201 = arith.addf %196, %200 : vector<32x128xf32>
    %c0_184 = arith.constant 0 : index
    %c16 = arith.constant 16 : index
    %c0_185 = arith.constant 0 : index
    %c0_186 = arith.constant 0 : index
    %202 = vector.load %arg6[%c0_184, %c16, %c0_185, %c0_186] : memref<1x32x32x128xf32, #tpu.memory_space<vmem>>, vector<1x1x32x128xf32>
    %203 = vector.shape_cast %202 : vector<1x1x32x128xf32> to vector<32x128xf32>
    %204 = vector.shape_cast %201 : vector<32x128xf32> to vector<1x1x32x128xf32>
    tpu.vector_store %arg6[%c0_184, %c16, %c0_185, %c0_186], %204 {strides = array<i32>} : memref<1x32x32x128xf32, #tpu.memory_space<vmem>>, vector<1x1x32x128xf32>,
    %c8_187 = arith.constant 8 : index
    %c0_188 = arith.constant 0 : index
    %c0_189 = arith.constant 0 : index
    %205 = vector.load %arg7[%c8_187, %c0_188, %c0_189] : memref<16x32x128xf32, #tpu.memory_space<vmem>>, vector<1x32x128xf32>
    %206 = vector.shape_cast %205 : vector<1x32x128xf32> to vector<32x128xf32>
    %cst_190 = arith.constant 7.500000e-01 : f32
    %207 = vector.broadcast %cst_190 : f32 to vector<32x128xf32>
    %208 = arith.mulf %207, %206 : vector<32x128xf32>
    %c9_191 = arith.constant 9 : index
    %c0_192 = arith.constant 0 : index
    %c0_193 = arith.constant 0 : index
    %209 = vector.load %arg7[%c9_191, %c0_192, %c0_193] : memref<16x32x128xf32, #tpu.memory_space<vmem>>, vector<1x32x128xf32>
    %210 = vector.shape_cast %209 : vector<1x32x128xf32> to vector<32x128xf32>
    %cst_194 = arith.constant 2.500000e-01 : f32
    %211 = vector.broadcast %cst_194 : f32 to vector<32x128xf32>
    %212 = arith.mulf %211, %210 : vector<32x128xf32>
    %213 = arith.addf %208, %212 : vector<32x128xf32>
    %c0_195 = arith.constant 0 : index
    %c17 = arith.constant 17 : index
    %c0_196 = arith.constant 0 : index
    %c0_197 = arith.constant 0 : index
    %214 = vector.load %arg6[%c0_195, %c17, %c0_196, %c0_197] : memref<1x32x32x128xf32, #tpu.memory_space<vmem>>, vector<1x1x32x128xf32>
    %215 = vector.shape_cast %214 : vector<1x1x32x128xf32> to vector<32x128xf32>
    %216 = vector.shape_cast %213 : vector<32x128xf32> to vector<1x1x32x128xf32>
    tpu.vector_store %arg6[%c0_195, %c17, %c0_196, %c0_197], %216 {strides = array<i32>} : memref<1x32x32x128xf32, #tpu.memory_space<vmem>>, vector<1x1x32x128xf32>,
    %c8_198 = arith.constant 8 : index
    %c0_199 = arith.constant 0 : index
    %c0_200 = arith.constant 0 : index
    %217 = vector.load %arg7[%c8_198, %c0_199, %c0_200] : memref<16x32x128xf32, #tpu.memory_space<vmem>>, vector<1x32x128xf32>
    %218 = vector.shape_cast %217 : vector<1x32x128xf32> to vector<32x128xf32>
    %cst_201 = arith.constant 2.500000e-01 : f32
    %219 = vector.broadcast %cst_201 : f32 to vector<32x128xf32>
    %220 = arith.mulf %219, %218 : vector<32x128xf32>
    %c9_202 = arith.constant 9 : index
    %c0_203 = arith.constant 0 : index
    %c0_204 = arith.constant 0 : index
    %221 = vector.load %arg7[%c9_202, %c0_203, %c0_204] : memref<16x32x128xf32, #tpu.memory_space<vmem>>, vector<1x32x128xf32>
    %222 = vector.shape_cast %221 : vector<1x32x128xf32> to vector<32x128xf32>
    %cst_205 = arith.constant 7.500000e-01 : f32
    %223 = vector.broadcast %cst_205 : f32 to vector<32x128xf32>
    %224 = arith.mulf %223, %222 : vector<32x128xf32>
    %225 = arith.addf %220, %224 : vector<32x128xf32>
    %c0_206 = arith.constant 0 : index
    %c18 = arith.constant 18 : index
    %c0_207 = arith.constant 0 : index
    %c0_208 = arith.constant 0 : index
    %226 = vector.load %arg6[%c0_206, %c18, %c0_207, %c0_208] : memref<1x32x32x128xf32, #tpu.memory_space<vmem>>, vector<1x1x32x128xf32>
    %227 = vector.shape_cast %226 : vector<1x1x32x128xf32> to vector<32x128xf32>
    %228 = vector.shape_cast %225 : vector<32x128xf32> to vector<1x1x32x128xf32>
    tpu.vector_store %arg6[%c0_206, %c18, %c0_207, %c0_208], %228 {strides = array<i32>} : memref<1x32x32x128xf32, #tpu.memory_space<vmem>>, vector<1x1x32x128xf32>,
    %c9_209 = arith.constant 9 : index
    %c0_210 = arith.constant 0 : index
    %c0_211 = arith.constant 0 : index
    %229 = vector.load %arg7[%c9_209, %c0_210, %c0_211] : memref<16x32x128xf32, #tpu.memory_space<vmem>>, vector<1x32x128xf32>
    %230 = vector.shape_cast %229 : vector<1x32x128xf32> to vector<32x128xf32>
    %cst_212 = arith.constant 7.500000e-01 : f32
    %231 = vector.broadcast %cst_212 : f32 to vector<32x128xf32>
    %232 = arith.mulf %231, %230 : vector<32x128xf32>
    %c10_213 = arith.constant 10 : index
    %c0_214 = arith.constant 0 : index
    %c0_215 = arith.constant 0 : index
    %233 = vector.load %arg7[%c10_213, %c0_214, %c0_215] : memref<16x32x128xf32, #tpu.memory_space<vmem>>, vector<1x32x128xf32>
    %234 = vector.shape_cast %233 : vector<1x32x128xf32> to vector<32x128xf32>
    %cst_216 = arith.constant 2.500000e-01 : f32
    %235 = vector.broadcast %cst_216 : f32 to vector<32x128xf32>
    %236 = arith.mulf %235, %234 : vector<32x128xf32>
    %237 = arith.addf %232, %236 : vector<32x128xf32>
    %c0_217 = arith.constant 0 : index
    %c19 = arith.constant 19 : index
    %c0_218 = arith.constant 0 : index
    %c0_219 = arith.constant 0 : index
    %238 = vector.load %arg6[%c0_217, %c19, %c0_218, %c0_219] : memref<1x32x32x128xf32, #tpu.memory_space<vmem>>, vector<1x1x32x128xf32>
    %239 = vector.shape_cast %238 : vector<1x1x32x128xf32> to vector<32x128xf32>
    %240 = vector.shape_cast %237 : vector<32x128xf32> to vector<1x1x32x128xf32>
    tpu.vector_store %arg6[%c0_217, %c19, %c0_218, %c0_219], %240 {strides = array<i32>} : memref<1x32x32x128xf32, #tpu.memory_space<vmem>>, vector<1x1x32x128xf32>,
    %c9_220 = arith.constant 9 : index
    %c0_221 = arith.constant 0 : index
    %c0_222 = arith.constant 0 : index
    %241 = vector.load %arg7[%c9_220, %c0_221, %c0_222] : memref<16x32x128xf32, #tpu.memory_space<vmem>>, vector<1x32x128xf32>
    %242 = vector.shape_cast %241 : vector<1x32x128xf32> to vector<32x128xf32>
    %cst_223 = arith.constant 2.500000e-01 : f32
    %243 = vector.broadcast %cst_223 : f32 to vector<32x128xf32>
    %244 = arith.mulf %243, %242 : vector<32x128xf32>
    %c10_224 = arith.constant 10 : index
    %c0_225 = arith.constant 0 : index
    %c0_226 = arith.constant 0 : index
    %245 = vector.load %arg7[%c10_224, %c0_225, %c0_226] : memref<16x32x128xf32, #tpu.memory_space<vmem>>, vector<1x32x128xf32>
    %246 = vector.shape_cast %245 : vector<1x32x128xf32> to vector<32x128xf32>
    %cst_227 = arith.constant 7.500000e-01 : f32
    %247 = vector.broadcast %cst_227 : f32 to vector<32x128xf32>
    %248 = arith.mulf %247, %246 : vector<32x128xf32>
    %249 = arith.addf %244, %248 : vector<32x128xf32>
    %c0_228 = arith.constant 0 : index
    %c20 = arith.constant 20 : index
    %c0_229 = arith.constant 0 : index
    %c0_230 = arith.constant 0 : index
    %250 = vector.load %arg6[%c0_228, %c20, %c0_229, %c0_230] : memref<1x32x32x128xf32, #tpu.memory_space<vmem>>, vector<1x1x32x128xf32>
    %251 = vector.shape_cast %250 : vector<1x1x32x128xf32> to vector<32x128xf32>
    %252 = vector.shape_cast %249 : vector<32x128xf32> to vector<1x1x32x128xf32>
    tpu.vector_store %arg6[%c0_228, %c20, %c0_229, %c0_230], %252 {strides = array<i32>} : memref<1x32x32x128xf32, #tpu.memory_space<vmem>>, vector<1x1x32x128xf32>,
    %c10_231 = arith.constant 10 : index
    %c0_232 = arith.constant 0 : index
    %c0_233 = arith.constant 0 : index
    %253 = vector.load %arg7[%c10_231, %c0_232, %c0_233] : memref<16x32x128xf32, #tpu.memory_space<vmem>>, vector<1x32x128xf32>
    %254 = vector.shape_cast %253 : vector<1x32x128xf32> to vector<32x128xf32>
    %cst_234 = arith.constant 7.500000e-01 : f32
    %255 = vector.broadcast %cst_234 : f32 to vector<32x128xf32>
    %256 = arith.mulf %255, %254 : vector<32x128xf32>
    %c11_235 = arith.constant 11 : index
    %c0_236 = arith.constant 0 : index
    %c0_237 = arith.constant 0 : index
    %257 = vector.load %arg7[%c11_235, %c0_236, %c0_237] : memref<16x32x128xf32, #tpu.memory_space<vmem>>, vector<1x32x128xf32>
    %258 = vector.shape_cast %257 : vector<1x32x128xf32> to vector<32x128xf32>
    %cst_238 = arith.constant 2.500000e-01 : f32
    %259 = vector.broadcast %cst_238 : f32 to vector<32x128xf32>
    %260 = arith.mulf %259, %258 : vector<32x128xf32>
    %261 = arith.addf %256, %260 : vector<32x128xf32>
    %c0_239 = arith.constant 0 : index
    %c21 = arith.constant 21 : index
    %c0_240 = arith.constant 0 : index
    %c0_241 = arith.constant 0 : index
    %262 = vector.load %arg6[%c0_239, %c21, %c0_240, %c0_241] : memref<1x32x32x128xf32, #tpu.memory_space<vmem>>, vector<1x1x32x128xf32>
    %263 = vector.shape_cast %262 : vector<1x1x32x128xf32> to vector<32x128xf32>
    %264 = vector.shape_cast %261 : vector<32x128xf32> to vector<1x1x32x128xf32>
    tpu.vector_store %arg6[%c0_239, %c21, %c0_240, %c0_241], %264 {strides = array<i32>} : memref<1x32x32x128xf32, #tpu.memory_space<vmem>>, vector<1x1x32x128xf32>,
    %c10_242 = arith.constant 10 : index
    %c0_243 = arith.constant 0 : index
    %c0_244 = arith.constant 0 : index
    %265 = vector.load %arg7[%c10_242, %c0_243, %c0_244] : memref<16x32x128xf32, #tpu.memory_space<vmem>>, vector<1x32x128xf32>
    %266 = vector.shape_cast %265 : vector<1x32x128xf32> to vector<32x128xf32>
    %cst_245 = arith.constant 2.500000e-01 : f32
    %267 = vector.broadcast %cst_245 : f32 to vector<32x128xf32>
    %268 = arith.mulf %267, %266 : vector<32x128xf32>
    %c11_246 = arith.constant 11 : index
    %c0_247 = arith.constant 0 : index
    %c0_248 = arith.constant 0 : index
    %269 = vector.load %arg7[%c11_246, %c0_247, %c0_248] : memref<16x32x128xf32, #tpu.memory_space<vmem>>, vector<1x32x128xf32>
    %270 = vector.shape_cast %269 : vector<1x32x128xf32> to vector<32x128xf32>
    %cst_249 = arith.constant 7.500000e-01 : f32
    %271 = vector.broadcast %cst_249 : f32 to vector<32x128xf32>
    %272 = arith.mulf %271, %270 : vector<32x128xf32>
    %273 = arith.addf %268, %272 : vector<32x128xf32>
    %c0_250 = arith.constant 0 : index
    %c22 = arith.constant 22 : index
    %c0_251 = arith.constant 0 : index
    %c0_252 = arith.constant 0 : index
    %274 = vector.load %arg6[%c0_250, %c22, %c0_251, %c0_252] : memref<1x32x32x128xf32, #tpu.memory_space<vmem>>, vector<1x1x32x128xf32>
    %275 = vector.shape_cast %274 : vector<1x1x32x128xf32> to vector<32x128xf32>
    %276 = vector.shape_cast %273 : vector<32x128xf32> to vector<1x1x32x128xf32>
    tpu.vector_store %arg6[%c0_250, %c22, %c0_251, %c0_252], %276 {strides = array<i32>} : memref<1x32x32x128xf32, #tpu.memory_space<vmem>>, vector<1x1x32x128xf32>,
    %c11_253 = arith.constant 11 : index
    %c0_254 = arith.constant 0 : index
    %c0_255 = arith.constant 0 : index
    %277 = vector.load %arg7[%c11_253, %c0_254, %c0_255] : memref<16x32x128xf32, #tpu.memory_space<vmem>>, vector<1x32x128xf32>
    %278 = vector.shape_cast %277 : vector<1x32x128xf32> to vector<32x128xf32>
    %cst_256 = arith.constant 7.500000e-01 : f32
    %279 = vector.broadcast %cst_256 : f32 to vector<32x128xf32>
    %280 = arith.mulf %279, %278 : vector<32x128xf32>
    %c12_257 = arith.constant 12 : index
    %c0_258 = arith.constant 0 : index
    %c0_259 = arith.constant 0 : index
    %281 = vector.load %arg7[%c12_257, %c0_258, %c0_259] : memref<16x32x128xf32, #tpu.memory_space<vmem>>, vector<1x32x128xf32>
    %282 = vector.shape_cast %281 : vector<1x32x128xf32> to vector<32x128xf32>
    %cst_260 = arith.constant 2.500000e-01 : f32
    %283 = vector.broadcast %cst_260 : f32 to vector<32x128xf32>
    %284 = arith.mulf %283, %282 : vector<32x128xf32>
    %285 = arith.addf %280, %284 : vector<32x128xf32>
    %c0_261 = arith.constant 0 : index
    %c23 = arith.constant 23 : index
    %c0_262 = arith.constant 0 : index
    %c0_263 = arith.constant 0 : index
    %286 = vector.load %arg6[%c0_261, %c23, %c0_262, %c0_263] : memref<1x32x32x128xf32, #tpu.memory_space<vmem>>, vector<1x1x32x128xf32>
    %287 = vector.shape_cast %286 : vector<1x1x32x128xf32> to vector<32x128xf32>
    %288 = vector.shape_cast %285 : vector<32x128xf32> to vector<1x1x32x128xf32>
    tpu.vector_store %arg6[%c0_261, %c23, %c0_262, %c0_263], %288 {strides = array<i32>} : memref<1x32x32x128xf32, #tpu.memory_space<vmem>>, vector<1x1x32x128xf32>,
    %c11_264 = arith.constant 11 : index
    %c0_265 = arith.constant 0 : index
    %c0_266 = arith.constant 0 : index
    %289 = vector.load %arg7[%c11_264, %c0_265, %c0_266] : memref<16x32x128xf32, #tpu.memory_space<vmem>>, vector<1x32x128xf32>
    %290 = vector.shape_cast %289 : vector<1x32x128xf32> to vector<32x128xf32>
    %cst_267 = arith.constant 2.500000e-01 : f32
    %291 = vector.broadcast %cst_267 : f32 to vector<32x128xf32>
    %292 = arith.mulf %291, %290 : vector<32x128xf32>
    %c12_268 = arith.constant 12 : index
    %c0_269 = arith.constant 0 : index
    %c0_270 = arith.constant 0 : index
    %293 = vector.load %arg7[%c12_268, %c0_269, %c0_270] : memref<16x32x128xf32, #tpu.memory_space<vmem>>, vector<1x32x128xf32>
    %294 = vector.shape_cast %293 : vector<1x32x128xf32> to vector<32x128xf32>
    %cst_271 = arith.constant 7.500000e-01 : f32
    %295 = vector.broadcast %cst_271 : f32 to vector<32x128xf32>
    %296 = arith.mulf %295, %294 : vector<32x128xf32>
    %297 = arith.addf %292, %296 : vector<32x128xf32>
    %c0_272 = arith.constant 0 : index
    %c24 = arith.constant 24 : index
    %c0_273 = arith.constant 0 : index
    %c0_274 = arith.constant 0 : index
    %298 = vector.load %arg6[%c0_272, %c24, %c0_273, %c0_274] : memref<1x32x32x128xf32, #tpu.memory_space<vmem>>, vector<1x1x32x128xf32>
    %299 = vector.shape_cast %298 : vector<1x1x32x128xf32> to vector<32x128xf32>
    %300 = vector.shape_cast %297 : vector<32x128xf32> to vector<1x1x32x128xf32>
    tpu.vector_store %arg6[%c0_272, %c24, %c0_273, %c0_274], %300 {strides = array<i32>} : memref<1x32x32x128xf32, #tpu.memory_space<vmem>>, vector<1x1x32x128xf32>,
    %c12_275 = arith.constant 12 : index
    %c0_276 = arith.constant 0 : index
    %c0_277 = arith.constant 0 : index
    %301 = vector.load %arg7[%c12_275, %c0_276, %c0_277] : memref<16x32x128xf32, #tpu.memory_space<vmem>>, vector<1x32x128xf32>
    %302 = vector.shape_cast %301 : vector<1x32x128xf32> to vector<32x128xf32>
    %cst_278 = arith.constant 7.500000e-01 : f32
    %303 = vector.broadcast %cst_278 : f32 to vector<32x128xf32>
    %304 = arith.mulf %303, %302 : vector<32x128xf32>
    %c13_279 = arith.constant 13 : index
    %c0_280 = arith.constant 0 : index
    %c0_281 = arith.constant 0 : index
    %305 = vector.load %arg7[%c13_279, %c0_280, %c0_281] : memref<16x32x128xf32, #tpu.memory_space<vmem>>, vector<1x32x128xf32>
    %306 = vector.shape_cast %305 : vector<1x32x128xf32> to vector<32x128xf32>
    %cst_282 = arith.constant 2.500000e-01 : f32
    %307 = vector.broadcast %cst_282 : f32 to vector<32x128xf32>
    %308 = arith.mulf %307, %306 : vector<32x128xf32>
    %309 = arith.addf %304, %308 : vector<32x128xf32>
    %c0_283 = arith.constant 0 : index
    %c25 = arith.constant 25 : index
    %c0_284 = arith.constant 0 : index
    %c0_285 = arith.constant 0 : index
    %310 = vector.load %arg6[%c0_283, %c25, %c0_284, %c0_285] : memref<1x32x32x128xf32, #tpu.memory_space<vmem>>, vector<1x1x32x128xf32>
    %311 = vector.shape_cast %310 : vector<1x1x32x128xf32> to vector<32x128xf32>
    %312 = vector.shape_cast %309 : vector<32x128xf32> to vector<1x1x32x128xf32>
    tpu.vector_store %arg6[%c0_283, %c25, %c0_284, %c0_285], %312 {strides = array<i32>} : memref<1x32x32x128xf32, #tpu.memory_space<vmem>>, vector<1x1x32x128xf32>,
    %c12_286 = arith.constant 12 : index
    %c0_287 = arith.constant 0 : index
    %c0_288 = arith.constant 0 : index
    %313 = vector.load %arg7[%c12_286, %c0_287, %c0_288] : memref<16x32x128xf32, #tpu.memory_space<vmem>>, vector<1x32x128xf32>
    %314 = vector.shape_cast %313 : vector<1x32x128xf32> to vector<32x128xf32>
    %cst_289 = arith.constant 2.500000e-01 : f32
    %315 = vector.broadcast %cst_289 : f32 to vector<32x128xf32>
    %316 = arith.mulf %315, %314 : vector<32x128xf32>
    %c13_290 = arith.constant 13 : index
    %c0_291 = arith.constant 0 : index
    %c0_292 = arith.constant 0 : index
    %317 = vector.load %arg7[%c13_290, %c0_291, %c0_292] : memref<16x32x128xf32, #tpu.memory_space<vmem>>, vector<1x32x128xf32>
    %318 = vector.shape_cast %317 : vector<1x32x128xf32> to vector<32x128xf32>
    %cst_293 = arith.constant 7.500000e-01 : f32
    %319 = vector.broadcast %cst_293 : f32 to vector<32x128xf32>
    %320 = arith.mulf %319, %318 : vector<32x128xf32>
    %321 = arith.addf %316, %320 : vector<32x128xf32>
    %c0_294 = arith.constant 0 : index
    %c26 = arith.constant 26 : index
    %c0_295 = arith.constant 0 : index
    %c0_296 = arith.constant 0 : index
    %322 = vector.load %arg6[%c0_294, %c26, %c0_295, %c0_296] : memref<1x32x32x128xf32, #tpu.memory_space<vmem>>, vector<1x1x32x128xf32>
    %323 = vector.shape_cast %322 : vector<1x1x32x128xf32> to vector<32x128xf32>
    %324 = vector.shape_cast %321 : vector<32x128xf32> to vector<1x1x32x128xf32>
    tpu.vector_store %arg6[%c0_294, %c26, %c0_295, %c0_296], %324 {strides = array<i32>} : memref<1x32x32x128xf32, #tpu.memory_space<vmem>>, vector<1x1x32x128xf32>,
    %c13_297 = arith.constant 13 : index
    %c0_298 = arith.constant 0 : index
    %c0_299 = arith.constant 0 : index
    %325 = vector.load %arg7[%c13_297, %c0_298, %c0_299] : memref<16x32x128xf32, #tpu.memory_space<vmem>>, vector<1x32x128xf32>
    %326 = vector.shape_cast %325 : vector<1x32x128xf32> to vector<32x128xf32>
    %cst_300 = arith.constant 7.500000e-01 : f32
    %327 = vector.broadcast %cst_300 : f32 to vector<32x128xf32>
    %328 = arith.mulf %327, %326 : vector<32x128xf32>
    %c14_301 = arith.constant 14 : index
    %c0_302 = arith.constant 0 : index
    %c0_303 = arith.constant 0 : index
    %329 = vector.load %arg7[%c14_301, %c0_302, %c0_303] : memref<16x32x128xf32, #tpu.memory_space<vmem>>, vector<1x32x128xf32>
    %330 = vector.shape_cast %329 : vector<1x32x128xf32> to vector<32x128xf32>
    %cst_304 = arith.constant 2.500000e-01 : f32
    %331 = vector.broadcast %cst_304 : f32 to vector<32x128xf32>
    %332 = arith.mulf %331, %330 : vector<32x128xf32>
    %333 = arith.addf %328, %332 : vector<32x128xf32>
    %c0_305 = arith.constant 0 : index
    %c27 = arith.constant 27 : index
    %c0_306 = arith.constant 0 : index
    %c0_307 = arith.constant 0 : index
    %334 = vector.load %arg6[%c0_305, %c27, %c0_306, %c0_307] : memref<1x32x32x128xf32, #tpu.memory_space<vmem>>, vector<1x1x32x128xf32>
    %335 = vector.shape_cast %334 : vector<1x1x32x128xf32> to vector<32x128xf32>
    %336 = vector.shape_cast %333 : vector<32x128xf32> to vector<1x1x32x128xf32>
    tpu.vector_store %arg6[%c0_305, %c27, %c0_306, %c0_307], %336 {strides = array<i32>} : memref<1x32x32x128xf32, #tpu.memory_space<vmem>>, vector<1x1x32x128xf32>,
    %c13_308 = arith.constant 13 : index
    %c0_309 = arith.constant 0 : index
    %c0_310 = arith.constant 0 : index
    %337 = vector.load %arg7[%c13_308, %c0_309, %c0_310] : memref<16x32x128xf32, #tpu.memory_space<vmem>>, vector<1x32x128xf32>
    %338 = vector.shape_cast %337 : vector<1x32x128xf32> to vector<32x128xf32>
    %cst_311 = arith.constant 2.500000e-01 : f32
    %339 = vector.broadcast %cst_311 : f32 to vector<32x128xf32>
    %340 = arith.mulf %339, %338 : vector<32x128xf32>
    %c14_312 = arith.constant 14 : index
    %c0_313 = arith.constant 0 : index
    %c0_314 = arith.constant 0 : index
    %341 = vector.load %arg7[%c14_312, %c0_313, %c0_314] : memref<16x32x128xf32, #tpu.memory_space<vmem>>, vector<1x32x128xf32>
    %342 = vector.shape_cast %341 : vector<1x32x128xf32> to vector<32x128xf32>
    %cst_315 = arith.constant 7.500000e-01 : f32
    %343 = vector.broadcast %cst_315 : f32 to vector<32x128xf32>
    %344 = arith.mulf %343, %342 : vector<32x128xf32>
    %345 = arith.addf %340, %344 : vector<32x128xf32>
    %c0_316 = arith.constant 0 : index
    %c28 = arith.constant 28 : index
    %c0_317 = arith.constant 0 : index
    %c0_318 = arith.constant 0 : index
    %346 = vector.load %arg6[%c0_316, %c28, %c0_317, %c0_318] : memref<1x32x32x128xf32, #tpu.memory_space<vmem>>, vector<1x1x32x128xf32>
    %347 = vector.shape_cast %346 : vector<1x1x32x128xf32> to vector<32x128xf32>
    %348 = vector.shape_cast %345 : vector<32x128xf32> to vector<1x1x32x128xf32>
    tpu.vector_store %arg6[%c0_316, %c28, %c0_317, %c0_318], %348 {strides = array<i32>} : memref<1x32x32x128xf32, #tpu.memory_space<vmem>>, vector<1x1x32x128xf32>,
    %c14_319 = arith.constant 14 : index
    %c0_320 = arith.constant 0 : index
    %c0_321 = arith.constant 0 : index
    %349 = vector.load %arg7[%c14_319, %c0_320, %c0_321] : memref<16x32x128xf32, #tpu.memory_space<vmem>>, vector<1x32x128xf32>
    %350 = vector.shape_cast %349 : vector<1x32x128xf32> to vector<32x128xf32>
    %cst_322 = arith.constant 7.500000e-01 : f32
    %351 = vector.broadcast %cst_322 : f32 to vector<32x128xf32>
    %352 = arith.mulf %351, %350 : vector<32x128xf32>
    %c15_323 = arith.constant 15 : index
    %c0_324 = arith.constant 0 : index
    %c0_325 = arith.constant 0 : index
    %353 = vector.load %arg7[%c15_323, %c0_324, %c0_325] : memref<16x32x128xf32, #tpu.memory_space<vmem>>, vector<1x32x128xf32>
    %354 = vector.shape_cast %353 : vector<1x32x128xf32> to vector<32x128xf32>
    %cst_326 = arith.constant 2.500000e-01 : f32
    %355 = vector.broadcast %cst_326 : f32 to vector<32x128xf32>
    %356 = arith.mulf %355, %354 : vector<32x128xf32>
    %357 = arith.addf %352, %356 : vector<32x128xf32>
    %c0_327 = arith.constant 0 : index
    %c29 = arith.constant 29 : index
    %c0_328 = arith.constant 0 : index
    %c0_329 = arith.constant 0 : index
    %358 = vector.load %arg6[%c0_327, %c29, %c0_328, %c0_329] : memref<1x32x32x128xf32, #tpu.memory_space<vmem>>, vector<1x1x32x128xf32>
    %359 = vector.shape_cast %358 : vector<1x1x32x128xf32> to vector<32x128xf32>
    %360 = vector.shape_cast %357 : vector<32x128xf32> to vector<1x1x32x128xf32>
    tpu.vector_store %arg6[%c0_327, %c29, %c0_328, %c0_329], %360 {strides = array<i32>} : memref<1x32x32x128xf32, #tpu.memory_space<vmem>>, vector<1x1x32x128xf32>,
    %c14_330 = arith.constant 14 : index
    %c0_331 = arith.constant 0 : index
    %c0_332 = arith.constant 0 : index
    %361 = vector.load %arg7[%c14_330, %c0_331, %c0_332] : memref<16x32x128xf32, #tpu.memory_space<vmem>>, vector<1x32x128xf32>
    %362 = vector.shape_cast %361 : vector<1x32x128xf32> to vector<32x128xf32>
    %cst_333 = arith.constant 2.500000e-01 : f32
    %363 = vector.broadcast %cst_333 : f32 to vector<32x128xf32>
    %364 = arith.mulf %363, %362 : vector<32x128xf32>
    %c15_334 = arith.constant 15 : index
    %c0_335 = arith.constant 0 : index
    %c0_336 = arith.constant 0 : index
    %365 = vector.load %arg7[%c15_334, %c0_335, %c0_336] : memref<16x32x128xf32, #tpu.memory_space<vmem>>, vector<1x32x128xf32>
    %366 = vector.shape_cast %365 : vector<1x32x128xf32> to vector<32x128xf32>
    %cst_337 = arith.constant 7.500000e-01 : f32
    %367 = vector.broadcast %cst_337 : f32 to vector<32x128xf32>
    %368 = arith.mulf %367, %366 : vector<32x128xf32>
    %369 = arith.addf %364, %368 : vector<32x128xf32>
    %c0_338 = arith.constant 0 : index
    %c30 = arith.constant 30 : index
    %c0_339 = arith.constant 0 : index
    %c0_340 = arith.constant 0 : index
    %370 = vector.load %arg6[%c0_338, %c30, %c0_339, %c0_340] : memref<1x32x32x128xf32, #tpu.memory_space<vmem>>, vector<1x1x32x128xf32>
    %371 = vector.shape_cast %370 : vector<1x1x32x128xf32> to vector<32x128xf32>
    %372 = vector.shape_cast %369 : vector<32x128xf32> to vector<1x1x32x128xf32>
    tpu.vector_store %arg6[%c0_338, %c30, %c0_339, %c0_340], %372 {strides = array<i32>} : memref<1x32x32x128xf32, #tpu.memory_space<vmem>>, vector<1x1x32x128xf32>,
    %c15_341 = arith.constant 15 : index
    %c0_342 = arith.constant 0 : index
    %c0_343 = arith.constant 0 : index
    %373 = vector.load %arg7[%c15_341, %c0_342, %c0_343] : memref<16x32x128xf32, #tpu.memory_space<vmem>>, vector<1x32x128xf32>
    %374 = vector.shape_cast %373 : vector<1x32x128xf32> to vector<32x128xf32>
    %cst_344 = arith.constant 7.500000e-01 : f32
    %375 = vector.broadcast %cst_344 : f32 to vector<32x128xf32>
    %376 = arith.mulf %375, %374 : vector<32x128xf32>
    %c15_345 = arith.constant 15 : index
    %c0_346 = arith.constant 0 : index
    %c0_347 = arith.constant 0 : index
    %377 = vector.load %arg7[%c15_345, %c0_346, %c0_347] : memref<16x32x128xf32, #tpu.memory_space<vmem>>, vector<1x32x128xf32>
    %378 = vector.shape_cast %377 : vector<1x32x128xf32> to vector<32x128xf32>
    %cst_348 = arith.constant 2.500000e-01 : f32
    %379 = vector.broadcast %cst_348 : f32 to vector<32x128xf32>
    %380 = arith.mulf %379, %378 : vector<32x128xf32>
    %381 = arith.addf %376, %380 : vector<32x128xf32>
    %c0_349 = arith.constant 0 : index
    %c31 = arith.constant 31 : index
    %c0_350 = arith.constant 0 : index
    %c0_351 = arith.constant 0 : index
    %382 = vector.load %arg6[%c0_349, %c31, %c0_350, %c0_351] : memref<1x32x32x128xf32, #tpu.memory_space<vmem>>, vector<1x1x32x128xf32>
    %383 = vector.shape_cast %382 : vector<1x1x32x128xf32> to vector<32x128xf32>
    %384 = vector.shape_cast %381 : vector<32x128xf32> to vector<1x1x32x128xf32>
    tpu.vector_store %arg6[%c0_349, %c31, %c0_350, %c0_351], %384 {strides = array<i32>} : memref<1x32x32x128xf32, #tpu.memory_space<vmem>>, vector<1x1x32x128xf32>,
    return
  }
  func.func @transform_0(%arg0: i32) -> (i32, i32, i32, i32) {
    %c0_i32 = arith.constant 0 : i32
    %c0_i32_0 = arith.constant 0 : i32
    %c0_i32_1 = arith.constant 0 : i32
    %c0_i32_2 = arith.constant 0 : i32
    return %arg0, %c0_i32, %c0_i32_0, %c0_i32_1 : i32, i32, i32, i32
  }
  func.func @transform_1(%arg0: i32) -> (i32, i32, i32) {
    %c0_i32 = arith.constant 0 : i32
    %c0_i32_0 = arith.constant 0 : i32
    %c0_i32_1 = arith.constant 0 : i32
    %c0_i32_2 = arith.constant 0 : i32
    return %c0_i32, %c0_i32_0, %c0_i32_1 : i32, i32, i32
  }
  func.func @transform_2(%arg0: i32) -> (i32, i32) {
    %c0_i32 = arith.constant 0 : i32
    %c0_i32_0 = arith.constant 0 : i32
    %c0_i32_1 = arith.constant 0 : i32
    return %c0_i32, %c0_i32_0 : i32, i32
  }
  func.func @transform_3(%arg0: i32) -> (i32, i32) {
    %c0_i32 = arith.constant 0 : i32
    %c0_i32_0 = arith.constant 0 : i32
    %c0_i32_1 = arith.constant 0 : i32
    return %c0_i32, %c0_i32_0 : i32, i32
  }
  func.func @transform_4(%arg0: i32) -> (i32, i32) {
    %c0_i32 = arith.constant 0 : i32
    %c0_i32_0 = arith.constant 0 : i32
    %c0_i32_1 = arith.constant 0 : i32
    return %c0_i32, %c0_i32_0 : i32, i32
  }
  func.func @transform_5(%arg0: i32) -> (i32, i32, i32, i32) {
    %c0_i32 = arith.constant 0 : i32
    %c0_i32_0 = arith.constant 0 : i32
    %c0_i32_1 = arith.constant 0 : i32
    %c0_i32_2 = arith.constant 0 : i32
    return %arg0, %c0_i32, %c0_i32_0, %c0_i32_1 : i32, i32, i32, i32
  }
}

module attributes {stable_mosaic.version = 11 : i64} {
  func.func @kernel(%arg0: i32, %arg1: memref<1x34x34x128xf32, #tpu.memory_space<vmem>>, %arg2: memref<9x128x128xbf16, #tpu.memory_space<vmem>>, %arg3: memref<1x128xf32, #tpu.memory_space<vmem>>, %arg4: memref<1x128xf32, #tpu.memory_space<vmem>>, %arg5: memref<1x32x32x128xf32, #tpu.memory_space<vmem>>) attributes {dimension_semantics = [#tpu.dimension_semantics<parallel>], iteration_bounds = array<i64: 2>, scalar_prefetch = 0 : i64, scratch_operands = 0 : i64, tpu.core_type = #tpu.core_type<tc>, window_params = [{transform_indices = @transform_0, window_bounds = array<i64: 1, 34, 34, 128>}, {pipeline_mode = #tpu.pipeline_mode<synchronous>, transform_indices = @transform_1, window_bounds = array<i64: 9, 128, 128>}, {pipeline_mode = #tpu.pipeline_mode<synchronous>, transform_indices = @transform_2, window_bounds = array<i64: 1, 128>}, {pipeline_mode = #tpu.pipeline_mode<synchronous>, transform_indices = @transform_3, window_bounds = array<i64: 1, 128>}, {transform_indices = @transform_4, window_bounds = array<i64: 1, 32, 32, 128>}]} {
    %c0_i32 = arith.constant 0 : i32
    %c32_i32 = arith.constant 32 : i32
    %0 = arith.addi %c0_i32, %c32_i32 : i32
    %c1_i32 = arith.constant 1 : i32
    scf.for %arg6 = %c0_i32 to %0 step %c1_i32  : i32 {
      %c1_i32_1 = arith.constant 1 : i32
      %1 = arith.muli %arg6, %c1_i32_1 : i32
      %c0_i32_2 = arith.constant 0 : i32
      %2 = arith.addi %c0_i32_2, %1 : i32
      %cst = arith.constant 0.000000e+00 : f32
      %3 = vector.broadcast %cst : f32 to vector<32x128xf32>
      %c0_i32_3 = arith.constant 0 : i32
      %4 = arith.addi %2, %c0_i32_3 : i32
      %c0 = arith.constant 0 : index
      %5 = arith.index_cast %4 : i32 to index
      %c0_4 = arith.constant 0 : index
      %c0_5 = arith.constant 0 : index
      %6 = vector.load %arg1[%c0, %5, %c0_4, %c0_5] : memref<1x34x34x128xf32, #tpu.memory_space<vmem>>, vector<1x1x32x128xf32>
      %7 = vector.shape_cast %6 : vector<1x1x32x128xf32> to vector<32x128xf32>
      %8 = arith.truncf %7 : vector<32x128xf32> to vector<32x128xbf16>
      %c0_6 = arith.constant 0 : index
      %c0_7 = arith.constant 0 : index
      %c0_8 = arith.constant 0 : index
      %9 = vector.load %arg2[%c0_6, %c0_7, %c0_8] : memref<9x128x128xbf16, #tpu.memory_space<vmem>>, vector<1x128x128xbf16>
      %10 = vector.shape_cast %9 : vector<1x128x128xbf16> to vector<128x128xbf16>
      %cst_9 = arith.constant dense<0.000000e+00> : vector<32x128xf32>
      %11 = tpu.matmul %8, %10, %cst_9 {dimension_numbers = #tpu.dot_dimension_numbers<[1], [0], [0], [1], [0, 0, 1, 1], [], []>} : vector<32x128xbf16>, vector<128x128xbf16>, vector<32x128xf32> -> vector<32x128xf32>
      %12 = arith.addf %3, %11 : vector<32x128xf32>
      %c0_i32_10 = arith.constant 0 : i32
      %13 = arith.addi %2, %c0_i32_10 : i32
      %c0_11 = arith.constant 0 : index
      %14 = arith.index_cast %13 : i32 to index
      %c1 = arith.constant 1 : index
      %c0_12 = arith.constant 0 : index
      %15 = vector.load %arg1[%c0_11, %14, %c1, %c0_12] : memref<1x34x34x128xf32, #tpu.memory_space<vmem>>, vector<1x1x32x128xf32>
      %16 = vector.shape_cast %15 : vector<1x1x32x128xf32> to vector<32x128xf32>
      %17 = arith.truncf %16 : vector<32x128xf32> to vector<32x128xbf16>
      %c1_13 = arith.constant 1 : index
      %c0_14 = arith.constant 0 : index
      %c0_15 = arith.constant 0 : index
      %18 = vector.load %arg2[%c1_13, %c0_14, %c0_15] : memref<9x128x128xbf16, #tpu.memory_space<vmem>>, vector<1x128x128xbf16>
      %19 = vector.shape_cast %18 : vector<1x128x128xbf16> to vector<128x128xbf16>
      %cst_16 = arith.constant dense<0.000000e+00> : vector<32x128xf32>
      %20 = tpu.matmul %17, %19, %cst_16 {dimension_numbers = #tpu.dot_dimension_numbers<[1], [0], [0], [1], [0, 0, 1, 1], [], []>} : vector<32x128xbf16>, vector<128x128xbf16>, vector<32x128xf32> -> vector<32x128xf32>
      %21 = arith.addf %12, %20 : vector<32x128xf32>
      %c0_i32_17 = arith.constant 0 : i32
      %22 = arith.addi %2, %c0_i32_17 : i32
      %c0_18 = arith.constant 0 : index
      %23 = arith.index_cast %22 : i32 to index
      %c2 = arith.constant 2 : index
      %c0_19 = arith.constant 0 : index
      %24 = vector.load %arg1[%c0_18, %23, %c2, %c0_19] : memref<1x34x34x128xf32, #tpu.memory_space<vmem>>, vector<1x1x32x128xf32>
      %25 = vector.shape_cast %24 : vector<1x1x32x128xf32> to vector<32x128xf32>
      %26 = arith.truncf %25 : vector<32x128xf32> to vector<32x128xbf16>
      %c2_20 = arith.constant 2 : index
      %c0_21 = arith.constant 0 : index
      %c0_22 = arith.constant 0 : index
      %27 = vector.load %arg2[%c2_20, %c0_21, %c0_22] : memref<9x128x128xbf16, #tpu.memory_space<vmem>>, vector<1x128x128xbf16>
      %28 = vector.shape_cast %27 : vector<1x128x128xbf16> to vector<128x128xbf16>
      %cst_23 = arith.constant dense<0.000000e+00> : vector<32x128xf32>
      %29 = tpu.matmul %26, %28, %cst_23 {dimension_numbers = #tpu.dot_dimension_numbers<[1], [0], [0], [1], [0, 0, 1, 1], [], []>} : vector<32x128xbf16>, vector<128x128xbf16>, vector<32x128xf32> -> vector<32x128xf32>
      %30 = arith.addf %21, %29 : vector<32x128xf32>
      %c1_i32_24 = arith.constant 1 : i32
      %31 = arith.addi %2, %c1_i32_24 : i32
      %c0_25 = arith.constant 0 : index
      %32 = arith.index_cast %31 : i32 to index
      %c0_26 = arith.constant 0 : index
      %c0_27 = arith.constant 0 : index
      %33 = vector.load %arg1[%c0_25, %32, %c0_26, %c0_27] : memref<1x34x34x128xf32, #tpu.memory_space<vmem>>, vector<1x1x32x128xf32>
      %34 = vector.shape_cast %33 : vector<1x1x32x128xf32> to vector<32x128xf32>
      %35 = arith.truncf %34 : vector<32x128xf32> to vector<32x128xbf16>
      %c3 = arith.constant 3 : index
      %c0_28 = arith.constant 0 : index
      %c0_29 = arith.constant 0 : index
      %36 = vector.load %arg2[%c3, %c0_28, %c0_29] : memref<9x128x128xbf16, #tpu.memory_space<vmem>>, vector<1x128x128xbf16>
      %37 = vector.shape_cast %36 : vector<1x128x128xbf16> to vector<128x128xbf16>
      %cst_30 = arith.constant dense<0.000000e+00> : vector<32x128xf32>
      %38 = tpu.matmul %35, %37, %cst_30 {dimension_numbers = #tpu.dot_dimension_numbers<[1], [0], [0], [1], [0, 0, 1, 1], [], []>} : vector<32x128xbf16>, vector<128x128xbf16>, vector<32x128xf32> -> vector<32x128xf32>
      %39 = arith.addf %30, %38 : vector<32x128xf32>
      %c1_i32_31 = arith.constant 1 : i32
      %40 = arith.addi %2, %c1_i32_31 : i32
      %c0_32 = arith.constant 0 : index
      %41 = arith.index_cast %40 : i32 to index
      %c1_33 = arith.constant 1 : index
      %c0_34 = arith.constant 0 : index
      %42 = vector.load %arg1[%c0_32, %41, %c1_33, %c0_34] : memref<1x34x34x128xf32, #tpu.memory_space<vmem>>, vector<1x1x32x128xf32>
      %43 = vector.shape_cast %42 : vector<1x1x32x128xf32> to vector<32x128xf32>
      %44 = arith.truncf %43 : vector<32x128xf32> to vector<32x128xbf16>
      %c4 = arith.constant 4 : index
      %c0_35 = arith.constant 0 : index
      %c0_36 = arith.constant 0 : index
      %45 = vector.load %arg2[%c4, %c0_35, %c0_36] : memref<9x128x128xbf16, #tpu.memory_space<vmem>>, vector<1x128x128xbf16>
      %46 = vector.shape_cast %45 : vector<1x128x128xbf16> to vector<128x128xbf16>
      %cst_37 = arith.constant dense<0.000000e+00> : vector<32x128xf32>
      %47 = tpu.matmul %44, %46, %cst_37 {dimension_numbers = #tpu.dot_dimension_numbers<[1], [0], [0], [1], [0, 0, 1, 1], [], []>} : vector<32x128xbf16>, vector<128x128xbf16>, vector<32x128xf32> -> vector<32x128xf32>
      %48 = arith.addf %39, %47 : vector<32x128xf32>
      %c1_i32_38 = arith.constant 1 : i32
      %49 = arith.addi %2, %c1_i32_38 : i32
      %c0_39 = arith.constant 0 : index
      %50 = arith.index_cast %49 : i32 to index
      %c2_40 = arith.constant 2 : index
      %c0_41 = arith.constant 0 : index
      %51 = vector.load %arg1[%c0_39, %50, %c2_40, %c0_41] : memref<1x34x34x128xf32, #tpu.memory_space<vmem>>, vector<1x1x32x128xf32>
      %52 = vector.shape_cast %51 : vector<1x1x32x128xf32> to vector<32x128xf32>
      %53 = arith.truncf %52 : vector<32x128xf32> to vector<32x128xbf16>
      %c5 = arith.constant 5 : index
      %c0_42 = arith.constant 0 : index
      %c0_43 = arith.constant 0 : index
      %54 = vector.load %arg2[%c5, %c0_42, %c0_43] : memref<9x128x128xbf16, #tpu.memory_space<vmem>>, vector<1x128x128xbf16>
      %55 = vector.shape_cast %54 : vector<1x128x128xbf16> to vector<128x128xbf16>
      %cst_44 = arith.constant dense<0.000000e+00> : vector<32x128xf32>
      %56 = tpu.matmul %53, %55, %cst_44 {dimension_numbers = #tpu.dot_dimension_numbers<[1], [0], [0], [1], [0, 0, 1, 1], [], []>} : vector<32x128xbf16>, vector<128x128xbf16>, vector<32x128xf32> -> vector<32x128xf32>
      %57 = arith.addf %48, %56 : vector<32x128xf32>
      %c2_i32 = arith.constant 2 : i32
      %58 = arith.addi %2, %c2_i32 : i32
      %c0_45 = arith.constant 0 : index
      %59 = arith.index_cast %58 : i32 to index
      %c0_46 = arith.constant 0 : index
      %c0_47 = arith.constant 0 : index
      %60 = vector.load %arg1[%c0_45, %59, %c0_46, %c0_47] : memref<1x34x34x128xf32, #tpu.memory_space<vmem>>, vector<1x1x32x128xf32>
      %61 = vector.shape_cast %60 : vector<1x1x32x128xf32> to vector<32x128xf32>
      %62 = arith.truncf %61 : vector<32x128xf32> to vector<32x128xbf16>
      %c6 = arith.constant 6 : index
      %c0_48 = arith.constant 0 : index
      %c0_49 = arith.constant 0 : index
      %63 = vector.load %arg2[%c6, %c0_48, %c0_49] : memref<9x128x128xbf16, #tpu.memory_space<vmem>>, vector<1x128x128xbf16>
      %64 = vector.shape_cast %63 : vector<1x128x128xbf16> to vector<128x128xbf16>
      %cst_50 = arith.constant dense<0.000000e+00> : vector<32x128xf32>
      %65 = tpu.matmul %62, %64, %cst_50 {dimension_numbers = #tpu.dot_dimension_numbers<[1], [0], [0], [1], [0, 0, 1, 1], [], []>} : vector<32x128xbf16>, vector<128x128xbf16>, vector<32x128xf32> -> vector<32x128xf32>
      %66 = arith.addf %57, %65 : vector<32x128xf32>
      %c2_i32_51 = arith.constant 2 : i32
      %67 = arith.addi %2, %c2_i32_51 : i32
      %c0_52 = arith.constant 0 : index
      %68 = arith.index_cast %67 : i32 to index
      %c1_53 = arith.constant 1 : index
      %c0_54 = arith.constant 0 : index
      %69 = vector.load %arg1[%c0_52, %68, %c1_53, %c0_54] : memref<1x34x34x128xf32, #tpu.memory_space<vmem>>, vector<1x1x32x128xf32>
      %70 = vector.shape_cast %69 : vector<1x1x32x128xf32> to vector<32x128xf32>
      %71 = arith.truncf %70 : vector<32x128xf32> to vector<32x128xbf16>
      %c7 = arith.constant 7 : index
      %c0_55 = arith.constant 0 : index
      %c0_56 = arith.constant 0 : index
      %72 = vector.load %arg2[%c7, %c0_55, %c0_56] : memref<9x128x128xbf16, #tpu.memory_space<vmem>>, vector<1x128x128xbf16>
      %73 = vector.shape_cast %72 : vector<1x128x128xbf16> to vector<128x128xbf16>
      %cst_57 = arith.constant dense<0.000000e+00> : vector<32x128xf32>
      %74 = tpu.matmul %71, %73, %cst_57 {dimension_numbers = #tpu.dot_dimension_numbers<[1], [0], [0], [1], [0, 0, 1, 1], [], []>} : vector<32x128xbf16>, vector<128x128xbf16>, vector<32x128xf32> -> vector<32x128xf32>
      %75 = arith.addf %66, %74 : vector<32x128xf32>
      %c2_i32_58 = arith.constant 2 : i32
      %76 = arith.addi %2, %c2_i32_58 : i32
      %c0_59 = arith.constant 0 : index
      %77 = arith.index_cast %76 : i32 to index
      %c2_60 = arith.constant 2 : index
      %c0_61 = arith.constant 0 : index
      %78 = vector.load %arg1[%c0_59, %77, %c2_60, %c0_61] : memref<1x34x34x128xf32, #tpu.memory_space<vmem>>, vector<1x1x32x128xf32>
      %79 = vector.shape_cast %78 : vector<1x1x32x128xf32> to vector<32x128xf32>
      %80 = arith.truncf %79 : vector<32x128xf32> to vector<32x128xbf16>
      %c8 = arith.constant 8 : index
      %c0_62 = arith.constant 0 : index
      %c0_63 = arith.constant 0 : index
      %81 = vector.load %arg2[%c8, %c0_62, %c0_63] : memref<9x128x128xbf16, #tpu.memory_space<vmem>>, vector<1x128x128xbf16>
      %82 = vector.shape_cast %81 : vector<1x128x128xbf16> to vector<128x128xbf16>
      %cst_64 = arith.constant dense<0.000000e+00> : vector<32x128xf32>
      %83 = tpu.matmul %80, %82, %cst_64 {dimension_numbers = #tpu.dot_dimension_numbers<[1], [0], [0], [1], [0, 0, 1, 1], [], []>} : vector<32x128xbf16>, vector<128x128xbf16>, vector<32x128xf32> -> vector<32x128xf32>
      %84 = arith.addf %75, %83 : vector<32x128xf32>
      %c0_65 = arith.constant 0 : index
      %c0_66 = arith.constant 0 : index
      %85 = vector.load %arg3[%c0_65, %c0_66] : memref<1x128xf32, #tpu.memory_space<vmem>>, vector<1x128xf32>
      %86 = vector.broadcast %85 : vector<1x128xf32> to vector<32x128xf32>
      %87 = arith.mulf %84, %86 : vector<32x128xf32>
      %c0_67 = arith.constant 0 : index
      %c0_68 = arith.constant 0 : index
      %88 = vector.load %arg4[%c0_67, %c0_68] : memref<1x128xf32, #tpu.memory_space<vmem>>, vector<1x128xf32>
      %89 = vector.broadcast %88 : vector<1x128xf32> to vector<32x128xf32>
      %90 = arith.addf %87, %89 : vector<32x128xf32>
      %c0_69 = arith.constant 0 : index
      %91 = arith.index_cast %2 : i32 to index
      %c0_70 = arith.constant 0 : index
      %c0_71 = arith.constant 0 : index
      %92 = vector.load %arg5[%c0_69, %91, %c0_70, %c0_71] : memref<1x32x32x128xf32, #tpu.memory_space<vmem>>, vector<1x1x32x128xf32>
      %93 = vector.shape_cast %92 : vector<1x1x32x128xf32> to vector<32x128xf32>
      %94 = vector.shape_cast %90 : vector<32x128xf32> to vector<1x1x32x128xf32>
      tpu.vector_store %arg5[%c0_69, %91, %c0_70, %c0_71], %94 {strides = array<i32>} : memref<1x32x32x128xf32, #tpu.memory_space<vmem>>, vector<1x1x32x128xf32>,
    }
    %c32_i32_0 = arith.constant 32 : i32
    return
  }
  func.func @transform_0(%arg0: i32) -> (i32, i32, i32, i32) {
    %c0_i32 = arith.constant 0 : i32
    %c0_i32_0 = arith.constant 0 : i32
    %c0_i32_1 = arith.constant 0 : i32
    %c0_i32_2 = arith.constant 0 : i32
    return %arg0, %c0_i32, %c0_i32_0, %c0_i32_1 : i32, i32, i32, i32
  }
  func.func @transform_1(%arg0: i32) -> (i32, i32, i32) {
    %c0_i32 = arith.constant 0 : i32
    %c0_i32_0 = arith.constant 0 : i32
    %c0_i32_1 = arith.constant 0 : i32
    %c0_i32_2 = arith.constant 0 : i32
    return %c0_i32, %c0_i32_0, %c0_i32_1 : i32, i32, i32
  }
  func.func @transform_2(%arg0: i32) -> (i32, i32) {
    %c0_i32 = arith.constant 0 : i32
    %c0_i32_0 = arith.constant 0 : i32
    %c0_i32_1 = arith.constant 0 : i32
    return %c0_i32, %c0_i32_0 : i32, i32
  }
  func.func @transform_3(%arg0: i32) -> (i32, i32) {
    %c0_i32 = arith.constant 0 : i32
    %c0_i32_0 = arith.constant 0 : i32
    %c0_i32_1 = arith.constant 0 : i32
    return %c0_i32, %c0_i32_0 : i32, i32
  }
  func.func @transform_4(%arg0: i32) -> (i32, i32, i32, i32) {
    %c0_i32 = arith.constant 0 : i32
    %c0_i32_0 = arith.constant 0 : i32
    %c0_i32_1 = arith.constant 0 : i32
    %c0_i32_2 = arith.constant 0 : i32
    return %arg0, %c0_i32, %c0_i32_0, %c0_i32_1 : i32, i32, i32, i32
  }
}

</mosaic_0001>

<bundles_post_ra>
// kernel: _lambda_.19
= control target key start
LH: loop header
LB: loop body
LE: loop exit
PB: predicated region body
PF: predicated region fallthrough
CT: control target
= control target key end

     0   :  { %9 = vsyncpa [#allocation3], 0  ;;  %s199_s0 = inlined_call_operand.vmem [shape: f32[8,32], index: 0, kind: input, shape index: {}]   ;;  %s200_s1 = inlined_call_operand.vmem [shape: f32[8,32], index: 1, kind: input, shape index: {}]   ;;  %s201_s2 = inlined_call_operand.hbm [shape: f32[1,32], index: 2, kind: input, shape index: {}]   ;;  %s202_s3 = inlined_call_operand.hbm [shape: f32[1,32], index: 3, kind: input, shape index: {}]   ;;  %s203_s4 = inlined_call_operand.vmem [shape: f32[8,32], index: 4, kind: output, shape index: {}]  }
   0x1   :  { %10 = vsyncpa [#allocation5], 0  ;;  %s136_s15 = smov [#allocation2]   ;;  %s137_s17 = smov [#allocation4]  }
   0x2   :  { %s21_s16 = sshll.u32 %s136_s15, 4  ;;  %s31_s18 = sshll.u32 %s137_s17, 4  ;;  %s22_s16 = int_to_ptr.vmem [resolvable:$true] %s21_s16  ;;  %s32_s18 = int_to_ptr.vmem [resolvable:$true] %s31_s18 }
   0x3   :  { %s88_s21 = scalar_lea.hbm %s201_s2, 16 }
   0x4   :  { %p89_p0 = scmp.ne.s32.totalorder %s201_s2, %s88_s21  ;;  %p92_p1 = scmp.lt.u32.totalorder %s88_s21, %s201_s2 }
   0x6   :  { %p94_p2 = pnand %p92_p1, %p89_p0 }
   0x8   :  { %97 = shalt.err (!%p94_p2)
}
   0x9   :  { %s98_s26 = scalar_lea.vmem %s22_s16, 16  ;;  %s102_s27 = scalar_lea.vmem %s22_s16, 32 }
   0xa   :  { %p99_p3 = scmp.ne.s32.totalorder %s22_s16, %s98_s26  ;;  %p103_p4 = scmp.lt.s32.totalorder %s22_s16, %s22_s16 }
   0xb   :  { %p104_p5 = scmp.lt.s32.totalorder %s102_s27, %s98_s26 }
   0xd   :  { %p105_p6 = por %p104_p5, %p103_p4 }
   0xf   :  { %p106_p7 = pnand %p105_p6, %p99_p3 }
  0x11   :  { %109 = shalt.err (!%p106_p7)
}
  0x12   :  { %24 = dma.hbm_to_vmem [thread:$0]  %s201_s2, 16, %s22_s16, [#allocation3]  }
  0x13   :  { %s110_s6 = scalar_lea.hbm %s202_s3, 16 }
  0x14   :  { %p111_p8 = scmp.ne.s32.totalorder %s202_s3, %s110_s6  ;;  %p114_p9 = scmp.lt.u32.totalorder %s110_s6, %s202_s3 }
  0x16   :  { %p116_p10 = pnand %p114_p9, %p111_p8 }
  0x18   :  { %119 = shalt.err (!%p116_p10)
}
  0x19   :  { %s120_s11 = scalar_lea.vmem %s32_s18, 16  ;;  %s124_s12 = scalar_lea.vmem %s32_s18, 32 }
  0x1a   :  { %p121_p11 = scmp.ne.s32.totalorder %s32_s18, %s120_s11  ;;  %p125_p12 = scmp.lt.s32.totalorder %s32_s18, %s32_s18 }
  0x1b   :  { %p126_p13 = scmp.lt.s32.totalorder %s124_s12, %s120_s11 }
  0x1d   :  { %p127_p0 = por %p126_p13, %p125_p12 }
  0x1f   :  { %p128_p1 = pnand %p127_p0, %p121_p11 }
  0x21   :  { %131 = shalt.err (!%p128_p1)
}
  0x22   :  { %34 = dma.hbm_to_vmem [thread:$0]  %s202_s3, 16, %s32_s18, [#allocation5]  }
  0x23   :  { %132 = dma.done.wait [#allocation3], 16  }
  0x24   :  { %133 = vsyncadd [#allocation3], 4294967280 }
  0x25   :  { %134 = dma.done.wait [#allocation5], 16  }
  0x26   :  { %135 = vsyncadd [#allocation5], 4294967280  ;;  %v41_v0 = vld [vmem:[%s199_s0] sm:$0xff]  ;;  %vm44_vm0 = vcmask 261120  }
  0x27   :  { %v42_v1 = vld [vmem:[%s200_s1] sm:$0xff] }
  0x28   :  { %v43_v2 = vadd.f32 %v42_v1, %v41_v0  ;;  %v82_v13 = vld [vmem:[#allocation2] ss:$0 sm:$0xff]  ;;  %v83_v15 = vld [vmem:[#allocation4] ss:$0 sm:$0xff] }
  0x2a   :  { %v45_v3 = vsel %vm44_vm0, %v43_v2, 0.0 }
  0x2b   :  { %46 = vadd.xlane.f32.xlu0 %v45_v3 }
  0xb8   :  { %v47_v4 = vpop.xlane.xlu0 %46 }
  0xb9   :  { %v49_v5 = vmul.f32 0.03125, %v47_v4 }
  0xbb   :  { %v50_v6 = vsub.f32 %v43_v2, %v49_v5 }
  0xbd   :  { %v51_v7 = vmul.f32 %v50_v6, %v50_v6 }
  0xbf   :  { %v52_v8 = vsel %vm44_vm0, %v51_v7, 0.0 }
  0xc0   :  { %53 = vadd.xlane.f32.xlu0 %v52_v8 }
 0x14d   :  { %v54_v9 = vpop.xlane.xlu0 %53 }
 0x14e   :  { %v55_v10 = vmul.f32 0.03125, %v54_v9 }
 0x150   :  { %v56_v11 = vadd.f32 1e-12, %v55_v10 }
 0x152   :  { %86 = vrsqrt.f32 %v56_v11 }
 0x15c   :  { %v87_v12 = vpop.eup %86 }
 0x15d   :  { %v58_v14 = vmul.f32 %v87_v12, %v50_v6 }
 0x15f   :  { %v66_v16 = vmul.f32 %v82_v13, %v58_v14 }
 0x161   :  { %v74_v17 = vadd.f32 %v83_v15, %v66_v16 }
 0x163   :  { %75 = vst.msk [vmem:[%s203_s4] sm:$0xff] %vm44_vm0, %v74_v17 }
 0x164   :  { %80 = vsyncpa [#allocation3], 1 }
 0x165   :  { %81 = vsyncpa [#allocation5], 1 }

// kernel: _lambda_.20
= control target key start
LH: loop header
LB: loop body
LE: loop exit
PB: predicated region body
PF: predicated region fallthrough
CT: control target
= control target key end

     0   :  { %v109_v0 = vmov 0.0   ;;  %vm110_vm0 = vmmov 0   ;;  %vm40_vm1 = vcmask 261120   ;;  %vm84_vm2 = vcmask 785408   ;;  %s146_s1 = inlined_call_operand.vmem [shape: bf16[32,96], index: 1, kind: input, shape index: {}]   ;;  %s147_s0 = inlined_call_operand.vmem [shape: f32[8,32], index: 0, kind: input, shape index: {}]   ;;  %s148_s2 = inlined_call_operand.vmem [shape: f32[1,96], index: 2, kind: input, shape index: {}]   ;;  %s149_s3 = inlined_call_operand.vmem [shape: f32[8,96], index: 3, kind: output, shape index: {}]  }
   0x1   :  { %97 = vmatprep.subr.bf16.mxu0 %v109_v0  ;;  %v107_v1 = vld [vmem:[%s146_s1] sm:$0xff]   ;;  %101 = vmatprep.mubr.msk.bf16.mxu0 %vm110_vm0, %v109_v0  ;;  %v108_v2 = vld [vmem:[%s146_s1 + $0x8] sm:$0xff]  }
   0x2   :  { %98 = vmatpush3.bf16.msra.mxu0 %v107_v1  ;;  %v15_v3 = vld [vmem:[%s147_s0] sm:$0xff] }
   0x3   :  { %99 = vmatprep.subr.bf16.mxu0 %v109_v0  ;;  %v16_v4 = vpack.c.bf16 %v15_v3, %v15_v3  ;;  %v90_v5 = vld [vmem:[%s148_s2] ss:$0 sm:$0xff] }
   0x6   :  { %100 = vmatpush3.bf16.msra.mxu0 %v108_v2 }
   0x9   :  { %102 = vmatmul.mubr.msk.bf16.vlgmr.msra.gmra.mrb[0].mxu0 %vm40_vm1, %v16_v4 }
  0xdc   :  { %v78_v6 = vpop.f32.mrb[0].mxu0 }
  0xdd   :  { %v79_v7 = vadd.f32 %v90_v5, %v78_v6  ;;  %v103_v8 = vpop.f32.mrb[1].mxu0 }
  0xde   :  { %v81_v9 = vpop.f32.mrb[2].mxu0 }
  0xdf   :  { %85 = vst.msk [vmem:[%s149_s3] sm:$0xff] %vm84_vm2, %v79_v7  ;;  %v104_v10 = vpop.f32.mrb[3].mxu0 }

// kernel: _lambda_.18
= control target key start
LH: loop header
LB: loop body
LE: loop exit
PB: predicated region body
PF: predicated region fallthrough
CT: control target
= control target key end

     0   :  { %vm545_vm0 = vcmask 261120   ;;  %s955_s1 = inlined_call_operand.vmem [shape: bf16[768,32], index: 1, kind: input, shape index: {}]   ;;  %s956_s0 = inlined_call_operand.vmem [shape: f32[8,768], index: 0, kind: input, shape index: {}]   ;;  %s957_s2 = inlined_call_operand.vmem [shape: f32[1,32], index: 2, kind: input, shape index: {}]   ;;  %s958_s3 = inlined_call_operand.vmem [shape: f32[1,32], index: 3, kind: input, shape index: {}]   ;;  %s959_s4 = inlined_call_operand.vmem [shape: f32[1,32], index: 4, kind: input, shape index: {}]   ;;  %s960_s5 = inlined_call_operand.vmem [shape: f32[8,32], index: 5, kind: output, shape index: {}]  }
   0x1   :  { %v698_v0 = vld [vmem:[%s955_s1 + $0x40] sm:$0xff]   ;;  %v702_v4 = vld [vmem:[%s955_s1 + $0x48] sm:$0xff]   ;;  %v706_v8 = vld [vmem:[%s955_s1 + $0x50] sm:$0xff]  }
   0x2   :  { %v699_v1 = vld [vmem:[%s955_s1] sm:$0xff]   ;;  %632 = vmatprep.subr.bf16.mxu0 %v698_v0  ;;  %v703_v5 = vld [vmem:[%s955_s1 + $0x8] sm:$0xff]   ;;  %v707_v9 = vld [vmem:[%s955_s1 + $0x10] sm:$0xff]  }
   0x3   :  { %v700_v2 = vld [vmem:[%s955_s1 + $0xc0] sm:$0xff]   ;;  %633 = vmatpush3.bf16.msra.mxu0 %v699_v1  ;;  %v704_v6 = vld [vmem:[%s955_s1 + $0xc8] sm:$0xff]   ;;  %v708_v10 = vld [vmem:[%s955_s1 + $0xd0] sm:$0xff]  }
   0x4   :  { %v701_v3 = vld [vmem:[%s955_s1 + $0x80] sm:$0xff]   ;;  %654 = vmatprep.subr.bf16.mxu1 %v700_v2  ;;  %634 = vmatprep.subr.bf16.mxu0 %v702_v4  ;;  %v705_v7 = vld [vmem:[%s955_s1 + $0x88] sm:$0xff]   ;;  %v709_v11 = vld [vmem:[%s955_s1 + $0x90] sm:$0xff]  }
   0x5   :  { %655 = vmatpush3.bf16.msra.mxu1 %v701_v3  ;;  %v710_v12 = vld [vmem:[%s955_s1 + $0x58] sm:$0xff]   ;;  %v714_v16 = vld [vmem:[%s955_s1 + $0x60] sm:$0xff]   ;;  %v718_v20 = vld [vmem:[%s955_s1 + $0x68] sm:$0xff]  }
   0x6   :  { %656 = vmatprep.subr.bf16.mxu1 %v704_v6  ;;  %v711_v13 = vld [vmem:[%s955_s1 + $0x18] sm:$0xff]   ;;  %v715_v17 = vld [vmem:[%s955_s1 + $0x20] sm:$0xff]   ;;  %v719_v21 = vld [vmem:[%s955_s1 + $0x28] sm:$0xff]  }
   0x7   :  { %635 = vmatpush3.bf16.msra.mxu0 %v703_v5  ;;  %v712_v14 = vld [vmem:[%s955_s1 + $0xd8] sm:$0xff]   ;;  %v716_v18 = vld [vmem:[%s955_s1 + $0xe0] sm:$0xff]   ;;  %v720_v22 = vld [vmem:[%s955_s1 + $0xe8] sm:$0xff]  }
   0x8   :  { %636 = vmatprep.subr.bf16.mxu0 %v706_v8  ;;  %v713_v15 = vld [vmem:[%s955_s1 + $0x98] sm:$0xff]   ;;  %v717_v19 = vld [vmem:[%s955_s1 + $0xa0] sm:$0xff]   ;;  %v721_v23 = vld [vmem:[%s955_s1 + $0xa8] sm:$0xff]  }
   0x9   :  { %657 = vmatpush3.bf16.msra.mxu1 %v705_v7  ;;  %v722_v24 = vld [vmem:[%s955_s1 + $0x70] sm:$0xff]   ;;  %v726_v28 = vld [vmem:[%s955_s1 + $0x78] sm:$0xff]   ;;  %v22_v31 = vld [vmem:[%s956_s0 + $0x8] sm:$0xff] }
   0xa   :  { %658 = vmatprep.subr.bf16.mxu1 %v708_v10  ;;  %v723_v25 = vld [vmem:[%s955_s1 + $0x30] sm:$0xff]   ;;  %v727_v29 = vld [vmem:[%s955_s1 + $0x38] sm:$0xff]   ;;  %v28_v32 = vpack.c.bf16 %v22_v31, %v22_v31  ;;  %v21_v34 = vld [vmem:[%s956_s0] sm:$0xff] }
   0xb   :  { %637 = vmatpush3.bf16.msra.mxu0 %v707_v9  ;;  %v724_v26 = vld [vmem:[%s955_s1 + $0xf0] sm:$0xff]   ;;  %v728_v30 = vld [vmem:[%s955_s1 + $0xf8] sm:$0xff]   ;;  %v27_v35 = vpack.c.bf16 %v21_v34, %v21_v34  ;;  %v730_v36 = vld [vmem:[%s955_s1 + $0x140] sm:$0xff]  }
   0xc   :  { %638 = vmatprep.subr.bf16.mxu0 %v710_v12  ;;  %v725_v27 = vld [vmem:[%s955_s1 + $0xb0] sm:$0xff]   ;;  %v729_v33 = vld [vmem:[%s955_s1 + $0xb8] sm:$0xff]   ;;  %456 = vmatprep.mubr.bf16.mxu0 %v28_v32  ;;  %v731_v39 = vld [vmem:[%s955_s1 + $0x100] sm:$0xff]  }
   0xd   :  { %659 = vmatpush3.bf16.msra.mxu1 %v709_v11  ;;  %v24_v37 = vld [vmem:[%s956_s0 + $0x18] sm:$0xff]  ;;  %v23_v40 = vld [vmem:[%s956_s0 + $0x10] sm:$0xff]  ;;  %v732_v42 = vld [vmem:[%s955_s1 + $0x148] sm:$0xff]  }
   0xe   :  { %660 = vmatprep.subr.bf16.mxu1 %v712_v14  ;;  %v30_v38 = vpack.c.bf16 %v24_v37, %v24_v37  ;;  %v29_v41 = vpack.c.bf16 %v23_v40, %v23_v40  ;;  %v733_v43 = vld [vmem:[%s955_s1 + $0x108] sm:$0xff]   ;;  %v734_v44 = vld [vmem:[%s955_s1 + $0x150] sm:$0xff]   ;;  %v736_v46 = vld [vmem:[%s955_s1 + $0x158] sm:$0xff]  }
   0xf   :  { %639 = vmatpush3.bf16.msra.mxu0 %v711_v13  ;;  %v735_v45 = vld [vmem:[%s955_s1 + $0x110] sm:$0xff]   ;;  %v737_v47 = vld [vmem:[%s955_s1 + $0x118] sm:$0xff]   ;;  %v738_v48 = vld [vmem:[%s955_s1 + $0x160] sm:$0xff]  }
  0x10   :  { %640 = vmatprep.subr.bf16.mxu0 %v714_v16  ;;  %496 = vmatprep.mubr.bf16.mxu1 %v30_v38  ;;  %v739_v49 = vld [vmem:[%s955_s1 + $0x120] sm:$0xff]   ;;  %v740_v50 = vld [vmem:[%s955_s1 + $0x168] sm:$0xff]   ;;  %v742_v54 = vld [vmem:[%s955_s1 + $0x170] sm:$0xff]  }
  0x11   :  { %661 = vmatpush3.bf16.msra.mxu1 %v713_v15  ;;  %v26_v51 = vld [vmem:[%s956_s0 + $0x28] sm:$0xff]  ;;  %v743_v55 = vld [vmem:[%s955_s1 + $0x130] sm:$0xff]   ;;  %v744_v56 = vld [vmem:[%s955_s1 + $0x178] sm:$0xff]  }
  0x12   :  { %662 = vmatprep.subr.bf16.mxu1 %v716_v18  ;;  %v32_v52 = vpack.c.bf16 %v26_v51, %v26_v51  ;;  %v741_v53 = vld [vmem:[%s955_s1 + $0x128] sm:$0xff]   ;;  %v745_v57 = vld [vmem:[%s955_s1 + $0x138] sm:$0xff]   ;;  %v25_v58 = vld [vmem:[%s956_s0 + $0x20] sm:$0xff] }
  0x13   :  { %641 = vmatpush3.bf16.msra.mxu0 %v715_v17  ;;  %v31_v59 = vpack.c.bf16 %v25_v58, %v25_v58  ;;  %v581_v61 = vld [vmem:[%s957_s2] ss:$0 sm:$0xff] }
  0x14   :  { %642 = vmatprep.subr.bf16.mxu0 %v718_v20 }
  0x15   :  { %663 = vmatpush3.bf16.msra.mxu1 %v717_v19 }
  0x16   :  { %664 = vmatprep.subr.bf16.mxu1 %v720_v22 }
  0x17   :  { %643 = vmatpush3.bf16.msra.mxu0 %v719_v21 }
  0x18   :  { %644 = vmatprep.subr.bf16.mxu0 %v722_v24 }
  0x19   :  { %665 = vmatpush3.bf16.msra.mxu1 %v721_v23 }
  0x1a   :  { %666 = vmatprep.subr.bf16.mxu1 %v724_v26  ;;  %v630_v26 = vld [vmem:[%s958_s3] ss:$0 sm:$0xff] }
  0x1b   :  { %645 = vmatpush3.bf16.msra.mxu0 %v723_v25 }
  0x1c   :  { %646 = vmatprep.subr.bf16.mxu0 %v726_v28  ;;  %v631_v28 = vld [vmem:[%s959_s4] ss:$0 sm:$0xff] }
  0x1d   :  { %667 = vmatpush3.bf16.msra.mxu1 %v725_v27 }
  0x1e   :  { %668 = vmatprep.subr.bf16.mxu1 %v728_v30 }
  0x1f   :  { %647 = vmatpush3.bf16.msra.mxu0 %v727_v29 }
  0x20   :  { %676 = vmatprep.subr.bf16.mxu0 %v730_v36 }
  0x21   :  { %669 = vmatpush3.bf16.msra.mxu1 %v729_v33 }
  0x22   :  { %457 = vmatmul.mubr.bf16.vlgmr.msra.gmra.mrb[0].mxu0 %v27_v35 }
  0x23   :  { %677 = vmatpush3.bf16.msra.mxu0 %v731_v39  ;;  %536 = vmatprep.mubr.bf16.mxu0 %v32_v52 }
  0x24   :  { %497 = vmatmul.mubr.bf16.vlgmr.msra.gmra.mrb[0].mxu1 %v29_v41  ;;  %678 = vmatprep.subr.bf16.mxu0 %v732_v42 }
  0x27   :  { %679 = vmatpush3.bf16.msra.mxu0 %v733_v43 }
  0x28   :  { %680 = vmatprep.subr.bf16.mxu0 %v734_v44 }
  0x2b   :  { %681 = vmatpush3.bf16.msra.mxu0 %v735_v45 }
  0x2c   :  { %682 = vmatprep.subr.bf16.mxu0 %v736_v46 }
  0x2f   :  { %683 = vmatpush3.bf16.msra.mxu0 %v737_v47 }
  0x30   :  { %684 = vmatprep.subr.bf16.mxu0 %v738_v48 }
  0x33   :  { %685 = vmatpush3.bf16.msra.mxu0 %v739_v49 }
  0x34   :  { %686 = vmatprep.subr.bf16.mxu0 %v740_v50 }
  0x37   :  { %687 = vmatpush3.bf16.msra.mxu0 %v741_v53 }
  0x38   :  { %688 = vmatprep.subr.bf16.mxu0 %v742_v54 }
  0x3b   :  { %689 = vmatpush3.bf16.msra.mxu0 %v743_v55 }
  0x3c   :  { %690 = vmatprep.subr.bf16.mxu0 %v744_v56 }
  0x3f   :  { %691 = vmatpush3.bf16.msra.mxu0 %v745_v57 }
  0x42   :  { %537 = vmatmul.mubr.bf16.vlgmr.msra.gmra.mrb[4].mxu0 %v31_v59 }
  0xf5   :  { %v648_v60 = vpop.f32.mrb[0].mxu0 }
  0xf6   :  { %v649_v62 = vpop.f32.mrb[1].mxu0 }
  0xf7   :  { %v650_v63 = vadd.f32 %v649_v62, %v648_v60  ;;  %v651_v0 = vpop.f32.mrb[2].mxu0  ;;  %v670_v1 = vpop.f32.mrb[0].mxu1 }
  0xf8   :  { %v652_v2 = vpop.f32.mrb[3].mxu0  ;;  %v671_v4 = vpop.f32.mrb[1].mxu1 }
  0xf9   :  { %v459_v3 = vadd.f32 %v650_v63, %v581_v61  ;;  %v672_v5 = vadd.f32 %v671_v4, %v670_v1  ;;  %v673_v6 = vpop.f32.mrb[2].mxu1 }
  0xfa   :  { %v674_v7 = vpop.f32.mrb[3].mxu1 }
  0xfb   :  { %v499_v8 = vadd.f32 %v672_v5, %v459_v3 }
 0x115   :  { %v692_v9 = vpop.f32.mrb[4].mxu0 }
 0x116   :  { %v693_v10 = vpop.f32.mrb[5].mxu0 }
 0x117   :  { %v694_v11 = vadd.f32 %v693_v10, %v692_v9  ;;  %v695_v12 = vpop.f32.mrb[6].mxu0 }
 0x118   :  { %v696_v13 = vpop.f32.mrb[7].mxu0 }
 0x119   :  { %v539_v14 = vadd.f32 %v694_v11, %v499_v8 }
 0x11b   :  { %v544_v15 = vmax.f32 %v539_v14, 0.0 }
 0x11d   :  { %v546_v16 = vsel %vm545_vm0, %v544_v15, 0.0 }
 0x11e   :  { %547 = vadd.xlane.f32.xlu0 %v546_v16 }
 0x1ab   :  { %v548_v17 = vpop.xlane.xlu0 %547 }
 0x1ac   :  { %v550_v18 = vmul.f32 0.03125, %v548_v17 }
 0x1ae   :  { %v551_v19 = vsub.f32 %v544_v15, %v550_v18 }
 0x1b0   :  { %v552_v20 = vmul.f32 %v551_v19, %v551_v19 }
 0x1b2   :  { %v553_v21 = vsel %vm545_vm0, %v552_v20, 0.0 }
 0x1b3   :  { %554 = vadd.xlane.f32.xlu0 %v553_v21 }
 0x240   :  { %v555_v22 = vpop.xlane.xlu0 %554 }
 0x241   :  { %v556_v23 = vmul.f32 0.03125, %v555_v22 }
 0x243   :  { %v557_v24 = vadd.f32 1e-12, %v556_v23 }
 0x245   :  { %746 = vrsqrt.f32 %v557_v24 }
 0x24f   :  { %v747_v25 = vpop.eup %746 }
 0x250   :  { %v559_v27 = vmul.f32 %v747_v25, %v551_v19 }
 0x252   :  { %v567_v29 = vmul.f32 %v630_v26, %v559_v27 }
 0x254   :  { %v575_v30 = vadd.f32 %v631_v28, %v567_v29 }
 0x256   :  { %576 = vst.msk [vmem:[%s960_s5] sm:$0xff] %vm545_vm0, %v575_v30 }

// kernel: _lambda_.22
= control target key start
LH: loop header
LB: loop body
LE: loop exit
PB: predicated region body
PF: predicated region fallthrough
CT: control target
= control target key end

     0   :  { %v153_v0 = vmov 0.0   ;;  %vm154_vm0 = vmmov 0   ;;  %vm49_vm1 = vcmask 261120   ;;  %s218_s1 = inlined_call_operand.vmem [shape: bf16[32,32], index: 1, kind: input, shape index: {}]   ;;  %s219_s0 = inlined_call_operand.vmem [shape: f32[8,32], index: 0, kind: input, shape index: {}]   ;;  %s220_s2 = inlined_call_operand.vmem [shape: f32[1,32], index: 2, kind: input, shape index: {}]   ;;  %s221_s3 = inlined_call_operand.vmem [shape: f32[8,32], index: 3, kind: input, shape index: {}]   ;;  %s222_s4 = inlined_call_operand.vmem [shape: f32[1,32], index: 4, kind: input, shape index: {}]   ;;  %s223_s5 = inlined_call_operand.vmem [shape: f32[1,32], index: 5, kind: input, shape index: {}]   ;;  %s224_s6 = inlined_call_operand.vmem [shape: f32[8,32], index: 6, kind: output, shape index: {}]  }
   0x1   :  { %139 = vmatprep.subr.bf16.mxu0 %v153_v0  ;;  %v149_v1 = vld [vmem:[%s218_s1] sm:$0xff]   ;;  %143 = vmatprep.mubr.msk.bf16.mxu0 %vm154_vm0, %v153_v0  ;;  %v150_v2 = vld [vmem:[%s218_s1 + $0x8] sm:$0xff]  }
   0x2   :  { %140 = vmatpush3.bf16.msra.mxu0 %v149_v1  ;;  %v24_v3 = vld [vmem:[%s219_s0] sm:$0xff] }
   0x3   :  { %141 = vmatprep.subr.bf16.mxu0 %v153_v0  ;;  %v25_v4 = vpack.c.bf16 %v24_v3, %v24_v3  ;;  %v130_v5 = vld [vmem:[%s220_s2] ss:$0 sm:$0xff] }
   0x4   :  { %v93_v7 = vld [vmem:[%s221_s3] sm:$0xff] }
   0x5   :  { %v134_v23 = vld [vmem:[%s222_s4] ss:$0 sm:$0xff] }
   0x6   :  { %142 = vmatpush3.bf16.msra.mxu0 %v150_v2  ;;  %v135_v25 = vld [vmem:[%s223_s5] ss:$0 sm:$0xff] }
   0x9   :  { %144 = vmatmul.mubr.msk.bf16.vlgmr.msra.gmra.mrb[0].mxu0 %vm49_vm1, %v25_v4 }
  0xdc   :  { %v87_v6 = vpop.f32.mrb[0].mxu0 }
  0xdd   :  { %v88_v8 = vadd.f32 %v130_v5, %v87_v6  ;;  %v145_v9 = vpop.f32.mrb[1].mxu0 }
  0xde   :  { %v90_v10 = vpop.f32.mrb[2].mxu0 }
  0xdf   :  { %v146_v11 = vpop.f32.mrb[3].mxu0  ;;  %v94_v12 = vadd.f32 %v93_v7, %v88_v8 }
  0xe1   :  { %v95_v13 = vsel %vm49_vm1, %v94_v12, 0.0 }
  0xe2   :  { %96 = vadd.xlane.f32.xlu0 %v95_v13 }
 0x16f   :  { %v97_v14 = vpop.xlane.xlu0 %96 }
 0x170   :  { %v99_v15 = vmul.f32 0.03125, %v97_v14 }
 0x172   :  { %v100_v16 = vsub.f32 %v94_v12, %v99_v15 }
 0x174   :  { %v101_v17 = vmul.f32 %v100_v16, %v100_v16 }
 0x176   :  { %v102_v18 = vsel %vm49_vm1, %v101_v17, 0.0 }
 0x177   :  { %103 = vadd.xlane.f32.xlu0 %v102_v18 }
 0x204   :  { %v104_v19 = vpop.xlane.xlu0 %103 }
 0x205   :  { %v105_v20 = vmul.f32 0.03125, %v104_v19 }
 0x207   :  { %v106_v21 = vadd.f32 1e-12, %v105_v20 }
 0x209   :  { %151 = vrsqrt.f32 %v106_v21 }
 0x213   :  { %v152_v22 = vpop.eup %151 }
 0x214   :  { %v108_v24 = vmul.f32 %v152_v22, %v100_v16 }
 0x216   :  { %v116_v26 = vmul.f32 %v134_v23, %v108_v24 }
 0x218   :  { %v124_v27 = vadd.f32 %v135_v25, %v116_v26 }
 0x21a   :  { %125 = vst.msk [vmem:[%s224_s6] sm:$0xff] %vm49_vm1, %v124_v27 }

// kernel: _lambda_.21
= control target key start
LH: loop header
LB: loop body
LE: loop exit
PB: predicated region body
PF: predicated region fallthrough
CT: control target
= control target key end

     0   :  { %v1098_v0 = vmov 0.0   ;;  %vm63_vm0 = vcmask 64512   ;;  %vm1099_vm1 = vmmov 0   ;;  %vm440_vm2 = vcmask 27648   ;;  %s1352_s1 = inlined_call_operand.vmem [shape: f32[8,4,8], index: 1, kind: input, shape index: {}]   ;;  %s1353_s0 = inlined_call_operand.vmem [shape: f32[8,4,8], index: 0, kind: input, shape index: {}]   ;;  %s1354_s2 = inlined_call_operand.vmem [shape: f32[8,4,8], index: 2, kind: input, shape index: {}]   ;;  %s1355_s3 = inlined_call_operand.vmem [shape: f32[8,4,8], index: 3, kind: output, shape index: {}]  }
   0x1   :  { %968 = vmatprep.subr.bf16.mxu0 %v1098_v0  ;;  %974 = vmatprep.subr.bf16.mxu1 %v1098_v0  ;;  %v31_v1 = vld [vmem:[%s1352_s1] sm:$0xf]  ;;  %v32_v2 = vld [vmem:[%s1352_s1 + $0x4] sm:$0xf]  ;;  %v33_v5 = vld [vmem:[%s1352_s1 + $0x8] sm:$0xf] }
   0x2   :  { %v39_v3 = vpack.c.bf16 %v31_v1, %v31_v1  ;;  %v40_v4 = vpack.c.bf16 %v32_v2, %v32_v2  ;;  %970 = vmatprep.mubr.msk.bf16.mxu0 %vm1099_vm1, %v1098_v0  ;;  %976 = vmatprep.mubr.msk.bf16.mxu1 %vm1099_vm1, %v1098_v0  ;;  %v34_v6 = vld [vmem:[%s1352_s1 + $0xc] sm:$0xf]  ;;  %v15_v9 = vld [vmem:[%s1353_s0] sm:$0xf]  ;;  %v16_v10 = vld [vmem:[%s1353_s0 + $0x4] sm:$0xf]  ;;  %v41_v11 = vpack.c.bf16 %v33_v5, %v33_v5 }
   0x3   :  { %v42_v12 = vpack.c.bf16 %v34_v6, %v34_v6  ;;  %v23_v13 = vpack.c.bf16 %v15_v9, %v15_v9  ;;  %v24_v14 = vpack.c.bf16 %v16_v10, %v16_v10  ;;  %v35_v17 = vld [vmem:[%s1352_s1 + $0x10] sm:$0xf]  ;;  %v36_v18 = vld [vmem:[%s1352_s1 + $0x14] sm:$0xf]  ;;  %v17_v19 = vld [vmem:[%s1353_s0 + $0x8] sm:$0xf] }
   0x4   :  { %v68_v7 = vsel %vm63_vm0, %v39_v3, 0  ;;  %v114_v8 = vsel %vm63_vm0, %v40_v4, 0  ;;  %v160_v15 = vsel %vm63_vm0, %v41_v11, 0  ;;  %v18_v20 = vld [vmem:[%s1353_s0 + $0xc] sm:$0xf]  ;;  %v43_v21 = vpack.c.bf16 %v35_v17, %v35_v17 }
   0x5   :  { %969 = vmatpush3.bf16.xpose.msra.mxu0 %v68_v7  ;;  %975 = vmatpush3.bf16.xpose.msra.mxu1 %v114_v8  ;;  %v206_v16 = vsel %vm63_vm0, %v42_v12, 0  ;;  %v44_v22 = vpack.c.bf16 %v36_v18, %v36_v18  ;;  %v25_v23 = vpack.c.bf16 %v17_v19, %v17_v19  ;;  %v26_v24 = vpack.c.bf16 %v18_v20, %v18_v20  ;;  %v37_v27 = vld [vmem:[%s1352_s1 + $0x18] sm:$0xf]  ;;  %v38_v28 = vld [vmem:[%s1352_s1 + $0x1c] sm:$0xf] }
   0x6   :  { %980 = vmatprep.subr.bf16.mxu0 %v1098_v0  ;;  %986 = vmatprep.subr.bf16.mxu1 %v1098_v0  ;;  %v252_v25 = vsel %vm63_vm0, %v43_v21, 0  ;;  %v19_v29 = vld [vmem:[%s1353_s0 + $0x10] sm:$0xf]  ;;  %v20_v30 = vld [vmem:[%s1353_s0 + $0x14] sm:$0xf]  ;;  %v45_v31 = vpack.c.bf16 %v37_v27, %v37_v27  ;;  %v46_v32 = vpack.c.bf16 %v38_v28, %v38_v28  ;;  %vm541_vm3 = vcmask 1041408  }
   0x7   :  { %v298_v26 = vsel %vm63_vm0, %v44_v22, 0  ;;  %v27_v33 = vpack.c.bf16 %v19_v29, %v19_v29  ;;  %v28_v34 = vpack.c.bf16 %v20_v30, %v20_v30  ;;  %v21_v37 = vld [vmem:[%s1353_s0 + $0x18] sm:$0xf]  ;;  %v22_v38 = vld [vmem:[%s1353_s0 + $0x1c] sm:$0xf]  ;;  %vm537_vm4 = vcmask 31744  }
   0x8   :  { %v344_v35 = vsel %vm63_vm0, %v45_v31, 0  ;;  %v390_v36 = vsel %vm63_vm0, %v46_v32, 0  ;;  %v29_v39 = vpack.c.bf16 %v21_v37, %v21_v37  ;;  %v30_v40 = vpack.c.bf16 %v22_v38, %v22_v38 }
   0x9   :  { %vm907_vm5 = vcmask 60416  }
   0xc   :  { %971 = vmatmul.mubr.msk.bf16.vlgmr.msra.gmra.mrb[0].mxu0 %vm63_vm0, %v23_v13  ;;  %977 = vmatmul.mubr.msk.bf16.vlgmr.msra.gmra.mrb[0].mxu1 %vm63_vm0, %v24_v14 }
   0xd   :  { %981 = vmatpush3.bf16.xpose.msra.mxu0 %v160_v15  ;;  %987 = vmatpush3.bf16.xpose.msra.mxu1 %v206_v16 }
   0xe   :  { %982 = vmatprep.mubr.msk.bf16.mxu0 %vm1099_vm1, %v1098_v0  ;;  %988 = vmatprep.mubr.msk.bf16.mxu1 %vm1099_vm1, %v1098_v0 }
   0xf   :  { %992 = vmatprep.subr.bf16.mxu0 %v1098_v0  ;;  %998 = vmatprep.subr.bf16.mxu1 %v1098_v0 }
  0x14   :  { %983 = vmatmul.mubr.msk.bf16.vlgmr.msra.gmra.mrb[4].mxu0 %vm63_vm0, %v25_v23  ;;  %989 = vmatmul.mubr.msk.bf16.vlgmr.msra.gmra.mrb[4].mxu1 %vm63_vm0, %v26_v24 }
  0x15   :  { %993 = vmatpush3.bf16.xpose.msra.mxu0 %v252_v25  ;;  %999 = vmatpush3.bf16.xpose.msra.mxu1 %v298_v26 }
  0x16   :  { %994 = vmatprep.mubr.msk.bf16.mxu0 %vm1099_vm1, %v1098_v0  ;;  %1000 = vmatprep.mubr.msk.bf16.mxu1 %vm1099_vm1, %v1098_v0 }
  0x17   :  { %1004 = vmatprep.subr.bf16.mxu0 %v1098_v0  ;;  %1010 = vmatprep.subr.bf16.mxu1 %v1098_v0 }
  0x1c   :  { %995 = vmatmul.mubr.msk.bf16.vlgmr.msra.gmra.mrb[8].mxu0 %vm63_vm0, %v27_v33  ;;  %1001 = vmatmul.mubr.msk.bf16.vlgmr.msra.gmra.mrb[8].mxu1 %vm63_vm0, %v28_v34 }
  0x1d   :  { %1005 = vmatpush3.bf16.xpose.msra.mxu0 %v344_v35  ;;  %1011 = vmatpush3.bf16.xpose.msra.mxu1 %v390_v36 }
  0x1e   :  { %1006 = vmatprep.mubr.msk.bf16.mxu0 %vm1099_vm1, %v1098_v0  ;;  %1012 = vmatprep.mubr.msk.bf16.mxu1 %vm1099_vm1, %v1098_v0 }
  0x1f   :  { %1016 = vmatprep.subr.bf16.mxu0 %v1098_v0  ;;  %1022 = vmatprep.subr.bf16.mxu1 %v1098_v0 }
  0x24   :  { %1007 = vmatmul.mubr.msk.bf16.vlgmr.msra.gmra.mrb[12].mxu0 %vm63_vm0, %v29_v39  ;;  %1013 = vmatmul.mubr.msk.bf16.vlgmr.msra.gmra.mrb[12].mxu1 %vm63_vm0, %v30_v40 }
  0x25   :  { %1018 = vmatprep.mubr.msk.bf16.mxu0 %vm1099_vm1, %v1098_v0  ;;  %1024 = vmatprep.mubr.msk.bf16.mxu1 %vm1099_vm1, %v1098_v0 }
  0xdf   :  { %v104_v41 = vpop.f32.mrb[0].mxu0  ;;  %v150_v42 = vpop.f32.mrb[0].mxu1 }
  0xe0   :  { %v432_v43 = vmul.f32 0.35355338, %v104_v41  ;;  %v972_v44 = vpop.f32.mrb[1].mxu0  ;;  %v433_v45 = vmul.f32 0.35355338, %v150_v42  ;;  %v978_v46 = vpop.f32.mrb[1].mxu1 }
  0xe1   :  { %v107_v47 = vpop.f32.mrb[2].mxu0  ;;  %v153_v48 = vpop.f32.mrb[2].mxu1 }
  0xe2   :  { %v973_v49 = vpop.f32.mrb[3].mxu0  ;;  %v441_v50 = vsel %vm440_vm2, %v432_v43, -inf  ;;  %v979_v51 = vpop.f32.mrb[3].mxu1  ;;  %v444_v52 = vsel %vm440_vm2, %v433_v45, -inf }
  0xe3   :  { %442 = vmax.xlane.f32.xlu0 %v441_v50 }
  0xe7   :  { %445 = vmax.xlane.f32.xlu0 %v444_v52  ;;  %v196_v53 = vpop.f32.mrb[4].mxu0  ;;  %v242_v54 = vpop.f32.mrb[4].mxu1 }
  0xe8   :  { %v434_v55 = vmul.f32 0.35355338, %v196_v53  ;;  %v984_v56 = vpop.f32.mrb[5].mxu0  ;;  %v435_v57 = vmul.f32 0.35355338, %v242_v54  ;;  %v990_v58 = vpop.f32.mrb[5].mxu1 }
  0xe9   :  { %v199_v59 = vpop.f32.mrb[6].mxu0  ;;  %v245_v60 = vpop.f32.mrb[6].mxu1 }
  0xea   :  { %v985_v61 = vpop.f32.mrb[7].mxu0  ;;  %v447_v62 = vsel %vm440_vm2, %v434_v55, -inf  ;;  %v991_v63 = vpop.f32.mrb[7].mxu1  ;;  %v450_v1 = vsel %vm440_vm2, %v435_v57, -inf }
  0xeb   :  { %448 = vmax.xlane.f32.xlu1 %v447_v62 }
  0xef   :  { %v334_v2 = vpop.f32.mrb[8].mxu1  ;;  %451 = vmax.xlane.f32.xlu1 %v450_v1  ;;  %v288_v3 = vpop.f32.mrb[8].mxu0 }
  0xf0   :  { %v437_v4 = vmul.f32 0.35355338, %v334_v2  ;;  %v436_v5 = vmul.f32 0.35355338, %v288_v3  ;;  %v996_v6 = vpop.f32.mrb[9].mxu0  ;;  %v1002_v7 = vpop.f32.mrb[9].mxu1 }
  0xf1   :  { %v337_v8 = vpop.f32.mrb[10].mxu1  ;;  %v291_v9 = vpop.f32.mrb[10].mxu0  ;;  %v47_v2 = vld [vmem:[%s1354_s2] sm:$0xf]  ;;  %v48_v6 = vld [vmem:[%s1354_s2 + $0x4] sm:$0xf] }
  0xf2   :  { %v456_v10 = vsel %vm440_vm2, %v437_v4, -inf  ;;  %v453_v11 = vsel %vm440_vm2, %v436_v5, -inf  ;;  %v997_v12 = vpop.f32.mrb[11].mxu0  ;;  %v1003_v13 = vpop.f32.mrb[11].mxu1  ;;  %v56_v7 = vpack.c.bf16 %v48_v6, %v48_v6  ;;  %v49_v9 = vld [vmem:[%s1354_s2 + $0x8] sm:$0xf] }
  0xf3   :  { %457 = vmax.xlane.f32.xlu1 %v456_v10  ;;  %454 = vmax.xlane.f32.xlu0 %v453_v11  ;;  %v57_v10 = vpack.c.bf16 %v49_v9, %v49_v9  ;;  %v50_v12 = vld [vmem:[%s1354_s2 + $0xc] sm:$0xf] }
  0xf4   :  { %v589_v8 = vsel %vm541_vm3, %v56_v7, 0  ;;  %v58_v13 = vpack.c.bf16 %v50_v12, %v50_v12 }
  0xf5   :  { %1023 = vmatpush3.bf16.msra.mxu1 %v589_v8  ;;  %v635_v11 = vsel %vm541_vm3, %v57_v10, 0 }
  0xf6   :  { %1034 = vmatprep.subr.bf16.mxu1 %v1098_v0 }
  0xf7   :  { %v380_v14 = vpop.f32.mrb[12].mxu0  ;;  %v426_v15 = vpop.f32.mrb[12].mxu1 }
  0xf8   :  { %v438_v16 = vmul.f32 0.35355338, %v380_v14  ;;  %v439_v17 = vmul.f32 0.35355338, %v426_v15  ;;  %v1008_v18 = vpop.f32.mrb[13].mxu0  ;;  %v1014_v19 = vpop.f32.mrb[13].mxu1 }
  0xf9   :  { %v429_v20 = vpop.f32.mrb[14].mxu1  ;;  %v383_v21 = vpop.f32.mrb[14].mxu0  ;;  %v681_v14 = vsel %vm541_vm3, %v58_v13, 0  ;;  %v51_v15 = vld [vmem:[%s1354_s2 + $0x10] sm:$0xf] }
  0xfa   :  { %v462_v22 = vsel %vm440_vm2, %v439_v17, -inf  ;;  %v459_v23 = vsel %vm440_vm2, %v438_v16, -inf  ;;  %v1009_v24 = vpop.f32.mrb[15].mxu0  ;;  %v1015_v25 = vpop.f32.mrb[15].mxu1  ;;  %v52_v18 = vld [vmem:[%s1354_s2 + $0x14] sm:$0xf] }
  0xfb   :  { %463 = vmax.xlane.f32.xlu1 %v462_v22  ;;  %460 = vmax.xlane.f32.xlu0 %v459_v23  ;;  %v60_v19 = vpack.c.bf16 %v52_v18, %v52_v18  ;;  %v53_v21 = vld [vmem:[%s1354_s2 + $0x18] sm:$0xf]  ;;  %v54_v24 = vld [vmem:[%s1354_s2 + $0x1c] sm:$0xf] }
  0xfc   :  { %v61_v22 = vpack.c.bf16 %v53_v21, %v53_v21  ;;  %v62_v25 = vpack.c.bf16 %v54_v24, %v54_v24 }
  0xfd   :  { %v773_v20 = vsel %vm541_vm3, %v60_v19, 0 }
  0xfe   :  { %v819_v23 = vsel %vm541_vm3, %v61_v22, 0 }
 0x170   :  { %v443_v26 = vpop.xlane.xlu0 %442 }
 0x171   :  { %v465_v27 = vsub.f32 %v432_v43, %v443_v26  ;;  %v865_v26 = vsel %vm541_vm3, %v62_v25, 0 }
 0x173   :  { %v473_v28 = vmul.f32 1.442695, %v465_v27 }
 0x174   :  { %v446_v29 = vpop.xlane.xlu0 %445 }
 0x175   :  { %1066 = vpow2.f32 %v473_v28  ;;  %v466_v30 = vsub.f32 %v433_v45, %v446_v29 }
 0x177   :  { %v475_v31 = vmul.f32 1.442695, %v466_v30 }
 0x178   :  { %v449_v32 = vpop.xlane.xlu1 %448 }
 0x179   :  { %1068 = vpow2.f32 %v475_v31  ;;  %v467_v33 = vsub.f32 %v434_v55, %v449_v32 }
 0x17b   :  { %v477_v34 = vmul.f32 1.442695, %v467_v33 }
 0x17c   :  { %v452_v35 = vpop.xlane.xlu1 %451 }
 0x17d   :  { %1070 = vpow2.f32 %v477_v34  ;;  %v468_v36 = vsub.f32 %v435_v57, %v452_v35 }
 0x17f   :  { %v1222_v37 = vpop.eup %1066  ;;  %v479_v38 = vmul.f32 1.442695, %v468_v36 }
 0x180   :  { %v458_v39 = vpop.xlane.xlu1 %457  ;;  %v455_v40 = vpop.xlane.xlu0 %454  ;;  %v489_v41 = vsel %vm440_vm2, %v1222_v37, 0.0 }
 0x181   :  { %1072 = vpow2.f32 %v479_v38  ;;  %v470_v42 = vsub.f32 %v437_v4, %v458_v39  ;;  %v469_v43 = vsub.f32 %v436_v5, %v455_v40  ;;  %490 = vadd.xlane.f32.xlu0 %v489_v41  ;;  %v55_v4 = vpack.c.bf16 %v47_v2, %v47_v2 }
 0x183   :  { %v1226_v44 = vpop.eup %1068  ;;  %v483_v45 = vmul.f32 1.442695, %v470_v42  ;;  %v481_v46 = vmul.f32 1.442695, %v469_v43  ;;  %v543_v5 = vsel %vm541_vm3, %v55_v4, 0 }
 0x184   :  { %v492_v47 = vsel %vm440_vm2, %v1226_v44, 0.0  ;;  %1017 = vmatpush3.bf16.msra.mxu0 %v543_v5 }
 0x185   :  { %1074 = vpow2.f32 %v483_v45  ;;  %493 = vadd.xlane.f32.xlu1 %v492_v47  ;;  %1028 = vmatprep.subr.bf16.mxu0 %v1098_v0 }
 0x186   :  { %1076 = vpow2.f32 %v481_v46 }
 0x187   :  { %v1230_v48 = vpop.eup %1070 }
 0x188   :  { %v464_v49 = vpop.xlane.xlu1 %463  ;;  %v461_v50 = vpop.xlane.xlu0 %460  ;;  %v495_v51 = vsel %vm440_vm2, %v1230_v48, 0.0 }
 0x189   :  { %v472_v52 = vsub.f32 %v439_v17, %v464_v49  ;;  %v471_v53 = vsub.f32 %v438_v16, %v461_v50  ;;  %496 = vadd.xlane.f32.xlu0 %v495_v51  ;;  %v59_v16 = vpack.c.bf16 %v51_v15, %v51_v15 }
 0x18b   :  { %v1234_v54 = vpop.eup %1072  ;;  %v487_v55 = vmul.f32 1.442695, %v472_v52  ;;  %v485_v56 = vmul.f32 1.442695, %v471_v53  ;;  %v727_v17 = vsel %vm541_vm3, %v59_v16, 0 }
 0x18c   :  { %v498_v57 = vsel %vm440_vm2, %v1234_v54, 0.0 }
 0x18d   :  { %1078 = vpow2.f32 %v487_v55  ;;  %499 = vadd.xlane.f32.xlu1 %v498_v57 }
 0x18e   :  { %1080 = vpow2.f32 %v485_v56 }
 0x18f   :  { %v1238_v58 = vpop.eup %1074 }
 0x190   :  { %v1240_v59 = vpop.eup %1076  ;;  %v504_v60 = vsel %vm440_vm2, %v1238_v58, 0.0 }
 0x191   :  { %505 = vadd.xlane.f32.xlu1 %v504_v60  ;;  %v501_v61 = vsel %vm440_vm2, %v1240_v59, 0.0 }
 0x192   :  { %502 = vadd.xlane.f32.xlu0 %v501_v61 }
 0x197   :  { %v1246_v62 = vpop.eup %1078 }
 0x198   :  { %v1248_v63 = vpop.eup %1080  ;;  %v510_v1 = vsel %vm440_vm2, %v1246_v62, 0.0 }
 0x199   :  { %511 = vadd.xlane.f32.xlu1 %v510_v1  ;;  %v507_v3 = vsel %vm440_vm2, %v1248_v63, 0.0 }
 0x19a   :  { %508 = vadd.xlane.f32.xlu0 %v507_v3 }
 0x20e   :  { %v491_v27 = vpop.xlane.xlu0 %490 }
 0x20f   :  { %1082 = vrcp.f32 %v491_v27 }
 0x212   :  { %v494_v28 = vpop.xlane.xlu1 %493 }
 0x213   :  { %1084 = vrcp.f32 %v494_v28 }
 0x216   :  { %v497_v29 = vpop.xlane.xlu0 %496 }
 0x217   :  { %1086 = vrcp.f32 %v497_v29 }
 0x219   :  { %v1083_v30 = vpop.eup %1082 }
 0x21a   :  { %v521_v31 = vmul.f32 %v1083_v30, %v1222_v37  ;;  %v500_v32 = vpop.xlane.xlu1 %499 }
 0x21b   :  { %1088 = vrcp.f32 %v500_v32 }
 0x21c   :  { %v529_v33 = vpack.c.bf16 %v521_v31, %v521_v31 }
 0x21d   :  { %v1085_v34 = vpop.eup %1084 }
 0x21e   :  { %v522_v35 = vmul.f32 %v1085_v34, %v1226_v44  ;;  %v506_v36 = vpop.xlane.xlu1 %505  ;;  %1019 = vmatmul.mubr.msk.bf16.vlgmr.msra.gmra.mrb[16].mxu0 %vm537_vm4, %v529_v33 }
 0x21f   :  { %1090 = vrcp.f32 %v506_v36  ;;  %v503_v38 = vpop.xlane.xlu0 %502  ;;  %1029 = vmatpush3.bf16.msra.mxu0 %v635_v11  ;;  %1030 = vmatprep.mubr.msk.bf16.mxu0 %vm1099_vm1, %v1098_v0 }
 0x220   :  { %1092 = vrcp.f32 %v503_v38  ;;  %v530_v39 = vpack.c.bf16 %v522_v35, %v522_v35  ;;  %1040 = vmatprep.subr.bf16.mxu0 %v1098_v0 }
 0x221   :  { %v1087_v37 = vpop.eup %1086 }
 0x222   :  { %v523_v40 = vmul.f32 %v1087_v37, %v1230_v48  ;;  %1025 = vmatmul.mubr.msk.bf16.vlgmr.msra.gmra.mrb[16].mxu1 %vm537_vm4, %v530_v39 }
 0x223   :  { %1035 = vmatpush3.bf16.msra.mxu1 %v681_v14  ;;  %1036 = vmatprep.mubr.msk.bf16.mxu1 %vm1099_vm1, %v1098_v0 }
 0x224   :  { %v531_v41 = vpack.c.bf16 %v523_v40, %v523_v40  ;;  %1046 = vmatprep.subr.bf16.mxu1 %v1098_v0 }
 0x225   :  { %v1089_v42 = vpop.eup %1088 }
 0x226   :  { %v524_v43 = vmul.f32 %v1089_v42, %v1234_v54  ;;  %v512_v44 = vpop.xlane.xlu1 %511  ;;  %1031 = vmatmul.mubr.msk.bf16.vlgmr.msra.gmra.mrb[20].mxu0 %vm537_vm4, %v531_v41 }
 0x227   :  { %1094 = vrcp.f32 %v512_v44  ;;  %v509_v45 = vpop.xlane.xlu0 %508  ;;  %1041 = vmatpush3.bf16.msra.mxu0 %v727_v17  ;;  %1042 = vmatprep.mubr.msk.bf16.mxu0 %vm1099_vm1, %v1098_v0 }
 0x228   :  { %1096 = vrcp.f32 %v509_v45  ;;  %v532_v46 = vpack.c.bf16 %v524_v43, %v524_v43  ;;  %1052 = vmatprep.subr.bf16.mxu0 %v1098_v0 }
 0x229   :  { %v1091_v47 = vpop.eup %1090 }
 0x22a   :  { %v1093_v48 = vpop.eup %1092  ;;  %1037 = vmatmul.mubr.msk.bf16.vlgmr.msra.gmra.mrb[20].mxu1 %vm537_vm4, %v532_v46  ;;  %v526_v50 = vmul.f32 %v1091_v47, %v1238_v58 }
 0x22b   :  { %v525_v49 = vmul.f32 %v1093_v48, %v1240_v59  ;;  %1047 = vmatpush3.bf16.msra.mxu1 %v773_v20  ;;  %1048 = vmatprep.mubr.msk.bf16.mxu1 %vm1099_vm1, %v1098_v0 }
 0x22c   :  { %1058 = vmatprep.subr.bf16.mxu1 %v1098_v0  ;;  %v534_v52 = vpack.c.bf16 %v526_v50, %v526_v50 }
 0x22d   :  { %v533_v51 = vpack.c.bf16 %v525_v49, %v525_v49 }
 0x22f   :  { %1043 = vmatmul.mubr.msk.bf16.vlgmr.msra.gmra.mrb[24].mxu0 %vm537_vm4, %v533_v51 }
 0x230   :  { %1053 = vmatpush3.bf16.msra.mxu0 %v819_v23  ;;  %1054 = vmatprep.mubr.msk.bf16.mxu0 %vm1099_vm1, %v1098_v0 }
 0x231   :  { %v1095_v53 = vpop.eup %1094 }
 0x232   :  { %v1097_v54 = vpop.eup %1096  ;;  %1049 = vmatmul.mubr.msk.bf16.vlgmr.msra.gmra.mrb[24].mxu1 %vm537_vm4, %v534_v52  ;;  %v528_v56 = vmul.f32 %v1095_v53, %v1246_v62 }
 0x233   :  { %v527_v55 = vmul.f32 %v1097_v54, %v1248_v63  ;;  %1059 = vmatpush3.bf16.msra.mxu1 %v865_v26  ;;  %1060 = vmatprep.mubr.msk.bf16.mxu1 %vm1099_vm1, %v1098_v0 }
 0x234   :  { %v536_v58 = vpack.c.bf16 %v528_v56, %v528_v56 }
 0x235   :  { %v535_v57 = vpack.c.bf16 %v527_v55, %v527_v55 }
 0x237   :  { %1055 = vmatmul.mubr.msk.bf16.vlgmr.msra.gmra.mrb[28].mxu0 %vm537_vm4, %v535_v57 }
 0x23a   :  { %1061 = vmatmul.mubr.msk.bf16.vlgmr.msra.gmra.mrb[28].mxu1 %vm537_vm4, %v536_v58 }
 0x2f1   :  { %v579_v59 = vpop.f32.mrb[16].mxu0 }
 0x2f2   :  { %908 = vst.msk [vmem:[%s1355_s3] sm:$0xf] %vm907_vm5, %v579_v59  ;;  %v1020_v60 = vpop.f32.mrb[17].mxu0 }
 0x2f3   :  { %v582_v61 = vpop.f32.mrb[18].mxu0 }
 0x2f4   :  { %v1021_v63 = vpop.f32.mrb[19].mxu0 }
 0x2f5   :  { %v625_v1 = vpop.f32.mrb[16].mxu1 }
 0x2f6   :  { %909 = vst.msk [vmem:[%s1355_s3 + $0x4] sm:$0xf] %vm907_vm5, %v625_v1  ;;  %v1026_v0 = vpop.f32.mrb[17].mxu1 }
 0x2f7   :  { %v628_v62 = vpop.f32.mrb[18].mxu1 }
 0x2f8   :  { %v1027_v2 = vpop.f32.mrb[19].mxu1 }
 0x2f9   :  { %v671_v3 = vpop.f32.mrb[20].mxu0 }
 0x2fa   :  { %910 = vst.msk [vmem:[%s1355_s3 + $0x8] sm:$0xf] %vm907_vm5, %v671_v3  ;;  %v1032_v4 = vpop.f32.mrb[21].mxu0 }
 0x2fb   :  { %v674_v5 = vpop.f32.mrb[22].mxu0 }
 0x2fc   :  { %v1033_v6 = vpop.f32.mrb[23].mxu0 }
 0x2fd   :  { %v717_v7 = vpop.f32.mrb[20].mxu1 }
 0x2fe   :  { %911 = vst.msk [vmem:[%s1355_s3 + $0xc] sm:$0xf] %vm907_vm5, %v717_v7  ;;  %v1038_v8 = vpop.f32.mrb[21].mxu1 }
 0x2ff   :  { %v720_v9 = vpop.f32.mrb[22].mxu1 }
 0x300   :  { %v1039_v10 = vpop.f32.mrb[23].mxu1 }
 0x302   :  { %v763_v11 = vpop.f32.mrb[24].mxu0 }
 0x303   :  { %912 = vst.msk [vmem:[%s1355_s3 + $0x10] sm:$0xf] %vm907_vm5, %v763_v11  ;;  %v1044_v12 = vpop.f32.mrb[25].mxu0 }
 0x304   :  { %v766_v13 = vpop.f32.mrb[26].mxu0 }
 0x305   :  { %v1045_v14 = vpop.f32.mrb[27].mxu0  ;;  %v809_v15 = vpop.f32.mrb[24].mxu1 }
 0x306   :  { %913 = vst.msk [vmem:[%s1355_s3 + $0x14] sm:$0xf] %vm907_vm5, %v809_v15  ;;  %v1050_v16 = vpop.f32.mrb[25].mxu1 }
 0x307   :  { %v812_v17 = vpop.f32.mrb[26].mxu1 }
 0x308   :  { %v1051_v18 = vpop.f32.mrb[27].mxu1 }
 0x30a   :  { %v855_v19 = vpop.f32.mrb[28].mxu0 }
 0x30b   :  { %914 = vst.msk [vmem:[%s1355_s3 + $0x18] sm:$0xf] %vm907_vm5, %v855_v19  ;;  %v1056_v20 = vpop.f32.mrb[29].mxu0 }
 0x30c   :  { %v858_v21 = vpop.f32.mrb[30].mxu0 }
 0x30d   :  { %v1057_v22 = vpop.f32.mrb[31].mxu0  ;;  %v901_v23 = vpop.f32.mrb[28].mxu1 }
 0x30e   :  { %915 = vst.msk [vmem:[%s1355_s3 + $0x1c] sm:$0xf] %vm907_vm5, %v901_v23  ;;  %v1062_v24 = vpop.f32.mrb[29].mxu1 }
 0x30f   :  { %v904_v25 = vpop.f32.mrb[30].mxu1 }
 0x310   :  { %v1063_v26 = vpop.f32.mrb[31].mxu1 }

// kernel: _lambda_.23
= control target key start
LH: loop header
LB: loop body
LE: loop exit
PB: predicated region body
PF: predicated region fallthrough
CT: control target
= control target key end

     0   :  { %v110_v0 = vmov 0.0   ;;  %vm111_vm0 = vmmov 0   ;;  %vm40_vm1 = vcmask 261120   ;;  %vm85_vm2 = vcmask 523264   ;;  %s147_s1 = inlined_call_operand.vmem [shape: bf16[32,64], index: 1, kind: input, shape index: {}]   ;;  %s148_s0 = inlined_call_operand.vmem [shape: f32[8,32], index: 0, kind: input, shape index: {}]   ;;  %s149_s2 = inlined_call_operand.vmem [shape: f32[1,64], index: 2, kind: input, shape index: {}]   ;;  %s150_s3 = inlined_call_operand.vmem [shape: f32[8,64], index: 3, kind: output, shape index: {}]  }
   0x1   :  { %98 = vmatprep.subr.bf16.mxu0 %v110_v0  ;;  %v108_v1 = vld [vmem:[%s147_s1] sm:$0xff]   ;;  %102 = vmatprep.mubr.msk.bf16.mxu0 %vm111_vm0, %v110_v0  ;;  %v109_v2 = vld [vmem:[%s147_s1 + $0x8] sm:$0xff]  }
   0x2   :  { %99 = vmatpush3.bf16.msra.mxu0 %v108_v1  ;;  %v15_v3 = vld [vmem:[%s148_s0] sm:$0xff] }
   0x3   :  { %100 = vmatprep.subr.bf16.mxu0 %v110_v0  ;;  %v16_v4 = vpack.c.bf16 %v15_v3, %v15_v3  ;;  %v91_v5 = vld [vmem:[%s149_s2] ss:$0 sm:$0xff] }
   0x6   :  { %101 = vmatpush3.bf16.msra.mxu0 %v109_v2 }
   0x9   :  { %103 = vmatmul.mubr.msk.bf16.vlgmr.msra.gmra.mrb[0].mxu0 %vm40_vm1, %v16_v4 }
  0xdc   :  { %v78_v6 = vpop.f32.mrb[0].mxu0 }
  0xdd   :  { %v79_v7 = vadd.f32 %v91_v5, %v78_v6  ;;  %v104_v8 = vpop.f32.mrb[1].mxu0 }
  0xde   :  { %v81_v9 = vpop.f32.mrb[2].mxu0 }
  0xdf   :  { %v84_v10 = vmax.f32 %v79_v7, 0.0  ;;  %v105_v11 = vpop.f32.mrb[3].mxu0 }
  0xe1   :  { %86 = vst.msk [vmem:[%s150_s3] sm:$0xff] %vm85_vm2, %v84_v10 }

// kernel: _lambda_.24
= control target key start
LH: loop header
LB: loop body
LE: loop exit
PB: predicated region body
PF: predicated region fallthrough
CT: control target
= control target key end

     0   :  { %v180_v0 = vmov 0.0   ;;  %vm181_vm0 = vmmov 0   ;;  %vm65_vm1 = vcmask 523264   ;;  %vm111_vm2 = vcmask 261120   ;;  %s250_s1 = inlined_call_operand.vmem [shape: bf16[64,32], index: 1, kind: input, shape index: {}]   ;;  %s251_s0 = inlined_call_operand.vmem [shape: f32[8,64], index: 0, kind: input, shape index: {}]   ;;  %s252_s2 = inlined_call_operand.vmem [shape: f32[1,32], index: 2, kind: input, shape index: {}]   ;;  %s253_s3 = inlined_call_operand.vmem [shape: f32[8,32], index: 3, kind: input, shape index: {}]   ;;  %s254_s4 = inlined_call_operand.vmem [shape: f32[1,32], index: 4, kind: input, shape index: {}]   ;;  %s255_s5 = inlined_call_operand.vmem [shape: f32[1,32], index: 5, kind: input, shape index: {}]   ;;  %s256_s6 = inlined_call_operand.vmem [shape: f32[8,32], index: 6, kind: output, shape index: {}]  }
   0x1   :  { %160 = vmatprep.subr.bf16.mxu0 %v180_v0  ;;  %v174_v1 = vld [vmem:[%s250_s1] sm:$0xff]   ;;  %168 = vmatprep.mubr.msk.bf16.mxu0 %vm181_vm0, %v180_v0  ;;  %v175_v2 = vld [vmem:[%s250_s1 + $0x8] sm:$0xff]   ;;  %v176_v3 = vld [vmem:[%s250_s1 + $0x10] sm:$0xff]  }
   0x2   :  { %161 = vmatpush3.bf16.msra.mxu0 %v174_v1  ;;  %v177_v4 = vld [vmem:[%s250_s1 + $0x18] sm:$0xff]   ;;  %v24_v5 = vld [vmem:[%s251_s0] sm:$0xff] }
   0x3   :  { %162 = vmatprep.subr.bf16.mxu0 %v180_v0  ;;  %v25_v6 = vpack.c.bf16 %v24_v5, %v24_v5  ;;  %v147_v7 = vld [vmem:[%s252_s2] ss:$0 sm:$0xff] }
   0x4   :  { %v109_v9 = vld [vmem:[%s253_s3] sm:$0xff] }
   0x5   :  { %v153_v25 = vld [vmem:[%s254_s4] ss:$0 sm:$0xff] }
   0x6   :  { %163 = vmatpush3.bf16.msra.mxu0 %v175_v2  ;;  %v154_v27 = vld [vmem:[%s255_s5] ss:$0 sm:$0xff] }
   0x7   :  { %164 = vmatprep.subr.bf16.mxu0 %v180_v0 }
   0xa   :  { %165 = vmatpush3.bf16.msra.mxu0 %v176_v3 }
   0xb   :  { %166 = vmatprep.subr.bf16.mxu0 %v180_v0 }
   0xe   :  { %167 = vmatpush3.bf16.msra.mxu0 %v177_v4 }
  0x11   :  { %169 = vmatmul.mubr.msk.bf16.vlgmr.msra.gmra.mrb[0].mxu0 %vm65_vm1, %v25_v6 }
  0xe4   :  { %v103_v8 = vpop.f32.mrb[0].mxu0 }
  0xe5   :  { %v104_v10 = vadd.f32 %v147_v7, %v103_v8  ;;  %v170_v11 = vpop.f32.mrb[1].mxu0 }
  0xe6   :  { %v106_v12 = vpop.f32.mrb[2].mxu0 }
  0xe7   :  { %v171_v13 = vpop.f32.mrb[3].mxu0  ;;  %v110_v14 = vadd.f32 %v109_v9, %v104_v10 }
  0xe9   :  { %v112_v15 = vsel %vm111_vm2, %v110_v14, 0.0 }
  0xea   :  { %113 = vadd.xlane.f32.xlu0 %v112_v15 }
 0x177   :  { %v114_v16 = vpop.xlane.xlu0 %113 }
 0x178   :  { %v116_v17 = vmul.f32 0.03125, %v114_v16 }
 0x17a   :  { %v117_v18 = vsub.f32 %v110_v14, %v116_v17 }
 0x17c   :  { %v118_v19 = vmul.f32 %v117_v18, %v117_v18 }
 0x17e   :  { %v119_v20 = vsel %vm111_vm2, %v118_v19, 0.0 }
 0x17f   :  { %120 = vadd.xlane.f32.xlu0 %v119_v20 }
 0x20c   :  { %v121_v21 = vpop.xlane.xlu0 %120 }
 0x20d   :  { %v122_v22 = vmul.f32 0.03125, %v121_v21 }
 0x20f   :  { %v123_v23 = vadd.f32 1e-12, %v122_v22 }
 0x211   :  { %178 = vrsqrt.f32 %v123_v23 }
 0x21b   :  { %v179_v24 = vpop.eup %178 }
 0x21c   :  { %v125_v26 = vmul.f32 %v179_v24, %v117_v18 }
 0x21e   :  { %v133_v28 = vmul.f32 %v153_v25, %v125_v26 }
 0x220   :  { %v141_v29 = vadd.f32 %v154_v27, %v133_v28 }
 0x222   :  { %142 = vst.msk [vmem:[%s256_s6] sm:$0xff] %vm111_vm2, %v141_v29 }

// kernel: _lambda_.30
= control target key start
LH: loop header
LB: loop body
LE: loop exit
PB: predicated region body
PF: predicated region fallthrough
CT: control target
= control target key end

     0   :  { %v108_v0 = vmov 0.0   ;;  %vm109_vm0 = vmmov 0   ;;  %vm40_vm1 = vcmask 261120   ;;  %s145_s1 = inlined_call_operand.vmem [shape: bf16[32,32], index: 1, kind: input, shape index: {}]   ;;  %s146_s0 = inlined_call_operand.vmem [shape: f32[8,32], index: 0, kind: input, shape index: {}]   ;;  %s147_s2 = inlined_call_operand.vmem [shape: f32[1,32], index: 2, kind: input, shape index: {}]   ;;  %s148_s3 = inlined_call_operand.vmem [shape: f32[8,32], index: 3, kind: output, shape index: {}]  }
   0x1   :  { %96 = vmatprep.subr.bf16.mxu0 %v108_v0  ;;  %v106_v1 = vld [vmem:[%s145_s1] sm:$0xff]   ;;  %100 = vmatprep.mubr.msk.bf16.mxu0 %vm109_vm0, %v108_v0  ;;  %v107_v2 = vld [vmem:[%s145_s1 + $0x8] sm:$0xff]  }
   0x2   :  { %97 = vmatpush3.bf16.msra.mxu0 %v106_v1  ;;  %v15_v3 = vld [vmem:[%s146_s0] sm:$0xff] }
   0x3   :  { %98 = vmatprep.subr.bf16.mxu0 %v108_v0  ;;  %v16_v4 = vpack.c.bf16 %v15_v3, %v15_v3  ;;  %v89_v5 = vld [vmem:[%s147_s2] ss:$0 sm:$0xff] }
   0x6   :  { %99 = vmatpush3.bf16.msra.mxu0 %v107_v2 }
   0x9   :  { %101 = vmatmul.mubr.msk.bf16.vlgmr.msra.gmra.mrb[0].mxu0 %vm40_vm1, %v16_v4 }
  0xdc   :  { %v78_v6 = vpop.f32.mrb[0].mxu0 }
  0xdd   :  { %v79_v7 = vadd.f32 %v89_v5, %v78_v6  ;;  %v102_v8 = vpop.f32.mrb[1].mxu0 }
  0xde   :  { %v81_v9 = vpop.f32.mrb[2].mxu0 }
  0xdf   :  { %84 = vst.msk [vmem:[%s148_s3] sm:$0xff] %vm40_vm1, %v79_v7  ;;  %v103_v10 = vpop.f32.mrb[3].mxu0 }

// kernel: _lambda_.31
= control target key start
LH: loop header
LB: loop body
LE: loop exit
PB: predicated region body
PF: predicated region fallthrough
CT: control target
= control target key end

     0   :  { %s2067_s18 = smov 0   ;;  %s2435_s0 = inlined_call_operand.vmem [shape: f32[2,4,4,128], index: 0, kind: input, shape index: {}]   ;;  %s2436_s1 = inlined_call_operand.vmem [shape: bf16[9,128,128], index: 1, kind: input, shape index: {}]   ;;  %s2437_s2 = inlined_call_operand.vmem [shape: f32[1,128], index: 2, kind: input, shape index: {}]   ;;  %s2438_s3 = inlined_call_operand.vmem [shape: f32[1,128], index: 3, kind: input, shape index: {}]   ;;  %s2439_s4 = inlined_call_operand.vmem [shape: f32[4,2], index: 4, kind: input, shape index: {}]   ;;  %s2440_s5 = inlined_call_operand.vmem [shape: f32[2,4,4,128], index: 5, kind: output, shape index: {}]  }
   0x1 LB: > { %s1403_s19 = sadd.s32 4294967295, %s2029_s18   ;;  %p1407_p0 = scmp.ge.s32.totalorder %s2029_s18, 1  ;;  %s2029_s18 = sphi %s2067_s18, %s15_s18  }
   0x2   : > { %p187_p1 = scmp.lt.s32.totalorder %s2029_s18, 3 }
   0x4   : > { %p188_p2 = pnand %p1407_p0, %p187_p1 }
   0x5   : > { %p215_p3 = scmp.lt.s32.totalorder (!%p188_p2), %s1403_s19, 1  ;;  %s2085_s27 = smov (!%p188_p2), 0  }
   0x6   : > { %191 = sbr.rel (%p188_p2) target bundleno = 627 (0x273), region = 40 }
   0xd   : > { %s2442_s19 = smov (!%p215_p3, %s1403_s19), 1 }
   0xe   : > { %s1630_s20 = sshll.u32 %s2442_s19, 4 }
   0xf   : > { %s2078_s23 = scalar_lea.vmem %s2435_s0, %s1630_s20  ;;  %s2083_s26 = scalar_lea.vmem %s2440_s5, %s1630_s20 }
  0x10 LB: >> { %v1947_v0 = vld [vmem:[%s2436_s1 + $0x40] sm:$0xff]   ;;  %v2035_v1 = vmov 0.0   ;;  %v1949_v3 = vld [vmem:[%s2436_s1 + $0x48] sm:$0xff]   ;;  %vm2036_vm0 = vmmov 0   ;;  %v1951_v5 = vld [vmem:[%s2436_s1 + $0x50] sm:$0xff]   ;;  %s1412_s6 = sshll.u32 %s2033_s27, 2  ;;  %s2033_s27 = sphi %s2085_s27, %s231_s27  }
  0x11   : >> { %1715 = vmatprep.subr.bf16.mxu1 %v2035_v1  ;;  %1795 = vmatprep.subr.bf16.mxu0 %v2035_v1  ;;  %v1948_v2 = vld [vmem:[%s2436_s1 + $0x100] sm:$0xff]   ;;  %v1950_v4 = vld [vmem:[%s2436_s1 + $0x108] sm:$0xff]   ;;  %v1952_v6 = vld [vmem:[%s2436_s1 + $0x110] sm:$0xff]   ;;  %s2153_s11 = scalar_lea.vmem %s2078_s23, %s1412_s6  ;;  %vm1231_vm1 = vcmask 1041408   ;;  %vm1227_vm2 = vcmask 15360   ;;  %s1305_s20 = scalar_lea.vmem [#allocation2], %s1412_s6 }
  0x12   : >> { %1716 = vmatpush3.bf16.msra.mxu1 %v1947_v0  ;;  %1731 = vmatprep.mubr.msk.bf16.mxu1 %vm2036_vm0, %v2035_v1  ;;  %v1953_v7 = vld [vmem:[%s2436_s1 + $0x58] sm:$0xff]   ;;  %v1955_v9 = vld [vmem:[%s2436_s1 + $0x60] sm:$0xff]   ;;  %v1957_v11 = vld [vmem:[%s2436_s1 + $0x68] sm:$0xff]   ;;  %s231_s27 = sadd.s32 1, %s2033_s27  }
  0x13   : >> { %1796 = vmatpush3.bf16.msra.mxu0 %v1948_v2  ;;  %1717 = vmatprep.subr.bf16.mxu1 %v2035_v1  ;;  %v1954_v8 = vld [vmem:[%s2436_s1 + $0x118] sm:$0xff]   ;;  %v1956_v10 = vld [vmem:[%s2436_s1 + $0x120] sm:$0xff]   ;;  %v1958_v12 = vld [vmem:[%s2436_s1 + $0x128] sm:$0xff]   ;;  %p228_p4 = scmp.ge.s32.totalorder %s231_s27, 2  }
  0x14   : >> { %1797 = vmatprep.subr.bf16.mxu0 %v2035_v1  ;;  %1811 = vmatprep.mubr.msk.bf16.mxu0 %vm2036_vm0, %v2035_v1  ;;  %v1959_v13 = vld [vmem:[%s2436_s1 + $0x70] sm:$0xff]   ;;  %v1961_v15 = vld [vmem:[%s2436_s1 + $0x78] sm:$0xff]   ;;  %v252_v17 = vld [vmem:[%s2153_s11 + $0x1] sm:$0x3] }
  0x15   : >> { %v1960_v14 = vld [vmem:[%s2436_s1 + $0x130] sm:$0xff]   ;;  %v1962_v16 = vld [vmem:[%s2436_s1 + $0x138] sm:$0xff]   ;;  %v1495_v18 = vld [vmem:[%s2153_s11 + $0x5] sm:$0x3]  ;;  %v253_v19 = vpack.c.bf16 %v252_v17, %v252_v17 }
  0x16   : >> { %1718 = vmatpush3.bf16.msra.mxu1 %v1949_v3  ;;  %v1963_v20 = vld [vmem:[%s2436_s1] sm:$0xff]   ;;  %v667_v21 = vpack.c.bf16 %v1495_v18, %v1495_v18  ;;  %v1965_v23 = vld [vmem:[%s2436_s1 + $0x8] sm:$0xff]   ;;  %v1967_v25 = vld [vmem:[%s2436_s1 + $0x10] sm:$0xff]  }
  0x17   : >> { %1798 = vmatpush3.bf16.msra.mxu0 %v1950_v4  ;;  %1719 = vmatprep.subr.bf16.mxu1 %v2035_v1  ;;  %v1964_v22 = vld [vmem:[%s2436_s1 + $0x140] sm:$0xff]   ;;  %v1966_v24 = vld [vmem:[%s2436_s1 + $0x148] sm:$0xff]   ;;  %v1968_v26 = vld [vmem:[%s2436_s1 + $0x150] sm:$0xff]  }
  0x18   : >> { %1799 = vmatprep.subr.bf16.mxu0 %v2035_v1  ;;  %v1969_v27 = vld [vmem:[%s2436_s1 + $0x18] sm:$0xff]   ;;  %v1971_v29 = vld [vmem:[%s2436_s1 + $0x20] sm:$0xff]   ;;  %v1973_v31 = vld [vmem:[%s2436_s1 + $0x28] sm:$0xff]  }
  0x19   : >> { %v1970_v28 = vld [vmem:[%s2436_s1 + $0x158] sm:$0xff]   ;;  %v1972_v30 = vld [vmem:[%s2436_s1 + $0x160] sm:$0xff]   ;;  %v1974_v32 = vld [vmem:[%s2436_s1 + $0x168] sm:$0xff]  }
  0x1a   : >> { %1720 = vmatpush3.bf16.msra.mxu1 %v1951_v5  ;;  %v1975_v33 = vld [vmem:[%s2436_s1 + $0x30] sm:$0xff]   ;;  %v1977_v35 = vld [vmem:[%s2436_s1 + $0x38] sm:$0xff]   ;;  %v234_v37 = vld [vmem:[%s2153_s11] sm:$0x3] }
  0x1b   : >> { %1800 = vmatpush3.bf16.msra.mxu0 %v1952_v6  ;;  %1721 = vmatprep.subr.bf16.mxu1 %v2035_v1  ;;  %v1976_v34 = vld [vmem:[%s2436_s1 + $0x170] sm:$0xff]   ;;  %v1978_v36 = vld [vmem:[%s2436_s1 + $0x178] sm:$0xff]   ;;  %v1520_v38 = vld [vmem:[%s2153_s11 + $0x6] sm:$0x3]  ;;  %v235_v39 = vpack.c.bf16 %v234_v37, %v234_v37 }
  0x1c   : >> { %1801 = vmatprep.subr.bf16.mxu0 %v2035_v1  ;;  %v1979_v40 = vld [vmem:[%s2436_s1 + $0x80] sm:$0xff]   ;;  %v775_v41 = vpack.c.bf16 %v1520_v38, %v1520_v38  ;;  %v1981_v43 = vld [vmem:[%s2436_s1 + $0x88] sm:$0xff]   ;;  %v1983_v45 = vld [vmem:[%s2436_s1 + $0x90] sm:$0xff]  }
  0x1d   : >> { %v1980_v42 = vld [vmem:[%s2436_s1 + $0x180] sm:$0xff]   ;;  %v1982_v44 = vld [vmem:[%s2436_s1 + $0x188] sm:$0xff]   ;;  %v1984_v46 = vld [vmem:[%s2436_s1 + $0x190] sm:$0xff]  }
  0x1e   : >> { %1722 = vmatpush3.bf16.msra.mxu1 %v1953_v7  ;;  %v1985_v47 = vld [vmem:[%s2436_s1 + $0x98] sm:$0xff]   ;;  %v1987_v49 = vld [vmem:[%s2436_s1 + $0xa0] sm:$0xff]   ;;  %v1989_v51 = vld [vmem:[%s2436_s1 + $0xa8] sm:$0xff]  }
  0x1f   : >> { %1802 = vmatpush3.bf16.msra.mxu0 %v1954_v8  ;;  %1723 = vmatprep.subr.bf16.mxu1 %v2035_v1  ;;  %v1986_v48 = vld [vmem:[%s2436_s1 + $0x198] sm:$0xff]   ;;  %v1988_v50 = vld [vmem:[%s2436_s1 + $0x1a0] sm:$0xff]   ;;  %v1990_v52 = vld [vmem:[%s2436_s1 + $0x1a8] sm:$0xff]  }
  0x20   : >> { %1803 = vmatprep.subr.bf16.mxu0 %v2035_v1  ;;  %v1991_v53 = vld [vmem:[%s2436_s1 + $0xb0] sm:$0xff]   ;;  %v1993_v55 = vld [vmem:[%s2436_s1 + $0xb8] sm:$0xff]   ;;  %v447_v56 = vld [vmem:[%s2153_s11 + $0x2] sm:$0x3] }
  0x21   : >> { %v1992_v54 = vld [vmem:[%s2436_s1 + $0x1b0] sm:$0xff]   ;;  %v1994_v57 = vld [vmem:[%s2436_s1 + $0x1b8] sm:$0xff]   ;;  %v1546_v58 = vld [vmem:[%s2153_s11 + $0x8] sm:$0x3]  ;;  %v448_v59 = vpack.c.bf16 %v447_v56, %v447_v56 }
  0x22   : >> { %1724 = vmatpush3.bf16.msra.mxu1 %v1955_v9  ;;  %v1995_v60 = vld [vmem:[%s2436_s1 + $0xc0] sm:$0xff]   ;;  %v886_v61 = vpack.c.bf16 %v1546_v58, %v1546_v58  ;;  %v1997_v63 = vld [vmem:[%s2436_s1 + $0xc8] sm:$0xff]   ;;  %v1999_v2 = vld [vmem:[%s2436_s1 + $0xd0] sm:$0xff]  }
  0x23   : >> { %1804 = vmatpush3.bf16.msra.mxu0 %v1956_v10  ;;  %1725 = vmatprep.subr.bf16.mxu1 %v2035_v1  ;;  %v1996_v62 = vld [vmem:[%s2436_s1 + $0x1c0] sm:$0xff]   ;;  %v1998_v0 = vld [vmem:[%s2436_s1 + $0x1c8] sm:$0xff]   ;;  %v2000_v3 = vld [vmem:[%s2436_s1 + $0x1d0] sm:$0xff]  }
  0x24   : >> { %1805 = vmatprep.subr.bf16.mxu0 %v2035_v1  ;;  %v2001_v4 = vld [vmem:[%s2436_s1 + $0xd8] sm:$0xff]   ;;  %v2003_v6 = vld [vmem:[%s2436_s1 + $0xe0] sm:$0xff]   ;;  %v2005_v8 = vld [vmem:[%s2436_s1 + $0xe8] sm:$0xff]  }
  0x25   : >> { %v2002_v5 = vld [vmem:[%s2436_s1 + $0x1d8] sm:$0xff]   ;;  %v2004_v7 = vld [vmem:[%s2436_s1 + $0x1e0] sm:$0xff]   ;;  %v2006_v9 = vld [vmem:[%s2436_s1 + $0x1e8] sm:$0xff]  }
  0x26   : >> { %1726 = vmatpush3.bf16.msra.mxu1 %v1957_v11  ;;  %v2007_v10 = vld [vmem:[%s2436_s1 + $0xf0] sm:$0xff]   ;;  %v2011_v18 = vld [vmem:[%s2436_s1 + $0x200] sm:$0xff]  }
  0x27   : >> { %1806 = vmatpush3.bf16.msra.mxu0 %v1958_v12  ;;  %1727 = vmatprep.subr.bf16.mxu1 %v2035_v1  ;;  %v2008_v11 = vld [vmem:[%s2436_s1 + $0x1f0] sm:$0xff]   ;;  %v2009_v12 = vld [vmem:[%s2436_s1 + $0xf8] sm:$0xff]  }
  0x28   : >> { %1807 = vmatprep.subr.bf16.mxu0 %v2035_v1 }
  0x2a   : >> { %1728 = vmatpush3.bf16.msra.mxu1 %v1959_v13  ;;  %v1470_v13 = vld [vmem:[%s2153_s11 + $0x4] sm:$0x3] }
  0x2b   : >> { %1808 = vmatpush3.bf16.msra.mxu0 %v1960_v14  ;;  %1729 = vmatprep.subr.bf16.mxu1 %v2035_v1  ;;  %v2010_v14 = vld [vmem:[%s2436_s1 + $0x1f8] sm:$0xff]  }
  0x2c   : >> { %1809 = vmatprep.subr.bf16.mxu0 %v2035_v1 }
  0x2e   : >> { %1730 = vmatpush3.bf16.msra.mxu1 %v1961_v15  ;;  %v1571_v15 = vld [vmem:[%s2153_s11 + $0x9] sm:$0x3] }
  0x2f   : >> { %1810 = vmatpush3.bf16.msra.mxu0 %v1962_v16  ;;  %1735 = vmatprep.subr.bf16.mxu1 %v2035_v1  ;;  %v559_v16 = vpack.c.bf16 %v1470_v13, %v1470_v13  ;;  %v994_v17 = vpack.c.bf16 %v1571_v15, %v1571_v15 }
  0x30   : >> { %1815 = vmatprep.subr.bf16.mxu0 %v2035_v1 }
  0x31   : >> { %1732 = vmatmul.mubr.bf16.vlgmr.msra.gmra.mrb[0].mxu1 %v253_v19  ;;  %v2012_v19 = vld [vmem:[%s2436_s1 + $0x208] sm:$0xff]  }
  0x32   : >> { %1736 = vmatpush3.bf16.msra.mxu1 %v1963_v20  ;;  %1812 = vmatmul.mubr.bf16.vlgmr.msra.gmra.mrb[0].mxu0 %v667_v21  ;;  %v2013_v20 = vld [vmem:[%s2436_s1 + $0x210] sm:$0xff]   ;;  %v2014_v21 = vld [vmem:[%s2436_s1 + $0x218] sm:$0xff]  }
  0x33   : >> { %1816 = vmatpush3.bf16.msra.mxu0 %v1964_v22  ;;  %1737 = vmatprep.subr.bf16.mxu1 %v2035_v1  ;;  %v2015_v22 = vld [vmem:[%s2436_s1 + $0x220] sm:$0xff]  }
  0x34   : >> { %1817 = vmatprep.subr.bf16.mxu0 %v2035_v1  ;;  %1751 = vmatprep.mubr.msk.bf16.mxu1 %vm2036_vm0, %v2035_v1 }
  0x35   : >> { %1831 = vmatprep.mubr.msk.bf16.mxu0 %vm2036_vm0, %v2035_v1 }
  0x36   : >> { %1738 = vmatpush3.bf16.msra.mxu1 %v1965_v23  ;;  %v2016_v23 = vld [vmem:[%s2436_s1 + $0x228] sm:$0xff]  }
  0x37   : >> { %1818 = vmatpush3.bf16.msra.mxu0 %v1966_v24  ;;  %1739 = vmatprep.subr.bf16.mxu1 %v2035_v1  ;;  %v2017_v24 = vld [vmem:[%s2436_s1 + $0x230] sm:$0xff]  }
  0x38   : >> { %1819 = vmatprep.subr.bf16.mxu0 %v2035_v1 }
  0x3a   : >> { %1740 = vmatpush3.bf16.msra.mxu1 %v1967_v25  ;;  %v2018_v25 = vld [vmem:[%s2436_s1 + $0x238] sm:$0xff]  }
  0x3b   : >> { %1820 = vmatpush3.bf16.msra.mxu0 %v1968_v26  ;;  %1741 = vmatprep.subr.bf16.mxu1 %v2035_v1  ;;  %v1596_v26 = vld [vmem:[%s2153_s11 + $0xa] sm:$0x3] }
  0x3c   : >> { %1821 = vmatprep.subr.bf16.mxu0 %v2035_v1 }
  0x3e   : >> { %1742 = vmatpush3.bf16.msra.mxu1 %v1969_v27  ;;  %v1102_v27 = vpack.c.bf16 %v1596_v26, %v1596_v26 }
  0x3f   : >> { %1822 = vmatpush3.bf16.msra.mxu0 %v1970_v28  ;;  %1743 = vmatprep.subr.bf16.mxu1 %v2035_v1 }
  0x40   : >> { %1823 = vmatprep.subr.bf16.mxu0 %v2035_v1 }
  0x42   : >> { %1744 = vmatpush3.bf16.msra.mxu1 %v1971_v29 }
  0x43   : >> { %1824 = vmatpush3.bf16.msra.mxu0 %v1972_v30  ;;  %1745 = vmatprep.subr.bf16.mxu1 %v2035_v1 }
  0x44   : >> { %1825 = vmatprep.subr.bf16.mxu0 %v2035_v1 }
  0x46   : >> { %1746 = vmatpush3.bf16.msra.mxu1 %v1973_v31 }
  0x47   : >> { %1826 = vmatpush3.bf16.msra.mxu0 %v1974_v32  ;;  %1747 = vmatprep.subr.bf16.mxu1 %v2035_v1 }
  0x48   : >> { %1827 = vmatprep.subr.bf16.mxu0 %v2035_v1 }
  0x4a   : >> { %1748 = vmatpush3.bf16.msra.mxu1 %v1975_v33  ;;  %v1621_v33 = vld [vmem:[%s2437_s2] ss:$0 sm:$0xff] }
  0x4b   : >> { %1828 = vmatpush3.bf16.msra.mxu0 %v1976_v34  ;;  %1749 = vmatprep.subr.bf16.mxu1 %v2035_v1 }
  0x4c   : >> { %1829 = vmatprep.subr.bf16.mxu0 %v2035_v1 }
  0x4e   : >> { %1750 = vmatpush3.bf16.msra.mxu1 %v1977_v35 }
  0x4f   : >> { %1830 = vmatpush3.bf16.msra.mxu0 %v1978_v36  ;;  %1755 = vmatprep.subr.bf16.mxu1 %v2035_v1  ;;  %v1622_v36 = vld [vmem:[%s2438_s3] ss:$0 sm:$0xff] }
  0x50   : >> { %1835 = vmatprep.subr.bf16.mxu0 %v2035_v1 }
  0x51   : >> { %1752 = vmatmul.mubr.bf16.vlgmr.msra.gmra.mrb[0].mxu1 %v235_v39 }
  0x52   : >> { %1756 = vmatpush3.bf16.msra.mxu1 %v1979_v40  ;;  %1832 = vmatmul.mubr.bf16.vlgmr.msra.gmra.mrb[0].mxu0 %v775_v41  ;;  %v1226_v41 = vld [vmem:[%s2439_s4] sm:$0xf] }
  0x53   : >> { %1836 = vmatpush3.bf16.msra.mxu0 %v1980_v42  ;;  %1757 = vmatprep.subr.bf16.mxu1 %v2035_v1 }
  0x54   : >> { %1837 = vmatprep.subr.bf16.mxu0 %v2035_v1  ;;  %1771 = vmatprep.mubr.msk.bf16.mxu1 %vm2036_vm0, %v2035_v1 }
  0x55   : >> { %1851 = vmatprep.mubr.msk.bf16.mxu0 %vm2036_vm0, %v2035_v1 }
  0x56   : >> { %1758 = vmatpush3.bf16.msra.mxu1 %v1981_v43 }
  0x57   : >> { %1838 = vmatpush3.bf16.msra.mxu0 %v1982_v44  ;;  %1759 = vmatprep.subr.bf16.mxu1 %v2035_v1 }
  0x58   : >> { %1839 = vmatprep.subr.bf16.mxu0 %v2035_v1 }
  0x5a   : >> { %1760 = vmatpush3.bf16.msra.mxu1 %v1983_v45 }
  0x5b   : >> { %1840 = vmatpush3.bf16.msra.mxu0 %v1984_v46  ;;  %1761 = vmatprep.subr.bf16.mxu1 %v2035_v1 }
  0x5c   : >> { %1841 = vmatprep.subr.bf16.mxu0 %v2035_v1 }
  0x5e   : >> { %1762 = vmatpush3.bf16.msra.mxu1 %v1985_v47 }
  0x5f   : >> { %1842 = vmatpush3.bf16.msra.mxu0 %v1986_v48  ;;  %1763 = vmatprep.subr.bf16.mxu1 %v2035_v1 }
  0x60   : >> { %1843 = vmatprep.subr.bf16.mxu0 %v2035_v1 }
  0x62   : >> { %1764 = vmatpush3.bf16.msra.mxu1 %v1987_v49 }
  0x63   : >> { %1844 = vmatpush3.bf16.msra.mxu0 %v1988_v50  ;;  %1765 = vmatprep.subr.bf16.mxu1 %v2035_v1 }
  0x64   : >> { %1845 = vmatprep.subr.bf16.mxu0 %v2035_v1 }
  0x66   : >> { %1766 = vmatpush3.bf16.msra.mxu1 %v1989_v51 }
  0x67   : >> { %1846 = vmatpush3.bf16.msra.mxu0 %v1990_v52  ;;  %1767 = vmatprep.subr.bf16.mxu1 %v2035_v1 }
  0x68   : >> { %1847 = vmatprep.subr.bf16.mxu0 %v2035_v1 }
  0x6a   : >> { %1768 = vmatpush3.bf16.msra.mxu1 %v1991_v53 }
  0x6b   : >> { %1848 = vmatpush3.bf16.msra.mxu0 %v1992_v54  ;;  %1769 = vmatprep.subr.bf16.mxu1 %v2035_v1 }
  0x6c   : >> { %1849 = vmatprep.subr.bf16.mxu0 %v2035_v1 }
  0x6e   : >> { %1770 = vmatpush3.bf16.msra.mxu1 %v1993_v55 }
  0x6f   : >> { %1850 = vmatpush3.bf16.msra.mxu0 %v1994_v57  ;;  %1775 = vmatprep.subr.bf16.mxu1 %v2035_v1 }
  0x70   : >> { %1855 = vmatprep.subr.bf16.mxu0 %v2035_v1 }
  0x71   : >> { %1772 = vmatmul.mubr.bf16.vlgmr.msra.gmra.mrb[0].mxu1 %v448_v59 }
  0x72   : >> { %1776 = vmatpush3.bf16.msra.mxu1 %v1995_v60  ;;  %1852 = vmatmul.mubr.bf16.vlgmr.msra.gmra.mrb[0].mxu0 %v886_v61 }
  0x73   : >> { %1856 = vmatpush3.bf16.msra.mxu0 %v1996_v62  ;;  %1777 = vmatprep.subr.bf16.mxu1 %v2035_v1 }
  0x74   : >> { %1857 = vmatprep.subr.bf16.mxu0 %v2035_v1  ;;  %1791 = vmatprep.mubr.msk.bf16.mxu1 %vm2036_vm0, %v2035_v1 }
  0x75   : >> { %1871 = vmatprep.mubr.msk.bf16.mxu0 %vm2036_vm0, %v2035_v1 }
  0x76   : >> { %1778 = vmatpush3.bf16.msra.mxu1 %v1997_v63 }
  0x77   : >> { %1858 = vmatpush3.bf16.msra.mxu0 %v1998_v0  ;;  %1779 = vmatprep.subr.bf16.mxu1 %v2035_v1 }
  0x78   : >> { %1859 = vmatprep.subr.bf16.mxu0 %v2035_v1 }
  0x7a   : >> { %1780 = vmatpush3.bf16.msra.mxu1 %v1999_v2 }
  0x7b   : >> { %1860 = vmatpush3.bf16.msra.mxu0 %v2000_v3  ;;  %1781 = vmatprep.subr.bf16.mxu1 %v2035_v1 }
  0x7c   : >> { %1861 = vmatprep.subr.bf16.mxu0 %v2035_v1 }
  0x7e   : >> { %1782 = vmatpush3.bf16.msra.mxu1 %v2001_v4 }
  0x7f   : >> { %1862 = vmatpush3.bf16.msra.mxu0 %v2002_v5  ;;  %1783 = vmatprep.subr.bf16.mxu1 %v2035_v1 }
  0x80   : >> { %1863 = vmatprep.subr.bf16.mxu0 %v2035_v1 }
  0x82   : >> { %1784 = vmatpush3.bf16.msra.mxu1 %v2003_v6 }
  0x83   : >> { %1864 = vmatpush3.bf16.msra.mxu0 %v2004_v7  ;;  %1785 = vmatprep.subr.bf16.mxu1 %v2035_v1 }
  0x84   : >> { %1865 = vmatprep.subr.bf16.mxu0 %v2035_v1 }
  0x86   : >> { %1786 = vmatpush3.bf16.msra.mxu1 %v2005_v8 }
  0x87   : >> { %1866 = vmatpush3.bf16.msra.mxu0 %v2006_v9  ;;  %1787 = vmatprep.subr.bf16.mxu1 %v2035_v1 }
  0x88   : >> { %1867 = vmatprep.subr.bf16.mxu0 %v2035_v1 }
  0x8a   : >> { %1788 = vmatpush3.bf16.msra.mxu1 %v2007_v10 }
  0x8b   : >> { %1868 = vmatpush3.bf16.msra.mxu0 %v2008_v11  ;;  %1789 = vmatprep.subr.bf16.mxu1 %v2035_v1 }
  0x8c   : >> { %1869 = vmatprep.subr.bf16.mxu0 %v2035_v1 }
  0x8e   : >> { %1790 = vmatpush3.bf16.msra.mxu1 %v2009_v12 }
  0x8f   : >> { %1870 = vmatpush3.bf16.msra.mxu0 %v2010_v14  ;;  %1895 = vmatprep.subr.mxu1 %v2035_v1 }
  0x90   : >> { %1875 = vmatprep.subr.bf16.mxu0 %v2035_v1 }
  0x91   : >> { %1792 = vmatmul.mubr.bf16.vlgmr.msra.gmra.mrb[0].mxu1 %v559_v16 }
  0x92   : >> { %1872 = vmatmul.mubr.bf16.vlgmr.msra.gmra.mrb[0].mxu0 %v994_v17  ;;  %1897 = vmatprep.mubr.msk.f32.mxu1 %vm2036_vm0, %v2035_v1 }
  0x93   : >> { %1876 = vmatpush3.bf16.msra.mxu0 %v2011_v18  ;;  %1891 = vmatprep.mubr.msk.bf16.mxu0 %vm2036_vm0, %v2035_v1 }
  0x94   : >> { %1877 = vmatprep.subr.bf16.mxu0 %v2035_v1 }
  0x97   : >> { %1878 = vmatpush3.bf16.msra.mxu0 %v2012_v19 }
  0x98   : >> { %1879 = vmatprep.subr.bf16.mxu0 %v2035_v1 }
  0x9b   : >> { %1880 = vmatpush3.bf16.msra.mxu0 %v2013_v20 }
  0x9c   : >> { %1881 = vmatprep.subr.bf16.mxu0 %v2035_v1 }
  0x9f   : >> { %1882 = vmatpush3.bf16.msra.mxu0 %v2014_v21 }
  0xa0   : >> { %1883 = vmatprep.subr.bf16.mxu0 %v2035_v1 }
  0xa3   : >> { %1884 = vmatpush3.bf16.msra.mxu0 %v2015_v22 }
  0xa4   : >> { %1885 = vmatprep.subr.bf16.mxu0 %v2035_v1 }
  0xa7   : >> { %1886 = vmatpush3.bf16.msra.mxu0 %v2016_v23 }
  0xa8   : >> { %1887 = vmatprep.subr.bf16.mxu0 %v2035_v1 }
  0xab   : >> { %1888 = vmatpush3.bf16.msra.mxu0 %v2017_v24 }
  0xac   : >> { %1889 = vmatprep.subr.bf16.mxu0 %v2035_v1 }
  0xaf   : >> { %1890 = vmatpush3.bf16.msra.mxu0 %v2018_v25 }
  0xb2   : >> { %1892 = vmatmul.mubr.bf16.vlgmr.msra.gmra.mrb[0].mxu0 %v1102_v27 }
 0x164   : >> { %v659_v28 = vpop.f32.mrb[0].mxu1 }
 0x165   : >> { %v1793_v29 = vpop.f32.mrb[1].mxu1 }
 0x166   : >> { %v662_v30 = vpop.f32.mrb[2].mxu1 }
 0x167   : >> { %v1794_v31 = vpop.f32.mrb[3].mxu1 }
 0x185   : >> { %v1202_v32 = vpop.f32.mrb[0].mxu0 }
 0x186   : >> { %v1900_v34 = vadd.f32 %v1202_v32, %v659_v28  ;;  %v1893_v35 = vpop.f32.mrb[1].mxu0 }
 0x187   : >> { %v1205_v1 = vpop.f32.mrb[2].mxu0 }
 0x188   : >> { %v1216_v37 = vmul.f32 %v1900_v34, %v1621_v33  ;;  %v1894_v38 = vpop.f32.mrb[3].mxu0 }
 0x18a   : >> { %v1224_v39 = vadd.f32 %v1622_v36, %v1216_v37 }
 0x18c   : >> { %v1225_v40 = vmax.f32 %v1224_v39, 0.0 }
 0x18e   : >> { %1896 = vmatpush3.msk.msra.mxu1 %vm1231_vm1, %v1225_v40 }
 0x18f   : >> { %1898 = vmatmul.mubr.msk.f32.vlgmr.msra.gmra.mrb[4].mxu1 %vm1227_vm2, %v1226_v41 }
 0x25d   : > { %230 = sbr.rel (!%p228_p4) target bundleno = 16 (0x10), region = 93 }
 0x262   : >> { %v1301_v42 = vpop.f32.mrb[4].mxu1 }
 0x263   : >> { %1306 = vst [vmem:[%s1305_s20] sm:$0xf] %v1301_v42  ;;  %v1899_v43 = vpop.f32.mrb[5].mxu1 }
 0x26a   : > { %v1307_v44 = vld [vmem:[#allocation2] sm:$0xf]  ;;  %v1309_v45 = vld [vmem:[#allocation2 + $0x4] sm:$0xf] }
 0x26b   : > { %v1313_v46 = vld [vmem:[#allocation2] sm:$0xf]  ;;  %v1310_v47 = vmul.f32 0.0, %v1309_v45  ;;  %v1315_v49 = vld [vmem:[#allocation2 + $0x4] sm:$0xf] }
 0x26c   : > { %v1314_v48 = vmul.f32 0.75, %v1313_v46  ;;  %v1320_v50 = vld [vmem:[#allocation2] sm:$0xf]  ;;  %v1316_v51 = vmul.f32 0.25, %v1315_v49  ;;  %v1322_v53 = vld [vmem:[#allocation2 + $0x4] sm:$0xf] }
 0x26d   : > { %v1321_v52 = vmul.f32 0.25, %v1320_v50  ;;  %v1327_v54 = vld [vmem:[#allocation2 + $0x4] sm:$0xf]  ;;  %v1311_v55 = vadd.f32 %v1310_v47, %v1307_v44  ;;  %v1323_v56 = vmul.f32 0.75, %v1322_v53 }
 0x26e   : > { %v1328_v57 = vmul.f32 0.75, %v1327_v54  ;;  %v1329_v58 = vmul.f32 0.25, %v1327_v54  ;;  %v1317_v59 = vadd.f32 %v1316_v51, %v1314_v48 }
 0x26f   : > { %1312 = vst [vmem:[%s2083_s26] sm:$0xf] %v1311_v55  ;;  %v1324_v60 = vadd.f32 %v1323_v56, %v1321_v52 }
 0x270   : > { %v1330_v61 = vadd.f32 %v1329_v58, %v1328_v57  ;;  %1625 = vst [vmem:[%s2083_s26 + $0x4] sm:$0xf] %v1317_v59 }
 0x271   : > { %1626 = vst [vmem:[%s2083_s26 + $0x8] sm:$0xf] %v1324_v60 }
 0x272   : > { %1627 = vst [vmem:[%s2083_s26 + $0xc] sm:$0xf] %v1330_v61 }
 0x273 PF: > { %s15_s18 = sadd.s32 1, %s2029_s18  }
 0x274   : > { %p12_p5 = scmp.ge.s32.totalorder %s15_s18, 4  }
 0x276   :  { %14 = sbr.rel (!%p12_p5) target bundleno = 1 (0x1), region = 104 }

// kernel: _lambda_.33
= control target key start
LH: loop header
LB: loop body
LE: loop exit
PB: predicated region body
PF: predicated region fallthrough
CT: control target
= control target key end

     0   :  { %s2284_s18 = smov 0   ;;  %s2682_s0 = inlined_call_operand.vmem [shape: f32[2,10,10,128], index: 0, kind: input, shape index: {}]   ;;  %s2683_s1 = inlined_call_operand.vmem [shape: bf16[9,128,128], index: 1, kind: input, shape index: {}]   ;;  %s2684_s2 = inlined_call_operand.vmem [shape: f32[1,128], index: 2, kind: input, shape index: {}]   ;;  %s2685_s3 = inlined_call_operand.vmem [shape: f32[1,128], index: 3, kind: input, shape index: {}]   ;;  %s2686_s4 = inlined_call_operand.vmem [shape: f32[16,8], index: 4, kind: input, shape index: {}]   ;;  %s2687_s5 = inlined_call_operand.vmem [shape: f32[2,16,16,128], index: 5, kind: output, shape index: {}]  }
   0x1 LB: > { %s1593_s19 = sadd.s32 4294967295, %s2246_s18   ;;  %p1597_p0 = scmp.ge.s32.totalorder %s2246_s18, 1  ;;  %s2246_s18 = sphi %s2284_s18, %s15_s18  }
   0x2   : > { %p187_p1 = scmp.lt.s32.totalorder %s2246_s18, 3 }
   0x4   : > { %p188_p2 = pnand %p1597_p0, %p187_p1 }
   0x5   : > { %p215_p3 = scmp.lt.s32.totalorder (!%p188_p2), %s1593_s19, 1  ;;  %s2302_s28 = smov (!%p188_p2), 0  }
   0x6   : > { %191 = sbr.rel (%p188_p2) target bundleno = 643 (0x283), region = 40 }
   0xd   : > { %s2689_s19 = smov (!%p215_p3, %s1593_s19), 1 }
   0xe   : > { %s2145_s20 = smul.u32 160, %s2689_s19  ;;  %s1846_s21 = sshll.u32 %s2689_s19, 8 }
   0xf   : > { %s2295_s24 = scalar_lea.vmem %s2687_s5, %s1846_s21 }
  0x10   : > { %s2300_s27 = scalar_lea.vmem %s2682_s0, %s2145_s20 }
  0x11 LB: >> { %v2164_v0 = vld [vmem:[%s2683_s1 + $0x40] sm:$0xff]   ;;  %v2252_v1 = vmov 0.0   ;;  %v2166_v3 = vld [vmem:[%s2683_s1 + $0x48] sm:$0xff]   ;;  %vm2253_vm0 = vmmov 0   ;;  %v2168_v5 = vld [vmem:[%s2683_s1 + $0x50] sm:$0xff]   ;;  %s1601_s7 = sshll.u32 %s2250_s28, 4  ;;  %s2250_s28 = sphi %s2302_s28, %s231_s28  }
  0x12   : >> { %1931 = vmatprep.subr.bf16.mxu1 %v2252_v1  ;;  %2011 = vmatprep.subr.bf16.mxu0 %v2252_v1  ;;  %v2165_v2 = vld [vmem:[%s2683_s1 + $0x100] sm:$0xff]   ;;  %v2167_v4 = vld [vmem:[%s2683_s1 + $0x108] sm:$0xff]   ;;  %v2169_v6 = vld [vmem:[%s2683_s1 + $0x110] sm:$0xff]   ;;  %s2370_s12 = scalar_lea.vmem %s2300_s27, %s1601_s7  ;;  %vm1228_vm1 = vcmask 64512   ;;  %s1310_s23 = scalar_lea.vmem [#allocation2], %s1601_s7 }
  0x13   : >> { %1932 = vmatpush3.bf16.msra.mxu1 %v2164_v0  ;;  %1947 = vmatprep.mubr.msk.bf16.mxu1 %vm2253_vm0, %v2252_v1  ;;  %v2170_v7 = vld [vmem:[%s2683_s1 + $0x58] sm:$0xff]   ;;  %v2172_v9 = vld [vmem:[%s2683_s1 + $0x60] sm:$0xff]   ;;  %v2174_v11 = vld [vmem:[%s2683_s1 + $0x68] sm:$0xff]   ;;  %s231_s28 = sadd.s32 1, %s2250_s28  }
  0x14   : >> { %2012 = vmatpush3.bf16.msra.mxu0 %v2165_v2  ;;  %1933 = vmatprep.subr.bf16.mxu1 %v2252_v1  ;;  %v2171_v8 = vld [vmem:[%s2683_s1 + $0x118] sm:$0xff]   ;;  %v2173_v10 = vld [vmem:[%s2683_s1 + $0x120] sm:$0xff]   ;;  %v2175_v12 = vld [vmem:[%s2683_s1 + $0x128] sm:$0xff]   ;;  %p228_p4 = scmp.ge.s32.totalorder %s231_s28, 8  }
  0x15   : >> { %2013 = vmatprep.subr.bf16.mxu0 %v2252_v1  ;;  %2027 = vmatprep.mubr.msk.bf16.mxu0 %vm2253_vm0, %v2252_v1  ;;  %v2176_v13 = vld [vmem:[%s2683_s1 + $0x70] sm:$0xff]   ;;  %v2178_v15 = vld [vmem:[%s2683_s1 + $0x78] sm:$0xff]   ;;  %v252_v17 = vld [vmem:[%s2370_s12 + $0x1] sm:$0xff] }
  0x16   : >> { %v2177_v14 = vld [vmem:[%s2683_s1 + $0x130] sm:$0xff]   ;;  %v2179_v16 = vld [vmem:[%s2683_s1 + $0x138] sm:$0xff]   ;;  %v253_v19 = vpack.c.bf16 %v252_v17, %v252_v17  ;;  %v2180_v20 = vld [vmem:[%s2683_s1] sm:$0xff]  }
  0x17   : >> { %1934 = vmatpush3.bf16.msra.mxu1 %v2166_v3  ;;  %v1684_v18 = vld [vmem:[%s2370_s12 + $0x11] sm:$0xff]  ;;  %v2181_v22 = vld [vmem:[%s2683_s1 + $0x140] sm:$0xff]   ;;  %v2182_v23 = vld [vmem:[%s2683_s1 + $0x8] sm:$0xff]  }
  0x18   : >> { %2014 = vmatpush3.bf16.msra.mxu0 %v2167_v4  ;;  %1935 = vmatprep.subr.bf16.mxu1 %v2252_v1  ;;  %v667_v21 = vpack.c.bf16 %v1684_v18, %v1684_v18  ;;  %v2183_v24 = vld [vmem:[%s2683_s1 + $0x148] sm:$0xff]   ;;  %v2184_v25 = vld [vmem:[%s2683_s1 + $0x10] sm:$0xff]   ;;  %v2186_v27 = vld [vmem:[%s2683_s1 + $0x18] sm:$0xff]  }
  0x19   : >> { %2015 = vmatprep.subr.bf16.mxu0 %v2252_v1  ;;  %v2185_v26 = vld [vmem:[%s2683_s1 + $0x150] sm:$0xff]   ;;  %v2187_v28 = vld [vmem:[%s2683_s1 + $0x158] sm:$0xff]   ;;  %v2188_v29 = vld [vmem:[%s2683_s1 + $0x20] sm:$0xff]  }
  0x1a   : >> { %v2189_v30 = vld [vmem:[%s2683_s1 + $0x160] sm:$0xff]   ;;  %v2190_v31 = vld [vmem:[%s2683_s1 + $0x28] sm:$0xff]   ;;  %v2192_v33 = vld [vmem:[%s2683_s1 + $0x30] sm:$0xff]  }
  0x1b   : >> { %1936 = vmatpush3.bf16.msra.mxu1 %v2168_v5  ;;  %v2191_v32 = vld [vmem:[%s2683_s1 + $0x168] sm:$0xff]   ;;  %v2193_v34 = vld [vmem:[%s2683_s1 + $0x170] sm:$0xff]   ;;  %v2194_v35 = vld [vmem:[%s2683_s1 + $0x38] sm:$0xff]  }
  0x1c   : >> { %2016 = vmatpush3.bf16.msra.mxu0 %v2169_v6  ;;  %1937 = vmatprep.subr.bf16.mxu1 %v2252_v1  ;;  %v2195_v36 = vld [vmem:[%s2683_s1 + $0x178] sm:$0xff]   ;;  %v234_v37 = vld [vmem:[%s2370_s12] sm:$0xff]  ;;  %v2198_v43 = vld [vmem:[%s2683_s1 + $0x88] sm:$0xff]  }
  0x1d   : >> { %2017 = vmatprep.subr.bf16.mxu0 %v2252_v1  ;;  %v1709_v38 = vld [vmem:[%s2370_s12 + $0x12] sm:$0xff]  ;;  %v235_v39 = vpack.c.bf16 %v234_v37, %v234_v37  ;;  %v2196_v40 = vld [vmem:[%s2683_s1 + $0x80] sm:$0xff]   ;;  %v2199_v44 = vld [vmem:[%s2683_s1 + $0x188] sm:$0xff]  }
  0x1e   : >> { %v775_v41 = vpack.c.bf16 %v1709_v38, %v1709_v38  ;;  %v2197_v42 = vld [vmem:[%s2683_s1 + $0x180] sm:$0xff]   ;;  %v2200_v45 = vld [vmem:[%s2683_s1 + $0x90] sm:$0xff]   ;;  %v2202_v47 = vld [vmem:[%s2683_s1 + $0x98] sm:$0xff]  }
  0x1f   : >> { %1938 = vmatpush3.bf16.msra.mxu1 %v2170_v7  ;;  %v2201_v46 = vld [vmem:[%s2683_s1 + $0x190] sm:$0xff]   ;;  %v2203_v48 = vld [vmem:[%s2683_s1 + $0x198] sm:$0xff]   ;;  %v2204_v49 = vld [vmem:[%s2683_s1 + $0xa0] sm:$0xff]  }
  0x20   : >> { %2018 = vmatpush3.bf16.msra.mxu0 %v2171_v8  ;;  %1939 = vmatprep.subr.bf16.mxu1 %v2252_v1  ;;  %v2205_v50 = vld [vmem:[%s2683_s1 + $0x1a0] sm:$0xff]   ;;  %v2206_v51 = vld [vmem:[%s2683_s1 + $0xa8] sm:$0xff]   ;;  %v2208_v53 = vld [vmem:[%s2683_s1 + $0xb0] sm:$0xff]  }
  0x21   : >> { %2019 = vmatprep.subr.bf16.mxu0 %v2252_v1  ;;  %v2207_v52 = vld [vmem:[%s2683_s1 + $0x1a8] sm:$0xff]   ;;  %v2209_v54 = vld [vmem:[%s2683_s1 + $0x1b0] sm:$0xff]   ;;  %v2210_v55 = vld [vmem:[%s2683_s1 + $0xb8] sm:$0xff]  }
  0x22   : >> { %v447_v56 = vld [vmem:[%s2370_s12 + $0x2] sm:$0xff]  ;;  %v2211_v57 = vld [vmem:[%s2683_s1 + $0x1b8] sm:$0xff]   ;;  %v2216_v2 = vld [vmem:[%s2683_s1 + $0xd0] sm:$0xff]  }
  0x23   : >> { %1940 = vmatpush3.bf16.msra.mxu1 %v2172_v9  ;;  %v1735_v58 = vld [vmem:[%s2370_s12 + $0x20] sm:$0xff]  ;;  %v448_v59 = vpack.c.bf16 %v447_v56, %v447_v56  ;;  %v2214_v63 = vld [vmem:[%s2683_s1 + $0xc8] sm:$0xff]   ;;  %v2217_v3 = vld [vmem:[%s2683_s1 + $0x1d0] sm:$0xff]  }
  0x24   : >> { %2020 = vmatpush3.bf16.msra.mxu0 %v2173_v10  ;;  %1941 = vmatprep.subr.bf16.mxu1 %v2252_v1  ;;  %v2212_v60 = vld [vmem:[%s2683_s1 + $0xc0] sm:$0xff]   ;;  %v886_v61 = vpack.c.bf16 %v1735_v58, %v1735_v58  ;;  %v2215_v0 = vld [vmem:[%s2683_s1 + $0x1c8] sm:$0xff]   ;;  %v2218_v4 = vld [vmem:[%s2683_s1 + $0xd8] sm:$0xff]  }
  0x25   : >> { %2021 = vmatprep.subr.bf16.mxu0 %v2252_v1  ;;  %v2213_v62 = vld [vmem:[%s2683_s1 + $0x1c0] sm:$0xff]   ;;  %v2219_v5 = vld [vmem:[%s2683_s1 + $0x1d8] sm:$0xff]   ;;  %v2222_v8 = vld [vmem:[%s2683_s1 + $0xe8] sm:$0xff]  }
  0x26   : >> { %v2220_v6 = vld [vmem:[%s2683_s1 + $0xe0] sm:$0xff]   ;;  %v2223_v9 = vld [vmem:[%s2683_s1 + $0x1e8] sm:$0xff]   ;;  %v2224_v10 = vld [vmem:[%s2683_s1 + $0xf0] sm:$0xff]  }
  0x27   : >> { %1942 = vmatpush3.bf16.msra.mxu1 %v2174_v11  ;;  %v2221_v7 = vld [vmem:[%s2683_s1 + $0x1e0] sm:$0xff]   ;;  %v2225_v11 = vld [vmem:[%s2683_s1 + $0x1f0] sm:$0xff]  }
  0x28   : >> { %2022 = vmatpush3.bf16.msra.mxu0 %v2175_v12  ;;  %1943 = vmatprep.subr.bf16.mxu1 %v2252_v1  ;;  %v2226_v12 = vld [vmem:[%s2683_s1 + $0xf8] sm:$0xff]   ;;  %v2228_v18 = vld [vmem:[%s2683_s1 + $0x200] sm:$0xff]  }
  0x29   : >> { %2023 = vmatprep.subr.bf16.mxu0 %v2252_v1  ;;  %v1811_v37 = vld [vmem:[%s2685_s3] ss:$0 sm:$0xff] }
  0x2b   : >> { %1944 = vmatpush3.bf16.msra.mxu1 %v2176_v13  ;;  %v1659_v13 = vld [vmem:[%s2370_s12 + $0x10] sm:$0xff] }
  0x2c   : >> { %2024 = vmatpush3.bf16.msra.mxu0 %v2177_v14  ;;  %1945 = vmatprep.subr.bf16.mxu1 %v2252_v1  ;;  %v2227_v14 = vld [vmem:[%s2683_s1 + $0x1f8] sm:$0xff]  }
  0x2d   : >> { %2025 = vmatprep.subr.bf16.mxu0 %v2252_v1 }
  0x2f   : >> { %1946 = vmatpush3.bf16.msra.mxu1 %v2178_v15  ;;  %v1760_v15 = vld [vmem:[%s2370_s12 + $0x21] sm:$0xff] }
  0x30   : >> { %2026 = vmatpush3.bf16.msra.mxu0 %v2179_v16  ;;  %1951 = vmatprep.subr.bf16.mxu1 %v2252_v1  ;;  %v559_v16 = vpack.c.bf16 %v1659_v13, %v1659_v13  ;;  %v994_v17 = vpack.c.bf16 %v1760_v15, %v1760_v15 }
  0x31   : >> { %2031 = vmatprep.subr.bf16.mxu0 %v2252_v1 }
  0x32   : >> { %1948 = vmatmul.mubr.bf16.vlgmr.msra.gmra.mrb[0].mxu1 %v253_v19  ;;  %v2229_v19 = vld [vmem:[%s2683_s1 + $0x208] sm:$0xff]  }
  0x33   : >> { %1952 = vmatpush3.bf16.msra.mxu1 %v2180_v20  ;;  %2028 = vmatmul.mubr.bf16.vlgmr.msra.gmra.mrb[0].mxu0 %v667_v21  ;;  %v2230_v20 = vld [vmem:[%s2683_s1 + $0x210] sm:$0xff]   ;;  %v2231_v21 = vld [vmem:[%s2683_s1 + $0x218] sm:$0xff]  }
  0x34   : >> { %2032 = vmatpush3.bf16.msra.mxu0 %v2181_v22  ;;  %1953 = vmatprep.subr.bf16.mxu1 %v2252_v1  ;;  %v2232_v22 = vld [vmem:[%s2683_s1 + $0x220] sm:$0xff]  }
  0x35   : >> { %2033 = vmatprep.subr.bf16.mxu0 %v2252_v1  ;;  %1967 = vmatprep.mubr.msk.bf16.mxu1 %vm2253_vm0, %v2252_v1 }
  0x36   : >> { %2047 = vmatprep.mubr.msk.bf16.mxu0 %vm2253_vm0, %v2252_v1 }
  0x37   : >> { %1954 = vmatpush3.bf16.msra.mxu1 %v2182_v23  ;;  %v2233_v23 = vld [vmem:[%s2683_s1 + $0x228] sm:$0xff]  }
  0x38   : >> { %2034 = vmatpush3.bf16.msra.mxu0 %v2183_v24  ;;  %1955 = vmatprep.subr.bf16.mxu1 %v2252_v1  ;;  %v2234_v24 = vld [vmem:[%s2683_s1 + $0x230] sm:$0xff]  }
  0x39   : >> { %2035 = vmatprep.subr.bf16.mxu0 %v2252_v1 }
  0x3b   : >> { %1956 = vmatpush3.bf16.msra.mxu1 %v2184_v25  ;;  %v2235_v25 = vld [vmem:[%s2683_s1 + $0x238] sm:$0xff]  }
  0x3c   : >> { %2036 = vmatpush3.bf16.msra.mxu0 %v2185_v26  ;;  %1957 = vmatprep.subr.bf16.mxu1 %v2252_v1  ;;  %v1785_v26 = vld [vmem:[%s2370_s12 + $0x22] sm:$0xff] }
  0x3d   : >> { %2037 = vmatprep.subr.bf16.mxu0 %v2252_v1 }
  0x3f   : >> { %1958 = vmatpush3.bf16.msra.mxu1 %v2186_v27  ;;  %v1102_v27 = vpack.c.bf16 %v1785_v26, %v1785_v26 }
  0x40   : >> { %2038 = vmatpush3.bf16.msra.mxu0 %v2187_v28  ;;  %1959 = vmatprep.subr.bf16.mxu1 %v2252_v1  ;;  %v1226_v28 = vld [vmem:[%s2686_s4] sm:$0xff] }
  0x41   : >> { %2039 = vmatprep.subr.bf16.mxu0 %v2252_v1 }
  0x43   : >> { %1960 = vmatpush3.bf16.msra.mxu1 %v2188_v29 }
  0x44   : >> { %2040 = vmatpush3.bf16.msra.mxu0 %v2189_v30  ;;  %1961 = vmatprep.subr.bf16.mxu1 %v2252_v1 }
  0x45   : >> { %2041 = vmatprep.subr.bf16.mxu0 %v2252_v1 }
  0x47   : >> { %1962 = vmatpush3.bf16.msra.mxu1 %v2190_v31 }
  0x48   : >> { %2042 = vmatpush3.bf16.msra.mxu0 %v2191_v32  ;;  %1963 = vmatprep.subr.bf16.mxu1 %v2252_v1 }
  0x49   : >> { %2043 = vmatprep.subr.bf16.mxu0 %v2252_v1 }
  0x4b   : >> { %1964 = vmatpush3.bf16.msra.mxu1 %v2192_v33 }
  0x4c   : >> { %2044 = vmatpush3.bf16.msra.mxu0 %v2193_v34  ;;  %1965 = vmatprep.subr.bf16.mxu1 %v2252_v1 }
  0x4d   : >> { %2045 = vmatprep.subr.bf16.mxu0 %v2252_v1 }
  0x4f   : >> { %1966 = vmatpush3.bf16.msra.mxu1 %v2194_v35 }
  0x50   : >> { %2046 = vmatpush3.bf16.msra.mxu0 %v2195_v36  ;;  %1971 = vmatprep.subr.bf16.mxu1 %v2252_v1 }
  0x51   : >> { %2051 = vmatprep.subr.bf16.mxu0 %v2252_v1 }
  0x52   : >> { %1968 = vmatmul.mubr.bf16.vlgmr.msra.gmra.mrb[0].mxu1 %v235_v39 }
  0x53   : >> { %1972 = vmatpush3.bf16.msra.mxu1 %v2196_v40  ;;  %2048 = vmatmul.mubr.bf16.vlgmr.msra.gmra.mrb[0].mxu0 %v775_v41 }
  0x54   : >> { %2052 = vmatpush3.bf16.msra.mxu0 %v2197_v42  ;;  %1973 = vmatprep.subr.bf16.mxu1 %v2252_v1  ;;  %v1227_v42 = vld [vmem:[%s2686_s4 + $0x8] sm:$0xff] }
  0x55   : >> { %2053 = vmatprep.subr.bf16.mxu0 %v2252_v1  ;;  %1987 = vmatprep.mubr.msk.bf16.mxu1 %vm2253_vm0, %v2252_v1 }
  0x56   : >> { %2067 = vmatprep.mubr.msk.bf16.mxu0 %vm2253_vm0, %v2252_v1 }
  0x57   : >> { %1974 = vmatpush3.bf16.msra.mxu1 %v2198_v43 }
  0x58   : >> { %2054 = vmatpush3.bf16.msra.mxu0 %v2199_v44  ;;  %1975 = vmatprep.subr.bf16.mxu1 %v2252_v1 }
  0x59   : >> { %2055 = vmatprep.subr.bf16.mxu0 %v2252_v1 }
  0x5b   : >> { %1976 = vmatpush3.bf16.msra.mxu1 %v2200_v45 }
  0x5c   : >> { %2056 = vmatpush3.bf16.msra.mxu0 %v2201_v46  ;;  %1977 = vmatprep.subr.bf16.mxu1 %v2252_v1 }
  0x5d   : >> { %2057 = vmatprep.subr.bf16.mxu0 %v2252_v1 }
  0x5f   : >> { %1978 = vmatpush3.bf16.msra.mxu1 %v2202_v47 }
  0x60   : >> { %2058 = vmatpush3.bf16.msra.mxu0 %v2203_v48  ;;  %1979 = vmatprep.subr.bf16.mxu1 %v2252_v1 }
  0x61   : >> { %2059 = vmatprep.subr.bf16.mxu0 %v2252_v1 }
  0x63   : >> { %1980 = vmatpush3.bf16.msra.mxu1 %v2204_v49 }
  0x64   : >> { %2060 = vmatpush3.bf16.msra.mxu0 %v2205_v50  ;;  %1981 = vmatprep.subr.bf16.mxu1 %v2252_v1 }
  0x65   : >> { %2061 = vmatprep.subr.bf16.mxu0 %v2252_v1 }
  0x67   : >> { %1982 = vmatpush3.bf16.msra.mxu1 %v2206_v51 }
  0x68   : >> { %2062 = vmatpush3.bf16.msra.mxu0 %v2207_v52  ;;  %1983 = vmatprep.subr.bf16.mxu1 %v2252_v1 }
  0x69   : >> { %2063 = vmatprep.subr.bf16.mxu0 %v2252_v1 }
  0x6b   : >> { %1984 = vmatpush3.bf16.msra.mxu1 %v2208_v53 }
  0x6c   : >> { %2064 = vmatpush3.bf16.msra.mxu0 %v2209_v54  ;;  %1985 = vmatprep.subr.bf16.mxu1 %v2252_v1 }
  0x6d   : >> { %2065 = vmatprep.subr.bf16.mxu0 %v2252_v1 }
  0x6f   : >> { %1986 = vmatpush3.bf16.msra.mxu1 %v2210_v55 }
  0x70   : >> { %2066 = vmatpush3.bf16.msra.mxu0 %v2211_v57  ;;  %1991 = vmatprep.subr.bf16.mxu1 %v2252_v1 }
  0x71   : >> { %2071 = vmatprep.subr.bf16.mxu0 %v2252_v1 }
  0x72   : >> { %1988 = vmatmul.mubr.bf16.vlgmr.msra.gmra.mrb[0].mxu1 %v448_v59 }
  0x73   : >> { %1992 = vmatpush3.bf16.msra.mxu1 %v2212_v60  ;;  %2068 = vmatmul.mubr.bf16.vlgmr.msra.gmra.mrb[0].mxu0 %v886_v61 }
  0x74   : >> { %2072 = vmatpush3.bf16.msra.mxu0 %v2213_v62  ;;  %1993 = vmatprep.subr.bf16.mxu1 %v2252_v1 }
  0x75   : >> { %2073 = vmatprep.subr.bf16.mxu0 %v2252_v1  ;;  %2007 = vmatprep.mubr.msk.bf16.mxu1 %vm2253_vm0, %v2252_v1 }
  0x76   : >> { %2087 = vmatprep.mubr.msk.bf16.mxu0 %vm2253_vm0, %v2252_v1 }
  0x77   : >> { %1994 = vmatpush3.bf16.msra.mxu1 %v2214_v63 }
  0x78   : >> { %2074 = vmatpush3.bf16.msra.mxu0 %v2215_v0  ;;  %1995 = vmatprep.subr.bf16.mxu1 %v2252_v1 }
  0x79   : >> { %2075 = vmatprep.subr.bf16.mxu0 %v2252_v1 }
  0x7b   : >> { %1996 = vmatpush3.bf16.msra.mxu1 %v2216_v2 }
  0x7c   : >> { %2076 = vmatpush3.bf16.msra.mxu0 %v2217_v3  ;;  %1997 = vmatprep.subr.bf16.mxu1 %v2252_v1 }
  0x7d   : >> { %2077 = vmatprep.subr.bf16.mxu0 %v2252_v1 }
  0x7f   : >> { %1998 = vmatpush3.bf16.msra.mxu1 %v2218_v4 }
  0x80   : >> { %2078 = vmatpush3.bf16.msra.mxu0 %v2219_v5  ;;  %1999 = vmatprep.subr.bf16.mxu1 %v2252_v1 }
  0x81   : >> { %2079 = vmatprep.subr.bf16.mxu0 %v2252_v1 }
  0x83   : >> { %2000 = vmatpush3.bf16.msra.mxu1 %v2220_v6 }
  0x84   : >> { %2080 = vmatpush3.bf16.msra.mxu0 %v2221_v7  ;;  %2001 = vmatprep.subr.bf16.mxu1 %v2252_v1 }
  0x85   : >> { %2081 = vmatprep.subr.bf16.mxu0 %v2252_v1 }
  0x87   : >> { %2002 = vmatpush3.bf16.msra.mxu1 %v2222_v8 }
  0x88   : >> { %2082 = vmatpush3.bf16.msra.mxu0 %v2223_v9  ;;  %2003 = vmatprep.subr.bf16.mxu1 %v2252_v1 }
  0x89   : >> { %2083 = vmatprep.subr.bf16.mxu0 %v2252_v1 }
  0x8b   : >> { %2004 = vmatpush3.bf16.msra.mxu1 %v2224_v10 }
  0x8c   : >> { %2084 = vmatpush3.bf16.msra.mxu0 %v2225_v11  ;;  %2005 = vmatprep.subr.bf16.mxu1 %v2252_v1 }
  0x8d   : >> { %2085 = vmatprep.subr.bf16.mxu0 %v2252_v1 }
  0x8f   : >> { %2006 = vmatpush3.bf16.msra.mxu1 %v2226_v12 }
  0x90   : >> { %2086 = vmatpush3.bf16.msra.mxu0 %v2227_v14 }
  0x91   : >> { %2091 = vmatprep.subr.bf16.mxu0 %v2252_v1 }
  0x92   : >> { %2008 = vmatmul.mubr.bf16.vlgmr.msra.gmra.mrb[0].mxu1 %v559_v16 }
  0x93   : >> { %2088 = vmatmul.mubr.bf16.vlgmr.msra.gmra.mrb[0].mxu0 %v994_v17  ;;  %2113 = vmatprep.mubr.msk.f32.mxu1 %vm1228_vm1, %v1226_v28 }
  0x94   : >> { %2092 = vmatpush3.bf16.msra.mxu0 %v2228_v18  ;;  %2107 = vmatprep.mubr.msk.bf16.mxu0 %vm2253_vm0, %v2252_v1 }
  0x95   : >> { %2093 = vmatprep.subr.bf16.mxu0 %v2252_v1 }
  0x98   : >> { %2094 = vmatpush3.bf16.msra.mxu0 %v2229_v19 }
  0x99   : >> { %2095 = vmatprep.subr.bf16.mxu0 %v2252_v1 }
  0x9c   : >> { %2096 = vmatpush3.bf16.msra.mxu0 %v2230_v20 }
  0x9d   : >> { %2097 = vmatprep.subr.bf16.mxu0 %v2252_v1 }
  0xa0   : >> { %2098 = vmatpush3.bf16.msra.mxu0 %v2231_v21 }
  0xa1   : >> { %2099 = vmatprep.subr.bf16.mxu0 %v2252_v1 }
  0xa4   : >> { %2100 = vmatpush3.bf16.msra.mxu0 %v2232_v22 }
  0xa5   : >> { %2101 = vmatprep.subr.bf16.mxu0 %v2252_v1 }
  0xa8   : >> { %2102 = vmatpush3.bf16.msra.mxu0 %v2233_v23 }
  0xa9   : >> { %2103 = vmatprep.subr.bf16.mxu0 %v2252_v1 }
  0xac   : >> { %2104 = vmatpush3.bf16.msra.mxu0 %v2234_v24 }
  0xad   : >> { %2105 = vmatprep.subr.bf16.mxu0 %v2252_v1  ;;  %v1810_v1 = vld [vmem:[%s2684_s2] ss:$0 sm:$0xff] }
  0xb0   : >> { %2106 = vmatpush3.bf16.msra.mxu0 %v2235_v25 }
  0xb3   : >> { %2108 = vmatmul.mubr.bf16.vlgmr.msra.gmra.mrb[0].mxu0 %v1102_v27 }
 0x165   : >> { %v659_v29 = vpop.f32.mrb[0].mxu1 }
 0x166   : >> { %v2009_v30 = vpop.f32.mrb[1].mxu1 }
 0x167   : >> { %v662_v31 = vpop.f32.mrb[2].mxu1 }
 0x168   : >> { %v2010_v32 = vpop.f32.mrb[3].mxu1 }
 0x186   : >> { %v1202_v33 = vpop.f32.mrb[0].mxu0 }
 0x187   : >> { %v2116_v34 = vadd.f32 %v1202_v33, %v659_v29  ;;  %v2109_v35 = vpop.f32.mrb[1].mxu0 }
 0x188   : >> { %v1205_v36 = vpop.f32.mrb[2].mxu0 }
 0x189   : >> { %v1216_v38 = vmul.f32 %v2116_v34, %v1810_v1  ;;  %v2110_v39 = vpop.f32.mrb[3].mxu0 }
 0x18b   : >> { %v1224_v40 = vadd.f32 %v1811_v37, %v1216_v38 }
 0x18d   : >> { %v1225_v41 = vmax.f32 %v1224_v40, 0.0 }
 0x18f   : >> { %2111 = vmatprep.subr.mxu1 %v1225_v41 }
 0x190   : >> { %2112 = vmatpush3.msra.mxu1 %v1225_v41 }
 0x191   : >> { %2114 = vmatmul.mubr.msk.f32.vlgmr.msra.gmra.mrb[4].mxu1 %vm1228_vm1, %v1227_v42 }
 0x260   : > { %230 = sbr.rel (!%p228_p4) target bundleno = 17 (0x11), region = 111 }
 0x264   : >> { %v2115_v43 = vpop.f32.mrb[4].mxu1 }
 0x265   : >> { %1312 = vst [vmem:[%s1310_s23 + $0x8] sm:$0xff] %v2115_v43  ;;  %v1301_v44 = vpop.f32.mrb[5].mxu1 }
 0x266   : >> { %1311 = vst [vmem:[%s1310_s23] sm:$0xff] %v1301_v44 }
 0x26d   : > { %v1313_v45 = vld [vmem:[#allocation2] sm:$0xff]  ;;  %v1316_v46 = vld [vmem:[#allocation2 + $0x10] sm:$0xff]  ;;  %v1314_v47 = vld [vmem:[#allocation2 + $0x8] sm:$0xff] }
 0x26e   : > { %v1318_v48 = vmul.f32 0.0, %v1316_v46  ;;  %v1317_v49 = vld [vmem:[#allocation2 + $0x18] sm:$0xff]  ;;  %v1326_v50 = vmul.f32 0.75, %v1313_v45  ;;  %v1330_v51 = vmul.f32 0.25, %v1316_v46  ;;  %v1327_v52 = vmul.f32 0.75, %v1314_v47  ;;  %v1355_v53 = vld [vmem:[#allocation2 + $0x20] sm:$0xff] }
 0x26f   : > { %v1319_v54 = vmul.f32 0.0, %v1317_v49  ;;  %v1331_v55 = vmul.f32 0.25, %v1317_v49  ;;  %v1339_v56 = vmul.f32 0.25, %v1313_v45  ;;  %v1343_v57 = vmul.f32 0.75, %v1316_v46  ;;  %v1356_v58 = vld [vmem:[#allocation2 + $0x28] sm:$0xff]  ;;  %v1382_v63 = vld [vmem:[#allocation2 + $0x30] sm:$0xff] }
 0x270   : > { %v1320_v59 = vadd.f32 %v1318_v48, %v1313_v45  ;;  %v1332_v60 = vadd.f32 %v1330_v51, %v1326_v50  ;;  %v1340_v61 = vmul.f32 0.25, %v1314_v47  ;;  %v1344_v62 = vmul.f32 0.75, %v1317_v49  ;;  %v1383_v0 = vld [vmem:[#allocation2 + $0x38] sm:$0xff]  ;;  %v1409_v10 = vld [vmem:[#allocation2 + $0x40] sm:$0xff]  ;;  %v1410_v15 = vld [vmem:[#allocation2 + $0x48] sm:$0xff] }
 0x271   : > { %v1321_v2 = vadd.f32 %v1319_v54, %v1314_v47  ;;  %v1333_v3 = vadd.f32 %v1331_v55, %v1327_v52  ;;  %v1345_v4 = vadd.f32 %v1343_v57, %v1339_v56  ;;  %v1357_v5 = vmul.f32 0.25, %v1355_v53  ;;  %v1436_v20 = vld [vmem:[#allocation2 + $0x50] sm:$0xff]  ;;  %v1437_v21 = vld [vmem:[#allocation2 + $0x58] sm:$0xff]  ;;  %v1463_v30 = vld [vmem:[#allocation2 + $0x60] sm:$0xff] }
 0x272   : > { %1322 = vst [vmem:[%s2295_s24] sm:$0xff] %v1320_v59  ;;  %1814 = vst [vmem:[%s2295_s24 + $0x10] sm:$0xff] %v1332_v60  ;;  %v1346_v6 = vadd.f32 %v1344_v62, %v1340_v61  ;;  %v1358_v7 = vmul.f32 0.25, %v1356_v58  ;;  %v1370_v8 = vmul.f32 0.75, %v1355_v53  ;;  %v1371_v9 = vmul.f32 0.75, %v1356_v58  ;;  %v1464_v34 = vld [vmem:[#allocation2 + $0x68] sm:$0xff]  ;;  %v1490_v39 = vld [vmem:[#allocation2 + $0x70] sm:$0xff] }
 0x273   : > { %1323 = vst [vmem:[%s2295_s24 + $0x8] sm:$0xff] %v1321_v2  ;;  %1815 = vst [vmem:[%s2295_s24 + $0x18] sm:$0xff] %v1333_v3  ;;  %v1359_v11 = vadd.f32 %v1357_v5, %v1343_v57  ;;  %v1384_v12 = vmul.f32 0.25, %v1382_v63  ;;  %v1385_v13 = vmul.f32 0.25, %v1383_v0  ;;  %v1397_v14 = vmul.f32 0.75, %v1382_v63  ;;  %v1491_v40 = vld [vmem:[#allocation2 + $0x78] sm:$0xff] }
 0x274   : > { %1816 = vst [vmem:[%s2295_s24 + $0x20] sm:$0xff] %v1345_v4  ;;  %1817 = vst [vmem:[%s2295_s24 + $0x28] sm:$0xff] %v1346_v6  ;;  %v1360_v16 = vadd.f32 %v1358_v7, %v1344_v62  ;;  %v1372_v17 = vadd.f32 %v1370_v8, %v1330_v51  ;;  %v1373_v18 = vadd.f32 %v1371_v9, %v1331_v55  ;;  %v1398_v19 = vmul.f32 0.75, %v1383_v0 }
 0x275   : > { %1818 = vst [vmem:[%s2295_s24 + $0x30] sm:$0xff] %v1359_v11  ;;  %v1386_v22 = vadd.f32 %v1384_v12, %v1370_v8  ;;  %v1387_v23 = vadd.f32 %v1385_v13, %v1371_v9  ;;  %v1399_v24 = vadd.f32 %v1397_v14, %v1357_v5  ;;  %v1411_v25 = vmul.f32 0.25, %v1409_v10 }
 0x276   : > { %1819 = vst [vmem:[%s2295_s24 + $0x38] sm:$0xff] %v1360_v16  ;;  %1820 = vst [vmem:[%s2295_s24 + $0x40] sm:$0xff] %v1372_v17  ;;  %v1400_v26 = vadd.f32 %v1398_v19, %v1358_v7  ;;  %v1412_v27 = vmul.f32 0.25, %v1410_v15  ;;  %v1424_v28 = vmul.f32 0.75, %v1409_v10  ;;  %v1425_v29 = vmul.f32 0.75, %v1410_v15 }
 0x277   : > { %1821 = vst [vmem:[%s2295_s24 + $0x48] sm:$0xff] %v1373_v18  ;;  %1822 = vst [vmem:[%s2295_s24 + $0x50] sm:$0xff] %v1386_v22  ;;  %v1413_v31 = vadd.f32 %v1411_v25, %v1397_v14  ;;  %v1438_v32 = vmul.f32 0.25, %v1436_v20  ;;  %v1439_v33 = vmul.f32 0.25, %v1437_v21  ;;  %v1451_v1 = vmul.f32 0.75, %v1436_v20 }
 0x278   : > { %1823 = vst [vmem:[%s2295_s24 + $0x58] sm:$0xff] %v1387_v23  ;;  %1824 = vst [vmem:[%s2295_s24 + $0x60] sm:$0xff] %v1399_v24  ;;  %v1414_v35 = vadd.f32 %v1412_v27, %v1398_v19  ;;  %v1426_v36 = vadd.f32 %v1424_v28, %v1384_v12  ;;  %v1427_v37 = vadd.f32 %v1425_v29, %v1385_v13  ;;  %v1452_v38 = vmul.f32 0.75, %v1437_v21 }
 0x279   : > { %1825 = vst [vmem:[%s2295_s24 + $0x68] sm:$0xff] %v1400_v26  ;;  %1826 = vst [vmem:[%s2295_s24 + $0x70] sm:$0xff] %v1413_v31  ;;  %v1440_v41 = vadd.f32 %v1438_v32, %v1424_v28  ;;  %v1441_v42 = vadd.f32 %v1439_v33, %v1425_v29  ;;  %v1453_v43 = vadd.f32 %v1451_v1, %v1411_v25  ;;  %v1465_v44 = vmul.f32 0.25, %v1463_v30 }
 0x27a   : > { %1827 = vst [vmem:[%s2295_s24 + $0x78] sm:$0xff] %v1414_v35  ;;  %1828 = vst [vmem:[%s2295_s24 + $0x80] sm:$0xff] %v1426_v36  ;;  %v1454_v45 = vadd.f32 %v1452_v38, %v1412_v27  ;;  %v1466_v46 = vmul.f32 0.25, %v1464_v34  ;;  %v1478_v47 = vmul.f32 0.75, %v1463_v30  ;;  %v1479_v48 = vmul.f32 0.75, %v1464_v34 }
 0x27b   : > { %1829 = vst [vmem:[%s2295_s24 + $0x88] sm:$0xff] %v1427_v37  ;;  %1830 = vst [vmem:[%s2295_s24 + $0x90] sm:$0xff] %v1440_v41  ;;  %v1467_v49 = vadd.f32 %v1465_v44, %v1451_v1  ;;  %v1492_v50 = vmul.f32 0.25, %v1490_v39  ;;  %v1493_v51 = vmul.f32 0.25, %v1491_v40  ;;  %v1505_v52 = vmul.f32 0.75, %v1490_v39 }
 0x27c   : > { %1831 = vst [vmem:[%s2295_s24 + $0x98] sm:$0xff] %v1441_v42  ;;  %1832 = vst [vmem:[%s2295_s24 + $0xa0] sm:$0xff] %v1453_v43  ;;  %v1468_v53 = vadd.f32 %v1466_v46, %v1452_v38  ;;  %v1480_v54 = vadd.f32 %v1478_v47, %v1438_v32  ;;  %v1481_v55 = vadd.f32 %v1479_v48, %v1439_v33  ;;  %v1506_v56 = vmul.f32 0.75, %v1491_v40 }
 0x27d   : > { %1833 = vst [vmem:[%s2295_s24 + $0xa8] sm:$0xff] %v1454_v45  ;;  %1834 = vst [vmem:[%s2295_s24 + $0xb0] sm:$0xff] %v1467_v49  ;;  %v1494_v57 = vadd.f32 %v1492_v50, %v1478_v47  ;;  %v1495_v58 = vadd.f32 %v1493_v51, %v1479_v48  ;;  %v1507_v59 = vadd.f32 %v1505_v52, %v1465_v44 }
 0x27e   : > { %v1518_v60 = vadd.f32 %v1505_v52, %v1492_v50  ;;  %1835 = vst [vmem:[%s2295_s24 + $0xb8] sm:$0xff] %v1468_v53  ;;  %1836 = vst [vmem:[%s2295_s24 + $0xc0] sm:$0xff] %v1480_v54  ;;  %v1508_v61 = vadd.f32 %v1506_v56, %v1466_v46  ;;  %v1519_v62 = vadd.f32 %v1506_v56, %v1493_v51 }
 0x27f   : > { %1837 = vst [vmem:[%s2295_s24 + $0xc8] sm:$0xff] %v1481_v55  ;;  %1838 = vst [vmem:[%s2295_s24 + $0xd0] sm:$0xff] %v1494_v57 }
 0x280   : > { %1839 = vst [vmem:[%s2295_s24 + $0xd8] sm:$0xff] %v1495_v58  ;;  %1840 = vst [vmem:[%s2295_s24 + $0xe0] sm:$0xff] %v1507_v59 }
 0x281   : > { %1842 = vst [vmem:[%s2295_s24 + $0xf0] sm:$0xff] %v1518_v60  ;;  %1841 = vst [vmem:[%s2295_s24 + $0xe8] sm:$0xff] %v1508_v61 }
 0x282   : > { %1843 = vst [vmem:[%s2295_s24 + $0xf8] sm:$0xff] %v1519_v62 }
 0x283 PF: > { %s15_s18 = sadd.s32 1, %s2246_s18  }
 0x284   : > { %p12_p5 = scmp.ge.s32.totalorder %s15_s18, 4  }
 0x286   :  { %14 = sbr.rel (!%p12_p5) target bundleno = 1 (0x1), region = 122 }

// kernel: _lambda_.32
= control target key start
LH: loop header
LB: loop body
LE: loop exit
PB: predicated region body
PF: predicated region fallthrough
CT: control target
= control target key end

     0   :  { %s2100_s18 = smov 0   ;;  %s2472_s0 = inlined_call_operand.vmem [shape: f32[2,6,6,128], index: 0, kind: input, shape index: {}]   ;;  %s2473_s1 = inlined_call_operand.vmem [shape: bf16[9,128,128], index: 1, kind: input, shape index: {}]   ;;  %s2474_s2 = inlined_call_operand.vmem [shape: f32[1,128], index: 2, kind: input, shape index: {}]   ;;  %s2475_s3 = inlined_call_operand.vmem [shape: f32[1,128], index: 3, kind: input, shape index: {}]   ;;  %s2476_s4 = inlined_call_operand.vmem [shape: f32[8,4], index: 4, kind: input, shape index: {}]   ;;  %s2477_s5 = inlined_call_operand.vmem [shape: f32[2,8,8,128], index: 5, kind: output, shape index: {}]  }
   0x1 LB: > { %s1433_s19 = sadd.s32 4294967295, %s2062_s18   ;;  %p1437_p0 = scmp.ge.s32.totalorder %s2062_s18, 1  ;;  %s2062_s18 = sphi %s2100_s18, %s15_s18  }
   0x2   : > { %p187_p1 = scmp.lt.s32.totalorder %s2062_s18, 3 }
   0x4   : > { %p188_p2 = pnand %p1437_p0, %p187_p1 }
   0x5   : > { %p215_p3 = scmp.lt.s32.totalorder (!%p188_p2), %s1433_s19, 1  ;;  %s2118_s28 = smov (!%p188_p2), 0  }
   0x6   : > { %191 = sbr.rel (%p188_p2) target bundleno = 628 (0x274), region = 40 }
   0xd   : > { %s2479_s19 = smov (!%p215_p3, %s1433_s19), 1 }
   0xe   : > { %s1961_s20 = smul.u32 48, %s2479_s19  ;;  %s1663_s21 = sshll.u32 %s2479_s19, 6 }
   0xf   : > { %s2111_s24 = scalar_lea.vmem %s2477_s5, %s1663_s21 }
  0x10   : > { %s2116_s27 = scalar_lea.vmem %s2472_s0, %s1961_s20 }
  0x11 LB: >> { %v1980_v0 = vld [vmem:[%s2473_s1 + $0x40] sm:$0xff]   ;;  %v2068_v1 = vmov 0.0   ;;  %v1982_v3 = vld [vmem:[%s2473_s1 + $0x48] sm:$0xff]   ;;  %vm2069_vm0 = vmmov 0   ;;  %v1984_v5 = vld [vmem:[%s2473_s1 + $0x50] sm:$0xff]   ;;  %s1441_s7 = sshll.u32 %s2066_s28, 3  ;;  %s2066_s28 = sphi %s2118_s28, %s231_s28  }
  0x12   : >> { %1747 = vmatprep.subr.bf16.mxu1 %v2068_v1  ;;  %1827 = vmatprep.subr.bf16.mxu0 %v2068_v1  ;;  %v1981_v2 = vld [vmem:[%s2473_s1 + $0x100] sm:$0xff]   ;;  %v1983_v4 = vld [vmem:[%s2473_s1 + $0x108] sm:$0xff]   ;;  %v1985_v6 = vld [vmem:[%s2473_s1 + $0x110] sm:$0xff]   ;;  %s2186_s12 = scalar_lea.vmem %s2116_s27, %s1441_s7  ;;  %vm1231_vm1 = vcmask 1043456   ;;  %vm1227_vm2 = vcmask 31744   ;;  %s1305_s21 = scalar_lea.vmem [#allocation2], %s1441_s7 }
  0x13   : >> { %1748 = vmatpush3.bf16.msra.mxu1 %v1980_v0  ;;  %1763 = vmatprep.mubr.msk.bf16.mxu1 %vm2069_vm0, %v2068_v1  ;;  %v1986_v7 = vld [vmem:[%s2473_s1 + $0x58] sm:$0xff]   ;;  %v1988_v9 = vld [vmem:[%s2473_s1 + $0x60] sm:$0xff]   ;;  %v1990_v11 = vld [vmem:[%s2473_s1 + $0x68] sm:$0xff]   ;;  %s231_s28 = sadd.s32 1, %s2066_s28  }
  0x14   : >> { %1828 = vmatpush3.bf16.msra.mxu0 %v1981_v2  ;;  %1749 = vmatprep.subr.bf16.mxu1 %v2068_v1  ;;  %v1987_v8 = vld [vmem:[%s2473_s1 + $0x118] sm:$0xff]   ;;  %v1989_v10 = vld [vmem:[%s2473_s1 + $0x120] sm:$0xff]   ;;  %v1991_v12 = vld [vmem:[%s2473_s1 + $0x128] sm:$0xff]   ;;  %p228_p4 = scmp.ge.s32.totalorder %s231_s28, 4  }
  0x15   : >> { %1829 = vmatprep.subr.bf16.mxu0 %v2068_v1  ;;  %1843 = vmatprep.mubr.msk.bf16.mxu0 %vm2069_vm0, %v2068_v1  ;;  %v1992_v13 = vld [vmem:[%s2473_s1 + $0x70] sm:$0xff]   ;;  %v1994_v15 = vld [vmem:[%s2473_s1 + $0x78] sm:$0xff]   ;;  %v252_v17 = vld [vmem:[%s2186_s12 + $0x1] sm:$0xf] }
  0x16   : >> { %v1993_v14 = vld [vmem:[%s2473_s1 + $0x130] sm:$0xff]   ;;  %v1995_v16 = vld [vmem:[%s2473_s1 + $0x138] sm:$0xff]   ;;  %v1524_v18 = vld [vmem:[%s2186_s12 + $0x9] sm:$0xf]  ;;  %v253_v19 = vpack.c.bf16 %v252_v17, %v252_v17 }
  0x17   : >> { %1750 = vmatpush3.bf16.msra.mxu1 %v1982_v3  ;;  %v1996_v20 = vld [vmem:[%s2473_s1] sm:$0xff]   ;;  %v667_v21 = vpack.c.bf16 %v1524_v18, %v1524_v18  ;;  %v1998_v23 = vld [vmem:[%s2473_s1 + $0x8] sm:$0xff]   ;;  %v2000_v25 = vld [vmem:[%s2473_s1 + $0x10] sm:$0xff]  }
  0x18   : >> { %1830 = vmatpush3.bf16.msra.mxu0 %v1983_v4  ;;  %1751 = vmatprep.subr.bf16.mxu1 %v2068_v1  ;;  %v1997_v22 = vld [vmem:[%s2473_s1 + $0x140] sm:$0xff]   ;;  %v1999_v24 = vld [vmem:[%s2473_s1 + $0x148] sm:$0xff]   ;;  %v2001_v26 = vld [vmem:[%s2473_s1 + $0x150] sm:$0xff]  }
  0x19   : >> { %1831 = vmatprep.subr.bf16.mxu0 %v2068_v1  ;;  %v2002_v27 = vld [vmem:[%s2473_s1 + $0x18] sm:$0xff]   ;;  %v2004_v29 = vld [vmem:[%s2473_s1 + $0x20] sm:$0xff]   ;;  %v2006_v31 = vld [vmem:[%s2473_s1 + $0x28] sm:$0xff]  }
  0x1a   : >> { %v2003_v28 = vld [vmem:[%s2473_s1 + $0x158] sm:$0xff]   ;;  %v2005_v30 = vld [vmem:[%s2473_s1 + $0x160] sm:$0xff]   ;;  %v2007_v32 = vld [vmem:[%s2473_s1 + $0x168] sm:$0xff]  }
  0x1b   : >> { %1752 = vmatpush3.bf16.msra.mxu1 %v1984_v5  ;;  %v2008_v33 = vld [vmem:[%s2473_s1 + $0x30] sm:$0xff]   ;;  %v2010_v35 = vld [vmem:[%s2473_s1 + $0x38] sm:$0xff]   ;;  %v234_v37 = vld [vmem:[%s2186_s12] sm:$0xf] }
  0x1c   : >> { %1832 = vmatpush3.bf16.msra.mxu0 %v1985_v6  ;;  %1753 = vmatprep.subr.bf16.mxu1 %v2068_v1  ;;  %v2009_v34 = vld [vmem:[%s2473_s1 + $0x170] sm:$0xff]   ;;  %v2011_v36 = vld [vmem:[%s2473_s1 + $0x178] sm:$0xff]   ;;  %v1549_v38 = vld [vmem:[%s2186_s12 + $0xa] sm:$0xf]  ;;  %v235_v39 = vpack.c.bf16 %v234_v37, %v234_v37 }
  0x1d   : >> { %1833 = vmatprep.subr.bf16.mxu0 %v2068_v1  ;;  %v2012_v40 = vld [vmem:[%s2473_s1 + $0x80] sm:$0xff]   ;;  %v775_v41 = vpack.c.bf16 %v1549_v38, %v1549_v38  ;;  %v2014_v43 = vld [vmem:[%s2473_s1 + $0x88] sm:$0xff]   ;;  %v2016_v45 = vld [vmem:[%s2473_s1 + $0x90] sm:$0xff]  }
  0x1e   : >> { %v2013_v42 = vld [vmem:[%s2473_s1 + $0x180] sm:$0xff]   ;;  %v2015_v44 = vld [vmem:[%s2473_s1 + $0x188] sm:$0xff]   ;;  %v2017_v46 = vld [vmem:[%s2473_s1 + $0x190] sm:$0xff]  }
  0x1f   : >> { %1754 = vmatpush3.bf16.msra.mxu1 %v1986_v7  ;;  %v2018_v47 = vld [vmem:[%s2473_s1 + $0x98] sm:$0xff]   ;;  %v2020_v49 = vld [vmem:[%s2473_s1 + $0xa0] sm:$0xff]   ;;  %v2022_v51 = vld [vmem:[%s2473_s1 + $0xa8] sm:$0xff]  }
  0x20   : >> { %1834 = vmatpush3.bf16.msra.mxu0 %v1987_v8  ;;  %1755 = vmatprep.subr.bf16.mxu1 %v2068_v1  ;;  %v2019_v48 = vld [vmem:[%s2473_s1 + $0x198] sm:$0xff]   ;;  %v2021_v50 = vld [vmem:[%s2473_s1 + $0x1a0] sm:$0xff]   ;;  %v2023_v52 = vld [vmem:[%s2473_s1 + $0x1a8] sm:$0xff]  }
  0x21   : >> { %1835 = vmatprep.subr.bf16.mxu0 %v2068_v1  ;;  %v2024_v53 = vld [vmem:[%s2473_s1 + $0xb0] sm:$0xff]   ;;  %v2026_v55 = vld [vmem:[%s2473_s1 + $0xb8] sm:$0xff]   ;;  %v447_v56 = vld [vmem:[%s2186_s12 + $0x2] sm:$0xf] }
  0x22   : >> { %v2025_v54 = vld [vmem:[%s2473_s1 + $0x1b0] sm:$0xff]   ;;  %v2027_v57 = vld [vmem:[%s2473_s1 + $0x1b8] sm:$0xff]   ;;  %v448_v59 = vpack.c.bf16 %v447_v56, %v447_v56  ;;  %v2028_v60 = vld [vmem:[%s2473_s1 + $0xc0] sm:$0xff]  }
  0x23   : >> { %1756 = vmatpush3.bf16.msra.mxu1 %v1988_v9  ;;  %v1575_v58 = vld [vmem:[%s2186_s12 + $0x10] sm:$0xf]  ;;  %v2029_v62 = vld [vmem:[%s2473_s1 + $0x1c0] sm:$0xff]   ;;  %v2030_v63 = vld [vmem:[%s2473_s1 + $0xc8] sm:$0xff]  }
  0x24   : >> { %1836 = vmatpush3.bf16.msra.mxu0 %v1989_v10  ;;  %1757 = vmatprep.subr.bf16.mxu1 %v2068_v1  ;;  %v886_v61 = vpack.c.bf16 %v1575_v58, %v1575_v58  ;;  %v2031_v0 = vld [vmem:[%s2473_s1 + $0x1c8] sm:$0xff]   ;;  %v2032_v2 = vld [vmem:[%s2473_s1 + $0xd0] sm:$0xff]   ;;  %v2034_v4 = vld [vmem:[%s2473_s1 + $0xd8] sm:$0xff]  }
  0x25   : >> { %1837 = vmatprep.subr.bf16.mxu0 %v2068_v1  ;;  %v2033_v3 = vld [vmem:[%s2473_s1 + $0x1d0] sm:$0xff]   ;;  %v2035_v5 = vld [vmem:[%s2473_s1 + $0x1d8] sm:$0xff]   ;;  %v2036_v6 = vld [vmem:[%s2473_s1 + $0xe0] sm:$0xff]  }
  0x26   : >> { %v2037_v7 = vld [vmem:[%s2473_s1 + $0x1e0] sm:$0xff]   ;;  %v2038_v8 = vld [vmem:[%s2473_s1 + $0xe8] sm:$0xff]   ;;  %v2040_v10 = vld [vmem:[%s2473_s1 + $0xf0] sm:$0xff]  }
  0x27   : >> { %1758 = vmatpush3.bf16.msra.mxu1 %v1990_v11  ;;  %v2039_v9 = vld [vmem:[%s2473_s1 + $0x1e8] sm:$0xff]   ;;  %v2041_v11 = vld [vmem:[%s2473_s1 + $0x1f0] sm:$0xff]   ;;  %v2044_v18 = vld [vmem:[%s2473_s1 + $0x200] sm:$0xff]  }
  0x28   : >> { %1838 = vmatpush3.bf16.msra.mxu0 %v1991_v12  ;;  %1759 = vmatprep.subr.bf16.mxu1 %v2068_v1  ;;  %v2042_v12 = vld [vmem:[%s2473_s1 + $0xf8] sm:$0xff]  }
  0x29   : >> { %1839 = vmatprep.subr.bf16.mxu0 %v2068_v1 }
  0x2b   : >> { %1760 = vmatpush3.bf16.msra.mxu1 %v1992_v13  ;;  %v1499_v13 = vld [vmem:[%s2186_s12 + $0x8] sm:$0xf] }
  0x2c   : >> { %1840 = vmatpush3.bf16.msra.mxu0 %v1993_v14  ;;  %1761 = vmatprep.subr.bf16.mxu1 %v2068_v1  ;;  %v2043_v14 = vld [vmem:[%s2473_s1 + $0x1f8] sm:$0xff]  }
  0x2d   : >> { %1841 = vmatprep.subr.bf16.mxu0 %v2068_v1 }
  0x2f   : >> { %1762 = vmatpush3.bf16.msra.mxu1 %v1994_v15  ;;  %v1600_v15 = vld [vmem:[%s2186_s12 + $0x11] sm:$0xf] }
  0x30   : >> { %1842 = vmatpush3.bf16.msra.mxu0 %v1995_v16  ;;  %1767 = vmatprep.subr.bf16.mxu1 %v2068_v1  ;;  %v559_v16 = vpack.c.bf16 %v1499_v13, %v1499_v13  ;;  %v994_v17 = vpack.c.bf16 %v1600_v15, %v1600_v15 }
  0x31   : >> { %1847 = vmatprep.subr.bf16.mxu0 %v2068_v1 }
  0x32   : >> { %1764 = vmatmul.mubr.bf16.vlgmr.msra.gmra.mrb[0].mxu1 %v253_v19  ;;  %v2045_v19 = vld [vmem:[%s2473_s1 + $0x208] sm:$0xff]  }
  0x33   : >> { %1768 = vmatpush3.bf16.msra.mxu1 %v1996_v20  ;;  %1844 = vmatmul.mubr.bf16.vlgmr.msra.gmra.mrb[0].mxu0 %v667_v21  ;;  %v2046_v20 = vld [vmem:[%s2473_s1 + $0x210] sm:$0xff]   ;;  %v2047_v21 = vld [vmem:[%s2473_s1 + $0x218] sm:$0xff]  }
  0x34   : >> { %1848 = vmatpush3.bf16.msra.mxu0 %v1997_v22  ;;  %1769 = vmatprep.subr.bf16.mxu1 %v2068_v1  ;;  %v2048_v22 = vld [vmem:[%s2473_s1 + $0x220] sm:$0xff]  }
  0x35   : >> { %1849 = vmatprep.subr.bf16.mxu0 %v2068_v1  ;;  %1783 = vmatprep.mubr.msk.bf16.mxu1 %vm2069_vm0, %v2068_v1 }
  0x36   : >> { %1863 = vmatprep.mubr.msk.bf16.mxu0 %vm2069_vm0, %v2068_v1 }
  0x37   : >> { %1770 = vmatpush3.bf16.msra.mxu1 %v1998_v23  ;;  %v2049_v23 = vld [vmem:[%s2473_s1 + $0x228] sm:$0xff]  }
  0x38   : >> { %1850 = vmatpush3.bf16.msra.mxu0 %v1999_v24  ;;  %1771 = vmatprep.subr.bf16.mxu1 %v2068_v1  ;;  %v2050_v24 = vld [vmem:[%s2473_s1 + $0x230] sm:$0xff]  }
  0x39   : >> { %1851 = vmatprep.subr.bf16.mxu0 %v2068_v1 }
  0x3b   : >> { %1772 = vmatpush3.bf16.msra.mxu1 %v2000_v25  ;;  %v2051_v25 = vld [vmem:[%s2473_s1 + $0x238] sm:$0xff]  }
  0x3c   : >> { %1852 = vmatpush3.bf16.msra.mxu0 %v2001_v26  ;;  %1773 = vmatprep.subr.bf16.mxu1 %v2068_v1  ;;  %v1625_v26 = vld [vmem:[%s2186_s12 + $0x12] sm:$0xf] }
  0x3d   : >> { %1853 = vmatprep.subr.bf16.mxu0 %v2068_v1 }
  0x3f   : >> { %1774 = vmatpush3.bf16.msra.mxu1 %v2002_v27  ;;  %v1102_v27 = vpack.c.bf16 %v1625_v26, %v1625_v26 }
  0x40   : >> { %1854 = vmatpush3.bf16.msra.mxu0 %v2003_v28  ;;  %1775 = vmatprep.subr.bf16.mxu1 %v2068_v1 }
  0x41   : >> { %1855 = vmatprep.subr.bf16.mxu0 %v2068_v1 }
  0x43   : >> { %1776 = vmatpush3.bf16.msra.mxu1 %v2004_v29 }
  0x44   : >> { %1856 = vmatpush3.bf16.msra.mxu0 %v2005_v30  ;;  %1777 = vmatprep.subr.bf16.mxu1 %v2068_v1 }
  0x45   : >> { %1857 = vmatprep.subr.bf16.mxu0 %v2068_v1 }
  0x47   : >> { %1778 = vmatpush3.bf16.msra.mxu1 %v2006_v31 }
  0x48   : >> { %1858 = vmatpush3.bf16.msra.mxu0 %v2007_v32  ;;  %1779 = vmatprep.subr.bf16.mxu1 %v2068_v1 }
  0x49   : >> { %1859 = vmatprep.subr.bf16.mxu0 %v2068_v1 }
  0x4b   : >> { %1780 = vmatpush3.bf16.msra.mxu1 %v2008_v33  ;;  %v1650_v33 = vld [vmem:[%s2474_s2] ss:$0 sm:$0xff] }
  0x4c   : >> { %1860 = vmatpush3.bf16.msra.mxu0 %v2009_v34  ;;  %1781 = vmatprep.subr.bf16.mxu1 %v2068_v1 }
  0x4d   : >> { %1861 = vmatprep.subr.bf16.mxu0 %v2068_v1 }
  0x4f   : >> { %1782 = vmatpush3.bf16.msra.mxu1 %v2010_v35 }
  0x50   : >> { %1862 = vmatpush3.bf16.msra.mxu0 %v2011_v36  ;;  %1787 = vmatprep.subr.bf16.mxu1 %v2068_v1  ;;  %v1651_v36 = vld [vmem:[%s2475_s3] ss:$0 sm:$0xff] }
  0x51   : >> { %1867 = vmatprep.subr.bf16.mxu0 %v2068_v1 }
  0x52   : >> { %1784 = vmatmul.mubr.bf16.vlgmr.msra.gmra.mrb[0].mxu1 %v235_v39 }
  0x53   : >> { %1788 = vmatpush3.bf16.msra.mxu1 %v2012_v40  ;;  %1864 = vmatmul.mubr.bf16.vlgmr.msra.gmra.mrb[0].mxu0 %v775_v41  ;;  %v1226_v41 = vld [vmem:[%s2476_s4] sm:$0xff] }
  0x54   : >> { %1868 = vmatpush3.bf16.msra.mxu0 %v2013_v42  ;;  %1789 = vmatprep.subr.bf16.mxu1 %v2068_v1 }
  0x55   : >> { %1869 = vmatprep.subr.bf16.mxu0 %v2068_v1  ;;  %1803 = vmatprep.mubr.msk.bf16.mxu1 %vm2069_vm0, %v2068_v1 }
  0x56   : >> { %1883 = vmatprep.mubr.msk.bf16.mxu0 %vm2069_vm0, %v2068_v1 }
  0x57   : >> { %1790 = vmatpush3.bf16.msra.mxu1 %v2014_v43 }
  0x58   : >> { %1870 = vmatpush3.bf16.msra.mxu0 %v2015_v44  ;;  %1791 = vmatprep.subr.bf16.mxu1 %v2068_v1 }
  0x59   : >> { %1871 = vmatprep.subr.bf16.mxu0 %v2068_v1 }
  0x5b   : >> { %1792 = vmatpush3.bf16.msra.mxu1 %v2016_v45 }
  0x5c   : >> { %1872 = vmatpush3.bf16.msra.mxu0 %v2017_v46  ;;  %1793 = vmatprep.subr.bf16.mxu1 %v2068_v1 }
  0x5d   : >> { %1873 = vmatprep.subr.bf16.mxu0 %v2068_v1 }
  0x5f   : >> { %1794 = vmatpush3.bf16.msra.mxu1 %v2018_v47 }
  0x60   : >> { %1874 = vmatpush3.bf16.msra.mxu0 %v2019_v48  ;;  %1795 = vmatprep.subr.bf16.mxu1 %v2068_v1 }
  0x61   : >> { %1875 = vmatprep.subr.bf16.mxu0 %v2068_v1 }
  0x63   : >> { %1796 = vmatpush3.bf16.msra.mxu1 %v2020_v49 }
  0x64   : >> { %1876 = vmatpush3.bf16.msra.mxu0 %v2021_v50  ;;  %1797 = vmatprep.subr.bf16.mxu1 %v2068_v1 }
  0x65   : >> { %1877 = vmatprep.subr.bf16.mxu0 %v2068_v1 }
  0x67   : >> { %1798 = vmatpush3.bf16.msra.mxu1 %v2022_v51 }
  0x68   : >> { %1878 = vmatpush3.bf16.msra.mxu0 %v2023_v52  ;;  %1799 = vmatprep.subr.bf16.mxu1 %v2068_v1 }
  0x69   : >> { %1879 = vmatprep.subr.bf16.mxu0 %v2068_v1 }
  0x6b   : >> { %1800 = vmatpush3.bf16.msra.mxu1 %v2024_v53 }
  0x6c   : >> { %1880 = vmatpush3.bf16.msra.mxu0 %v2025_v54  ;;  %1801 = vmatprep.subr.bf16.mxu1 %v2068_v1 }
  0x6d   : >> { %1881 = vmatprep.subr.bf16.mxu0 %v2068_v1 }
  0x6f   : >> { %1802 = vmatpush3.bf16.msra.mxu1 %v2026_v55 }
  0x70   : >> { %1882 = vmatpush3.bf16.msra.mxu0 %v2027_v57  ;;  %1807 = vmatprep.subr.bf16.mxu1 %v2068_v1 }
  0x71   : >> { %1887 = vmatprep.subr.bf16.mxu0 %v2068_v1 }
  0x72   : >> { %1804 = vmatmul.mubr.bf16.vlgmr.msra.gmra.mrb[0].mxu1 %v448_v59 }
  0x73   : >> { %1808 = vmatpush3.bf16.msra.mxu1 %v2028_v60  ;;  %1884 = vmatmul.mubr.bf16.vlgmr.msra.gmra.mrb[0].mxu0 %v886_v61 }
  0x74   : >> { %1888 = vmatpush3.bf16.msra.mxu0 %v2029_v62  ;;  %1809 = vmatprep.subr.bf16.mxu1 %v2068_v1 }
  0x75   : >> { %1889 = vmatprep.subr.bf16.mxu0 %v2068_v1  ;;  %1823 = vmatprep.mubr.msk.bf16.mxu1 %vm2069_vm0, %v2068_v1 }
  0x76   : >> { %1903 = vmatprep.mubr.msk.bf16.mxu0 %vm2069_vm0, %v2068_v1 }
  0x77   : >> { %1810 = vmatpush3.bf16.msra.mxu1 %v2030_v63 }
  0x78   : >> { %1890 = vmatpush3.bf16.msra.mxu0 %v2031_v0  ;;  %1811 = vmatprep.subr.bf16.mxu1 %v2068_v1 }
  0x79   : >> { %1891 = vmatprep.subr.bf16.mxu0 %v2068_v1 }
  0x7b   : >> { %1812 = vmatpush3.bf16.msra.mxu1 %v2032_v2 }
  0x7c   : >> { %1892 = vmatpush3.bf16.msra.mxu0 %v2033_v3  ;;  %1813 = vmatprep.subr.bf16.mxu1 %v2068_v1 }
  0x7d   : >> { %1893 = vmatprep.subr.bf16.mxu0 %v2068_v1 }
  0x7f   : >> { %1814 = vmatpush3.bf16.msra.mxu1 %v2034_v4 }
  0x80   : >> { %1894 = vmatpush3.bf16.msra.mxu0 %v2035_v5  ;;  %1815 = vmatprep.subr.bf16.mxu1 %v2068_v1 }
  0x81   : >> { %1895 = vmatprep.subr.bf16.mxu0 %v2068_v1 }
  0x83   : >> { %1816 = vmatpush3.bf16.msra.mxu1 %v2036_v6 }
  0x84   : >> { %1896 = vmatpush3.bf16.msra.mxu0 %v2037_v7  ;;  %1817 = vmatprep.subr.bf16.mxu1 %v2068_v1 }
  0x85   : >> { %1897 = vmatprep.subr.bf16.mxu0 %v2068_v1 }
  0x87   : >> { %1818 = vmatpush3.bf16.msra.mxu1 %v2038_v8 }
  0x88   : >> { %1898 = vmatpush3.bf16.msra.mxu0 %v2039_v9  ;;  %1819 = vmatprep.subr.bf16.mxu1 %v2068_v1 }
  0x89   : >> { %1899 = vmatprep.subr.bf16.mxu0 %v2068_v1 }
  0x8b   : >> { %1820 = vmatpush3.bf16.msra.mxu1 %v2040_v10 }
  0x8c   : >> { %1900 = vmatpush3.bf16.msra.mxu0 %v2041_v11  ;;  %1821 = vmatprep.subr.bf16.mxu1 %v2068_v1 }
  0x8d   : >> { %1901 = vmatprep.subr.bf16.mxu0 %v2068_v1 }
  0x8f   : >> { %1822 = vmatpush3.bf16.msra.mxu1 %v2042_v12 }
  0x90   : >> { %1902 = vmatpush3.bf16.msra.mxu0 %v2043_v14  ;;  %1927 = vmatprep.subr.mxu1 %v2068_v1 }
  0x91   : >> { %1907 = vmatprep.subr.bf16.mxu0 %v2068_v1 }
  0x92   : >> { %1824 = vmatmul.mubr.bf16.vlgmr.msra.gmra.mrb[0].mxu1 %v559_v16 }
  0x93   : >> { %1904 = vmatmul.mubr.bf16.vlgmr.msra.gmra.mrb[0].mxu0 %v994_v17  ;;  %1929 = vmatprep.mubr.msk.f32.mxu1 %vm2069_vm0, %v2068_v1 }
  0x94   : >> { %1908 = vmatpush3.bf16.msra.mxu0 %v2044_v18  ;;  %1923 = vmatprep.mubr.msk.bf16.mxu0 %vm2069_vm0, %v2068_v1 }
  0x95   : >> { %1909 = vmatprep.subr.bf16.mxu0 %v2068_v1 }
  0x98   : >> { %1910 = vmatpush3.bf16.msra.mxu0 %v2045_v19 }
  0x99   : >> { %1911 = vmatprep.subr.bf16.mxu0 %v2068_v1 }
  0x9c   : >> { %1912 = vmatpush3.bf16.msra.mxu0 %v2046_v20 }
  0x9d   : >> { %1913 = vmatprep.subr.bf16.mxu0 %v2068_v1 }
  0xa0   : >> { %1914 = vmatpush3.bf16.msra.mxu0 %v2047_v21 }
  0xa1   : >> { %1915 = vmatprep.subr.bf16.mxu0 %v2068_v1 }
  0xa4   : >> { %1916 = vmatpush3.bf16.msra.mxu0 %v2048_v22 }
  0xa5   : >> { %1917 = vmatprep.subr.bf16.mxu0 %v2068_v1 }
  0xa8   : >> { %1918 = vmatpush3.bf16.msra.mxu0 %v2049_v23 }
  0xa9   : >> { %1919 = vmatprep.subr.bf16.mxu0 %v2068_v1 }
  0xac   : >> { %1920 = vmatpush3.bf16.msra.mxu0 %v2050_v24 }
  0xad   : >> { %1921 = vmatprep.subr.bf16.mxu0 %v2068_v1 }
  0xb0   : >> { %1922 = vmatpush3.bf16.msra.mxu0 %v2051_v25 }
  0xb3   : >> { %1924 = vmatmul.mubr.bf16.vlgmr.msra.gmra.mrb[0].mxu0 %v1102_v27 }
 0x165   : >> { %v659_v28 = vpop.f32.mrb[0].mxu1 }
 0x166   : >> { %v1825_v29 = vpop.f32.mrb[1].mxu1 }
 0x167   : >> { %v662_v30 = vpop.f32.mrb[2].mxu1 }
 0x168   : >> { %v1826_v31 = vpop.f32.mrb[3].mxu1 }
 0x186   : >> { %v1202_v32 = vpop.f32.mrb[0].mxu0 }
 0x187   : >> { %v1932_v34 = vadd.f32 %v1202_v32, %v659_v28  ;;  %v1925_v35 = vpop.f32.mrb[1].mxu0 }
 0x188   : >> { %v1205_v1 = vpop.f32.mrb[2].mxu0 }
 0x189   : >> { %v1216_v37 = vmul.f32 %v1932_v34, %v1650_v33  ;;  %v1926_v38 = vpop.f32.mrb[3].mxu0 }
 0x18b   : >> { %v1224_v39 = vadd.f32 %v1651_v36, %v1216_v37 }
 0x18d   : >> { %v1225_v40 = vmax.f32 %v1224_v39, 0.0 }
 0x18f   : >> { %1928 = vmatpush3.msk.msra.mxu1 %vm1231_vm1, %v1225_v40 }
 0x190   : >> { %1930 = vmatmul.mubr.msk.f32.vlgmr.msra.gmra.mrb[4].mxu1 %vm1227_vm2, %v1226_v41 }
 0x25e   : > { %230 = sbr.rel (!%p228_p4) target bundleno = 17 (0x11), region = 99 }
 0x263   : >> { %v1301_v42 = vpop.f32.mrb[4].mxu1 }
 0x264   : >> { %1306 = vst [vmem:[%s1305_s21] sm:$0xff] %v1301_v42  ;;  %v1931_v43 = vpop.f32.mrb[5].mxu1 }
 0x26b   : > { %v1307_v44 = vld [vmem:[#allocation2] sm:$0xff]  ;;  %v1309_v45 = vld [vmem:[#allocation2 + $0x8] sm:$0xff]  ;;  %v1330_v46 = vld [vmem:[#allocation2 + $0x10] sm:$0xff] }
 0x26c   : > { %v1310_v47 = vmul.f32 0.0, %v1309_v45  ;;  %v1314_v48 = vmul.f32 0.75, %v1307_v44  ;;  %v1316_v49 = vmul.f32 0.25, %v1309_v45  ;;  %v1321_v50 = vmul.f32 0.25, %v1307_v44  ;;  %v1345_v51 = vld [vmem:[#allocation2 + $0x18] sm:$0xff] }
 0x26d   : > { %v1323_v52 = vmul.f32 0.75, %v1309_v45  ;;  %v1331_v53 = vmul.f32 0.25, %v1330_v46  ;;  %v1338_v54 = vmul.f32 0.75, %v1330_v46  ;;  %v1346_v55 = vmul.f32 0.25, %v1345_v51 }
 0x26e   : > { %v1311_v56 = vadd.f32 %v1310_v47, %v1307_v44  ;;  %v1317_v57 = vadd.f32 %v1316_v49, %v1314_v48  ;;  %v1353_v58 = vmul.f32 0.75, %v1345_v51 }
 0x26f   : > { %v1324_v59 = vadd.f32 %v1323_v52, %v1321_v50  ;;  %v1332_v60 = vadd.f32 %v1331_v53, %v1323_v52  ;;  %v1339_v61 = vadd.f32 %v1338_v54, %v1316_v49  ;;  %v1347_v62 = vadd.f32 %v1346_v55, %v1338_v54 }
 0x270   : > { %1312 = vst [vmem:[%s2111_s24] sm:$0xff] %v1311_v56  ;;  %1654 = vst [vmem:[%s2111_s24 + $0x8] sm:$0xff] %v1317_v57  ;;  %v1354_v63 = vadd.f32 %v1353_v58, %v1331_v53  ;;  %v1360_v0 = vadd.f32 %v1353_v58, %v1346_v55 }
 0x271   : > { %1655 = vst [vmem:[%s2111_s24 + $0x10] sm:$0xff] %v1324_v59  ;;  %1656 = vst [vmem:[%s2111_s24 + $0x18] sm:$0xff] %v1332_v60 }
 0x272   : > { %1657 = vst [vmem:[%s2111_s24 + $0x20] sm:$0xff] %v1339_v61  ;;  %1658 = vst [vmem:[%s2111_s24 + $0x28] sm:$0xff] %v1347_v62 }
 0x273   : > { %1659 = vst [vmem:[%s2111_s24 + $0x30] sm:$0xff] %v1354_v63  ;;  %1660 = vst [vmem:[%s2111_s24 + $0x38] sm:$0xff] %v1360_v0 }
 0x274 PF: > { %s15_s18 = sadd.s32 1, %s2062_s18  }
 0x275   : > { %p12_p5 = scmp.ge.s32.totalorder %s15_s18, 4  }
 0x277   :  { %14 = sbr.rel (!%p12_p5) target bundleno = 1 (0x1), region = 110 }

// kernel: _lambda_.35
= control target key start
LH: loop header
LB: loop body
LE: loop exit
PB: predicated region body
PF: predicated region fallthrough
CT: control target
= control target key end

     0   :  { %s2088_s15 = smov 0   ;;  %s2381_s0 = inlined_call_operand.vmem [shape: f32[2,34,34,128], index: 0, kind: input, shape index: {}]   ;;  %s2382_s1 = inlined_call_operand.vmem [shape: bf16[9,128,128], index: 1, kind: input, shape index: {}]   ;;  %s2383_s2 = inlined_call_operand.vmem [shape: f32[1,128], index: 2, kind: input, shape index: {}]   ;;  %s2384_s3 = inlined_call_operand.vmem [shape: f32[1,128], index: 3, kind: input, shape index: {}]   ;;  %s2385_s4 = inlined_call_operand.vmem [shape: f32[2,32,32,128], index: 4, kind: output, shape index: {}]  }
   0x1 LB: > { %s1418_s16 = sadd.s32 4294967295, %s2057_s15   ;;  %p1422_p0 = scmp.ge.s32.totalorder %s2057_s15, 1  ;;  %s2057_s15 = sphi %s2088_s15, %s14_s15  }
   0x2   : > { %p162_p1 = scmp.lt.s32.totalorder %s2057_s15, 3 }
   0x4   : > { %p163_p2 = pnand %p1422_p0, %p162_p1 }
   0x5   : > { %p188_p3 = scmp.lt.s32.totalorder (!%p163_p2), %s1418_s16, 1  ;;  %s2106_s25 = smov (!%p163_p2), 0  }
   0x6   : > { %166 = sbr.rel (%p163_p2) target bundleno = 401 (0x191), region = 36 }
   0xd   : > { %s2387_s16 = smov (!%p188_p3, %s1418_s16), 1 }
   0xe   : > { %s1958_s17 = smul.u32 1360, %s2387_s16  ;;  %s1655_s18 = sshll.u32 %s2387_s16, 10 }
   0xf   : > { %s2099_s21 = scalar_lea.vmem %s2385_s4, %s1655_s18 }
  0x10   : > { %s2104_s24 = scalar_lea.vmem %s2381_s0, %s1958_s17 }
  0x11 LB: >> { %v1975_v0 = vld [vmem:[%s2382_s1 + $0x40] sm:$0xff]   ;;  %v1977_v2 = vld [vmem:[%s2382_s1 + $0x48] sm:$0xff]   ;;  %v1979_v4 = vld [vmem:[%s2382_s1 + $0x50] sm:$0xff]   ;;  %s205_s17 = smul.u32 40, %s2061_s25  ;;  %s1652_s26 = sshll.u32 %s2061_s25, 5  ;;  %s2061_s25 = sphi %s2106_s25, %s204_s25  }
  0x12   : >> { %v1976_v1 = vld [vmem:[%s2382_s1 + $0x100] sm:$0xff]   ;;  %1746 = vmatprep.subr.bf16.mxu1 %v1975_v0  ;;  %v1978_v3 = vld [vmem:[%s2382_s1 + $0x108] sm:$0xff]   ;;  %v1980_v5 = vld [vmem:[%s2382_s1 + $0x110] sm:$0xff]   ;;  %s204_s25 = sadd.s32 1, %s2061_s25  }
  0x13   : >> { %1826 = vmatprep.subr.bf16.mxu0 %v1976_v1  ;;  %1747 = vmatpush3.bf16.msra.mxu1 %v1975_v0  ;;  %v1981_v6 = vld [vmem:[%s2382_s1 + $0x58] sm:$0xff]   ;;  %v1983_v8 = vld [vmem:[%s2382_s1 + $0x60] sm:$0xff]   ;;  %s2143_s23 = scalar_lea.vmem %s2104_s24, %s205_s17  ;;  %v1985_v10 = vld [vmem:[%s2382_s1 + $0x68] sm:$0xff]   ;;  %p201_p4 = scmp.ge.s32.totalorder %s204_s25, 32  }
  0x14   : >> { %1827 = vmatpush3.bf16.msra.mxu0 %v1976_v1  ;;  %1748 = vmatprep.subr.bf16.mxu1 %v1977_v2  ;;  %v1982_v7 = vld [vmem:[%s2382_s1 + $0x118] sm:$0xff]   ;;  %v1984_v9 = vld [vmem:[%s2382_s1 + $0x120] sm:$0xff]   ;;  %v230_v12 = vld [vmem:[%s2143_s23 + $0x9] sm:$0xff] }
  0x15   : >> { %1828 = vmatprep.subr.bf16.mxu0 %v1978_v3  ;;  %v229_v11 = vld [vmem:[%s2143_s23 + $0x1] sm:$0xff]  ;;  %v1510_v15 = vld [vmem:[%s2143_s23 + $0x29] sm:$0xff]  ;;  %v1511_v16 = vld [vmem:[%s2143_s23 + $0x31] sm:$0xff] }
  0x16   : >> { %v1986_v13 = vld [vmem:[%s2382_s1 + $0x128] sm:$0xff]   ;;  %v233_v14 = vpack.c.bf16 %v230_v12, %v229_v11  ;;  %v701_v17 = vpack.c.bf16 %v1511_v16, %v1510_v15  ;;  %v1987_v18 = vld [vmem:[%s2382_s1 + $0x70] sm:$0xff]   ;;  %v1989_v20 = vld [vmem:[%s2382_s1 + $0x78] sm:$0xff]  }
  0x17   : >> { %1749 = vmatpush3.bf16.msra.mxu1 %v1977_v2  ;;  %v1988_v19 = vld [vmem:[%s2382_s1 + $0x130] sm:$0xff]   ;;  %v1990_v21 = vld [vmem:[%s2382_s1 + $0x138] sm:$0xff]   ;;  %v1991_v23 = vld [vmem:[%s2382_s1] sm:$0xff]  }
  0x18   : >> { %1829 = vmatpush3.bf16.msra.mxu0 %v1978_v3  ;;  %1750 = vmatprep.subr.bf16.mxu1 %v1979_v4  ;;  %v231_v22 = vld [vmem:[%s2143_s23 + $0x11] sm:$0xff]  ;;  %v232_v24 = vld [vmem:[%s2143_s23 + $0x19] sm:$0xff]  ;;  %v1513_v26 = vld [vmem:[%s2143_s23 + $0x41] sm:$0xff] }
  0x19   : >> { %1830 = vmatprep.subr.bf16.mxu0 %v1980_v5  ;;  %1762 = vmatprep.mubr.bf16.mxu1 %v233_v14  ;;  %v1512_v25 = vld [vmem:[%s2143_s23 + $0x39] sm:$0xff]  ;;  %v234_v28 = vpack.c.bf16 %v232_v24, %v231_v22  ;;  %v1993_v30 = vld [vmem:[%s2382_s1 + $0x8] sm:$0xff]   ;;  %v1995_v34 = vld [vmem:[%s2382_s1 + $0x10] sm:$0xff]  }
  0x1a   : >> { %1842 = vmatprep.mubr.bf16.mxu0 %v701_v17  ;;  %v1992_v27 = vld [vmem:[%s2382_s1 + $0x140] sm:$0xff]   ;;  %v702_v29 = vpack.c.bf16 %v1513_v26, %v1512_v25  ;;  %v1994_v31 = vld [vmem:[%s2382_s1 + $0x148] sm:$0xff]   ;;  %v1539_v37 = vld [vmem:[%s2143_s23 + $0x32] sm:$0xff] }
  0x1b   : >> { %1751 = vmatpush3.bf16.msra.mxu1 %v1979_v4  ;;  %v207_v32 = vld [vmem:[%s2143_s23] sm:$0xff]  ;;  %v208_v33 = vld [vmem:[%s2143_s23 + $0x8] sm:$0xff]  ;;  %v1996_v38 = vld [vmem:[%s2382_s1 + $0x150] sm:$0xff]  }
  0x1c   : >> { %1831 = vmatpush3.bf16.msra.mxu0 %v1980_v5  ;;  %1752 = vmatprep.subr.bf16.mxu1 %v1981_v6  ;;  %v211_v35 = vpack.c.bf16 %v208_v33, %v207_v32  ;;  %v1538_v36 = vld [vmem:[%s2143_s23 + $0x2a] sm:$0xff]  ;;  %v1997_v40 = vld [vmem:[%s2382_s1 + $0x18] sm:$0xff]   ;;  %v1999_v42 = vld [vmem:[%s2382_s1 + $0x20] sm:$0xff]  }
  0x1d   : >> { %1832 = vmatprep.subr.bf16.mxu0 %v1982_v7  ;;  %v825_v39 = vpack.c.bf16 %v1539_v37, %v1538_v36  ;;  %v1998_v41 = vld [vmem:[%s2382_s1 + $0x158] sm:$0xff]   ;;  %v2000_v43 = vld [vmem:[%s2382_s1 + $0x160] sm:$0xff]   ;;  %v2001_v44 = vld [vmem:[%s2382_s1 + $0x28] sm:$0xff]  }
  0x1e   : >> { %v2002_v45 = vld [vmem:[%s2382_s1 + $0x168] sm:$0xff]   ;;  %v2003_v46 = vld [vmem:[%s2382_s1 + $0x30] sm:$0xff]   ;;  %v2005_v48 = vld [vmem:[%s2382_s1 + $0x38] sm:$0xff]  }
  0x1f   : >> { %1753 = vmatpush3.bf16.msra.mxu1 %v1981_v6  ;;  %v2004_v47 = vld [vmem:[%s2382_s1 + $0x170] sm:$0xff]   ;;  %v2006_v49 = vld [vmem:[%s2382_s1 + $0x178] sm:$0xff]   ;;  %v2007_v52 = vld [vmem:[%s2382_s1 + $0x80] sm:$0xff]  }
  0x20   : >> { %1833 = vmatpush3.bf16.msra.mxu0 %v1982_v7  ;;  %1754 = vmatprep.subr.bf16.mxu1 %v1983_v8  ;;  %v209_v50 = vld [vmem:[%s2143_s23 + $0x10] sm:$0xff]  ;;  %v210_v51 = vld [vmem:[%s2143_s23 + $0x18] sm:$0xff]  ;;  %v2008_v54 = vld [vmem:[%s2382_s1 + $0x180] sm:$0xff]  }
  0x21   : >> { %1834 = vmatprep.subr.bf16.mxu0 %v1984_v9  ;;  %v1540_v53 = vld [vmem:[%s2143_s23 + $0x3a] sm:$0xff]  ;;  %v1541_v55 = vld [vmem:[%s2143_s23 + $0x42] sm:$0xff]  ;;  %v447_v57 = vld [vmem:[%s2143_s23 + $0xa] sm:$0xff]  ;;  %v212_v58 = vpack.c.bf16 %v210_v51, %v209_v50 }
  0x22   : >> { %v446_v56 = vld [vmem:[%s2143_s23 + $0x2] sm:$0xff]  ;;  %v1566_v59 = vld [vmem:[%s2143_s23 + $0x50] sm:$0xff]  ;;  %v826_v60 = vpack.c.bf16 %v1541_v55, %v1540_v53  ;;  %v1567_v61 = vld [vmem:[%s2143_s23 + $0x58] sm:$0xff] }
  0x23   : >> { %1755 = vmatpush3.bf16.msra.mxu1 %v1983_v8  ;;  %v2009_v62 = vld [vmem:[%s2382_s1 + $0x88] sm:$0xff]   ;;  %v450_v0 = vpack.c.bf16 %v447_v57, %v446_v56  ;;  %v952_v1 = vpack.c.bf16 %v1567_v61, %v1566_v59  ;;  %v2011_v2 = vld [vmem:[%s2382_s1 + $0x90] sm:$0xff]   ;;  %v2013_v4 = vld [vmem:[%s2382_s1 + $0x98] sm:$0xff]  }
  0x24   : >> { %1835 = vmatpush3.bf16.msra.mxu0 %v1984_v9  ;;  %1756 = vmatprep.subr.bf16.mxu1 %v1985_v10  ;;  %v2010_v63 = vld [vmem:[%s2382_s1 + $0x188] sm:$0xff]   ;;  %v2012_v3 = vld [vmem:[%s2382_s1 + $0x190] sm:$0xff]   ;;  %v2014_v5 = vld [vmem:[%s2382_s1 + $0x198] sm:$0xff]  }
  0x25   : >> { %1836 = vmatprep.subr.bf16.mxu0 %v1986_v13  ;;  %v2015_v6 = vld [vmem:[%s2382_s1 + $0xa0] sm:$0xff]   ;;  %v2017_v8 = vld [vmem:[%s2382_s1 + $0xa8] sm:$0xff]   ;;  %v2020_v11 = vld [vmem:[%s2382_s1 + $0x1b0] sm:$0xff]  }
  0x26   : >> { %v2016_v7 = vld [vmem:[%s2382_s1 + $0x1a0] sm:$0xff]   ;;  %v2018_v9 = vld [vmem:[%s2382_s1 + $0x1a8] sm:$0xff]   ;;  %v2021_v12 = vld [vmem:[%s2382_s1 + $0xb8] sm:$0xff]  }
  0x27   : >> { %1757 = vmatpush3.bf16.msra.mxu1 %v1985_v10  ;;  %v2019_v10 = vld [vmem:[%s2382_s1 + $0xb0] sm:$0xff]   ;;  %v449_v15 = vld [vmem:[%s2143_s23 + $0x1a] sm:$0xff]  ;;  %v2025_v26 = vld [vmem:[%s2382_s1 + $0xc8] sm:$0xff]  }
  0x28   : >> { %1837 = vmatpush3.bf16.msra.mxu0 %v1986_v13  ;;  %1758 = vmatprep.subr.bf16.mxu1 %v1987_v18  ;;  %v2022_v13 = vld [vmem:[%s2382_s1 + $0x1b8] sm:$0xff]   ;;  %v2023_v16 = vld [vmem:[%s2382_s1 + $0xc0] sm:$0xff]   ;;  %v1483_v22 = vld [vmem:[%s2143_s23 + $0x30] sm:$0xff] }
  0x29   : >> { %1838 = vmatprep.subr.bf16.mxu0 %v1988_v19  ;;  %v448_v14 = vld [vmem:[%s2143_s23 + $0x12] sm:$0xff]  ;;  %v1568_v17 = vld [vmem:[%s2143_s23 + $0x60] sm:$0xff]  ;;  %v2033_v36 = vld [vmem:[%s2382_s1 + $0xe8] sm:$0xff]  }
  0x2a   : >> { %v1594_v24 = vld [vmem:[%s2143_s23 + $0x51] sm:$0xff]  ;;  %v1595_v25 = vld [vmem:[%s2143_s23 + $0x59] sm:$0xff]  ;;  %v2034_v37 = vld [vmem:[%s2382_s1 + $0x1e8] sm:$0xff]  }
  0x2b   : >> { %1759 = vmatpush3.bf16.msra.mxu1 %v1987_v18  ;;  %v1569_v18 = vld [vmem:[%s2143_s23 + $0x68] sm:$0xff]  ;;  %v2029_v32 = vld [vmem:[%s2382_s1 + $0xd8] sm:$0xff]   ;;  %v2041_v53 = vld [vmem:[%s2382_s1 + $0x210] sm:$0xff]  }
  0x2c   : >> { %1839 = vmatpush3.bf16.msra.mxu0 %v1988_v19  ;;  %1760 = vmatprep.subr.bf16.mxu1 %v1989_v20  ;;  %v2024_v19 = vld [vmem:[%s2382_s1 + $0x1c0] sm:$0xff]   ;;  %v2030_v33 = vld [vmem:[%s2382_s1 + $0x1d8] sm:$0xff]   ;;  %v2044_v56 = vld [vmem:[%s2382_s1 + $0x228] sm:$0xff]  }
  0x2d   : >> { %1840 = vmatprep.subr.bf16.mxu0 %v1990_v21  ;;  %v2043_v55 = vld [vmem:[%s2382_s1 + $0x220] sm:$0xff]   ;;  %v2045_v57 = vld [vmem:[%s2382_s1 + $0x230] sm:$0xff]  }
  0x2e   : >> { %v1624_v59 = vld [vmem:[%s2143_s23 + $0x62] sm:$0xff] }
  0x2f   : >> { %1761 = vmatpush3.bf16.msra.mxu1 %v1989_v20  ;;  %v451_v20 = vpack.c.bf16 %v449_v15, %v448_v14 }
  0x30   : >> { %1841 = vmatpush3.bf16.msra.mxu0 %v1990_v21  ;;  %1766 = vmatprep.subr.bf16.mxu1 %v1991_v23  ;;  %v1482_v21 = vld [vmem:[%s2143_s23 + $0x28] sm:$0xff] }
  0x31   : >> { %1846 = vmatprep.subr.bf16.mxu0 %v1992_v27 }
  0x32   : >> { %1763 = vmatmul.mubr.bf16.vlgmr.msra.gmra.mrb[0].mxu1 %v234_v28  ;;  %v577_v28 = vpack.c.bf16 %v1483_v22, %v1482_v21 }
  0x33   : >> { %1767 = vmatpush3.bf16.msra.mxu1 %v1991_v23  ;;  %1843 = vmatmul.mubr.bf16.vlgmr.msra.gmra.mrb[0].mxu0 %v702_v29  ;;  %v953_v23 = vpack.c.bf16 %v1569_v18, %v1568_v17  ;;  %v1076_v29 = vpack.c.bf16 %v1595_v25, %v1594_v24 }
  0x34   : >> { %1847 = vmatpush3.bf16.msra.mxu0 %v1992_v27  ;;  %1768 = vmatprep.subr.bf16.mxu1 %v1993_v30  ;;  %v2026_v27 = vld [vmem:[%s2382_s1 + $0x1c8] sm:$0xff]  }
  0x35   : >> { %1848 = vmatprep.subr.bf16.mxu0 %v1994_v31  ;;  %1782 = vmatprep.mubr.bf16.mxu1 %v211_v35  ;;  %v2032_v35 = vld [vmem:[%s2382_s1 + $0x1e0] sm:$0xff]  }
  0x36   : >> { %1862 = vmatprep.mubr.bf16.mxu0 %v825_v39  ;;  %v2036_v39 = vld [vmem:[%s2382_s1 + $0x1f0] sm:$0xff]  }
  0x37   : >> { %1769 = vmatpush3.bf16.msra.mxu1 %v1993_v30  ;;  %v2027_v30 = vld [vmem:[%s2382_s1 + $0xd0] sm:$0xff]  }
  0x38   : >> { %1849 = vmatpush3.bf16.msra.mxu0 %v1994_v31  ;;  %1770 = vmatprep.subr.bf16.mxu1 %v1995_v34  ;;  %v2028_v31 = vld [vmem:[%s2382_s1 + $0x1d0] sm:$0xff]  }
  0x39   : >> { %1850 = vmatprep.subr.bf16.mxu0 %v1996_v38 }
  0x3b   : >> { %1771 = vmatpush3.bf16.msra.mxu1 %v1995_v34  ;;  %v2031_v34 = vld [vmem:[%s2382_s1 + $0xe0] sm:$0xff]  }
  0x3c   : >> { %1851 = vmatpush3.bf16.msra.mxu0 %v1996_v38  ;;  %1772 = vmatprep.subr.bf16.mxu1 %v1997_v40  ;;  %v2035_v38 = vld [vmem:[%s2382_s1 + $0xf0] sm:$0xff]  }
  0x3d   : >> { %1852 = vmatprep.subr.bf16.mxu0 %v1998_v41 }
  0x3f   : >> { %1773 = vmatpush3.bf16.msra.mxu1 %v1997_v40  ;;  %v2037_v40 = vld [vmem:[%s2382_s1 + $0xf8] sm:$0xff]  }
  0x40   : >> { %1853 = vmatpush3.bf16.msra.mxu0 %v1998_v41  ;;  %1774 = vmatprep.subr.bf16.mxu1 %v1999_v42  ;;  %v2038_v41 = vld [vmem:[%s2382_s1 + $0x1f8] sm:$0xff]  }
  0x41   : >> { %1854 = vmatprep.subr.bf16.mxu0 %v2000_v43 }
  0x43   : >> { %1775 = vmatpush3.bf16.msra.mxu1 %v1999_v42  ;;  %v1484_v42 = vld [vmem:[%s2143_s23 + $0x38] sm:$0xff] }
  0x44   : >> { %1855 = vmatpush3.bf16.msra.mxu0 %v2000_v43  ;;  %1776 = vmatprep.subr.bf16.mxu1 %v2001_v44  ;;  %v1485_v43 = vld [vmem:[%s2143_s23 + $0x40] sm:$0xff] }
  0x45   : >> { %1856 = vmatprep.subr.bf16.mxu0 %v2002_v45 }
  0x47   : >> { %1777 = vmatpush3.bf16.msra.mxu1 %v2001_v44  ;;  %v1596_v44 = vld [vmem:[%s2143_s23 + $0x61] sm:$0xff] }
  0x48   : >> { %1857 = vmatpush3.bf16.msra.mxu0 %v2002_v45  ;;  %1778 = vmatprep.subr.bf16.mxu1 %v2003_v46  ;;  %v1597_v45 = vld [vmem:[%s2143_s23 + $0x69] sm:$0xff] }
  0x49   : >> { %1858 = vmatprep.subr.bf16.mxu0 %v2004_v47  ;;  %v1077_v50 = vpack.c.bf16 %v1597_v45, %v1596_v44 }
  0x4b   : >> { %1779 = vmatpush3.bf16.msra.mxu1 %v2003_v46  ;;  %v2039_v46 = vld [vmem:[%s2382_s1 + $0x200] sm:$0xff]  }
  0x4c   : >> { %1859 = vmatpush3.bf16.msra.mxu0 %v2004_v47  ;;  %1780 = vmatprep.subr.bf16.mxu1 %v2005_v48  ;;  %v1622_v47 = vld [vmem:[%s2143_s23 + $0x52] sm:$0xff] }
  0x4d   : >> { %1860 = vmatprep.subr.bf16.mxu0 %v2006_v49 }
  0x4f   : >> { %1781 = vmatpush3.bf16.msra.mxu1 %v2005_v48  ;;  %v1623_v48 = vld [vmem:[%s2143_s23 + $0x5a] sm:$0xff] }
  0x50   : >> { %1861 = vmatpush3.bf16.msra.mxu0 %v2006_v49  ;;  %1786 = vmatprep.subr.bf16.mxu1 %v2007_v52  ;;  %v578_v49 = vpack.c.bf16 %v1485_v43, %v1484_v42  ;;  %v1200_v51 = vpack.c.bf16 %v1623_v48, %v1622_v47 }
  0x51   : >> { %1866 = vmatprep.subr.bf16.mxu0 %v2008_v54 }
  0x52   : >> { %1783 = vmatmul.mubr.bf16.vlgmr.msra.gmra.mrb[0].mxu1 %v212_v58  ;;  %v2046_v58 = vld [vmem:[%s2382_s1 + $0x238] sm:$0xff]  }
  0x53   : >> { %1787 = vmatpush3.bf16.msra.mxu1 %v2007_v52  ;;  %1863 = vmatmul.mubr.bf16.vlgmr.msra.gmra.mrb[0].mxu0 %v826_v60  ;;  %v2040_v52 = vld [vmem:[%s2382_s1 + $0x208] sm:$0xff]  }
  0x54   : >> { %1867 = vmatpush3.bf16.msra.mxu0 %v2008_v54  ;;  %1788 = vmatprep.subr.bf16.mxu1 %v2009_v62  ;;  %v2042_v54 = vld [vmem:[%s2382_s1 + $0x218] sm:$0xff]   ;;  %v1625_v60 = vld [vmem:[%s2143_s23 + $0x6a] sm:$0xff]  ;;  %s1343_s23 = scalar_lea.vmem %s2099_s21, %s1652_s26 }
  0x55   : >> { %1868 = vmatprep.subr.bf16.mxu0 %v2010_v63  ;;  %1802 = vmatprep.mubr.bf16.mxu1 %v450_v0  ;;  %v1201_v61 = vpack.c.bf16 %v1625_v60, %v1624_v59 }
  0x56   : >> { %1882 = vmatprep.mubr.bf16.mxu0 %v952_v1 }
  0x57   : >> { %1789 = vmatpush3.bf16.msra.mxu1 %v2009_v62 }
  0x58   : >> { %1869 = vmatpush3.bf16.msra.mxu0 %v2010_v63  ;;  %1790 = vmatprep.subr.bf16.mxu1 %v2011_v2 }
  0x59   : >> { %1870 = vmatprep.subr.bf16.mxu0 %v2012_v3 }
  0x5b   : >> { %1791 = vmatpush3.bf16.msra.mxu1 %v2011_v2 }
  0x5c   : >> { %1871 = vmatpush3.bf16.msra.mxu0 %v2012_v3  ;;  %1792 = vmatprep.subr.bf16.mxu1 %v2013_v4  ;;  %v1650_v3 = vld [vmem:[%s2383_s2] ss:$0 sm:$0xff] }
  0x5d   : >> { %1872 = vmatprep.subr.bf16.mxu0 %v2014_v5 }
  0x5f   : >> { %1793 = vmatpush3.bf16.msra.mxu1 %v2013_v4 }
  0x60   : >> { %1873 = vmatpush3.bf16.msra.mxu0 %v2014_v5  ;;  %1794 = vmatprep.subr.bf16.mxu1 %v2015_v6 }
  0x61   : >> { %1874 = vmatprep.subr.bf16.mxu0 %v2016_v7 }
  0x63   : >> { %1795 = vmatpush3.bf16.msra.mxu1 %v2015_v6  ;;  %v1651_v6 = vld [vmem:[%s2384_s3] ss:$0 sm:$0xff] }
  0x64   : >> { %1875 = vmatpush3.bf16.msra.mxu0 %v2016_v7  ;;  %1796 = vmatprep.subr.bf16.mxu1 %v2017_v8 }
  0x65   : >> { %1876 = vmatprep.subr.bf16.mxu0 %v2018_v9 }
  0x67   : >> { %1797 = vmatpush3.bf16.msra.mxu1 %v2017_v8 }
  0x68   : >> { %1877 = vmatpush3.bf16.msra.mxu0 %v2018_v9  ;;  %1798 = vmatprep.subr.bf16.mxu1 %v2019_v10 }
  0x69   : >> { %1878 = vmatprep.subr.bf16.mxu0 %v2020_v11 }
  0x6b   : >> { %1799 = vmatpush3.bf16.msra.mxu1 %v2019_v10 }
  0x6c   : >> { %1879 = vmatpush3.bf16.msra.mxu0 %v2020_v11  ;;  %1800 = vmatprep.subr.bf16.mxu1 %v2021_v12 }
  0x6d   : >> { %1880 = vmatprep.subr.bf16.mxu0 %v2022_v13 }
  0x6f   : >> { %1801 = vmatpush3.bf16.msra.mxu1 %v2021_v12 }
  0x70   : >> { %1881 = vmatpush3.bf16.msra.mxu0 %v2022_v13  ;;  %1806 = vmatprep.subr.bf16.mxu1 %v2023_v16 }
  0x71   : >> { %1886 = vmatprep.subr.bf16.mxu0 %v2024_v19 }
  0x72   : >> { %1803 = vmatmul.mubr.bf16.vlgmr.msra.gmra.mrb[0].mxu1 %v451_v20 }
  0x73   : >> { %1807 = vmatpush3.bf16.msra.mxu1 %v2023_v16  ;;  %1883 = vmatmul.mubr.bf16.vlgmr.msra.gmra.mrb[0].mxu0 %v953_v23 }
  0x74   : >> { %1887 = vmatpush3.bf16.msra.mxu0 %v2024_v19  ;;  %1808 = vmatprep.subr.bf16.mxu1 %v2025_v26 }
  0x75   : >> { %1888 = vmatprep.subr.bf16.mxu0 %v2026_v27  ;;  %1822 = vmatprep.mubr.bf16.mxu1 %v577_v28 }
  0x76   : >> { %1902 = vmatprep.mubr.bf16.mxu0 %v1076_v29 }
  0x77   : >> { %1809 = vmatpush3.bf16.msra.mxu1 %v2025_v26 }
  0x78   : >> { %1889 = vmatpush3.bf16.msra.mxu0 %v2026_v27  ;;  %1810 = vmatprep.subr.bf16.mxu1 %v2027_v30 }
  0x79   : >> { %1890 = vmatprep.subr.bf16.mxu0 %v2028_v31 }
  0x7b   : >> { %1811 = vmatpush3.bf16.msra.mxu1 %v2027_v30 }
  0x7c   : >> { %1891 = vmatpush3.bf16.msra.mxu0 %v2028_v31  ;;  %1812 = vmatprep.subr.bf16.mxu1 %v2029_v32 }
  0x7d   : >> { %1892 = vmatprep.subr.bf16.mxu0 %v2030_v33 }
  0x7f   : >> { %1813 = vmatpush3.bf16.msra.mxu1 %v2029_v32 }
  0x80   : >> { %1893 = vmatpush3.bf16.msra.mxu0 %v2030_v33  ;;  %1814 = vmatprep.subr.bf16.mxu1 %v2031_v34 }
  0x81   : >> { %1894 = vmatprep.subr.bf16.mxu0 %v2032_v35 }
  0x83   : >> { %1815 = vmatpush3.bf16.msra.mxu1 %v2031_v34 }
  0x84   : >> { %1895 = vmatpush3.bf16.msra.mxu0 %v2032_v35  ;;  %1816 = vmatprep.subr.bf16.mxu1 %v2033_v36 }
  0x85   : >> { %1896 = vmatprep.subr.bf16.mxu0 %v2034_v37 }
  0x87   : >> { %1817 = vmatpush3.bf16.msra.mxu1 %v2033_v36 }
  0x88   : >> { %1897 = vmatpush3.bf16.msra.mxu0 %v2034_v37  ;;  %1818 = vmatprep.subr.bf16.mxu1 %v2035_v38 }
  0x89   : >> { %1898 = vmatprep.subr.bf16.mxu0 %v2036_v39 }
  0x8b   : >> { %1819 = vmatpush3.bf16.msra.mxu1 %v2035_v38 }
  0x8c   : >> { %1899 = vmatpush3.bf16.msra.mxu0 %v2036_v39  ;;  %1820 = vmatprep.subr.bf16.mxu1 %v2037_v40 }
  0x8d   : >> { %1900 = vmatprep.subr.bf16.mxu0 %v2038_v41 }
  0x8f   : >> { %1821 = vmatpush3.bf16.msra.mxu1 %v2037_v40 }
  0x90   : >> { %1901 = vmatpush3.bf16.msra.mxu0 %v2038_v41 }
  0x91   : >> { %1906 = vmatprep.subr.bf16.mxu0 %v2039_v46 }
  0x92   : >> { %1823 = vmatmul.mubr.bf16.vlgmr.msra.gmra.mrb[0].mxu1 %v578_v49 }
  0x93   : >> { %1903 = vmatmul.mubr.bf16.vlgmr.msra.gmra.mrb[0].mxu0 %v1077_v50 }
  0x94   : >> { %1907 = vmatpush3.bf16.msra.mxu0 %v2039_v46  ;;  %1922 = vmatprep.mubr.bf16.mxu0 %v1200_v51 }
  0x95   : >> { %1908 = vmatprep.subr.bf16.mxu0 %v2040_v52 }
  0x98   : >> { %1909 = vmatpush3.bf16.msra.mxu0 %v2040_v52 }
  0x99   : >> { %1910 = vmatprep.subr.bf16.mxu0 %v2041_v53 }
  0x9c   : >> { %1911 = vmatpush3.bf16.msra.mxu0 %v2041_v53 }
  0x9d   : >> { %1912 = vmatprep.subr.bf16.mxu0 %v2042_v54 }
  0xa0   : >> { %1913 = vmatpush3.bf16.msra.mxu0 %v2042_v54 }
  0xa1   : >> { %1914 = vmatprep.subr.bf16.mxu0 %v2043_v55 }
  0xa4   : >> { %1915 = vmatpush3.bf16.msra.mxu0 %v2043_v55 }
  0xa5   : >> { %1916 = vmatprep.subr.bf16.mxu0 %v2044_v56 }
  0xa8   : >> { %1917 = vmatpush3.bf16.msra.mxu0 %v2044_v56 }
  0xa9   : >> { %1918 = vmatprep.subr.bf16.mxu0 %v2045_v57 }
  0xac   : >> { %1919 = vmatpush3.bf16.msra.mxu0 %v2045_v57 }
  0xad   : >> { %1920 = vmatprep.subr.bf16.mxu0 %v2046_v58 }
  0xb0   : >> { %1921 = vmatpush3.bf16.msra.mxu0 %v2046_v58 }
  0xb3   : >> { %1923 = vmatmul.mubr.bf16.vlgmr.msra.gmra.mrb[0].mxu0 %v1201_v61 }
 0x165   : >> { %v1824_v62 = vpop.f32.mrb[0].mxu1 }
 0x166   : >> { %v678_v63 = vpop.f32.mrb[1].mxu1 }
 0x167   : >> { %v1825_v0 = vpop.f32.mrb[2].mxu1 }
 0x168   : >> { %v681_v1 = vpop.f32.mrb[3].mxu1 }
 0x186   : >> { %v1924_v2 = vpop.f32.mrb[0].mxu0 }
 0x187   : >> { %v1926_v4 = vadd.f32 %v1924_v2, %v1824_v62  ;;  %v1301_v5 = vpop.f32.mrb[1].mxu0 }
 0x188   : >> { %v1927_v7 = vadd.f32 %v1301_v5, %v678_v63  ;;  %v1925_v8 = vpop.f32.mrb[2].mxu0 }
 0x189   : >> { %v1329_v9 = vmul.f32 %v1926_v4, %v1650_v3  ;;  %v1928_v10 = vadd.f32 %v1925_v8, %v1825_v0  ;;  %v1304_v11 = vpop.f32.mrb[3].mxu0 }
 0x18a   : >> { %v1327_v12 = vmul.f32 %v1927_v7, %v1650_v3  ;;  %v1929_v13 = vadd.f32 %v1304_v11, %v681_v1  ;;  %203 = sbr.rel (!%p201_p4) target bundleno = 17 (0x11), region = 85 }
 0x18b   : >> { %v1340_v14 = vadd.f32 %v1651_v6, %v1329_v9  ;;  %v1330_v15 = vmul.f32 %v1928_v10, %v1650_v3 }
 0x18c   : >> { %v1338_v16 = vadd.f32 %v1651_v6, %v1327_v12  ;;  %v1328_v17 = vmul.f32 %v1929_v13, %v1650_v3 }
 0x18d   : >> { %1346 = vst [vmem:[%s1343_s23 + $0x10] sm:$0xff] %v1340_v14  ;;  %v1341_v18 = vadd.f32 %v1651_v6, %v1330_v15 }
 0x18e   : >> { %1344 = vst [vmem:[%s1343_s23] sm:$0xff] %v1338_v16  ;;  %v1339_v19 = vadd.f32 %v1651_v6, %v1328_v17 }
 0x18f   : >> { %1347 = vst [vmem:[%s1343_s23 + $0x18] sm:$0xff] %v1341_v18 }
 0x190   : >> { %1345 = vst [vmem:[%s1343_s23 + $0x8] sm:$0xff] %v1339_v19 }
 0x191 PF: > { %s14_s15 = sadd.s32 1, %s2057_s15  }
 0x192   : > { %p11_p5 = scmp.ge.s32.totalorder %s14_s15, 4  }
 0x194   :  { %13 = sbr.rel (!%p11_p5) target bundleno = 1 (0x1), region = 96 }

// kernel: _lambda_.34
= control target key start
LH: loop header
LB: loop body
LE: loop exit
PB: predicated region body
PF: predicated region fallthrough
CT: control target
= control target key end

     0   :  { %s3042_s18 = smov 0   ;;  %s3554_s0 = inlined_call_operand.vmem [shape: f32[2,18,18,128], index: 0, kind: input, shape index: {}]   ;;  %s3555_s1 = inlined_call_operand.vmem [shape: bf16[9,128,128], index: 1, kind: input, shape index: {}]   ;;  %s3556_s2 = inlined_call_operand.vmem [shape: f32[1,128], index: 2, kind: input, shape index: {}]   ;;  %s3557_s3 = inlined_call_operand.vmem [shape: f32[1,128], index: 3, kind: input, shape index: {}]   ;;  %s3558_s4 = inlined_call_operand.vmem [shape: f32[32,16], index: 4, kind: input, shape index: {}]   ;;  %s3559_s5 = inlined_call_operand.vmem [shape: f32[2,32,32,128], index: 5, kind: output, shape index: {}]  }
   0x1 LB: > { %s2238_s19 = sadd.s32 4294967295, %s3004_s18   ;;  %p2242_p0 = scmp.ge.s32.totalorder %s3004_s18, 1  ;;  %s3004_s18 = sphi %s3042_s18, %s15_s18  }
   0x2   : > { %p187_p1 = scmp.lt.s32.totalorder %s3004_s18, 3 }
   0x4   : > { %p188_p2 = pnand %p2242_p0, %p187_p1 }
   0x5   : > { %p215_p3 = scmp.lt.s32.totalorder (!%p188_p2), %s2238_s19, 1  ;;  %s3060_s28 = smov (!%p188_p2), 0  }
   0x6   : > { %191 = sbr.rel (%p188_p2) target bundleno = 702 (0x2be), region = 40 }
   0xd   : > { %s3561_s19 = smov (!%p215_p3, %s2238_s19), 1 }
   0xe   : > { %s2903_s20 = smul.u32 432, %s3561_s19  ;;  %s2591_s21 = sshll.u32 %s3561_s19, 10 }
   0xf   : > { %s3053_s24 = scalar_lea.vmem %s3559_s5, %s2591_s21 }
  0x10   : > { %s3058_s27 = scalar_lea.vmem %s3554_s0, %s2903_s20 }
  0x11 LB: >> { %v2922_v0 = vld [vmem:[%s3555_s1 + $0x40] sm:$0xff]   ;;  %v3010_v1 = vmov 0.0   ;;  %v2924_v3 = vld [vmem:[%s3555_s1 + $0x48] sm:$0xff]   ;;  %vm3011_vm0 = vmmov 0   ;;  %v2926_v5 = vld [vmem:[%s3555_s1 + $0x50] sm:$0xff]   ;;  %s232_s26 = smul.u32 24, %s3008_s28  ;;  %s3008_s28 = sphi %s3060_s28, %s231_s28  }
  0x12   : >> { %2679 = vmatprep.subr.bf16.mxu1 %v3010_v1  ;;  %2759 = vmatprep.subr.bf16.mxu0 %v3010_v1  ;;  %v2923_v2 = vld [vmem:[%s3555_s1 + $0x100] sm:$0xff]   ;;  %v2925_v4 = vld [vmem:[%s3555_s1 + $0x108] sm:$0xff]   ;;  %v2927_v6 = vld [vmem:[%s3555_s1 + $0x110] sm:$0xff]   ;;  %vm1258_vm1 = vcmask 130048   ;;  %s2464_s21 = sshll.u32 %s3008_s28, 5  ;;  %s231_s28 = sadd.s32 1, %s3008_s28  }
  0x13   : >> { %2680 = vmatpush3.bf16.msra.mxu1 %v2922_v0  ;;  %2695 = vmatprep.mubr.msk.bf16.mxu1 %vm3011_vm0, %v3010_v1  ;;  %v2928_v7 = vld [vmem:[%s3555_s1 + $0x58] sm:$0xff]   ;;  %v2930_v9 = vld [vmem:[%s3555_s1 + $0x60] sm:$0xff]   ;;  %v2932_v11 = vld [vmem:[%s3555_s1 + $0x68] sm:$0xff]   ;;  %s3119_s8 = scalar_lea.vmem %s3058_s27, %s232_s26  ;;  %s1357_s22 = scalar_lea.vmem [#allocation2], %s2464_s21 }
  0x14   : >> { %2760 = vmatpush3.bf16.msra.mxu0 %v2923_v2  ;;  %2681 = vmatprep.subr.bf16.mxu1 %v3010_v1  ;;  %v2929_v8 = vld [vmem:[%s3555_s1 + $0x118] sm:$0xff]   ;;  %v2931_v10 = vld [vmem:[%s3555_s1 + $0x120] sm:$0xff]   ;;  %v2933_v12 = vld [vmem:[%s3555_s1 + $0x128] sm:$0xff]   ;;  %p228_p4 = scmp.ge.s32.totalorder %s231_s28, 16  }
  0x15   : >> { %2761 = vmatprep.subr.bf16.mxu0 %v3010_v1  ;;  %2775 = vmatprep.mubr.msk.bf16.mxu0 %vm3011_vm0, %v3010_v1  ;;  %v2934_v13 = vld [vmem:[%s3555_s1 + $0x70] sm:$0xff]   ;;  %v2936_v15 = vld [vmem:[%s3555_s1 + $0x78] sm:$0xff]   ;;  %v253_v16 = vld [vmem:[%s3119_s8 + $0x1] sm:$0xff] }
  0x16   : >> { %v2935_v14 = vld [vmem:[%s3555_s1 + $0x130] sm:$0xff]   ;;  %v2937_v17 = vld [vmem:[%s3555_s1 + $0x138] sm:$0xff]   ;;  %v2329_v20 = vld [vmem:[%s3119_s8 + $0x21] sm:$0xff] }
  0x17   : >> { %2682 = vmatpush3.bf16.msra.mxu1 %v2924_v3  ;;  %v254_v18 = vld [vmem:[%s3119_s8 + $0x9] sm:$0xff]  ;;  %v2328_v19 = vld [vmem:[%s3119_s8 + $0x19] sm:$0xff] }
  0x18   : >> { %2762 = vmatpush3.bf16.msra.mxu0 %v2925_v4  ;;  %2683 = vmatprep.subr.bf16.mxu1 %v3010_v1  ;;  %v255_v21 = vpack.c.bf16 %v254_v18, %v253_v16  ;;  %v2938_v22 = vld [vmem:[%s3555_s1] sm:$0xff]   ;;  %v678_v23 = vpack.c.bf16 %v2329_v20, %v2328_v19  ;;  %v2940_v25 = vld [vmem:[%s3555_s1 + $0x8] sm:$0xff]   ;;  %v2942_v27 = vld [vmem:[%s3555_s1 + $0x10] sm:$0xff]  }
  0x19   : >> { %2763 = vmatprep.subr.bf16.mxu0 %v3010_v1  ;;  %v2939_v24 = vld [vmem:[%s3555_s1 + $0x140] sm:$0xff]   ;;  %v2941_v26 = vld [vmem:[%s3555_s1 + $0x148] sm:$0xff]   ;;  %v2943_v28 = vld [vmem:[%s3555_s1 + $0x150] sm:$0xff]  }
  0x1a   : >> { %v2944_v29 = vld [vmem:[%s3555_s1 + $0x18] sm:$0xff]   ;;  %v2946_v31 = vld [vmem:[%s3555_s1 + $0x20] sm:$0xff]   ;;  %v2948_v33 = vld [vmem:[%s3555_s1 + $0x28] sm:$0xff]  }
  0x1b   : >> { %2684 = vmatpush3.bf16.msra.mxu1 %v2926_v5  ;;  %v2945_v30 = vld [vmem:[%s3555_s1 + $0x158] sm:$0xff]   ;;  %v2947_v32 = vld [vmem:[%s3555_s1 + $0x160] sm:$0xff]   ;;  %v2949_v34 = vld [vmem:[%s3555_s1 + $0x168] sm:$0xff]  }
  0x1c   : >> { %2764 = vmatpush3.bf16.msra.mxu0 %v2927_v6  ;;  %2685 = vmatprep.subr.bf16.mxu1 %v3010_v1  ;;  %v2950_v35 = vld [vmem:[%s3555_s1 + $0x30] sm:$0xff]   ;;  %v2952_v37 = vld [vmem:[%s3555_s1 + $0x38] sm:$0xff]   ;;  %v234_v38 = vld [vmem:[%s3119_s8] sm:$0xff] }
  0x1d   : >> { %2765 = vmatprep.subr.bf16.mxu0 %v3010_v1  ;;  %v2951_v36 = vld [vmem:[%s3555_s1 + $0x170] sm:$0xff]   ;;  %v2953_v39 = vld [vmem:[%s3555_s1 + $0x178] sm:$0xff]   ;;  %v235_v40 = vld [vmem:[%s3119_s8 + $0x8] sm:$0xff] }
  0x1e   : >> { %v2354_v41 = vld [vmem:[%s3119_s8 + $0x1a] sm:$0xff]  ;;  %v2355_v42 = vld [vmem:[%s3119_s8 + $0x22] sm:$0xff]  ;;  %v236_v43 = vpack.c.bf16 %v235_v40, %v234_v38  ;;  %v2958_v49 = vld [vmem:[%s3555_s1 + $0x90] sm:$0xff]  }
  0x1f   : >> { %2686 = vmatpush3.bf16.msra.mxu1 %v2928_v7  ;;  %v2954_v44 = vld [vmem:[%s3555_s1 + $0x80] sm:$0xff]   ;;  %v789_v45 = vpack.c.bf16 %v2355_v42, %v2354_v41  ;;  %v2956_v47 = vld [vmem:[%s3555_s1 + $0x88] sm:$0xff]   ;;  %v2959_v50 = vld [vmem:[%s3555_s1 + $0x190] sm:$0xff]  }
  0x20   : >> { %2766 = vmatpush3.bf16.msra.mxu0 %v2929_v8  ;;  %2687 = vmatprep.subr.bf16.mxu1 %v3010_v1  ;;  %v2955_v46 = vld [vmem:[%s3555_s1 + $0x180] sm:$0xff]   ;;  %v2957_v48 = vld [vmem:[%s3555_s1 + $0x188] sm:$0xff]   ;;  %v2960_v51 = vld [vmem:[%s3555_s1 + $0x98] sm:$0xff]  }
  0x21   : >> { %2767 = vmatprep.subr.bf16.mxu0 %v3010_v1  ;;  %v2961_v52 = vld [vmem:[%s3555_s1 + $0x198] sm:$0xff]   ;;  %v2962_v53 = vld [vmem:[%s3555_s1 + $0xa0] sm:$0xff]   ;;  %v2964_v55 = vld [vmem:[%s3555_s1 + $0xa8] sm:$0xff]  }
  0x22   : >> { %v2963_v54 = vld [vmem:[%s3555_s1 + $0x1a0] sm:$0xff]   ;;  %v2965_v56 = vld [vmem:[%s3555_s1 + $0x1a8] sm:$0xff]   ;;  %v2966_v57 = vld [vmem:[%s3555_s1 + $0xb0] sm:$0xff]  }
  0x23   : >> { %2688 = vmatpush3.bf16.msra.mxu1 %v2930_v9  ;;  %v2967_v58 = vld [vmem:[%s3555_s1 + $0x1b0] sm:$0xff]   ;;  %v2968_v59 = vld [vmem:[%s3555_s1 + $0xb8] sm:$0xff]   ;;  %v451_v60 = vld [vmem:[%s3119_s8 + $0x2] sm:$0xff] }
  0x24   : >> { %2768 = vmatpush3.bf16.msra.mxu0 %v2931_v10  ;;  %2689 = vmatprep.subr.bf16.mxu1 %v3010_v1  ;;  %v452_v61 = vld [vmem:[%s3119_s8 + $0xa] sm:$0xff]  ;;  %v2969_v62 = vld [vmem:[%s3555_s1 + $0x1b8] sm:$0xff]   ;;  %v2970_v3 = vld [vmem:[%s3555_s1 + $0xc0] sm:$0xff]  }
  0x25   : >> { %2769 = vmatprep.subr.bf16.mxu0 %v3010_v1  ;;  %v2380_v63 = vld [vmem:[%s3119_s8 + $0x30] sm:$0xff]  ;;  %v2381_v0 = vld [vmem:[%s3119_s8 + $0x38] sm:$0xff]  ;;  %v453_v2 = vpack.c.bf16 %v452_v61, %v451_v60  ;;  %v2971_v5 = vld [vmem:[%s3555_s1 + $0x1c0] sm:$0xff]  }
  0x26   : >> { %v903_v4 = vpack.c.bf16 %v2381_v0, %v2380_v63  ;;  %v2972_v6 = vld [vmem:[%s3555_s1 + $0xc8] sm:$0xff]   ;;  %v2974_v8 = vld [vmem:[%s3555_s1 + $0xd0] sm:$0xff]   ;;  %v2976_v10 = vld [vmem:[%s3555_s1 + $0xd8] sm:$0xff]  }
  0x27   : >> { %2690 = vmatpush3.bf16.msra.mxu1 %v2932_v11  ;;  %v2973_v7 = vld [vmem:[%s3555_s1 + $0x1c8] sm:$0xff]   ;;  %v2975_v9 = vld [vmem:[%s3555_s1 + $0x1d0] sm:$0xff]   ;;  %v2977_v11 = vld [vmem:[%s3555_s1 + $0x1d8] sm:$0xff]  }
  0x28   : >> { %2770 = vmatpush3.bf16.msra.mxu0 %v2933_v12  ;;  %2691 = vmatprep.subr.bf16.mxu1 %v3010_v1  ;;  %v2978_v12 = vld [vmem:[%s3555_s1 + $0xe0] sm:$0xff]   ;;  %v2982_v16 = vld [vmem:[%s3555_s1 + $0xf0] sm:$0xff]   ;;  %v2984_v18 = vld [vmem:[%s3555_s1 + $0xf8] sm:$0xff]  }
  0x29   : >> { %2771 = vmatprep.subr.bf16.mxu0 %v3010_v1  ;;  %v2302_v19 = vld [vmem:[%s3119_s8 + $0x18] sm:$0xff]  ;;  %v2303_v20 = vld [vmem:[%s3119_s8 + $0x20] sm:$0xff] }
  0x2b   : >> { %2692 = vmatpush3.bf16.msra.mxu1 %v2934_v13  ;;  %v2979_v13 = vld [vmem:[%s3555_s1 + $0x1e0] sm:$0xff]  }
  0x2c   : >> { %2772 = vmatpush3.bf16.msra.mxu0 %v2935_v14  ;;  %2693 = vmatprep.subr.bf16.mxu1 %v3010_v1  ;;  %v2980_v14 = vld [vmem:[%s3555_s1 + $0xe8] sm:$0xff]  }
  0x2d   : >> { %2773 = vmatprep.subr.bf16.mxu0 %v3010_v1 }
  0x2f   : >> { %2694 = vmatpush3.bf16.msra.mxu1 %v2936_v15  ;;  %v2981_v15 = vld [vmem:[%s3555_s1 + $0x1e8] sm:$0xff]  }
  0x30   : >> { %2774 = vmatpush3.bf16.msra.mxu0 %v2937_v17  ;;  %2699 = vmatprep.subr.bf16.mxu1 %v3010_v1  ;;  %v2983_v17 = vld [vmem:[%s3555_s1 + $0x1f0] sm:$0xff]  }
  0x31   : >> { %2779 = vmatprep.subr.bf16.mxu0 %v3010_v1 }
  0x32   : >> { %2696 = vmatmul.mubr.bf16.vlgmr.msra.gmra.mrb[0].mxu1 %v255_v21  ;;  %v2985_v21 = vld [vmem:[%s3555_s1 + $0x1f8] sm:$0xff]  }
  0x33   : >> { %2700 = vmatpush3.bf16.msra.mxu1 %v2938_v22  ;;  %2776 = vmatmul.mubr.bf16.vlgmr.msra.gmra.mrb[0].mxu0 %v678_v23  ;;  %v2406_v22 = vld [vmem:[%s3119_s8 + $0x31] sm:$0xff]  ;;  %v2407_v23 = vld [vmem:[%s3119_s8 + $0x39] sm:$0xff] }
  0x34   : >> { %2780 = vmatpush3.bf16.msra.mxu0 %v2939_v24  ;;  %2701 = vmatprep.subr.bf16.mxu1 %v3010_v1  ;;  %v567_v24 = vpack.c.bf16 %v2303_v20, %v2302_v19 }
  0x35   : >> { %2781 = vmatprep.subr.bf16.mxu0 %v3010_v1  ;;  %2715 = vmatprep.mubr.msk.bf16.mxu1 %vm3011_vm0, %v3010_v1 }
  0x36   : >> { %2795 = vmatprep.mubr.msk.bf16.mxu0 %vm3011_vm0, %v3010_v1 }
  0x37   : >> { %2702 = vmatpush3.bf16.msra.mxu1 %v2940_v25  ;;  %v1014_v25 = vpack.c.bf16 %v2407_v23, %v2406_v22 }
  0x38   : >> { %2782 = vmatpush3.bf16.msra.mxu0 %v2941_v26  ;;  %2703 = vmatprep.subr.bf16.mxu1 %v3010_v1  ;;  %v2986_v26 = vld [vmem:[%s3555_s1 + $0x200] sm:$0xff]  }
  0x39   : >> { %2783 = vmatprep.subr.bf16.mxu0 %v3010_v1 }
  0x3b   : >> { %2704 = vmatpush3.bf16.msra.mxu1 %v2942_v27  ;;  %v2987_v27 = vld [vmem:[%s3555_s1 + $0x208] sm:$0xff]  }
  0x3c   : >> { %2784 = vmatpush3.bf16.msra.mxu0 %v2943_v28  ;;  %2705 = vmatprep.subr.bf16.mxu1 %v3010_v1  ;;  %v2988_v28 = vld [vmem:[%s3555_s1 + $0x210] sm:$0xff]  }
  0x3d   : >> { %2785 = vmatprep.subr.bf16.mxu0 %v3010_v1 }
  0x3f   : >> { %2706 = vmatpush3.bf16.msra.mxu1 %v2944_v29  ;;  %v2989_v29 = vld [vmem:[%s3555_s1 + $0x218] sm:$0xff]  }
  0x40   : >> { %2786 = vmatpush3.bf16.msra.mxu0 %v2945_v30  ;;  %2707 = vmatprep.subr.bf16.mxu1 %v3010_v1  ;;  %v2990_v30 = vld [vmem:[%s3555_s1 + $0x220] sm:$0xff]  }
  0x41   : >> { %2787 = vmatprep.subr.bf16.mxu0 %v3010_v1 }
  0x43   : >> { %2708 = vmatpush3.bf16.msra.mxu1 %v2946_v31  ;;  %v2991_v31 = vld [vmem:[%s3555_s1 + $0x228] sm:$0xff]  }
  0x44   : >> { %2788 = vmatpush3.bf16.msra.mxu0 %v2947_v32  ;;  %2709 = vmatprep.subr.bf16.mxu1 %v3010_v1  ;;  %v2992_v32 = vld [vmem:[%s3555_s1 + $0x230] sm:$0xff]  }
  0x45   : >> { %2789 = vmatprep.subr.bf16.mxu0 %v3010_v1 }
  0x47   : >> { %2710 = vmatpush3.bf16.msra.mxu1 %v2948_v33  ;;  %v2993_v33 = vld [vmem:[%s3555_s1 + $0x238] sm:$0xff]  }
  0x48   : >> { %2790 = vmatpush3.bf16.msra.mxu0 %v2949_v34  ;;  %2711 = vmatprep.subr.bf16.mxu1 %v3010_v1  ;;  %v2432_v34 = vld [vmem:[%s3119_s8 + $0x32] sm:$0xff] }
  0x49   : >> { %2791 = vmatprep.subr.bf16.mxu0 %v3010_v1 }
  0x4b   : >> { %2712 = vmatpush3.bf16.msra.mxu1 %v2950_v35  ;;  %v2433_v35 = vld [vmem:[%s3119_s8 + $0x3a] sm:$0xff] }
  0x4c   : >> { %2792 = vmatpush3.bf16.msra.mxu0 %v2951_v36  ;;  %2713 = vmatprep.subr.bf16.mxu1 %v3010_v1  ;;  %v1125_v36 = vpack.c.bf16 %v2433_v35, %v2432_v34 }
  0x4d   : >> { %2793 = vmatprep.subr.bf16.mxu0 %v3010_v1 }
  0x4f   : >> { %2714 = vmatpush3.bf16.msra.mxu1 %v2952_v37  ;;  %v1254_v37 = vld [vmem:[%s3558_s4] sm:$0xff] }
  0x50   : >> { %2794 = vmatpush3.bf16.msra.mxu0 %v2953_v39  ;;  %2719 = vmatprep.subr.bf16.mxu1 %v3010_v1 }
  0x51   : >> { %2799 = vmatprep.subr.bf16.mxu0 %v3010_v1 }
  0x52   : >> { %2716 = vmatmul.mubr.bf16.vlgmr.msra.gmra.mrb[0].mxu1 %v236_v43  ;;  %v2458_v43 = vld [vmem:[%s3556_s2] ss:$0 sm:$0xff] }
  0x53   : >> { %2720 = vmatpush3.bf16.msra.mxu1 %v2954_v44  ;;  %2796 = vmatmul.mubr.bf16.vlgmr.msra.gmra.mrb[0].mxu0 %v789_v45  ;;  %v2459_v45 = vld [vmem:[%s3557_s3] ss:$0 sm:$0xff] }
  0x54   : >> { %2800 = vmatpush3.bf16.msra.mxu0 %v2955_v46  ;;  %2721 = vmatprep.subr.bf16.mxu1 %v3010_v1 }
  0x55   : >> { %2801 = vmatprep.subr.bf16.mxu0 %v3010_v1  ;;  %2735 = vmatprep.mubr.msk.bf16.mxu1 %vm3011_vm0, %v3010_v1 }
  0x56   : >> { %2815 = vmatprep.mubr.msk.bf16.mxu0 %vm3011_vm0, %v3010_v1 }
  0x57   : >> { %2722 = vmatpush3.bf16.msra.mxu1 %v2956_v47 }
  0x58   : >> { %2802 = vmatpush3.bf16.msra.mxu0 %v2957_v48  ;;  %2723 = vmatprep.subr.bf16.mxu1 %v3010_v1 }
  0x59   : >> { %2803 = vmatprep.subr.bf16.mxu0 %v3010_v1 }
  0x5b   : >> { %2724 = vmatpush3.bf16.msra.mxu1 %v2958_v49 }
  0x5c   : >> { %2804 = vmatpush3.bf16.msra.mxu0 %v2959_v50  ;;  %2725 = vmatprep.subr.bf16.mxu1 %v3010_v1 }
  0x5d   : >> { %2805 = vmatprep.subr.bf16.mxu0 %v3010_v1 }
  0x5f   : >> { %2726 = vmatpush3.bf16.msra.mxu1 %v2960_v51 }
  0x60   : >> { %2806 = vmatpush3.bf16.msra.mxu0 %v2961_v52  ;;  %2727 = vmatprep.subr.bf16.mxu1 %v3010_v1 }
  0x61   : >> { %2807 = vmatprep.subr.bf16.mxu0 %v3010_v1 }
  0x63   : >> { %2728 = vmatpush3.bf16.msra.mxu1 %v2962_v53 }
  0x64   : >> { %2808 = vmatpush3.bf16.msra.mxu0 %v2963_v54  ;;  %2729 = vmatprep.subr.bf16.mxu1 %v3010_v1 }
  0x65   : >> { %2809 = vmatprep.subr.bf16.mxu0 %v3010_v1 }
  0x67   : >> { %2730 = vmatpush3.bf16.msra.mxu1 %v2964_v55 }
  0x68   : >> { %2810 = vmatpush3.bf16.msra.mxu0 %v2965_v56  ;;  %2731 = vmatprep.subr.bf16.mxu1 %v3010_v1  ;;  %v1255_v56 = vld [vmem:[%s3558_s4 + $0x8] sm:$0xff] }
  0x69   : >> { %2811 = vmatprep.subr.bf16.mxu0 %v3010_v1 }
  0x6b   : >> { %2732 = vmatpush3.bf16.msra.mxu1 %v2966_v57  ;;  %v1256_v57 = vld [vmem:[%s3558_s4 + $0x10] sm:$0xff] }
  0x6c   : >> { %2812 = vmatpush3.bf16.msra.mxu0 %v2967_v58  ;;  %2733 = vmatprep.subr.bf16.mxu1 %v3010_v1  ;;  %v1257_v58 = vld [vmem:[%s3558_s4 + $0x18] sm:$0xff] }
  0x6d   : >> { %2813 = vmatprep.subr.bf16.mxu0 %v3010_v1 }
  0x6f   : >> { %2734 = vmatpush3.bf16.msra.mxu1 %v2968_v59 }
  0x70   : >> { %2814 = vmatpush3.bf16.msra.mxu0 %v2969_v62  ;;  %2739 = vmatprep.subr.bf16.mxu1 %v3010_v1 }
  0x71   : >> { %2819 = vmatprep.subr.bf16.mxu0 %v3010_v1 }
  0x72   : >> { %2736 = vmatmul.mubr.bf16.vlgmr.msra.gmra.mrb[0].mxu1 %v453_v2 }
  0x73   : >> { %2740 = vmatpush3.bf16.msra.mxu1 %v2970_v3  ;;  %2816 = vmatmul.mubr.bf16.vlgmr.msra.gmra.mrb[0].mxu0 %v903_v4 }
  0x74   : >> { %2820 = vmatpush3.bf16.msra.mxu0 %v2971_v5  ;;  %2741 = vmatprep.subr.bf16.mxu1 %v3010_v1 }
  0x75   : >> { %2821 = vmatprep.subr.bf16.mxu0 %v3010_v1  ;;  %2755 = vmatprep.mubr.msk.bf16.mxu1 %vm3011_vm0, %v3010_v1 }
  0x76   : >> { %2835 = vmatprep.mubr.msk.bf16.mxu0 %vm3011_vm0, %v3010_v1 }
  0x77   : >> { %2742 = vmatpush3.bf16.msra.mxu1 %v2972_v6 }
  0x78   : >> { %2822 = vmatpush3.bf16.msra.mxu0 %v2973_v7  ;;  %2743 = vmatprep.subr.bf16.mxu1 %v3010_v1 }
  0x79   : >> { %2823 = vmatprep.subr.bf16.mxu0 %v3010_v1 }
  0x7b   : >> { %2744 = vmatpush3.bf16.msra.mxu1 %v2974_v8 }
  0x7c   : >> { %2824 = vmatpush3.bf16.msra.mxu0 %v2975_v9  ;;  %2745 = vmatprep.subr.bf16.mxu1 %v3010_v1 }
  0x7d   : >> { %2825 = vmatprep.subr.bf16.mxu0 %v3010_v1 }
  0x7f   : >> { %2746 = vmatpush3.bf16.msra.mxu1 %v2976_v10 }
  0x80   : >> { %2826 = vmatpush3.bf16.msra.mxu0 %v2977_v11  ;;  %2747 = vmatprep.subr.bf16.mxu1 %v3010_v1 }
  0x81   : >> { %2827 = vmatprep.subr.bf16.mxu0 %v3010_v1 }
  0x83   : >> { %2748 = vmatpush3.bf16.msra.mxu1 %v2978_v12 }
  0x84   : >> { %2828 = vmatpush3.bf16.msra.mxu0 %v2979_v13  ;;  %2749 = vmatprep.subr.bf16.mxu1 %v3010_v1 }
  0x85   : >> { %2829 = vmatprep.subr.bf16.mxu0 %v3010_v1 }
  0x87   : >> { %2750 = vmatpush3.bf16.msra.mxu1 %v2980_v14 }
  0x88   : >> { %2830 = vmatpush3.bf16.msra.mxu0 %v2981_v15  ;;  %2751 = vmatprep.subr.bf16.mxu1 %v3010_v1 }
  0x89   : >> { %2831 = vmatprep.subr.bf16.mxu0 %v3010_v1 }
  0x8b   : >> { %2752 = vmatpush3.bf16.msra.mxu1 %v2982_v16 }
  0x8c   : >> { %2832 = vmatpush3.bf16.msra.mxu0 %v2983_v17  ;;  %2753 = vmatprep.subr.bf16.mxu1 %v3010_v1 }
  0x8d   : >> { %2833 = vmatprep.subr.bf16.mxu0 %v3010_v1 }
  0x8f   : >> { %2754 = vmatpush3.bf16.msra.mxu1 %v2984_v18 }
  0x90   : >> { %2834 = vmatpush3.bf16.msra.mxu0 %v2985_v21 }
  0x91   : >> { %2839 = vmatprep.subr.bf16.mxu0 %v3010_v1 }
  0x92   : >> { %2756 = vmatmul.mubr.bf16.vlgmr.msra.gmra.mrb[0].mxu1 %v567_v24 }
  0x93   : >> { %2836 = vmatmul.mubr.bf16.vlgmr.msra.gmra.mrb[0].mxu0 %v1014_v25  ;;  %2863 = vmatprep.mubr.msk.f32.mxu1 %vm1258_vm1, %v1254_v37 }
  0x94   : >> { %2840 = vmatpush3.bf16.msra.mxu0 %v2986_v26  ;;  %2855 = vmatprep.mubr.msk.bf16.mxu0 %vm3011_vm0, %v3010_v1 }
  0x95   : >> { %2841 = vmatprep.subr.bf16.mxu0 %v3010_v1 }
  0x98   : >> { %2842 = vmatpush3.bf16.msra.mxu0 %v2987_v27 }
  0x99   : >> { %2843 = vmatprep.subr.bf16.mxu0 %v3010_v1 }
  0x9c   : >> { %2844 = vmatpush3.bf16.msra.mxu0 %v2988_v28 }
  0x9d   : >> { %2845 = vmatprep.subr.bf16.mxu0 %v3010_v1 }
  0xa0   : >> { %2846 = vmatpush3.bf16.msra.mxu0 %v2989_v29 }
  0xa1   : >> { %2847 = vmatprep.subr.bf16.mxu0 %v3010_v1 }
  0xa4   : >> { %2848 = vmatpush3.bf16.msra.mxu0 %v2990_v30 }
  0xa5   : >> { %2849 = vmatprep.subr.bf16.mxu0 %v3010_v1 }
  0xa8   : >> { %2850 = vmatpush3.bf16.msra.mxu0 %v2991_v31 }
  0xa9   : >> { %2851 = vmatprep.subr.bf16.mxu0 %v3010_v1 }
  0xac   : >> { %2852 = vmatpush3.bf16.msra.mxu0 %v2992_v32 }
  0xad   : >> { %2853 = vmatprep.subr.bf16.mxu0 %v3010_v1 }
  0xb0   : >> { %2854 = vmatpush3.bf16.msra.mxu0 %v2993_v33 }
  0xb3   : >> { %2856 = vmatmul.mubr.bf16.vlgmr.msra.gmra.mrb[0].mxu0 %v1125_v36 }
 0x165   : >> { %v667_v38 = vpop.f32.mrb[0].mxu1 }
 0x166   : >> { %v2757_v39 = vpop.f32.mrb[1].mxu1 }
 0x167   : >> { %v670_v40 = vpop.f32.mrb[2].mxu1 }
 0x168   : >> { %v2758_v41 = vpop.f32.mrb[3].mxu1 }
 0x186   : >> { %v1225_v42 = vpop.f32.mrb[0].mxu0 }
 0x187   : >> { %v2873_v1 = vadd.f32 %v1225_v42, %v667_v38  ;;  %v2857_v44 = vpop.f32.mrb[1].mxu0 }
 0x188   : >> { %v1228_v46 = vpop.f32.mrb[2].mxu0 }
 0x189   : >> { %v1241_v47 = vmul.f32 %v2873_v1, %v2458_v43  ;;  %v2874_v48 = vadd.f32 %v1228_v46, %v670_v40  ;;  %v2858_v49 = vpop.f32.mrb[3].mxu0 }
 0x18b   : >> { %v1250_v50 = vadd.f32 %v2459_v45, %v1241_v47  ;;  %v1242_v51 = vmul.f32 %v2874_v48, %v2458_v43 }
 0x18d   : >> { %v1251_v52 = vadd.f32 %v2459_v45, %v1242_v51  ;;  %v1252_v53 = vmax.f32 %v1250_v50, 0.0 }
 0x18f   : >> { %v1253_v54 = vmax.f32 %v1251_v52, 0.0 }
 0x191   : >> { %v2869_v55 = vpack.c.bf16 %v1253_v54, %v1252_v53 }
 0x193   : >> { %2870 = vmatprep.subr.bf16.mxu1 %v2869_v55 }
 0x194   : >> { %2872 = vmatpush3.bf16.msra.mxu1 %v2869_v55 }
 0x197   : >> { %2864 = vmatmul.mubr.msk.f32.vlgmr.msra.gmra.mrb[4].mxu1 %vm1258_vm1, %v1255_v56 }
 0x198   : >> { %2866 = vmatprep.mubr.msk.f32.mxu1 %vm1258_vm1, %v1256_v57 }
 0x19b   : >> { %2867 = vmatmul.mubr.msk.f32.gmra.mrb[6].mxu1 %vm1258_vm1, %v1257_v58 }
 0x26a   : >> { %v2865_v59 = vpop.f32.mrb[4].mxu1  ;;  %230 = sbr.rel (!%p228_p4) target bundleno = 17 (0x11), region = 135 }
 0x26b   : >> { %1359 = vst [vmem:[%s1357_s22 + $0x8] sm:$0xff] %v2865_v59  ;;  %v1337_v60 = vpop.f32.mrb[5].mxu1 }
 0x26c   : >> { %1358 = vst [vmem:[%s1357_s22] sm:$0xff] %v1337_v60 }
 0x26e   : >> { %v2868_v61 = vpop.f32.mrb[6].mxu1 }
 0x26f   : >> { %1361 = vst [vmem:[%s1357_s22 + $0x18] sm:$0xff] %v2868_v61  ;;  %v1347_v62 = vpop.f32.mrb[7].mxu1 }
 0x270   : >> { %1360 = vst [vmem:[%s1357_s22 + $0x10] sm:$0xff] %v1347_v62 }
 0x277   : > { %v1362_v63 = vld [vmem:[#allocation2] sm:$0xff]  ;;  %v1363_v2 = vld [vmem:[#allocation2 + $0x8] sm:$0xff]  ;;  %v1364_v5 = vld [vmem:[#allocation2 + $0x10] sm:$0xff] }
 0x278   : > { %v1367_v0 = vld [vmem:[#allocation2 + $0x20] sm:$0xff]  ;;  %v1368_v4 = vld [vmem:[#allocation2 + $0x28] sm:$0xff]  ;;  %v1369_v6 = vld [vmem:[#allocation2 + $0x30] sm:$0xff]  ;;  %v1387_v7 = vmul.f32 0.75, %v1362_v63  ;;  %v1388_v13 = vmul.f32 0.75, %v1363_v2  ;;  %v1389_v18 = vmul.f32 0.75, %v1364_v5 }
 0x279   : > { %v1371_v3 = vmul.f32 0.0, %v1367_v0  ;;  %v3419_v8 = vmul.f32 0.25, %v1367_v0  ;;  %v1372_v9 = vmul.f32 0.0, %v1368_v4  ;;  %v1373_v10 = vmul.f32 0.0, %v1369_v6  ;;  %v1365_v11 = vld [vmem:[#allocation2 + $0x18] sm:$0xff]  ;;  %v1442_v27 = vld [vmem:[#allocation2 + $0x40] sm:$0xff] }
 0x27a   : > { %v1370_v12 = vld [vmem:[#allocation2 + $0x38] sm:$0xff]  ;;  %v1396_v14 = vmul.f32 0.25, %v1368_v4  ;;  %v1397_v22 = vmul.f32 0.25, %v1369_v6  ;;  %v1390_v24 = vmul.f32 0.75, %v1365_v11  ;;  %v1412_v26 = vmul.f32 0.25, %v1362_v63  ;;  %v1443_v32 = vld [vmem:[#allocation2 + $0x48] sm:$0xff] }
 0x27b   : > { %v1375_v15 = vadd.f32 %v1371_v3, %v1362_v63  ;;  %v1374_v16 = vmul.f32 0.0, %v1370_v12  ;;  %v1399_v17 = vadd.f32 %v3419_v8, %v1387_v7  ;;  %v1376_v19 = vadd.f32 %v1372_v9, %v1363_v2  ;;  %v1444_v33 = vld [vmem:[#allocation2 + $0x50] sm:$0xff]  ;;  %v1445_v34 = vld [vmem:[#allocation2 + $0x58] sm:$0xff]  ;;  %v1493_v46 = vld [vmem:[#allocation2 + $0x60] sm:$0xff] }
 0x27c   : > { %v1377_v20 = vadd.f32 %v1373_v10, %v1364_v5  ;;  %v1400_v21 = vadd.f32 %v1396_v14, %v1388_v13  ;;  %v1398_v25 = vmul.f32 0.25, %v1370_v12  ;;  %v1401_v28 = vadd.f32 %v1397_v22, %v1389_v18  ;;  %v1494_v51 = vld [vmem:[#allocation2 + $0x68] sm:$0xff]  ;;  %v1495_v52 = vld [vmem:[#allocation2 + $0x70] sm:$0xff]  ;;  %v1496_v53 = vld [vmem:[#allocation2 + $0x78] sm:$0xff] }
 0x27d   : > { %1379 = vst [vmem:[%s3053_s24] sm:$0xff] %v1375_v15  ;;  %v1378_v23 = vadd.f32 %v1374_v16, %v1365_v11  ;;  %2465 = vst [vmem:[%s3053_s24 + $0x20] sm:$0xff] %v1399_v17  ;;  %v1420_v29 = vmul.f32 0.75, %v1367_v0  ;;  %v1413_v30 = vmul.f32 0.25, %v1363_v2  ;;  %v1421_v31 = vmul.f32 0.75, %v1368_v4  ;;  %v1544_v3 = vld [vmem:[#allocation2 + $0x80] sm:$0xff]  ;;  %v1546_v9 = vld [vmem:[#allocation2 + $0x90] sm:$0xff] }
 0x27e   : > { %1380 = vst [vmem:[%s3053_s24 + $0x8] sm:$0xff] %v1376_v19  ;;  %1381 = vst [vmem:[%s3053_s24 + $0x10] sm:$0xff] %v1377_v20  ;;  %v1402_v35 = vadd.f32 %v1398_v25, %v1390_v24  ;;  %v1414_v36 = vmul.f32 0.25, %v1364_v5  ;;  %v1422_v37 = vmul.f32 0.75, %v1369_v6  ;;  %v1415_v38 = vmul.f32 0.25, %v1365_v11  ;;  %v1547_v10 = vld [vmem:[#allocation2 + $0x98] sm:$0xff] }
 0x27f   : > { %2466 = vst [vmem:[%s3053_s24 + $0x28] sm:$0xff] %v1400_v21  ;;  %1382 = vst [vmem:[%s3053_s24 + $0x18] sm:$0xff] %v1378_v23  ;;  %v1424_v39 = vadd.f32 %v1420_v29, %v1412_v26  ;;  %v1425_v40 = vadd.f32 %v1421_v31, %v1413_v30  ;;  %v1423_v41 = vmul.f32 0.75, %v1370_v12  ;;  %v1446_v42 = vmul.f32 0.25, %v1442_v27  ;;  %v1595_v23 = vld [vmem:[#allocation2 + $0xa0] sm:$0xff]  ;;  %v1598_v30 = vld [vmem:[#allocation2 + $0xb8] sm:$0xff] }
 0x280   : > { %2467 = vst [vmem:[%s3053_s24 + $0x30] sm:$0xff] %v1401_v28  ;;  %2468 = vst [vmem:[%s3053_s24 + $0x38] sm:$0xff] %v1402_v35  ;;  %v1426_v43 = vadd.f32 %v1422_v37, %v1414_v36  ;;  %v1447_v1 = vmul.f32 0.25, %v1443_v32  ;;  %v1448_v44 = vmul.f32 0.25, %v1444_v33  ;;  %v1449_v45 = vmul.f32 0.25, %v1445_v34  ;;  %v1596_v28 = vld [vmem:[#allocation2 + $0xa8] sm:$0xff] }
 0x281   : > { %2469 = vst [vmem:[%s3053_s24 + $0x40] sm:$0xff] %v1424_v39  ;;  %2470 = vst [vmem:[%s3053_s24 + $0x48] sm:$0xff] %v1425_v40  ;;  %v1427_v47 = vadd.f32 %v1423_v41, %v1415_v38  ;;  %v1450_v48 = vadd.f32 %v1446_v42, %v1420_v29  ;;  %v1471_v49 = vmul.f32 0.75, %v1442_v27  ;;  %v1472_v50 = vmul.f32 0.75, %v1443_v32  ;;  %v1597_v29 = vld [vmem:[#allocation2 + $0xb0] sm:$0xff] }
 0x282   : > { %2471 = vst [vmem:[%s3053_s24 + $0x50] sm:$0xff] %v1426_v43  ;;  %v1451_v54 = vadd.f32 %v1447_v1, %v1421_v31  ;;  %v1452_v55 = vadd.f32 %v1448_v44, %v1422_v37  ;;  %v1453_v56 = vadd.f32 %v1449_v45, %v1423_v41  ;;  %v1473_v57 = vmul.f32 0.75, %v1444_v33  ;;  %v1646_v43 = vld [vmem:[#allocation2 + $0xc0] sm:$0xff] }
 0x283   : > { %2472 = vst [vmem:[%s3053_s24 + $0x58] sm:$0xff] %v1427_v47  ;;  %2473 = vst [vmem:[%s3053_s24 + $0x60] sm:$0xff] %v1450_v48  ;;  %v1475_v58 = vadd.f32 %v1471_v49, %v3419_v8  ;;  %v1476_v59 = vadd.f32 %v1472_v50, %v1396_v14  ;;  %v1474_v60 = vmul.f32 0.75, %v1445_v34  ;;  %v1497_v61 = vmul.f32 0.25, %v1493_v46  ;;  %v1545_v8 = vld [vmem:[#allocation2 + $0x88] sm:$0xff]  ;;  %v1648_v48 = vld [vmem:[#allocation2 + $0xd0] sm:$0xff] }
 0x284   : > { %2474 = vst [vmem:[%s3053_s24 + $0x68] sm:$0xff] %v1451_v54  ;;  %2475 = vst [vmem:[%s3053_s24 + $0x70] sm:$0xff] %v1452_v55  ;;  %v1477_v62 = vadd.f32 %v1473_v57, %v1397_v22  ;;  %v1498_v63 = vmul.f32 0.25, %v1494_v51  ;;  %v1499_v0 = vmul.f32 0.25, %v1495_v52  ;;  %v1500_v2 = vmul.f32 0.25, %v1496_v53  ;;  %v1647_v47 = vld [vmem:[#allocation2 + $0xc8] sm:$0xff] }
 0x285   : > { %2476 = vst [vmem:[%s3053_s24 + $0x78] sm:$0xff] %v1453_v56  ;;  %2477 = vst [vmem:[%s3053_s24 + $0x80] sm:$0xff] %v1475_v58  ;;  %v1478_v4 = vadd.f32 %v1474_v60, %v1398_v25  ;;  %v1501_v5 = vadd.f32 %v1497_v61, %v1471_v49  ;;  %v1522_v6 = vmul.f32 0.75, %v1493_v46  ;;  %v1523_v7 = vmul.f32 0.75, %v1494_v51  ;;  %v1649_v49 = vld [vmem:[#allocation2 + $0xd8] sm:$0xff] }
 0x286   : > { %2478 = vst [vmem:[%s3053_s24 + $0x88] sm:$0xff] %v1476_v59  ;;  %2479 = vst [vmem:[%s3053_s24 + $0x90] sm:$0xff] %v1477_v62  ;;  %v1502_v11 = vadd.f32 %v1498_v63, %v1472_v50  ;;  %v1503_v12 = vadd.f32 %v1499_v0, %v1473_v57  ;;  %v1504_v13 = vadd.f32 %v1500_v2, %v1474_v60  ;;  %v1524_v14 = vmul.f32 0.75, %v1495_v52  ;;  %v1697_v62 = vld [vmem:[#allocation2 + $0xe0] sm:$0xff] }
 0x287   : > { %2480 = vst [vmem:[%s3053_s24 + $0x98] sm:$0xff] %v1478_v4  ;;  %2481 = vst [vmem:[%s3053_s24 + $0xa0] sm:$0xff] %v1501_v5  ;;  %v1526_v15 = vadd.f32 %v1522_v6, %v1446_v42  ;;  %v1527_v16 = vadd.f32 %v1523_v7, %v1447_v1  ;;  %v1525_v17 = vmul.f32 0.75, %v1496_v53  ;;  %v1548_v18 = vmul.f32 0.25, %v1544_v3  ;;  %v1698_v4 = vld [vmem:[#allocation2 + $0xe8] sm:$0xff]  ;;  %v1699_v5 = vld [vmem:[#allocation2 + $0xf0] sm:$0xff] }
 0x288   : > { %2482 = vst [vmem:[%s3053_s24 + $0xa8] sm:$0xff] %v1502_v11  ;;  %2483 = vst [vmem:[%s3053_s24 + $0xb0] sm:$0xff] %v1503_v12  ;;  %v1528_v19 = vadd.f32 %v1524_v14, %v1448_v44  ;;  %v1549_v20 = vmul.f32 0.25, %v1545_v8  ;;  %v1550_v21 = vmul.f32 0.25, %v1546_v9  ;;  %v1551_v22 = vmul.f32 0.25, %v1547_v10 }
 0x289   : > { %2484 = vst [vmem:[%s3053_s24 + $0xb8] sm:$0xff] %v1504_v13  ;;  %2485 = vst [vmem:[%s3053_s24 + $0xc0] sm:$0xff] %v1526_v15  ;;  %v1529_v24 = vadd.f32 %v1525_v17, %v1449_v45  ;;  %v1552_v25 = vadd.f32 %v1548_v18, %v1522_v6  ;;  %v1573_v26 = vmul.f32 0.75, %v1544_v3  ;;  %v1574_v27 = vmul.f32 0.75, %v1545_v8  ;;  %v1700_v6 = vld [vmem:[#allocation2 + $0xf8] sm:$0xff] }
 0x28a   : > { %2486 = vst [vmem:[%s3053_s24 + $0xc8] sm:$0xff] %v1527_v16  ;;  %2487 = vst [vmem:[%s3053_s24 + $0xd0] sm:$0xff] %v1528_v19  ;;  %v1553_v31 = vadd.f32 %v1549_v20, %v1523_v7  ;;  %v1554_v32 = vadd.f32 %v1550_v21, %v1524_v14  ;;  %v1555_v33 = vadd.f32 %v1551_v22, %v1525_v17  ;;  %v1575_v34 = vmul.f32 0.75, %v1546_v9  ;;  %v1748_v19 = vld [vmem:[#allocation2 + $0x100] sm:$0xff] }
 0x28b   : > { %2488 = vst [vmem:[%s3053_s24 + $0xd8] sm:$0xff] %v1529_v24  ;;  %2489 = vst [vmem:[%s3053_s24 + $0xe0] sm:$0xff] %v1552_v25  ;;  %v1577_v35 = vadd.f32 %v1573_v26, %v1497_v61  ;;  %v1578_v36 = vadd.f32 %v1574_v27, %v1498_v63  ;;  %v1576_v37 = vmul.f32 0.75, %v1547_v10  ;;  %v1599_v38 = vmul.f32 0.25, %v1595_v23  ;;  %v1749_v24 = vld [vmem:[#allocation2 + $0x108] sm:$0xff]  ;;  %v1750_v25 = vld [vmem:[#allocation2 + $0x110] sm:$0xff] }
 0x28c   : > { %2490 = vst [vmem:[%s3053_s24 + $0xe8] sm:$0xff] %v1553_v31  ;;  %2491 = vst [vmem:[%s3053_s24 + $0xf0] sm:$0xff] %v1554_v32  ;;  %v1579_v39 = vadd.f32 %v1575_v34, %v1499_v0  ;;  %v1600_v40 = vmul.f32 0.25, %v1596_v28  ;;  %v1601_v41 = vmul.f32 0.25, %v1597_v29  ;;  %v1602_v42 = vmul.f32 0.25, %v1598_v30 }
 0x28d   : > { %2492 = vst [vmem:[%s3053_s24 + $0xf8] sm:$0xff] %v1555_v33  ;;  %2493 = vst [vmem:[%s3053_s24 + $0x100] sm:$0xff] %v1577_v35  ;;  %v1580_v1 = vadd.f32 %v1576_v37, %v1500_v2  ;;  %v1603_v44 = vadd.f32 %v1599_v38, %v1573_v26  ;;  %v1624_v45 = vmul.f32 0.75, %v1595_v23  ;;  %v1625_v46 = vmul.f32 0.75, %v1596_v28  ;;  %v1751_v26 = vld [vmem:[#allocation2 + $0x118] sm:$0xff] }
 0x28e   : > { %2494 = vst [vmem:[%s3053_s24 + $0x108] sm:$0xff] %v1578_v36  ;;  %2495 = vst [vmem:[%s3053_s24 + $0x110] sm:$0xff] %v1579_v39  ;;  %v1604_v50 = vadd.f32 %v1600_v40, %v1574_v27  ;;  %v1605_v51 = vadd.f32 %v1601_v41, %v1575_v34  ;;  %v1606_v52 = vadd.f32 %v1602_v42, %v1576_v37  ;;  %v1626_v53 = vmul.f32 0.75, %v1597_v29  ;;  %v1799_v39 = vld [vmem:[#allocation2 + $0x120] sm:$0xff] }
 0x28f   : > { %2496 = vst [vmem:[%s3053_s24 + $0x118] sm:$0xff] %v1580_v1  ;;  %2497 = vst [vmem:[%s3053_s24 + $0x120] sm:$0xff] %v1603_v44  ;;  %v1628_v54 = vadd.f32 %v1624_v45, %v1548_v18  ;;  %v1629_v55 = vadd.f32 %v1625_v46, %v1549_v20  ;;  %v1627_v56 = vmul.f32 0.75, %v1598_v30  ;;  %v1650_v57 = vmul.f32 0.25, %v1646_v43  ;;  %v1800_v1 = vld [vmem:[#allocation2 + $0x128] sm:$0xff]  ;;  %v1801_v44 = vld [vmem:[#allocation2 + $0x130] sm:$0xff] }
 0x290   : > { %2498 = vst [vmem:[%s3053_s24 + $0x128] sm:$0xff] %v1604_v50  ;;  %2499 = vst [vmem:[%s3053_s24 + $0x130] sm:$0xff] %v1605_v51  ;;  %v1630_v58 = vadd.f32 %v1626_v53, %v1550_v21  ;;  %v1651_v59 = vmul.f32 0.25, %v1647_v47  ;;  %v1652_v60 = vmul.f32 0.25, %v1648_v48  ;;  %v1653_v61 = vmul.f32 0.25, %v1649_v49 }
 0x291   : > { %2500 = vst [vmem:[%s3053_s24 + $0x138] sm:$0xff] %v1606_v52  ;;  %2501 = vst [vmem:[%s3053_s24 + $0x140] sm:$0xff] %v1628_v54  ;;  %v1631_v63 = vadd.f32 %v1627_v56, %v1551_v22  ;;  %v1654_v0 = vadd.f32 %v1650_v57, %v1624_v45  ;;  %v1675_v2 = vmul.f32 0.75, %v1646_v43  ;;  %v1676_v3 = vmul.f32 0.75, %v1647_v47  ;;  %v1802_v45 = vld [vmem:[#allocation2 + $0x138] sm:$0xff] }
 0x292   : > { %2502 = vst [vmem:[%s3053_s24 + $0x148] sm:$0xff] %v1629_v55  ;;  %2503 = vst [vmem:[%s3053_s24 + $0x150] sm:$0xff] %v1630_v58  ;;  %v1655_v7 = vadd.f32 %v1651_v59, %v1625_v46  ;;  %v1656_v8 = vadd.f32 %v1652_v60, %v1626_v53  ;;  %v1657_v9 = vadd.f32 %v1653_v61, %v1627_v56  ;;  %v1677_v10 = vmul.f32 0.75, %v1648_v48  ;;  %v1850_v58 = vld [vmem:[#allocation2 + $0x140] sm:$0xff] }
 0x293   : > { %2504 = vst [vmem:[%s3053_s24 + $0x158] sm:$0xff] %v1631_v63  ;;  %2505 = vst [vmem:[%s3053_s24 + $0x160] sm:$0xff] %v1654_v0  ;;  %v1679_v11 = vadd.f32 %v1675_v2, %v1599_v38  ;;  %v1680_v12 = vadd.f32 %v1676_v3, %v1600_v40  ;;  %v1678_v13 = vmul.f32 0.75, %v1649_v49  ;;  %v1701_v14 = vmul.f32 0.25, %v1697_v62  ;;  %v1851_v63 = vld [vmem:[#allocation2 + $0x148] sm:$0xff]  ;;  %v1852_v0 = vld [vmem:[#allocation2 + $0x150] sm:$0xff] }
 0x294   : > { %2506 = vst [vmem:[%s3053_s24 + $0x168] sm:$0xff] %v1655_v7  ;;  %2507 = vst [vmem:[%s3053_s24 + $0x170] sm:$0xff] %v1656_v8  ;;  %v1681_v15 = vadd.f32 %v1677_v10, %v1601_v41  ;;  %v1702_v16 = vmul.f32 0.25, %v1698_v4  ;;  %v1703_v17 = vmul.f32 0.25, %v1699_v5  ;;  %v1704_v18 = vmul.f32 0.25, %v1700_v6 }
 0x295   : > { %2508 = vst [vmem:[%s3053_s24 + $0x178] sm:$0xff] %v1657_v9  ;;  %2509 = vst [vmem:[%s3053_s24 + $0x180] sm:$0xff] %v1679_v11  ;;  %v1682_v20 = vadd.f32 %v1678_v13, %v1602_v42  ;;  %v1705_v21 = vadd.f32 %v1701_v14, %v1675_v2  ;;  %v1726_v22 = vmul.f32 0.75, %v1697_v62  ;;  %v1727_v23 = vmul.f32 0.75, %v1698_v4  ;;  %v1853_v2 = vld [vmem:[#allocation2 + $0x158] sm:$0xff] }
 0x296   : > { %2510 = vst [vmem:[%s3053_s24 + $0x188] sm:$0xff] %v1680_v12  ;;  %2511 = vst [vmem:[%s3053_s24 + $0x190] sm:$0xff] %v1681_v15  ;;  %v1706_v27 = vadd.f32 %v1702_v16, %v1676_v3  ;;  %v1707_v28 = vadd.f32 %v1703_v17, %v1677_v10  ;;  %v1708_v29 = vadd.f32 %v1704_v18, %v1678_v13  ;;  %v1728_v30 = vmul.f32 0.75, %v1699_v5  ;;  %v1901_v15 = vld [vmem:[#allocation2 + $0x160] sm:$0xff] }
 0x297   : > { %2512 = vst [vmem:[%s3053_s24 + $0x198] sm:$0xff] %v1682_v20  ;;  %2513 = vst [vmem:[%s3053_s24 + $0x1a0] sm:$0xff] %v1705_v21  ;;  %v1730_v31 = vadd.f32 %v1726_v22, %v1650_v57  ;;  %v1731_v32 = vadd.f32 %v1727_v23, %v1651_v59  ;;  %v1729_v33 = vmul.f32 0.75, %v1700_v6  ;;  %v1752_v34 = vmul.f32 0.25, %v1748_v19  ;;  %v1902_v20 = vld [vmem:[#allocation2 + $0x168] sm:$0xff]  ;;  %v1903_v21 = vld [vmem:[#allocation2 + $0x170] sm:$0xff] }
 0x298   : > { %2514 = vst [vmem:[%s3053_s24 + $0x1a8] sm:$0xff] %v1706_v27  ;;  %2515 = vst [vmem:[%s3053_s24 + $0x1b0] sm:$0xff] %v1707_v28  ;;  %v1732_v35 = vadd.f32 %v1728_v30, %v1652_v60  ;;  %v1753_v36 = vmul.f32 0.25, %v1749_v24  ;;  %v1754_v37 = vmul.f32 0.25, %v1750_v25  ;;  %v1755_v38 = vmul.f32 0.25, %v1751_v26 }
 0x299   : > { %2516 = vst [vmem:[%s3053_s24 + $0x1b8] sm:$0xff] %v1708_v29  ;;  %2517 = vst [vmem:[%s3053_s24 + $0x1c0] sm:$0xff] %v1730_v31  ;;  %v1733_v40 = vadd.f32 %v1729_v33, %v1653_v61  ;;  %v1756_v41 = vadd.f32 %v1752_v34, %v1726_v22  ;;  %v1777_v42 = vmul.f32 0.75, %v1748_v19  ;;  %v1778_v43 = vmul.f32 0.75, %v1749_v24  ;;  %v1904_v22 = vld [vmem:[#allocation2 + $0x178] sm:$0xff] }
 0x29a   : > { %2518 = vst [vmem:[%s3053_s24 + $0x1c8] sm:$0xff] %v1731_v32  ;;  %2519 = vst [vmem:[%s3053_s24 + $0x1d0] sm:$0xff] %v1732_v35  ;;  %v1757_v46 = vadd.f32 %v1753_v36, %v1727_v23  ;;  %v1758_v47 = vadd.f32 %v1754_v37, %v1728_v30  ;;  %v1759_v48 = vadd.f32 %v1755_v38, %v1729_v33  ;;  %v1779_v49 = vmul.f32 0.75, %v1750_v25  ;;  %v1952_v35 = vld [vmem:[#allocation2 + $0x180] sm:$0xff] }
 0x29b   : > { %2520 = vst [vmem:[%s3053_s24 + $0x1d8] sm:$0xff] %v1733_v40  ;;  %2521 = vst [vmem:[%s3053_s24 + $0x1e0] sm:$0xff] %v1756_v41  ;;  %v1781_v50 = vadd.f32 %v1777_v42, %v1701_v14  ;;  %v1782_v51 = vadd.f32 %v1778_v43, %v1702_v16  ;;  %v1780_v52 = vmul.f32 0.75, %v1751_v26  ;;  %v1803_v53 = vmul.f32 0.25, %v1799_v39  ;;  %v1953_v40 = vld [vmem:[#allocation2 + $0x188] sm:$0xff]  ;;  %v1954_v41 = vld [vmem:[#allocation2 + $0x190] sm:$0xff] }
 0x29c   : > { %2522 = vst [vmem:[%s3053_s24 + $0x1e8] sm:$0xff] %v1757_v46  ;;  %2523 = vst [vmem:[%s3053_s24 + $0x1f0] sm:$0xff] %v1758_v47  ;;  %v1783_v54 = vadd.f32 %v1779_v49, %v1703_v17  ;;  %v1804_v55 = vmul.f32 0.25, %v1800_v1  ;;  %v1805_v56 = vmul.f32 0.25, %v1801_v44  ;;  %v1806_v57 = vmul.f32 0.25, %v1802_v45 }
 0x29d   : > { %2524 = vst [vmem:[%s3053_s24 + $0x1f8] sm:$0xff] %v1759_v48  ;;  %2525 = vst [vmem:[%s3053_s24 + $0x200] sm:$0xff] %v1781_v50  ;;  %v1784_v59 = vadd.f32 %v1780_v52, %v1704_v18  ;;  %v1807_v60 = vadd.f32 %v1803_v53, %v1777_v42  ;;  %v1828_v61 = vmul.f32 0.75, %v1799_v39  ;;  %v1829_v62 = vmul.f32 0.75, %v1800_v1  ;;  %v1955_v42 = vld [vmem:[#allocation2 + $0x198] sm:$0xff] }
 0x29e   : > { %2526 = vst [vmem:[%s3053_s24 + $0x208] sm:$0xff] %v1782_v51  ;;  %2527 = vst [vmem:[%s3053_s24 + $0x210] sm:$0xff] %v1783_v54  ;;  %v1808_v3 = vadd.f32 %v1804_v55, %v1778_v43  ;;  %v1809_v4 = vadd.f32 %v1805_v56, %v1779_v49  ;;  %v1810_v5 = vadd.f32 %v1806_v57, %v1780_v52  ;;  %v1830_v6 = vmul.f32 0.75, %v1801_v44  ;;  %v2003_v54 = vld [vmem:[#allocation2 + $0x1a0] sm:$0xff] }
 0x29f   : > { %2528 = vst [vmem:[%s3053_s24 + $0x218] sm:$0xff] %v1784_v59  ;;  %2529 = vst [vmem:[%s3053_s24 + $0x220] sm:$0xff] %v1807_v60  ;;  %v1832_v7 = vadd.f32 %v1828_v61, %v1752_v34  ;;  %v1833_v8 = vadd.f32 %v1829_v62, %v1753_v36  ;;  %v1831_v9 = vmul.f32 0.75, %v1802_v45  ;;  %v1854_v10 = vmul.f32 0.25, %v1850_v58  ;;  %v2004_v59 = vld [vmem:[#allocation2 + $0x1a8] sm:$0xff]  ;;  %v2005_v60 = vld [vmem:[#allocation2 + $0x1b0] sm:$0xff] }
 0x2a0   : > { %2530 = vst [vmem:[%s3053_s24 + $0x228] sm:$0xff] %v1808_v3  ;;  %2531 = vst [vmem:[%s3053_s24 + $0x230] sm:$0xff] %v1809_v4  ;;  %v1834_v11 = vadd.f32 %v1830_v6, %v1754_v37  ;;  %v1855_v12 = vmul.f32 0.25, %v1851_v63  ;;  %v1856_v13 = vmul.f32 0.25, %v1852_v0  ;;  %v1857_v14 = vmul.f32 0.25, %v1853_v2 }
 0x2a1   : > { %2532 = vst [vmem:[%s3053_s24 + $0x238] sm:$0xff] %v1810_v5  ;;  %2533 = vst [vmem:[%s3053_s24 + $0x240] sm:$0xff] %v1832_v7  ;;  %v1835_v16 = vadd.f32 %v1831_v9, %v1755_v38  ;;  %v1858_v17 = vadd.f32 %v1854_v10, %v1828_v61  ;;  %v1879_v18 = vmul.f32 0.75, %v1850_v58  ;;  %v1880_v19 = vmul.f32 0.75, %v1851_v63  ;;  %v2006_v61 = vld [vmem:[#allocation2 + $0x1b8] sm:$0xff] }
 0x2a2   : > { %2534 = vst [vmem:[%s3053_s24 + $0x248] sm:$0xff] %v1833_v8  ;;  %2535 = vst [vmem:[%s3053_s24 + $0x250] sm:$0xff] %v1834_v11  ;;  %v1859_v23 = vadd.f32 %v1855_v12, %v1829_v62  ;;  %v1860_v24 = vadd.f32 %v1856_v13, %v1830_v6  ;;  %v1861_v25 = vadd.f32 %v1857_v14, %v1831_v9  ;;  %v1881_v26 = vmul.f32 0.75, %v1852_v0  ;;  %v2054_v11 = vld [vmem:[#allocation2 + $0x1c0] sm:$0xff] }
 0x2a3   : > { %2536 = vst [vmem:[%s3053_s24 + $0x258] sm:$0xff] %v1835_v16  ;;  %2537 = vst [vmem:[%s3053_s24 + $0x260] sm:$0xff] %v1858_v17  ;;  %v1883_v27 = vadd.f32 %v1879_v18, %v1803_v53  ;;  %v1884_v28 = vadd.f32 %v1880_v19, %v1804_v55  ;;  %v1882_v29 = vmul.f32 0.75, %v1853_v2  ;;  %v1905_v30 = vmul.f32 0.25, %v1901_v15  ;;  %v2055_v16 = vld [vmem:[#allocation2 + $0x1c8] sm:$0xff]  ;;  %v2056_v17 = vld [vmem:[#allocation2 + $0x1d0] sm:$0xff] }
 0x2a4   : > { %2538 = vst [vmem:[%s3053_s24 + $0x268] sm:$0xff] %v1859_v23  ;;  %2539 = vst [vmem:[%s3053_s24 + $0x270] sm:$0xff] %v1860_v24  ;;  %v1885_v31 = vadd.f32 %v1881_v26, %v1805_v56  ;;  %v1906_v32 = vmul.f32 0.25, %v1902_v20  ;;  %v1907_v33 = vmul.f32 0.25, %v1903_v21  ;;  %v1908_v34 = vmul.f32 0.25, %v1904_v22 }
 0x2a5   : > { %2540 = vst [vmem:[%s3053_s24 + $0x278] sm:$0xff] %v1861_v25  ;;  %2541 = vst [vmem:[%s3053_s24 + $0x280] sm:$0xff] %v1883_v27  ;;  %v1886_v36 = vadd.f32 %v1882_v29, %v1806_v57  ;;  %v1909_v37 = vadd.f32 %v1905_v30, %v1879_v18  ;;  %v1930_v38 = vmul.f32 0.75, %v1901_v15  ;;  %v1931_v39 = vmul.f32 0.75, %v1902_v20  ;;  %v2057_v18 = vld [vmem:[#allocation2 + $0x1d8] sm:$0xff] }
 0x2a6   : > { %2542 = vst [vmem:[%s3053_s24 + $0x288] sm:$0xff] %v1884_v28  ;;  %2543 = vst [vmem:[%s3053_s24 + $0x290] sm:$0xff] %v1885_v31  ;;  %v1910_v43 = vadd.f32 %v1906_v32, %v1880_v19  ;;  %v1911_v1 = vadd.f32 %v1907_v33, %v1881_v26  ;;  %v1912_v44 = vadd.f32 %v1908_v34, %v1882_v29  ;;  %v1932_v45 = vmul.f32 0.75, %v1903_v21  ;;  %v2105_v31 = vld [vmem:[#allocation2 + $0x1e0] sm:$0xff] }
 0x2a7   : > { %2544 = vst [vmem:[%s3053_s24 + $0x298] sm:$0xff] %v1886_v36  ;;  %2545 = vst [vmem:[%s3053_s24 + $0x2a0] sm:$0xff] %v1909_v37  ;;  %v1934_v46 = vadd.f32 %v1930_v38, %v1854_v10  ;;  %v1935_v47 = vadd.f32 %v1931_v39, %v1855_v12  ;;  %v1933_v48 = vmul.f32 0.75, %v1904_v22  ;;  %v1956_v49 = vmul.f32 0.25, %v1952_v35  ;;  %v2106_v36 = vld [vmem:[#allocation2 + $0x1e8] sm:$0xff]  ;;  %v2107_v37 = vld [vmem:[#allocation2 + $0x1f0] sm:$0xff] }
 0x2a8   : > { %2546 = vst [vmem:[%s3053_s24 + $0x2a8] sm:$0xff] %v1910_v43  ;;  %2547 = vst [vmem:[%s3053_s24 + $0x2b0] sm:$0xff] %v1911_v1  ;;  %v1936_v50 = vadd.f32 %v1932_v45, %v1856_v13  ;;  %v1957_v51 = vmul.f32 0.25, %v1953_v40  ;;  %v1958_v52 = vmul.f32 0.25, %v1954_v41  ;;  %v1959_v53 = vmul.f32 0.25, %v1955_v42 }
 0x2a9   : > { %2548 = vst [vmem:[%s3053_s24 + $0x2b8] sm:$0xff] %v1912_v44  ;;  %2549 = vst [vmem:[%s3053_s24 + $0x2c0] sm:$0xff] %v1934_v46  ;;  %v1937_v55 = vadd.f32 %v1933_v48, %v1857_v14  ;;  %v1960_v56 = vadd.f32 %v1956_v49, %v1930_v38  ;;  %v1981_v57 = vmul.f32 0.75, %v1952_v35  ;;  %v1982_v58 = vmul.f32 0.75, %v1953_v40  ;;  %v2108_v38 = vld [vmem:[#allocation2 + $0x1f8] sm:$0xff] }
 0x2aa   : > { %2550 = vst [vmem:[%s3053_s24 + $0x2c8] sm:$0xff] %v1935_v47  ;;  %2551 = vst [vmem:[%s3053_s24 + $0x2d0] sm:$0xff] %v1936_v50  ;;  %v1961_v62 = vadd.f32 %v1957_v51, %v1931_v39  ;;  %v1962_v63 = vadd.f32 %v1958_v52, %v1932_v45  ;;  %v1963_v0 = vadd.f32 %v1959_v53, %v1933_v48  ;;  %v1983_v2 = vmul.f32 0.75, %v1954_v41 }
 0x2ab   : > { %2552 = vst [vmem:[%s3053_s24 + $0x2d8] sm:$0xff] %v1937_v55  ;;  %2553 = vst [vmem:[%s3053_s24 + $0x2e0] sm:$0xff] %v1960_v56  ;;  %v1985_v3 = vadd.f32 %v1981_v57, %v1905_v30  ;;  %v1986_v4 = vadd.f32 %v1982_v58, %v1906_v32  ;;  %v1984_v5 = vmul.f32 0.75, %v1955_v42  ;;  %v2007_v6 = vmul.f32 0.25, %v2003_v54 }
 0x2ac   : > { %2554 = vst [vmem:[%s3053_s24 + $0x2e8] sm:$0xff] %v1961_v62  ;;  %2555 = vst [vmem:[%s3053_s24 + $0x2f0] sm:$0xff] %v1962_v63  ;;  %v1987_v7 = vadd.f32 %v1983_v2, %v1907_v33  ;;  %v2008_v8 = vmul.f32 0.25, %v2004_v59  ;;  %v2009_v9 = vmul.f32 0.25, %v2005_v60  ;;  %v2010_v10 = vmul.f32 0.25, %v2006_v61 }
 0x2ad   : > { %2556 = vst [vmem:[%s3053_s24 + $0x2f8] sm:$0xff] %v1963_v0  ;;  %2557 = vst [vmem:[%s3053_s24 + $0x300] sm:$0xff] %v1985_v3  ;;  %v1988_v12 = vadd.f32 %v1984_v5, %v1908_v34  ;;  %v2011_v13 = vadd.f32 %v2007_v6, %v1981_v57  ;;  %v2032_v14 = vmul.f32 0.75, %v2003_v54  ;;  %v2033_v15 = vmul.f32 0.75, %v2004_v59 }
 0x2ae   : > { %2558 = vst [vmem:[%s3053_s24 + $0x308] sm:$0xff] %v1986_v4  ;;  %2559 = vst [vmem:[%s3053_s24 + $0x310] sm:$0xff] %v1987_v7  ;;  %v2012_v19 = vadd.f32 %v2008_v8, %v1982_v58  ;;  %v2013_v20 = vadd.f32 %v2009_v9, %v1983_v2  ;;  %v2014_v21 = vadd.f32 %v2010_v10, %v1984_v5  ;;  %v2034_v22 = vmul.f32 0.75, %v2005_v60 }
 0x2af   : > { %2560 = vst [vmem:[%s3053_s24 + $0x318] sm:$0xff] %v1988_v12  ;;  %2561 = vst [vmem:[%s3053_s24 + $0x320] sm:$0xff] %v2011_v13  ;;  %v2036_v23 = vadd.f32 %v2032_v14, %v1956_v49  ;;  %v2037_v24 = vadd.f32 %v2033_v15, %v1957_v51  ;;  %v2035_v25 = vmul.f32 0.75, %v2006_v61  ;;  %v2058_v26 = vmul.f32 0.25, %v2054_v11 }
 0x2b0   : > { %2562 = vst [vmem:[%s3053_s24 + $0x328] sm:$0xff] %v2012_v19  ;;  %2563 = vst [vmem:[%s3053_s24 + $0x330] sm:$0xff] %v2013_v20  ;;  %v2038_v27 = vadd.f32 %v2034_v22, %v1958_v52  ;;  %v2059_v28 = vmul.f32 0.25, %v2055_v16  ;;  %v2060_v29 = vmul.f32 0.25, %v2056_v17  ;;  %v2061_v30 = vmul.f32 0.25, %v2057_v18 }
 0x2b1   : > { %2564 = vst [vmem:[%s3053_s24 + $0x338] sm:$0xff] %v2014_v21  ;;  %2565 = vst [vmem:[%s3053_s24 + $0x340] sm:$0xff] %v2036_v23  ;;  %v2039_v32 = vadd.f32 %v2035_v25, %v1959_v53  ;;  %v2062_v33 = vadd.f32 %v2058_v26, %v2032_v14  ;;  %v2083_v34 = vmul.f32 0.75, %v2054_v11  ;;  %v2084_v35 = vmul.f32 0.75, %v2055_v16 }
 0x2b2   : > { %2566 = vst [vmem:[%s3053_s24 + $0x348] sm:$0xff] %v2037_v24  ;;  %2567 = vst [vmem:[%s3053_s24 + $0x350] sm:$0xff] %v2038_v27  ;;  %v2063_v39 = vadd.f32 %v2059_v28, %v2033_v15  ;;  %v2064_v40 = vadd.f32 %v2060_v29, %v2034_v22  ;;  %v2065_v41 = vadd.f32 %v2061_v30, %v2035_v25  ;;  %v2085_v42 = vmul.f32 0.75, %v2056_v17 }
 0x2b3   : > { %2568 = vst [vmem:[%s3053_s24 + $0x358] sm:$0xff] %v2039_v32  ;;  %2569 = vst [vmem:[%s3053_s24 + $0x360] sm:$0xff] %v2062_v33  ;;  %v2087_v43 = vadd.f32 %v2083_v34, %v2007_v6  ;;  %v2088_v1 = vadd.f32 %v2084_v35, %v2008_v8  ;;  %v2086_v44 = vmul.f32 0.75, %v2057_v18  ;;  %v2109_v45 = vmul.f32 0.25, %v2105_v31 }
 0x2b4   : > { %2570 = vst [vmem:[%s3053_s24 + $0x368] sm:$0xff] %v2063_v39  ;;  %2571 = vst [vmem:[%s3053_s24 + $0x370] sm:$0xff] %v2064_v40  ;;  %v2089_v46 = vadd.f32 %v2085_v42, %v2009_v9  ;;  %v2110_v47 = vmul.f32 0.25, %v2106_v36  ;;  %v2111_v48 = vmul.f32 0.25, %v2107_v37  ;;  %v2112_v49 = vmul.f32 0.25, %v2108_v38 }
 0x2b5   : > { %2572 = vst [vmem:[%s3053_s24 + $0x378] sm:$0xff] %v2065_v41  ;;  %2573 = vst [vmem:[%s3053_s24 + $0x380] sm:$0xff] %v2087_v43  ;;  %v2090_v50 = vadd.f32 %v2086_v44, %v2010_v10  ;;  %v2113_v51 = vadd.f32 %v2109_v45, %v2083_v34  ;;  %v2134_v52 = vmul.f32 0.75, %v2105_v31  ;;  %v2135_v53 = vmul.f32 0.75, %v2106_v36 }
 0x2b6   : > { %2574 = vst [vmem:[%s3053_s24 + $0x388] sm:$0xff] %v2088_v1  ;;  %2575 = vst [vmem:[%s3053_s24 + $0x390] sm:$0xff] %v2089_v46  ;;  %v2114_v54 = vadd.f32 %v2110_v47, %v2084_v35  ;;  %v2115_v55 = vadd.f32 %v2111_v48, %v2085_v42  ;;  %v2116_v56 = vadd.f32 %v2112_v49, %v2086_v44  ;;  %v2136_v57 = vmul.f32 0.75, %v2107_v37 }
 0x2b7   : > { %2576 = vst [vmem:[%s3053_s24 + $0x398] sm:$0xff] %v2090_v50  ;;  %2577 = vst [vmem:[%s3053_s24 + $0x3a0] sm:$0xff] %v2113_v51  ;;  %v2138_v58 = vadd.f32 %v2134_v52, %v2058_v26  ;;  %v2139_v59 = vadd.f32 %v2135_v53, %v2059_v28  ;;  %v2137_v60 = vmul.f32 0.75, %v2108_v38  ;;  %v2159_v61 = vadd.f32 %v2134_v52, %v2109_v45 }
 0x2b8   : > { %2578 = vst [vmem:[%s3053_s24 + $0x3a8] sm:$0xff] %v2114_v54  ;;  %2579 = vst [vmem:[%s3053_s24 + $0x3b0] sm:$0xff] %v2115_v55  ;;  %v2140_v62 = vadd.f32 %v2136_v57, %v2060_v29  ;;  %v2160_v63 = vadd.f32 %v2135_v53, %v2110_v47  ;;  %v2161_v0 = vadd.f32 %v2136_v57, %v2111_v48 }
 0x2b9   : > { %2580 = vst [vmem:[%s3053_s24 + $0x3b8] sm:$0xff] %v2116_v56  ;;  %2581 = vst [vmem:[%s3053_s24 + $0x3c0] sm:$0xff] %v2138_v58  ;;  %v2141_v2 = vadd.f32 %v2137_v60, %v2061_v30  ;;  %v2162_v3 = vadd.f32 %v2137_v60, %v2112_v49 }
 0x2ba   : > { %2582 = vst [vmem:[%s3053_s24 + $0x3c8] sm:$0xff] %v2139_v59  ;;  %2585 = vst [vmem:[%s3053_s24 + $0x3e0] sm:$0xff] %v2159_v61 }
 0x2bb   : > { %2583 = vst [vmem:[%s3053_s24 + $0x3d0] sm:$0xff] %v2140_v62  ;;  %2586 = vst [vmem:[%s3053_s24 + $0x3e8] sm:$0xff] %v2160_v63 }
 0x2bc   : > { %2587 = vst [vmem:[%s3053_s24 + $0x3f0] sm:$0xff] %v2161_v0  ;;  %2584 = vst [vmem:[%s3053_s24 + $0x3d8] sm:$0xff] %v2141_v2 }
 0x2bd   : > { %2588 = vst [vmem:[%s3053_s24 + $0x3f8] sm:$0xff] %v2162_v3 }
 0x2be PF: > { %s15_s18 = sadd.s32 1, %s3004_s18  }
 0x2bf   : > { %p12_p5 = scmp.ge.s32.totalorder %s15_s18, 4  }
 0x2c1   :  { %14 = sbr.rel (!%p12_p5) target bundleno = 1 (0x1), region = 146 }

</bundles_post_ra>
